<compile_context>
chip_gen: v7x
topology: tpu7x:2x2x1
jax: 0.10.0
libtpu: 0.0.40
codegen_flags: <defaults>
</compile_context>

<pallas_src>
import functools

import jax
import jax.numpy as jnp
from jax.experimental import pallas as pl
from jax.experimental.pallas import tpu as pltpu


def _leaky(x):
    # LeakyReLU(negative_slope=0.2)
    return jnp.maximum(x, 0.2 * x)


def _round_up(x, m):
    return (x + m - 1) // m * m


# ------------------------- kernel A: edge message MLP ------------------------
def edge_mlp_kernel(xe_ref, w1_ref, b1_ref, w2_ref, b2_ref, w3_ref, b3_ref,
                    w4_ref, b4_ref, msg1_ref, msg2_ref):
    dot = functools.partial(jnp.dot, preferred_element_type=jnp.float32)
    h1 = msg1_ref.shape[1]
    h2 = msg2_ref.shape[1]

    h = _leaky(dot(xe_ref[...], w1_ref[...]) + b1_ref[...])
    h = _leaky(dot(h, w2_ref[...]) + b2_ref[...])
    h = _leaky(dot(h, w3_ref[...]) + b3_ref[...])
    z = dot(h, w4_ref[...]) + b4_ref[...]          # [tE, 1+h1+h2] single matmul
    k = jax.nn.sigmoid(z[:, :1])                   # gate (EUP)
    msg1_ref[...] = z[:, 1:1 + h1] * k             # [tE, h1]
    msg2_ref[...] = z[:, 1 + h1:1 + h1 + h2] * k   # [tE, h2]


# --------------------- kernel B: aggregation + reduce MLP --------------------
def aggregate_kernel(dst_ref, msg1_ref, msg2t_ref, nf_ref,
                     wra_ref, wrb_ref, wrc_ref, br1_ref, wr2_ref, br2_ref,
                     wr3_ref, br3_ref, wr4_ref, br4_ref,
                     out_ref, acc1_ref, acc2_ref):
    f32 = jnp.float32
    dot = functools.partial(jnp.dot, preferred_element_type=f32)
    h1 = msg1_ref.shape[1]
    h2 = msg2t_ref.shape[0]
    tN = out_ref.shape[0]
    tE = dst_ref.shape[1]

    j = pl.program_id(1)

    @pl.when(j == 0)
    def _init():
        acc1_ref[...] = jnp.zeros_like(acc1_ref)        # [tN, h1+1] sum + degree
        acc2_ref[...] = jnp.full_like(acc2_ref, -1e30)  # [tN, h2]   running max

    # adjacency mask built in-kernel from int32 dst (no dense [N,E] in HBM).
    node_ids = (pl.program_id(0) * tN
                + jax.lax.broadcasted_iota(jnp.int32, (tN, tE), 0))
    mask = node_ids == dst_ref[...]                     # padded dst=-1 never hits
    adj = mask.astype(f32)                              # only for the MXU matmul

    # sum aggregation (MXU) + in-degree (XLU lane reduce, overlaps for free)
    sum_delta = dot(adj, msg1_ref[...])                 # [tN, h1]
    deg_delta = jnp.sum(adj, axis=1, keepdims=True)     # [tN, 1]
    acc1_ref[...] += jnp.concatenate([sum_delta, deg_delta], axis=1)

    # max aggregation: lane-dense per-feature masked max (h2 is small/static).
    neg = jnp.float32(-1e30)
    cols = []
    for f in range(h2):
        row = msg2t_ref[f:f + 1, :]                     # [1, tE] (lane-major)
        m_f = jnp.max(jnp.where(mask, row, neg), axis=1, keepdims=True)
        cols.append(m_f)                                # [tN, 1]
    acc2_ref[...] = jnp.maximum(acc2_ref[...], jnp.concatenate(cols, axis=1))

    # finalize: node reduce MLP on the last E tile only.
    @pl.when(j == pl.num_programs(1) - 1)
    def _finalize():
        nf1 = acc1_ref[:, :h1]
        deg = acc1_ref[:, h1:h1 + 1]
        nf2 = jnp.where(deg > 0.5, acc2_ref[...], 0.0)  # DGL: 0 for deg==0 nodes
        r = _leaky(dot(nf_ref[...], wra_ref[...]) + dot(nf1, wrb_ref[...])
                   + dot(nf2, wrc_ref[...]) + br1_ref[...])
        r = _leaky(dot(r, wr2_ref[...]) + br2_ref[...])
        r = _leaky(dot(r, wr3_ref[...]) + br3_ref[...])
        out_ref[...] = dot(r, wr4_ref[...]) + br4_ref[...]   # lane-dense [tN,128]


# ----------------------------- parameters -----------------------------------
def _linear(key, fan_in, fan_out):
    """PyTorch nn.Linear default init, W stored as [in, out]."""
    kw, kb = jax.random.split(key)
    bound = 1.0 / float(fan_in) ** 0.5
    w = jax.random.uniform(kw, (fan_in, fan_out), jnp.float32, -bound, bound)
    b = jax.random.uniform(kb, (1, fan_out), jnp.float32, -bound, bound)
    return w, b


def init_params(key, in_nf, out_nf, in_ef=12, h1=10, h2=10):
    keys = jax.random.split(key, 8)
    w1, b1 = _linear(keys[0], 2 * in_nf + in_ef, 32)
    w2, b2 = _linear(keys[1], 32, 32)
    w3, b3 = _linear(keys[2], 32, 32)
    w4, b4 = _linear(keys[3], 32, 1 + h1 + h2)
    wr1, br1 = _linear(keys[4], in_nf + h1 + h2, 32)
    wr2, br2 = _linear(keys[5], 32, 32)
    wr3, br3 = _linear(keys[6], 32, 32)
    wr4, br4 = _linear(keys[7], 32, out_nf)
    return dict(w1=w1, b1=b1, w2=w2, b2=b2, w3=w3, b3=b3, w4=w4, b4=b4,
                wr1=wr1, br1=br1, wr2=wr2, br2=br2, wr3=wr3, br3=br3,
                wr4=wr4, br4=br4)


def prepare_kernel_params(p, in_nf, h1, h2, out_lanes=128):
    """Zero-row-pad w1 (fused input concat), split wr1, lane-pad last layer."""
    w1 = p["w1"]
    xraw = w1.shape[0]
    xcols = _round_up(xraw, 8)
    w1p = jnp.zeros((xcols, w1.shape[1]), jnp.float32).at[:xraw].set(w1)

    wr1 = p["wr1"]
    wra, wrb, wrc = wr1[:in_nf], wr1[in_nf:in_nf + h1], wr1[in_nf + h1:]

    out_nf = p["wr4"].shape[1]
    out_pad = _round_up(max(out_nf, out_lanes), out_lanes)
    wr4p = jnp.zeros((p["wr4"].shape[0], out_pad), jnp.float32).at[:, :out_nf].set(p["wr4"])
    br4p = jnp.zeros((1, out_pad), jnp.float32).at[:, :out_nf].set(p["br4"])

    return dict(
        edge=(w1p, p["b1"], p["w2"], p["b2"], p["w3"], p["b3"], p["w4"], p["b4"]),
        reduce=(wra, wrb, wrc, p["br1"], p["wr2"], p["br2"], p["wr3"], p["br3"],
                wr4p, br4p),
    )


# ------------------------------- wrapper ------------------------------------
@functools.partial(jax.jit, static_argnames=("num_nodes", "out_nf", "tile_n", "tile_e"))
def allconv_forward(nf, ef, src, dst, kparams, *, num_nodes, out_nf,
                    tile_n=128, tile_e=512):
    edge_w = kparams["edge"]
    red_w = kparams["reduce"]
    in_nf = nf.shape[1]
    in_ef = ef.shape[1]
    h1 = red_w[1].shape[0]          # wrb rows
    h2 = red_w[2].shape[0]          # wrc rows
    xraw = 2 * in_nf + in_ef
    xcols = edge_w[0].shape[0]
    out_pad = red_w[-2].shape[1]
    num_edges = src.shape[0]

    n_pad = _round_up(num_nodes, tile_n)
    e_pad = _round_up(num_edges, tile_e)

    # fused edge-feature concat (one DMA / one matmul per step in kernel A);
    # padded edges get dst=-1 so they never match any node in kernel B.
    xe_cat = jnp.concatenate([nf[src], nf[dst], ef], axis=1)
    xe = jnp.zeros((e_pad, xcols), jnp.float32).at[:num_edges, :xraw].set(xe_cat)
    dstp = jnp.full((1, e_pad), -1, jnp.int32).at[0, :num_edges].set(dst.astype(jnp.int32))
    nfp = jnp.zeros((n_pad, in_nf), jnp.float32).at[:num_nodes].set(nf)

    # ---- kernel A: edge MLP, once over E ------------------------------------
    def full_spec_1(shape):
        return pl.BlockSpec(shape, lambda i: (0, 0))

    msg1_slab, msg2_slab = pl.pallas_call(
        edge_mlp_kernel,
        out_shape=(jax.ShapeDtypeStruct((e_pad, h1), jnp.float32),
                   jax.ShapeDtypeStruct((e_pad, h2), jnp.float32)),
        grid_spec=pltpu.PrefetchScalarGridSpec(
            num_scalar_prefetch=0,
            grid=(e_pad // tile_e,),
            in_specs=[pl.BlockSpec((tile_e, xcols), lambda i: (i, 0))]
                     + [full_spec_1(w.shape) for w in edge_w],
            out_specs=[pl.BlockSpec((tile_e, h1), lambda i: (i, 0)),
                       pl.BlockSpec((tile_e, h2), lambda i: (i, 0))]),
        compiler_params=pltpu.CompilerParams(dimension_semantics=("parallel",)),
    )(xe, *edge_w)

    # transpose msg2 once in XLA so the in-kernel max is a lane reduce.
    msg2t = msg2_slab.T                                   # [h2, e_pad]

    # ---- kernel B: (N-tile, E-tile) aggregation + reduce MLP ----------------
    def full_spec_2(shape):
        return pl.BlockSpec(shape, lambda i, j: (0, 0))

    out = pl.pallas_call(
        aggregate_kernel,
        out_shape=jax.ShapeDtypeStruct((n_pad, out_pad), jnp.float32),
        grid_spec=pltpu.PrefetchScalarGridSpec(
            num_scalar_prefetch=0,
            grid=(n_pad // tile_n, e_pad // tile_e),
            in_specs=[pl.BlockSpec((1, tile_e), lambda i, j: (0, j)),       # dst ids
                      pl.BlockSpec((tile_e, h1), lambda i, j: (j, 0)),      # msg1
                      pl.BlockSpec((h2, tile_e), lambda i, j: (0, j)),      # msg2^T
                      pl.BlockSpec((tile_n, in_nf), lambda i, j: (i, 0))]   # node nf
                     + [full_spec_2(w.shape) for w in red_w],
            out_specs=pl.BlockSpec((tile_n, out_pad), lambda i, j: (i, 0)),
            scratch_shapes=[pltpu.VMEM((tile_n, h1 + 1), jnp.float32),
                            pltpu.VMEM((tile_n, h2), jnp.float32)]),
        compiler_params=pltpu.CompilerParams(
            dimension_semantics=("parallel", "arbitrary")),
    )(dstp, msg1_slab, msg2t, nfp, *red_w)

    return out[:num_nodes, :out_nf]


# --------------------------- pure-JAX reference ------------------------------
def reference_forward(nf, ef, src, dst, p, num_nodes, h1, h2):
    x = jnp.concatenate([nf[src], nf[dst], ef], axis=1)
    h = _leaky(x @ p["w1"] + p["b1"])
    h = _leaky(h @ p["w2"] + p["b2"])
    h = _leaky(h @ p["w3"] + p["b3"])
    z = h @ p["w4"] + p["b4"]
    k = jax.nn.sigmoid(z[:, :1])
    msg1 = z[:, 1:1 + h1] * k
    msg2 = z[:, 1 + h1:] * k
    nf1 = jax.ops.segment_sum(msg1, dst, num_segments=num_nodes)
    nf2 = jax.ops.segment_max(msg2, dst, num_segments=num_nodes)
    deg = jax.ops.segment_sum(jnp.ones((src.shape[0],), jnp.float32), dst,
                              num_segments=num_nodes)
    nf2 = jnp.where(deg[:, None] > 0, nf2, 0.0)
    xr = jnp.concatenate([nf, nf1, nf2], axis=1)
    h = _leaky(xr @ p["wr1"] + p["br1"])
    h = _leaky(h @ p["wr2"] + p["br2"])
    h = _leaky(h @ p["wr3"] + p["br3"])
    return h @ p["wr4"] + p["br4"]


if __name__ == "__main__":
    in_nf, out_nf, in_ef, h1, h2 = 8, 8, 12, 10, 10
    N, E = 200, 1000   # non-multiples of the tile sizes: exercises padding/masking

    key = jax.random.PRNGKey(0)
    k_nf, k_ef, k_src, k_dst, k_p = jax.random.split(key, 5)
    nf = jax.random.normal(k_nf, (N, in_nf), jnp.float32)
    ef = jax.random.normal(k_ef, (E, in_ef), jnp.float32)
    src = jax.random.randint(k_src, (E,), 0, N)
    dst = jax.random.randint(k_dst, (E,), 0, N)

    raw = init_params(k_p, in_nf, out_nf, in_ef, h1, h2)
    kparams = prepare_kernel_params(raw, in_nf, h1, h2)

    out = allconv_forward(nf, ef, src, dst, kparams, num_nodes=N, out_nf=out_nf)
    out = jax.block_until_ready(out)

    ref = reference_forward(nf, ef, src, dst, raw, N, h1, h2)
    assert out.shape == (N, out_nf)
    err = float(jnp.max(jnp.abs(out - ref)))
    assert jnp.allclose(out, ref, rtol=1e-2, atol=1e-2), err
    print("KERNEL_OK")
</pallas_src>

<mosaic_0001>
module attributes {stable_mosaic.version = 11 : i64} {
  func.func @edge_mlp_kernel(%arg0: i32, %arg1: memref<512x32xf32, #tpu.memory_space<vmem>>, %arg2: memref<32x32xf32, #tpu.memory_space<vmem>>, %arg3: memref<1x32xf32, #tpu.memory_space<vmem>>, %arg4: memref<32x32xf32, #tpu.memory_space<vmem>>, %arg5: memref<1x32xf32, #tpu.memory_space<vmem>>, %arg6: memref<32x32xf32, #tpu.memory_space<vmem>>, %arg7: memref<1x32xf32, #tpu.memory_space<vmem>>, %arg8: memref<32x21xf32, #tpu.memory_space<vmem>>, %arg9: memref<1x21xf32, #tpu.memory_space<vmem>>, %arg10: memref<512x10xf32, #tpu.memory_space<vmem>>, %arg11: memref<512x10xf32, #tpu.memory_space<vmem>>) attributes {dimension_semantics = [#tpu.dimension_semantics<parallel>], iteration_bounds = array<i64: 2>, scalar_prefetch = 0 : i64, scratch_operands = 0 : i64, tpu.core_type = #tpu.core_type<tc>, window_params = [{transform_indices = @transform_0, window_bounds = array<i64: 512, 32>}, {pipeline_mode = #tpu.pipeline_mode<synchronous>, transform_indices = @transform_1, window_bounds = array<i64: 32, 32>}, {pipeline_mode = #tpu.pipeline_mode<synchronous>, transform_indices = @transform_2, window_bounds = array<i64: 1, 32>}, {pipeline_mode = #tpu.pipeline_mode<synchronous>, transform_indices = @transform_3, window_bounds = array<i64: 32, 32>}, {pipeline_mode = #tpu.pipeline_mode<synchronous>, transform_indices = @transform_4, window_bounds = array<i64: 1, 32>}, {pipeline_mode = #tpu.pipeline_mode<synchronous>, transform_indices = @transform_5, window_bounds = array<i64: 32, 32>}, {pipeline_mode = #tpu.pipeline_mode<synchronous>, transform_indices = @transform_6, window_bounds = array<i64: 1, 32>}, {pipeline_mode = #tpu.pipeline_mode<synchronous>, transform_indices = @transform_7, window_bounds = array<i64: 32, 21>}, {pipeline_mode = #tpu.pipeline_mode<synchronous>, transform_indices = @transform_8, window_bounds = array<i64: 1, 21>}, {transform_indices = @transform_9, window_bounds = array<i64: 512, 10>}, {transform_indices = @transform_10, window_bounds = array<i64: 512, 10>}]} {
    %c0 = arith.constant 0 : index
    %c0_0 = arith.constant 0 : index
    %0 = vector.load %arg1[%c0, %c0_0] : memref<512x32xf32, #tpu.memory_space<vmem>>, vector<512x32xf32>
    %c0_1 = arith.constant 0 : index
    %c0_2 = arith.constant 0 : index
    %1 = vector.load %arg2[%c0_1, %c0_2] : memref<32x32xf32, #tpu.memory_space<vmem>>, vector<32x32xf32>
    %cst = arith.constant dense<0.000000e+00> : vector<512x32xf32>
    %2 = tpu.matmul %0, %1, %cst {dimension_numbers = #tpu.dot_dimension_numbers<[1], [0], [0], [1], [0, 0, 1, 1], [], []>} : vector<512x32xf32>, vector<32x32xf32>, vector<512x32xf32> -> vector<512x32xf32>
    %c0_3 = arith.constant 0 : index
    %c0_4 = arith.constant 0 : index
    %3 = vector.load %arg3[%c0_3, %c0_4] : memref<1x32xf32, #tpu.memory_space<vmem>>, vector<1x32xf32>
    %4 = vector.broadcast %3 : vector<1x32xf32> to vector<512x32xf32>
    %5 = arith.addf %2, %4 : vector<512x32xf32>
    %cst_5 = arith.constant 2.000000e-01 : f32
    %6 = vector.broadcast %cst_5 : f32 to vector<512x32xf32>
    %7 = arith.mulf %6, %5 : vector<512x32xf32>
    %8 = arith.maximumf %5, %7 : vector<512x32xf32>
    %c0_6 = arith.constant 0 : index
    %c0_7 = arith.constant 0 : index
    %9 = vector.load %arg4[%c0_6, %c0_7] : memref<32x32xf32, #tpu.memory_space<vmem>>, vector<32x32xf32>
    %cst_8 = arith.constant dense<0.000000e+00> : vector<512x32xf32>
    %10 = tpu.matmul %8, %9, %cst_8 {dimension_numbers = #tpu.dot_dimension_numbers<[1], [0], [0], [1], [0, 0, 1, 1], [], []>} : vector<512x32xf32>, vector<32x32xf32>, vector<512x32xf32> -> vector<512x32xf32>
    %c0_9 = arith.constant 0 : index
    %c0_10 = arith.constant 0 : index
    %11 = vector.load %arg5[%c0_9, %c0_10] : memref<1x32xf32, #tpu.memory_space<vmem>>, vector<1x32xf32>
    %12 = vector.broadcast %11 : vector<1x32xf32> to vector<512x32xf32>
    %13 = arith.addf %10, %12 : vector<512x32xf32>
    %cst_11 = arith.constant 2.000000e-01 : f32
    %14 = vector.broadcast %cst_11 : f32 to vector<512x32xf32>
    %15 = arith.mulf %14, %13 : vector<512x32xf32>
    %16 = arith.maximumf %13, %15 : vector<512x32xf32>
    %c0_12 = arith.constant 0 : index
    %c0_13 = arith.constant 0 : index
    %17 = vector.load %arg6[%c0_12, %c0_13] : memref<32x32xf32, #tpu.memory_space<vmem>>, vector<32x32xf32>
    %cst_14 = arith.constant dense<0.000000e+00> : vector<512x32xf32>
    %18 = tpu.matmul %16, %17, %cst_14 {dimension_numbers = #tpu.dot_dimension_numbers<[1], [0], [0], [1], [0, 0, 1, 1], [], []>} : vector<512x32xf32>, vector<32x32xf32>, vector<512x32xf32> -> vector<512x32xf32>
    %c0_15 = arith.constant 0 : index
    %c0_16 = arith.constant 0 : index
    %19 = vector.load %arg7[%c0_15, %c0_16] : memref<1x32xf32, #tpu.memory_space<vmem>>, vector<1x32xf32>
    %20 = vector.broadcast %19 : vector<1x32xf32> to vector<512x32xf32>
    %21 = arith.addf %18, %20 : vector<512x32xf32>
    %cst_17 = arith.constant 2.000000e-01 : f32
    %22 = vector.broadcast %cst_17 : f32 to vector<512x32xf32>
    %23 = arith.mulf %22, %21 : vector<512x32xf32>
    %24 = arith.maximumf %21, %23 : vector<512x32xf32>
    %c0_18 = arith.constant 0 : index
    %c0_19 = arith.constant 0 : index
    %25 = vector.load %arg8[%c0_18, %c0_19] : memref<32x21xf32, #tpu.memory_space<vmem>>, vector<32x21xf32>
    %cst_20 = arith.constant dense<0.000000e+00> : vector<512x21xf32>
    %26 = tpu.matmul %24, %25, %cst_20 {dimension_numbers = #tpu.dot_dimension_numbers<[1], [0], [0], [1], [0, 0, 1, 1], [], []>} : vector<512x32xf32>, vector<32x21xf32>, vector<512x21xf32> -> vector<512x21xf32>
    %c0_21 = arith.constant 0 : index
    %c0_22 = arith.constant 0 : index
    %27 = vector.load %arg9[%c0_21, %c0_22] : memref<1x21xf32, #tpu.memory_space<vmem>>, vector<1x21xf32>
    %28 = vector.broadcast %27 : vector<1x21xf32> to vector<512x21xf32>
    %29 = arith.addf %26, %28 : vector<512x21xf32>
    %30 = vector.extract_strided_slice %29 {offsets = [0, 0], sizes = [512, 1], strides = [1, 1]} : vector<512x21xf32> to vector<512x1xf32>
    %31 = arith.negf %30 : vector<512x1xf32>
    %32 = math.exp %31 : vector<512x1xf32>
    %cst_23 = arith.constant 1.000000e+00 : f32
    %33 = vector.broadcast %cst_23 : f32 to vector<512x1xf32>
    %34 = arith.addf %33, %32 : vector<512x1xf32>
    %35 = arith.divf %33, %34 : vector<512x1xf32>
    %36 = vector.extract_strided_slice %29 {offsets = [0, 1], sizes = [512, 10], strides = [1, 1]} : vector<512x21xf32> to vector<512x10xf32>
    %37 = vector.broadcast %35 : vector<512x1xf32> to vector<512x10xf32>
    %38 = arith.mulf %36, %37 : vector<512x10xf32>
    %c0_24 = arith.constant 0 : index
    %c0_25 = arith.constant 0 : index
    %39 = vector.load %arg10[%c0_24, %c0_25] : memref<512x10xf32, #tpu.memory_space<vmem>>, vector<512x10xf32>
    tpu.vector_store %arg10[%c0_24, %c0_25], %38 {strides = array<i32>} : memref<512x10xf32, #tpu.memory_space<vmem>>, vector<512x10xf32>,
    %40 = vector.extract_strided_slice %29 {offsets = [0, 11], sizes = [512, 10], strides = [1, 1]} : vector<512x21xf32> to vector<512x10xf32>
    %41 = vector.broadcast %35 : vector<512x1xf32> to vector<512x10xf32>
    %42 = arith.mulf %40, %41 : vector<512x10xf32>
    %c0_26 = arith.constant 0 : index
    %c0_27 = arith.constant 0 : index
    %43 = vector.load %arg11[%c0_26, %c0_27] : memref<512x10xf32, #tpu.memory_space<vmem>>, vector<512x10xf32>
    tpu.vector_store %arg11[%c0_26, %c0_27], %42 {strides = array<i32>} : memref<512x10xf32, #tpu.memory_space<vmem>>, vector<512x10xf32>,
    return
  }
  func.func @transform_0(%arg0: i32) -> (i32, i32) {
    %c0_i32 = arith.constant 0 : i32
    %c0_i32_0 = arith.constant 0 : i32
    return %arg0, %c0_i32 : i32, i32
  }
  func.func @transform_1(%arg0: i32) -> (i32, i32) {
    %c0_i32 = arith.constant 0 : i32
    %c0_i32_0 = arith.constant 0 : i32
    %c0_i32_1 = arith.constant 0 : i32
    return %c0_i32, %c0_i32_0 : i32, i32
  }
  func.func @transform_2(%arg0: i32) -> (i32, i32) {
    %c0_i32 = arith.constant 0 : i32
    %c0_i32_0 = arith.constant 0 : i32
    %c0_i32_1 = arith.constant 0 : i32
    return %c0_i32, %c0_i32_0 : i32, i32
  }
  func.func @transform_3(%arg0: i32) -> (i32, i32) {
    %c0_i32 = arith.constant 0 : i32
    %c0_i32_0 = arith.constant 0 : i32
    %c0_i32_1 = arith.constant 0 : i32
    return %c0_i32, %c0_i32_0 : i32, i32
  }
  func.func @transform_4(%arg0: i32) -> (i32, i32) {
    %c0_i32 = arith.constant 0 : i32
    %c0_i32_0 = arith.constant 0 : i32
    %c0_i32_1 = arith.constant 0 : i32
    return %c0_i32, %c0_i32_0 : i32, i32
  }
  func.func @transform_5(%arg0: i32) -> (i32, i32) {
    %c0_i32 = arith.constant 0 : i32
    %c0_i32_0 = arith.constant 0 : i32
    %c0_i32_1 = arith.constant 0 : i32
    return %c0_i32, %c0_i32_0 : i32, i32
  }
  func.func @transform_6(%arg0: i32) -> (i32, i32) {
    %c0_i32 = arith.constant 0 : i32
    %c0_i32_0 = arith.constant 0 : i32
    %c0_i32_1 = arith.constant 0 : i32
    return %c0_i32, %c0_i32_0 : i32, i32
  }
  func.func @transform_7(%arg0: i32) -> (i32, i32) {
    %c0_i32 = arith.constant 0 : i32
    %c0_i32_0 = arith.constant 0 : i32
    %c0_i32_1 = arith.constant 0 : i32
    return %c0_i32, %c0_i32_0 : i32, i32
  }
  func.func @transform_8(%arg0: i32) -> (i32, i32) {
    %c0_i32 = arith.constant 0 : i32
    %c0_i32_0 = arith.constant 0 : i32
    %c0_i32_1 = arith.constant 0 : i32
    return %c0_i32, %c0_i32_0 : i32, i32
  }
  func.func @transform_9(%arg0: i32) -> (i32, i32) {
    %c0_i32 = arith.constant 0 : i32
    %c0_i32_0 = arith.constant 0 : i32
    return %arg0, %c0_i32 : i32, i32
  }
  func.func @transform_10(%arg0: i32) -> (i32, i32) {
    %c0_i32 = arith.constant 0 : i32
    %c0_i32_0 = arith.constant 0 : i32
    return %arg0, %c0_i32 : i32, i32
  }
}

module attributes {stable_mosaic.version = 11 : i64} {
  func.func @aggregate_kernel(%arg0: i32, %arg1: i32, %arg2: memref<1x512xi32, #tpu.memory_space<vmem>>, %arg3: memref<512x10xf32, #tpu.memory_space<vmem>>, %arg4: memref<10x512xf32, #tpu.memory_space<vmem>>, %arg5: memref<128x8xf32, #tpu.memory_space<vmem>>, %arg6: memref<8x32xf32, #tpu.memory_space<vmem>>, %arg7: memref<10x32xf32, #tpu.memory_space<vmem>>, %arg8: memref<10x32xf32, #tpu.memory_space<vmem>>, %arg9: memref<1x32xf32, #tpu.memory_space<vmem>>, %arg10: memref<32x32xf32, #tpu.memory_space<vmem>>, %arg11: memref<1x32xf32, #tpu.memory_space<vmem>>, %arg12: memref<32x32xf32, #tpu.memory_space<vmem>>, %arg13: memref<1x32xf32, #tpu.memory_space<vmem>>, %arg14: memref<32x128xf32, #tpu.memory_space<vmem>>, %arg15: memref<1x128xf32, #tpu.memory_space<vmem>>, %arg16: memref<128x128xf32, #tpu.memory_space<vmem>>, %arg17: memref<128x11xf32, #tpu.memory_space<vmem>>, %arg18: memref<128x10xf32, #tpu.memory_space<vmem>>) attributes {dimension_semantics = [#tpu.dimension_semantics<parallel>, #tpu.dimension_semantics<arbitrary>], iteration_bounds = array<i64: 2, 2>, scalar_prefetch = 0 : i64, scratch_operands = 2 : i64, tpu.core_type = #tpu.core_type<tc>, window_params = [{transform_indices = @transform_0, window_bounds = array<i64: 1, 512>}, {transform_indices = @transform_1, window_bounds = array<i64: 512, 10>}, {transform_indices = @transform_2, window_bounds = array<i64: 10, 512>}, {transform_indices = @transform_3, window_bounds = array<i64: 128, 8>}, {pipeline_mode = #tpu.pipeline_mode<synchronous>, transform_indices = @transform_4, window_bounds = array<i64: 8, 32>}, {pipeline_mode = #tpu.pipeline_mode<synchronous>, transform_indices = @transform_5, window_bounds = array<i64: 10, 32>}, {pipeline_mode = #tpu.pipeline_mode<synchronous>, transform_indices = @transform_6, window_bounds = array<i64: 10, 32>}, {pipeline_mode = #tpu.pipeline_mode<synchronous>, transform_indices = @transform_7, window_bounds = array<i64: 1, 32>}, {pipeline_mode = #tpu.pipeline_mode<synchronous>, transform_indices = @transform_8, window_bounds = array<i64: 32, 32>}, {pipeline_mode = #tpu.pipeline_mode<synchronous>, transform_indices = @transform_9, window_bounds = array<i64: 1, 32>}, {pipeline_mode = #tpu.pipeline_mode<synchronous>, transform_indices = @transform_10, window_bounds = array<i64: 32, 32>}, {pipeline_mode = #tpu.pipeline_mode<synchronous>, transform_indices = @transform_11, window_bounds = array<i64: 1, 32>}, {pipeline_mode = #tpu.pipeline_mode<synchronous>, transform_indices = @transform_12, window_bounds = array<i64: 32, 128>}, {pipeline_mode = #tpu.pipeline_mode<synchronous>, transform_indices = @transform_13, window_bounds = array<i64: 1, 128>}, {transform_indices = @transform_14, window_bounds = array<i64: 128, 128>}]} {
    %c0_i32 = arith.constant 0 : i32
    %0 = arith.cmpi eq, %arg1, %c0_i32 : i32
    %1 = arith.extui %0 : i1 to i32
    %c0_i32_0 = arith.constant 0 : i32
    %2 = arith.cmpi ne, %1, %c0_i32_0 : i32
    scf.if %2 {
      %cst_45 = arith.constant 0.000000e+00 : f32
      %97 = vector.broadcast %cst_45 : f32 to vector<128x11xf32>
      %c0_46 = arith.constant 0 : index
      %c0_47 = arith.constant 0 : index
      %98 = vector.load %arg17[%c0_46, %c0_47] : memref<128x11xf32, #tpu.memory_space<vmem>>, vector<128x11xf32>
      tpu.vector_store %arg17[%c0_46, %c0_47], %97 {strides = array<i32>} : memref<128x11xf32, #tpu.memory_space<vmem>>, vector<128x11xf32>,
      %cst_48 = arith.constant -1.000000e+30 : f32
      %99 = vector.broadcast %cst_48 : f32 to vector<128x10xf32>
      %c0_49 = arith.constant 0 : index
      %c0_50 = arith.constant 0 : index
      %100 = vector.load %arg18[%c0_49, %c0_50] : memref<128x10xf32, #tpu.memory_space<vmem>>, vector<128x10xf32>
      tpu.vector_store %arg18[%c0_49, %c0_50], %99 {strides = array<i32>} : memref<128x10xf32, #tpu.memory_space<vmem>>, vector<128x10xf32>,
    } else {
    }
    %c128_i32 = arith.constant 128 : i32
    %3 = arith.muli %arg0, %c128_i32 : i32
    %4 = tpu.iota {dimensions = array<i32: 0>} : vector<128x512xi32>
    %5 = vector.broadcast %3 : i32 to vector<128x512xi32>
    %6 = arith.addi %5, %4 : vector<128x512xi32>
    %c0 = arith.constant 0 : index
    %c0_1 = arith.constant 0 : index
    %7 = vector.load %arg2[%c0, %c0_1] : memref<1x512xi32, #tpu.memory_space<vmem>>, vector<1x512xi32>
    %8 = vector.broadcast %7 : vector<1x512xi32> to vector<128x512xi32>
    %9 = arith.cmpi eq, %6, %8 : vector<128x512xi32>
    %10 = arith.extui %9 : vector<128x512xi1> to vector<128x512xi32>
    %11 = arith.sitofp %10 : vector<128x512xi32> to vector<128x512xf32>
    %c0_2 = arith.constant 0 : index
    %c0_3 = arith.constant 0 : index
    %12 = vector.load %arg3[%c0_2, %c0_3] : memref<512x10xf32, #tpu.memory_space<vmem>>, vector<512x10xf32>
    %cst = arith.constant dense<0.000000e+00> : vector<128x10xf32>
    %13 = tpu.matmul %11, %12, %cst {dimension_numbers = #tpu.dot_dimension_numbers<[1], [0], [0], [1], [0, 0, 1, 1], [], []>} : vector<128x512xf32>, vector<512x10xf32>, vector<128x10xf32> -> vector<128x10xf32>
    %cst_4 = arith.constant dense<0.000000e+00> : vector<128xf32>
    %14 = vector.multi_reduction <add>, %11, %cst_4 [1] : vector<128x512xf32> to vector<128xf32>
    %15 = vector.shape_cast %14 : vector<128xf32> to vector<128x1xf32>
    %c0_5 = arith.constant 0 : index
    %c0_6 = arith.constant 0 : index
    %16 = vector.load %arg17[%c0_5, %c0_6] : memref<128x11xf32, #tpu.memory_space<vmem>>, vector<128x11xf32>
    %17 = tpu.concatenate %13, %15 in 1 : vector<128x10xf32>, vector<128x1xf32> -> vector<128x11xf32>
    %18 = arith.addf %16, %17 : vector<128x11xf32>
    %c0_7 = arith.constant 0 : index
    %c0_8 = arith.constant 0 : index
    %19 = vector.load %arg17[%c0_7, %c0_8] : memref<128x11xf32, #tpu.memory_space<vmem>>, vector<128x11xf32>
    tpu.vector_store %arg17[%c0_7, %c0_8], %18 {strides = array<i32>} : memref<128x11xf32, #tpu.memory_space<vmem>>, vector<128x11xf32>,
    %c0_9 = arith.constant 0 : index
    %c0_10 = arith.constant 0 : index
    %20 = vector.load %arg4[%c0_9, %c0_10] : memref<10x512xf32, #tpu.memory_space<vmem>>, vector<1x512xf32>
    %cst_11 = arith.constant -1.000000e+30 : f32
    %21 = vector.shape_cast %20 : vector<1x512xf32> to vector<1x512xf32>
    %22 = vector.broadcast %21 : vector<1x512xf32> to vector<128x512xf32>
    %23 = vector.broadcast %cst_11 : f32 to vector<128x512xf32>
    %24 = arith.select %9, %22, %23 : vector<128x512xi1>, vector<128x512xf32>
    %cst_12 = arith.constant dense<0xFF800000> : vector<128xf32>
    %25 = vector.multi_reduction <maximumf>, %24, %cst_12 [1] : vector<128x512xf32> to vector<128xf32>
    %26 = vector.shape_cast %25 : vector<128xf32> to vector<128x1xf32>
    %c1 = arith.constant 1 : index
    %c0_13 = arith.constant 0 : index
    %27 = vector.load %arg4[%c1, %c0_13] : memref<10x512xf32, #tpu.memory_space<vmem>>, vector<1x512xf32>
    %cst_14 = arith.constant -1.000000e+30 : f32
    %28 = vector.shape_cast %27 : vector<1x512xf32> to vector<1x512xf32>
    %29 = vector.broadcast %28 : vector<1x512xf32> to vector<128x512xf32>
    %30 = vector.broadcast %cst_14 : f32 to vector<128x512xf32>
    %31 = arith.select %9, %29, %30 : vector<128x512xi1>, vector<128x512xf32>
    %cst_15 = arith.constant dense<0xFF800000> : vector<128xf32>
    %32 = vector.multi_reduction <maximumf>, %31, %cst_15 [1] : vector<128x512xf32> to vector<128xf32>
    %33 = vector.shape_cast %32 : vector<128xf32> to vector<128x1xf32>
    %c2 = arith.constant 2 : index
    %c0_16 = arith.constant 0 : index
    %34 = vector.load %arg4[%c2, %c0_16] : memref<10x512xf32, #tpu.memory_space<vmem>>, vector<1x512xf32>
    %cst_17 = arith.constant -1.000000e+30 : f32
    %35 = vector.shape_cast %34 : vector<1x512xf32> to vector<1x512xf32>
    %36 = vector.broadcast %35 : vector<1x512xf32> to vector<128x512xf32>
    %37 = vector.broadcast %cst_17 : f32 to vector<128x512xf32>
    %38 = arith.select %9, %36, %37 : vector<128x512xi1>, vector<128x512xf32>
    %cst_18 = arith.constant dense<0xFF800000> : vector<128xf32>
    %39 = vector.multi_reduction <maximumf>, %38, %cst_18 [1] : vector<128x512xf32> to vector<128xf32>
    %40 = vector.shape_cast %39 : vector<128xf32> to vector<128x1xf32>
    %c3 = arith.constant 3 : index
    %c0_19 = arith.constant 0 : index
    %41 = vector.load %arg4[%c3, %c0_19] : memref<10x512xf32, #tpu.memory_space<vmem>>, vector<1x512xf32>
    %cst_20 = arith.constant -1.000000e+30 : f32
    %42 = vector.shape_cast %41 : vector<1x512xf32> to vector<1x512xf32>
    %43 = vector.broadcast %42 : vector<1x512xf32> to vector<128x512xf32>
    %44 = vector.broadcast %cst_20 : f32 to vector<128x512xf32>
    %45 = arith.select %9, %43, %44 : vector<128x512xi1>, vector<128x512xf32>
    %cst_21 = arith.constant dense<0xFF800000> : vector<128xf32>
    %46 = vector.multi_reduction <maximumf>, %45, %cst_21 [1] : vector<128x512xf32> to vector<128xf32>
    %47 = vector.shape_cast %46 : vector<128xf32> to vector<128x1xf32>
    %c4 = arith.constant 4 : index
    %c0_22 = arith.constant 0 : index
    %48 = vector.load %arg4[%c4, %c0_22] : memref<10x512xf32, #tpu.memory_space<vmem>>, vector<1x512xf32>
    %cst_23 = arith.constant -1.000000e+30 : f32
    %49 = vector.shape_cast %48 : vector<1x512xf32> to vector<1x512xf32>
    %50 = vector.broadcast %49 : vector<1x512xf32> to vector<128x512xf32>
    %51 = vector.broadcast %cst_23 : f32 to vector<128x512xf32>
    %52 = arith.select %9, %50, %51 : vector<128x512xi1>, vector<128x512xf32>
    %cst_24 = arith.constant dense<0xFF800000> : vector<128xf32>
    %53 = vector.multi_reduction <maximumf>, %52, %cst_24 [1] : vector<128x512xf32> to vector<128xf32>
    %54 = vector.shape_cast %53 : vector<128xf32> to vector<128x1xf32>
    %c5 = arith.constant 5 : index
    %c0_25 = arith.constant 0 : index
    %55 = vector.load %arg4[%c5, %c0_25] : memref<10x512xf32, #tpu.memory_space<vmem>>, vector<1x512xf32>
    %cst_26 = arith.constant -1.000000e+30 : f32
    %56 = vector.shape_cast %55 : vector<1x512xf32> to vector<1x512xf32>
    %57 = vector.broadcast %56 : vector<1x512xf32> to vector<128x512xf32>
    %58 = vector.broadcast %cst_26 : f32 to vector<128x512xf32>
    %59 = arith.select %9, %57, %58 : vector<128x512xi1>, vector<128x512xf32>
    %cst_27 = arith.constant dense<0xFF800000> : vector<128xf32>
    %60 = vector.multi_reduction <maximumf>, %59, %cst_27 [1] : vector<128x512xf32> to vector<128xf32>
    %61 = vector.shape_cast %60 : vector<128xf32> to vector<128x1xf32>
    %c6 = arith.constant 6 : index
    %c0_28 = arith.constant 0 : index
    %62 = vector.load %arg4[%c6, %c0_28] : memref<10x512xf32, #tpu.memory_space<vmem>>, vector<1x512xf32>
    %cst_29 = arith.constant -1.000000e+30 : f32
    %63 = vector.shape_cast %62 : vector<1x512xf32> to vector<1x512xf32>
    %64 = vector.broadcast %63 : vector<1x512xf32> to vector<128x512xf32>
    %65 = vector.broadcast %cst_29 : f32 to vector<128x512xf32>
    %66 = arith.select %9, %64, %65 : vector<128x512xi1>, vector<128x512xf32>
    %cst_30 = arith.constant dense<0xFF800000> : vector<128xf32>
    %67 = vector.multi_reduction <maximumf>, %66, %cst_30 [1] : vector<128x512xf32> to vector<128xf32>
    %68 = vector.shape_cast %67 : vector<128xf32> to vector<128x1xf32>
    %c7 = arith.constant 7 : index
    %c0_31 = arith.constant 0 : index
    %69 = vector.load %arg4[%c7, %c0_31] : memref<10x512xf32, #tpu.memory_space<vmem>>, vector<1x512xf32>
    %cst_32 = arith.constant -1.000000e+30 : f32
    %70 = vector.shape_cast %69 : vector<1x512xf32> to vector<1x512xf32>
    %71 = vector.broadcast %70 : vector<1x512xf32> to vector<128x512xf32>
    %72 = vector.broadcast %cst_32 : f32 to vector<128x512xf32>
    %73 = arith.select %9, %71, %72 : vector<128x512xi1>, vector<128x512xf32>
    %cst_33 = arith.constant dense<0xFF800000> : vector<128xf32>
    %74 = vector.multi_reduction <maximumf>, %73, %cst_33 [1] : vector<128x512xf32> to vector<128xf32>
    %75 = vector.shape_cast %74 : vector<128xf32> to vector<128x1xf32>
    %c8 = arith.constant 8 : index
    %c0_34 = arith.constant 0 : index
    %76 = vector.load %arg4[%c8, %c0_34] : memref<10x512xf32, #tpu.memory_space<vmem>>, vector<1x512xf32>
    %cst_35 = arith.constant -1.000000e+30 : f32
    %77 = vector.shape_cast %76 : vector<1x512xf32> to vector<1x512xf32>
    %78 = vector.broadcast %77 : vector<1x512xf32> to vector<128x512xf32>
    %79 = vector.broadcast %cst_35 : f32 to vector<128x512xf32>
    %80 = arith.select %9, %78, %79 : vector<128x512xi1>, vector<128x512xf32>
    %cst_36 = arith.constant dense<0xFF800000> : vector<128xf32>
    %81 = vector.multi_reduction <maximumf>, %80, %cst_36 [1] : vector<128x512xf32> to vector<128xf32>
    %82 = vector.shape_cast %81 : vector<128xf32> to vector<128x1xf32>
    %c9 = arith.constant 9 : index
    %c0_37 = arith.constant 0 : index
    %83 = vector.load %arg4[%c9, %c0_37] : memref<10x512xf32, #tpu.memory_space<vmem>>, vector<1x512xf32>
    %cst_38 = arith.constant -1.000000e+30 : f32
    %84 = vector.shape_cast %83 : vector<1x512xf32> to vector<1x512xf32>
    %85 = vector.broadcast %84 : vector<1x512xf32> to vector<128x512xf32>
    %86 = vector.broadcast %cst_38 : f32 to vector<128x512xf32>
    %87 = arith.select %9, %85, %86 : vector<128x512xi1>, vector<128x512xf32>
    %cst_39 = arith.constant dense<0xFF800000> : vector<128xf32>
    %88 = vector.multi_reduction <maximumf>, %87, %cst_39 [1] : vector<128x512xf32> to vector<128xf32>
    %89 = vector.shape_cast %88 : vector<128xf32> to vector<128x1xf32>
    %c0_40 = arith.constant 0 : index
    %c0_41 = arith.constant 0 : index
    %90 = vector.load %arg18[%c0_40, %c0_41] : memref<128x10xf32, #tpu.memory_space<vmem>>, vector<128x10xf32>
    %91 = tpu.concatenate %26, %33, %40, %47, %54, %61, %68, %75, %82, %89 in 1 : vector<128x1xf32>, vector<128x1xf32>, vector<128x1xf32>, vector<128x1xf32>, vector<128x1xf32>, vector<128x1xf32>, vector<128x1xf32>, vector<128x1xf32>, vector<128x1xf32>, vector<128x1xf32> -> vector<128x10xf32>
    %92 = arith.maximumf %90, %91 : vector<128x10xf32>
    %c0_42 = arith.constant 0 : index
    %c0_43 = arith.constant 0 : index
    %93 = vector.load %arg18[%c0_42, %c0_43] : memref<128x10xf32, #tpu.memory_space<vmem>>, vector<128x10xf32>
    tpu.vector_store %arg18[%c0_42, %c0_43], %92 {strides = array<i32>} : memref<128x10xf32, #tpu.memory_space<vmem>>, vector<128x10xf32>,
    %c1_i32 = arith.constant 1 : i32
    %94 = arith.cmpi eq, %arg1, %c1_i32 : i32
    %95 = arith.extui %94 : i1 to i32
    %c0_i32_44 = arith.constant 0 : i32
    %96 = arith.cmpi ne, %95, %c0_i32_44 : i32
    scf.if %96 {
      %c0_45 = arith.constant 0 : index
      %c0_46 = arith.constant 0 : index
      %97 = vector.load %arg17[%c0_45, %c0_46] : memref<128x11xf32, #tpu.memory_space<vmem>>, vector<128x10xf32>
      %c0_47 = arith.constant 0 : index
      %c10 = arith.constant 10 : index
      %98 = vector.load %arg17[%c0_47, %c10] : memref<128x11xf32, #tpu.memory_space<vmem>>, vector<128x1xf32>
      %cst_48 = arith.constant 5.000000e-01 : f32
      %99 = vector.broadcast %cst_48 : f32 to vector<128x1xf32>
      %100 = arith.cmpf ogt, %98, %99 : vector<128x1xf32>
      %c0_49 = arith.constant 0 : index
      %c0_50 = arith.constant 0 : index
      %101 = vector.load %arg18[%c0_49, %c0_50] : memref<128x10xf32, #tpu.memory_space<vmem>>, vector<128x10xf32>
      %cst_51 = arith.constant 0.000000e+00 : f32
      %102 = vector.shape_cast %100 : vector<128x1xi1> to vector<128x1xi1>
      %103 = vector.broadcast %102 : vector<128x1xi1> to vector<128x10xi1>
      %104 = vector.broadcast %cst_51 : f32 to vector<128x10xf32>
      %105 = arith.select %103, %101, %104 : vector<128x10xi1>, vector<128x10xf32>
      %c0_52 = arith.constant 0 : index
      %c0_53 = arith.constant 0 : index
      %106 = vector.load %arg5[%c0_52, %c0_53] : memref<128x8xf32, #tpu.memory_space<vmem>>, vector<128x8xf32>
      %c0_54 = arith.constant 0 : index
      %c0_55 = arith.constant 0 : index
      %107 = vector.load %arg6[%c0_54, %c0_55] : memref<8x32xf32, #tpu.memory_space<vmem>>, vector<8x32xf32>
      %cst_56 = arith.constant dense<0.000000e+00> : vector<128x32xf32>
      %108 = tpu.matmul %106, %107, %cst_56 {dimension_numbers = #tpu.dot_dimension_numbers<[1], [0], [0], [1], [0, 0, 1, 1], [], []>} : vector<128x8xf32>, vector<8x32xf32>, vector<128x32xf32> -> vector<128x32xf32>
      %c0_57 = arith.constant 0 : index
      %c0_58 = arith.constant 0 : index
      %109 = vector.load %arg7[%c0_57, %c0_58] : memref<10x32xf32, #tpu.memory_space<vmem>>, vector<10x32xf32>
      %cst_59 = arith.constant dense<0.000000e+00> : vector<128x32xf32>
      %110 = tpu.matmul %97, %109, %cst_59 {dimension_numbers = #tpu.dot_dimension_numbers<[1], [0], [0], [1], [0, 0, 1, 1], [], []>} : vector<128x10xf32>, vector<10x32xf32>, vector<128x32xf32> -> vector<128x32xf32>
      %111 = arith.addf %108, %110 : vector<128x32xf32>
      %c0_60 = arith.constant 0 : index
      %c0_61 = arith.constant 0 : index
      %112 = vector.load %arg8[%c0_60, %c0_61] : memref<10x32xf32, #tpu.memory_space<vmem>>, vector<10x32xf32>
      %cst_62 = arith.constant dense<0.000000e+00> : vector<128x32xf32>
      %113 = tpu.matmul %105, %112, %cst_62 {dimension_numbers = #tpu.dot_dimension_numbers<[1], [0], [0], [1], [0, 0, 1, 1], [], []>} : vector<128x10xf32>, vector<10x32xf32>, vector<128x32xf32> -> vector<128x32xf32>
      %114 = arith.addf %111, %113 : vector<128x32xf32>
      %c0_63 = arith.constant 0 : index
      %c0_64 = arith.constant 0 : index
      %115 = vector.load %arg9[%c0_63, %c0_64] : memref<1x32xf32, #tpu.memory_space<vmem>>, vector<1x32xf32>
      %116 = vector.broadcast %115 : vector<1x32xf32> to vector<128x32xf32>
      %117 = arith.addf %114, %116 : vector<128x32xf32>
      %cst_65 = arith.constant 2.000000e-01 : f32
      %118 = vector.broadcast %cst_65 : f32 to vector<128x32xf32>
      %119 = arith.mulf %118, %117 : vector<128x32xf32>
      %120 = arith.maximumf %117, %119 : vector<128x32xf32>
      %c0_66 = arith.constant 0 : index
      %c0_67 = arith.constant 0 : index
      %121 = vector.load %arg10[%c0_66, %c0_67] : memref<32x32xf32, #tpu.memory_space<vmem>>, vector<32x32xf32>
      %cst_68 = arith.constant dense<0.000000e+00> : vector<128x32xf32>
      %122 = tpu.matmul %120, %121, %cst_68 {dimension_numbers = #tpu.dot_dimension_numbers<[1], [0], [0], [1], [0, 0, 1, 1], [], []>} : vector<128x32xf32>, vector<32x32xf32>, vector<128x32xf32> -> vector<128x32xf32>
      %c0_69 = arith.constant 0 : index
      %c0_70 = arith.constant 0 : index
      %123 = vector.load %arg11[%c0_69, %c0_70] : memref<1x32xf32, #tpu.memory_space<vmem>>, vector<1x32xf32>
      %124 = vector.broadcast %123 : vector<1x32xf32> to vector<128x32xf32>
      %125 = arith.addf %122, %124 : vector<128x32xf32>
      %cst_71 = arith.constant 2.000000e-01 : f32
      %126 = vector.broadcast %cst_71 : f32 to vector<128x32xf32>
      %127 = arith.mulf %126, %125 : vector<128x32xf32>
      %128 = arith.maximumf %125, %127 : vector<128x32xf32>
      %c0_72 = arith.constant 0 : index
      %c0_73 = arith.constant 0 : index
      %129 = vector.load %arg12[%c0_72, %c0_73] : memref<32x32xf32, #tpu.memory_space<vmem>>, vector<32x32xf32>
      %cst_74 = arith.constant dense<0.000000e+00> : vector<128x32xf32>
      %130 = tpu.matmul %128, %129, %cst_74 {dimension_numbers = #tpu.dot_dimension_numbers<[1], [0], [0], [1], [0, 0, 1, 1], [], []>} : vector<128x32xf32>, vector<32x32xf32>, vector<128x32xf32> -> vector<128x32xf32>
      %c0_75 = arith.constant 0 : index
      %c0_76 = arith.constant 0 : index
      %131 = vector.load %arg13[%c0_75, %c0_76] : memref<1x32xf32, #tpu.memory_space<vmem>>, vector<1x32xf32>
      %132 = vector.broadcast %131 : vector<1x32xf32> to vector<128x32xf32>
      %133 = arith.addf %130, %132 : vector<128x32xf32>
      %cst_77 = arith.constant 2.000000e-01 : f32
      %134 = vector.broadcast %cst_77 : f32 to vector<128x32xf32>
      %135 = arith.mulf %134, %133 : vector<128x32xf32>
      %136 = arith.maximumf %133, %135 : vector<128x32xf32>
      %c0_78 = arith.constant 0 : index
      %c0_79 = arith.constant 0 : index
      %137 = vector.load %arg14[%c0_78, %c0_79] : memref<32x128xf32, #tpu.memory_space<vmem>>, vector<32x128xf32>
      %cst_80 = arith.constant dense<0.000000e+00> : vector<128x128xf32>
      %138 = tpu.matmul %136, %137, %cst_80 {dimension_numbers = #tpu.dot_dimension_numbers<[1], [0], [0], [1], [0, 0, 1, 1], [], []>} : vector<128x32xf32>, vector<32x128xf32>, vector<128x128xf32> -> vector<128x128xf32>
      %c0_81 = arith.constant 0 : index
      %c0_82 = arith.constant 0 : index
      %139 = vector.load %arg15[%c0_81, %c0_82] : memref<1x128xf32, #tpu.memory_space<vmem>>, vector<1x128xf32>
      %140 = vector.broadcast %139 : vector<1x128xf32> to vector<128x128xf32>
      %141 = arith.addf %138, %140 : vector<128x128xf32>
      %c0_83 = arith.constant 0 : index
      %c0_84 = arith.constant 0 : index
      %142 = vector.load %arg16[%c0_83, %c0_84] : memref<128x128xf32, #tpu.memory_space<vmem>>, vector<128x128xf32>
      tpu.vector_store %arg16[%c0_83, %c0_84], %141 {strides = array<i32>} : memref<128x128xf32, #tpu.memory_space<vmem>>, vector<128x128xf32>,
    } else {
    }
    return
  }
  func.func @transform_0(%arg0: i32, %arg1: i32) -> (i32, i32) {
    %c0_i32 = arith.constant 0 : i32
    %c0_i32_0 = arith.constant 0 : i32
    return %c0_i32, %arg1 : i32, i32
  }
  func.func @transform_1(%arg0: i32, %arg1: i32) -> (i32, i32) {
    %c0_i32 = arith.constant 0 : i32
    %c0_i32_0 = arith.constant 0 : i32
    return %arg1, %c0_i32 : i32, i32
  }
  func.func @transform_2(%arg0: i32, %arg1: i32) -> (i32, i32) {
    %c0_i32 = arith.constant 0 : i32
    %c0_i32_0 = arith.constant 0 : i32
    return %c0_i32, %arg1 : i32, i32
  }
  func.func @transform_3(%arg0: i32, %arg1: i32) -> (i32, i32) {
    %c0_i32 = arith.constant 0 : i32
    %c0_i32_0 = arith.constant 0 : i32
    return %arg0, %c0_i32 : i32, i32
  }
  func.func @transform_4(%arg0: i32, %arg1: i32) -> (i32, i32) {
    %c0_i32 = arith.constant 0 : i32
    %c0_i32_0 = arith.constant 0 : i32
    %c0_i32_1 = arith.constant 0 : i32
    return %c0_i32, %c0_i32_0 : i32, i32
  }
  func.func @transform_5(%arg0: i32, %arg1: i32) -> (i32, i32) {
    %c0_i32 = arith.constant 0 : i32
    %c0_i32_0 = arith.constant 0 : i32
    %c0_i32_1 = arith.constant 0 : i32
    return %c0_i32, %c0_i32_0 : i32, i32
  }
  func.func @transform_6(%arg0: i32, %arg1: i32) -> (i32, i32) {
    %c0_i32 = arith.constant 0 : i32
    %c0_i32_0 = arith.constant 0 : i32
    %c0_i32_1 = arith.constant 0 : i32
    return %c0_i32, %c0_i32_0 : i32, i32
  }
  func.func @transform_7(%arg0: i32, %arg1: i32) -> (i32, i32) {
    %c0_i32 = arith.constant 0 : i32
    %c0_i32_0 = arith.constant 0 : i32
    %c0_i32_1 = arith.constant 0 : i32
    return %c0_i32, %c0_i32_0 : i32, i32
  }
  func.func @transform_8(%arg0: i32, %arg1: i32) -> (i32, i32) {
    %c0_i32 = arith.constant 0 : i32
    %c0_i32_0 = arith.constant 0 : i32
    %c0_i32_1 = arith.constant 0 : i32
    return %c0_i32, %c0_i32_0 : i32, i32
  }
  func.func @transform_9(%arg0: i32, %arg1: i32) -> (i32, i32) {
    %c0_i32 = arith.constant 0 : i32
    %c0_i32_0 = arith.constant 0 : i32
    %c0_i32_1 = arith.constant 0 : i32
    return %c0_i32, %c0_i32_0 : i32, i32
  }
  func.func @transform_10(%arg0: i32, %arg1: i32) -> (i32, i32) {
    %c0_i32 = arith.constant 0 : i32
    %c0_i32_0 = arith.constant 0 : i32
    %c0_i32_1 = arith.constant 0 : i32
    return %c0_i32, %c0_i32_0 : i32, i32
  }
  func.func @transform_11(%arg0: i32, %arg1: i32) -> (i32, i32) {
    %c0_i32 = arith.constant 0 : i32
    %c0_i32_0 = arith.constant 0 : i32
    %c0_i32_1 = arith.constant 0 : i32
    return %c0_i32, %c0_i32_0 : i32, i32
  }
  func.func @transform_12(%arg0: i32, %arg1: i32) -> (i32, i32) {
    %c0_i32 = arith.constant 0 : i32
    %c0_i32_0 = arith.constant 0 : i32
    %c0_i32_1 = arith.constant 0 : i32
    return %c0_i32, %c0_i32_0 : i32, i32
  }
  func.func @transform_13(%arg0: i32, %arg1: i32) -> (i32, i32) {
    %c0_i32 = arith.constant 0 : i32
    %c0_i32_0 = arith.constant 0 : i32
    %c0_i32_1 = arith.constant 0 : i32
    return %c0_i32, %c0_i32_0 : i32, i32
  }
  func.func @transform_14(%arg0: i32, %arg1: i32) -> (i32, i32) {
    %c0_i32 = arith.constant 0 : i32
    %c0_i32_0 = arith.constant 0 : i32
    return %arg0, %c0_i32 : i32, i32
  }
}

</mosaic_0001>

<bundles_post_ra>
// kernel: allconv_forward.2
= control target key start
LH: loop header
LB: loop body
LE: loop exit
PB: predicated region body
PF: predicated region fallthrough
CT: control target
= control target key end

     0   :  { %s6006_s13 = smov 0   ;;  %s7434_s0 = inlined_call_operand.vmem [shape: f32[1024,32], index: 0, kind: input, shape index: {}]   ;;  %s7435_s1 = inlined_call_operand.vmem [shape: f32[32,32], index: 1, kind: input, shape index: {}]   ;;  %s7436_s2 = inlined_call_operand.vmem [shape: f32[1,32], index: 2, kind: input, shape index: {}]   ;;  %s7437_s3 = inlined_call_operand.vmem [shape: f32[32,32], index: 3, kind: input, shape index: {}]   ;;  %s7438_s4 = inlined_call_operand.vmem [shape: f32[1,32], index: 4, kind: input, shape index: {}]   ;;  %s7439_s5 = inlined_call_operand.vmem [shape: f32[32,32], index: 5, kind: input, shape index: {}]   ;;  %s7440_s6 = inlined_call_operand.vmem [shape: f32[1,32], index: 6, kind: input, shape index: {}]   ;;  %s7441_s7 = inlined_call_operand.vmem [shape: f32[32,21], index: 7, kind: input, shape index: {}]   ;;  %s7442_s8 = inlined_call_operand.vmem [shape: f32[1,21], index: 8, kind: input, shape index: {}]   ;;  %s7443_s9 = inlined_call_operand.vmem [shape: f32[1024,10], index: 9, kind: output, shape index: {0}]   ;;  %s7444_s10 = inlined_call_operand.vmem [shape: f32[1024,10], index: 10, kind: output, shape index: {1}]  }
   0x1 LB: > { %s4613_s14 = sadd.s32 4294967295, %s5946_s13   ;;  %p4617_p0 = scmp.ge.s32.totalorder %s5946_s13, 1  ;;  %s5946_s13 = sphi %s6006_s13, %s21_s13  }
   0x2   : > { %p316_p1 = scmp.lt.s32.totalorder %s5946_s13, 3 }
   0x4   : > { %p317_p2 = pnand %p4617_p0, %p316_p1 }
   0x6   : > { %320 = sbr.rel (%p317_p2) target bundleno = 1437 (0x59d), region = 56 }
   0xd   : > { %v441_v0 = vld [vmem:[%s7435_s1] sm:$0xff]  ;;  %v442_v1 = vld [vmem:[%s7435_s1 + $0x8] sm:$0xff]  ;;  %v443_v2 = vld [vmem:[%s7435_s1 + $0x10] sm:$0xff]  ;;  %s4618_s21 = sshll.u32 %s4613_s14, 6  ;;  %vm452_vm0 = vcmask 261120   ;;  %s5949_s26 = smov 127  }
   0xe   : > { %v5638_v3 = vpack.c.bf16 %v442_v1, %v441_v0  ;;  %v444_v4 = vld [vmem:[%s7435_s1 + $0x18] sm:$0xff]  ;;  %p360_p3 = scmp.lt.s32.totalorder %s4618_s21, 127  ;;  %v1158_v50 = vld [vmem:[%s7437_s3] sm:$0xff]  ;;  %v1159_v51 = vld [vmem:[%s7437_s3 + $0x8] sm:$0xff]  ;;  %vm4202_vm1 = vcmask 80896  }
   0xf   : > { %v5642_v5 = vpack.c.bf16 %v444_v4, %v443_v2  ;;  %v5646_v53 = vpack.c.bf16 %v1159_v51, %v1158_v50  ;;  %v1160_v55 = vld [vmem:[%s7437_s3 + $0x10] sm:$0xff]  ;;  %v1161_v56 = vld [vmem:[%s7437_s3 + $0x18] sm:$0xff] }
  0x10   : > { %5639 = vmatprep.subr.bf16.mxu0 %v5638_v3  ;;  %s7500_s21 = smov (!%p360_p3, %s4618_s21), 127  ;;  %v5650_v58 = vpack.c.bf16 %v1161_v56, %v1160_v55 }
  0x11   : > { %5641 = vmatpush3.bf16.msra.mxu0 %v5638_v3  ;;  %s6026_s24 = sshll.u32 %s7500_s21, 3  ;;  %5647 = vmatprep.subr.bf16.mxu1 %v5646_v53 }
  0x12   : > { %5643 = vmatprep.subr.bf16.mxu0 %v5642_v5  ;;  %s6032_s27 = scalar_lea.vmem %s7434_s0, %s6026_s24  ;;  %5649 = vmatpush3.bf16.msra.mxu1 %v5646_v53  ;;  %s7038_s30 = scalar_lea.vmem %s7443_s9, %s6026_s24 }
  0x13   : > { %v377_v6 = vld [vmem:[%s6032_s27] sm:$0xff]  ;;  %v378_v7 = vld [vmem:[%s6032_s27 + $0x8] sm:$0xff]  ;;  %v379_v8 = vld [vmem:[%s6032_s27 + $0x10] sm:$0xff]  ;;  %5651 = vmatprep.subr.bf16.mxu1 %v5650_v58  ;;  %s7054_s14 = scalar_lea.vmem %s7444_s10, %s6026_s24 }
  0x14   : > { %5230 = vmatprep.mubr.msk.f32.mxu0 %vm452_vm0, %v377_v6  ;;  %v380_v9 = vld [vmem:[%s6032_s27 + $0x18] sm:$0xff]  ;;  %v381_v10 = vld [vmem:[%s6032_s27 + $0x20] sm:$0xff]  ;;  %v382_v11 = vld [vmem:[%s6032_s27 + $0x28] sm:$0xff] }
  0x15   : > { %5645 = vmatpush3.bf16.msra.mxu0 %v5642_v5  ;;  %v383_v12 = vld [vmem:[%s6032_s27 + $0x30] sm:$0xff]  ;;  %v384_v13 = vld [vmem:[%s6032_s27 + $0x38] sm:$0xff]  ;;  %v385_v14 = vld [vmem:[%s6032_s27 + $0x40] sm:$0xff] }
  0x16   : > { %v386_v15 = vld [vmem:[%s6032_s27 + $0x48] sm:$0xff]  ;;  %v387_v16 = vld [vmem:[%s6032_s27 + $0x50] sm:$0xff]  ;;  %v388_v17 = vld [vmem:[%s6032_s27 + $0x58] sm:$0xff]  ;;  %5653 = vmatpush3.bf16.msra.mxu1 %v5650_v58 }
  0x17   : > { %v389_v18 = vld [vmem:[%s6032_s27 + $0x60] sm:$0xff]  ;;  %v390_v19 = vld [vmem:[%s6032_s27 + $0x68] sm:$0xff]  ;;  %v391_v20 = vld [vmem:[%s6032_s27 + $0x70] sm:$0xff] }
  0x18   : > { %5231 = vmatmul.mubr.msk.f32.vlgmr.msra.gmra.mrb[0].mxu0 %vm452_vm0, %v378_v7  ;;  %v392_v21 = vld [vmem:[%s6032_s27 + $0x78] sm:$0xff]  ;;  %v393_v22 = vld [vmem:[%s6032_s27 + $0x80] sm:$0xff]  ;;  %v394_v23 = vld [vmem:[%s6032_s27 + $0x88] sm:$0xff] }
  0x19   : > { %5233 = vmatprep.mubr.msk.f32.mxu0 %vm452_vm0, %v379_v8  ;;  %v395_v24 = vld [vmem:[%s6032_s27 + $0x90] sm:$0xff]  ;;  %v396_v25 = vld [vmem:[%s6032_s27 + $0x98] sm:$0xff]  ;;  %v397_v26 = vld [vmem:[%s6032_s27 + $0xa0] sm:$0xff] }
  0x1a   : > { %v398_v27 = vld [vmem:[%s6032_s27 + $0xa8] sm:$0xff]  ;;  %v399_v28 = vld [vmem:[%s6032_s27 + $0xb0] sm:$0xff]  ;;  %v400_v29 = vld [vmem:[%s6032_s27 + $0xb8] sm:$0xff] }
  0x1b   : > { %v401_v30 = vld [vmem:[%s6032_s27 + $0xc0] sm:$0xff]  ;;  %v402_v31 = vld [vmem:[%s6032_s27 + $0xc8] sm:$0xff]  ;;  %v403_v32 = vld [vmem:[%s6032_s27 + $0xd0] sm:$0xff] }
  0x1c   : > { %5234 = vmatmul.mubr.msk.f32.gmra.mrb[2].mxu0 %vm452_vm0, %v380_v9  ;;  %v404_v33 = vld [vmem:[%s6032_s27 + $0xd8] sm:$0xff]  ;;  %v405_v34 = vld [vmem:[%s6032_s27 + $0xe0] sm:$0xff]  ;;  %v406_v35 = vld [vmem:[%s6032_s27 + $0xe8] sm:$0xff] }
  0x1d   : > { %5236 = vmatprep.mubr.msk.f32.mxu0 %vm452_vm0, %v381_v10  ;;  %v407_v36 = vld [vmem:[%s6032_s27 + $0xf0] sm:$0xff]  ;;  %v408_v37 = vld [vmem:[%s6032_s27 + $0xf8] sm:$0xff]  ;;  %v409_v38 = vld [vmem:[%s6032_s27 + $0x100] sm:$0xff] }
  0x1e   : > { %v410_v39 = vld [vmem:[%s6032_s27 + $0x108] sm:$0xff]  ;;  %v411_v40 = vld [vmem:[%s6032_s27 + $0x110] sm:$0xff]  ;;  %v412_v41 = vld [vmem:[%s6032_s27 + $0x118] sm:$0xff] }
  0x1f   : > { %v413_v42 = vld [vmem:[%s6032_s27 + $0x120] sm:$0xff]  ;;  %v414_v43 = vld [vmem:[%s6032_s27 + $0x128] sm:$0xff]  ;;  %v415_v44 = vld [vmem:[%s6032_s27 + $0x130] sm:$0xff] }
  0x20   : > { %5237 = vmatmul.mubr.msk.f32.gmra.mrb[4].mxu0 %vm452_vm0, %v382_v11  ;;  %v416_v45 = vld [vmem:[%s6032_s27 + $0x138] sm:$0xff]  ;;  %v417_v46 = vld [vmem:[%s6032_s27 + $0x140] sm:$0xff]  ;;  %v418_v47 = vld [vmem:[%s6032_s27 + $0x148] sm:$0xff] }
  0x21   : > { %5239 = vmatprep.mubr.msk.f32.mxu0 %vm452_vm0, %v383_v12  ;;  %v419_v48 = vld [vmem:[%s6032_s27 + $0x150] sm:$0xff]  ;;  %v420_v49 = vld [vmem:[%s6032_s27 + $0x158] sm:$0xff]  ;;  %v421_v52 = vld [vmem:[%s6032_s27 + $0x160] sm:$0xff] }
  0x22   : > { %v422_v54 = vld [vmem:[%s6032_s27 + $0x168] sm:$0xff]  ;;  %v423_v57 = vld [vmem:[%s6032_s27 + $0x170] sm:$0xff]  ;;  %v424_v59 = vld [vmem:[%s6032_s27 + $0x178] sm:$0xff] }
  0x23   : > { %v425_v60 = vld [vmem:[%s6032_s27 + $0x180] sm:$0xff]  ;;  %v426_v61 = vld [vmem:[%s6032_s27 + $0x188] sm:$0xff]  ;;  %v427_v62 = vld [vmem:[%s6032_s27 + $0x190] sm:$0xff] }
  0x24   : > { %5240 = vmatmul.mubr.msk.f32.gmra.mrb[6].mxu0 %vm452_vm0, %v384_v13  ;;  %v428_v63 = vld [vmem:[%s6032_s27 + $0x198] sm:$0xff]  ;;  %v429_v0 = vld [vmem:[%s6032_s27 + $0x1a0] sm:$0xff]  ;;  %v430_v1 = vld [vmem:[%s6032_s27 + $0x1a8] sm:$0xff] }
  0x25   : > { %5242 = vmatprep.mubr.msk.f32.mxu0 %vm452_vm0, %v385_v14  ;;  %v431_v2 = vld [vmem:[%s6032_s27 + $0x1b0] sm:$0xff]  ;;  %v432_v3 = vld [vmem:[%s6032_s27 + $0x1b8] sm:$0xff]  ;;  %v433_v4 = vld [vmem:[%s6032_s27 + $0x1c0] sm:$0xff] }
  0x26   : > { %v434_v5 = vld [vmem:[%s6032_s27 + $0x1c8] sm:$0xff]  ;;  %v435_v6 = vld [vmem:[%s6032_s27 + $0x1d0] sm:$0xff]  ;;  %v436_v7 = vld [vmem:[%s6032_s27 + $0x1d8] sm:$0xff] }
  0x27   : > { %v437_v8 = vld [vmem:[%s6032_s27 + $0x1e0] sm:$0xff]  ;;  %v438_v9 = vld [vmem:[%s6032_s27 + $0x1e8] sm:$0xff]  ;;  %v439_v10 = vld [vmem:[%s6032_s27 + $0x1f0] sm:$0xff] }
  0x28   : > { %5243 = vmatmul.mubr.msk.f32.gmra.mrb[8].mxu0 %vm452_vm0, %v386_v15  ;;  %v440_v11 = vld [vmem:[%s6032_s27 + $0x1f8] sm:$0xff]  ;;  %v1874_v12 = vld [vmem:[%s7439_s5] sm:$0xff]  ;;  %v1875_v13 = vld [vmem:[%s7439_s5 + $0x8] sm:$0xff]  ;;  %s5950_s27 = smov 117  }
  0x29   : > { %5245 = vmatprep.mubr.msk.f32.mxu0 %vm452_vm0, %v387_v16  ;;  %v5654_v14 = vpack.c.bf16 %v1875_v13, %v1874_v12  ;;  %v6183_v15 = vld [vmem:[%s7436_s2] ss:$0 sm:$0xff] }
  0x2b   : > { %5655 = vmatprep.subr.bf16.mxu0 %v5654_v14 }
  0x2c   : > { %5246 = vmatmul.mubr.msk.f32.gmra.mrb[10].mxu0 %vm452_vm0, %v388_v17 }
  0x2d   : > { %5248 = vmatprep.mubr.msk.f32.mxu0 %vm452_vm0, %v389_v18  ;;  %5657 = vmatpush3.bf16.msra.mxu0 %v5654_v14 }
  0x30   : > { %5249 = vmatmul.mubr.msk.f32.gmra.mrb[12].mxu0 %vm452_vm0, %v390_v19 }
  0x31   : > { %5251 = vmatprep.mubr.msk.f32.mxu0 %vm452_vm0, %v391_v20 }
  0x34   : > { %5252 = vmatmul.mubr.msk.f32.gmra.mrb[14].mxu0 %vm452_vm0, %v392_v21 }
  0x35   : > { %5254 = vmatprep.mubr.msk.f32.mxu0 %vm452_vm0, %v393_v22 }
  0x38   : > { %5255 = vmatmul.mubr.msk.f32.gmra.mrb[16].mxu0 %vm452_vm0, %v394_v23 }
  0x39   : > { %5257 = vmatprep.mubr.msk.f32.mxu0 %vm452_vm0, %v395_v24 }
  0x3c   : > { %5258 = vmatmul.mubr.msk.f32.gmra.mrb[18].mxu0 %vm452_vm0, %v396_v25  ;;  %v1876_v25 = vld [vmem:[%s7439_s5 + $0x10] sm:$0xff] }
  0x3d   : > { %5260 = vmatprep.mubr.msk.f32.mxu0 %vm452_vm0, %v397_v26  ;;  %v1877_v26 = vld [vmem:[%s7439_s5 + $0x18] sm:$0xff] }
  0x40   : > { %5261 = vmatmul.mubr.msk.f32.gmra.mrb[20].mxu0 %vm452_vm0, %v398_v27 }
  0x41   : > { %5263 = vmatprep.mubr.msk.f32.mxu0 %vm452_vm0, %v399_v28 }
  0x44   : > { %5264 = vmatmul.mubr.msk.f32.gmra.mrb[22].mxu0 %vm452_vm0, %v400_v29  ;;  %v5658_v29 = vpack.c.bf16 %v1877_v26, %v1876_v25 }
  0x45   : > { %5266 = vmatprep.mubr.msk.f32.mxu0 %vm452_vm0, %v401_v30 }
  0x46   : > { %5659 = vmatprep.subr.bf16.mxu0 %v5658_v29 }
  0x47   : > { %5661 = vmatpush3.bf16.msra.mxu0 %v5658_v29 }
  0x48   : > { %5267 = vmatmul.mubr.msk.f32.gmra.mrb[24].mxu0 %vm452_vm0, %v402_v31 }
  0x49   : > { %5269 = vmatprep.mubr.msk.f32.mxu0 %vm452_vm0, %v403_v32 }
  0x4c   : > { %5270 = vmatmul.mubr.msk.f32.gmra.mrb[26].mxu0 %vm452_vm0, %v404_v33 }
  0x4d   : > { %5272 = vmatprep.mubr.msk.f32.mxu0 %vm452_vm0, %v405_v34 }
  0x50   : > { %5273 = vmatmul.mubr.msk.f32.gmra.mrb[28].mxu0 %vm452_vm0, %v406_v35 }
  0x51   : > { %5275 = vmatprep.mubr.msk.f32.mxu0 %vm452_vm0, %v407_v36 }
  0x54   : > { %5276 = vmatmul.mubr.msk.f32.gmra.mrb[30].mxu0 %vm452_vm0, %v408_v37 }
  0x55   : > { %5278 = vmatprep.mubr.msk.f32.mxu0 %vm452_vm0, %v409_v38 }
  0x58   : > { %5279 = vmatmul.mubr.msk.f32.gmra.mrb[32].mxu0 %vm452_vm0, %v410_v39 }
  0x59   : > { %5281 = vmatprep.mubr.msk.f32.mxu0 %vm452_vm0, %v411_v40 }
  0x5c   : > { %5282 = vmatmul.mubr.msk.f32.gmra.mrb[34].mxu0 %vm452_vm0, %v412_v41 }
  0x5d   : > { %5284 = vmatprep.mubr.msk.f32.mxu0 %vm452_vm0, %v413_v42 }
  0x60   : > { %5285 = vmatmul.mubr.msk.f32.gmra.mrb[36].mxu0 %vm452_vm0, %v414_v43 }
  0x61   : > { %5287 = vmatprep.mubr.msk.f32.mxu0 %vm452_vm0, %v415_v44 }
  0x64   : > { %5288 = vmatmul.mubr.msk.f32.gmra.mrb[38].mxu0 %vm452_vm0, %v416_v45 }
  0x65   : > { %5290 = vmatprep.mubr.msk.f32.mxu0 %vm452_vm0, %v417_v46 }
  0x68   : > { %5291 = vmatmul.mubr.msk.f32.gmra.mrb[40].mxu0 %vm452_vm0, %v418_v47 }
  0x69   : > { %5293 = vmatprep.mubr.msk.f32.mxu0 %vm452_vm0, %v419_v48 }
  0x6c   : > { %5294 = vmatmul.mubr.msk.f32.gmra.mrb[42].mxu0 %vm452_vm0, %v420_v49 }
  0x6d   : > { %5296 = vmatprep.mubr.msk.f32.mxu0 %vm452_vm0, %v421_v52 }
  0x70   : > { %5297 = vmatmul.mubr.msk.f32.gmra.mrb[44].mxu0 %vm452_vm0, %v422_v54 }
  0x71   : > { %5299 = vmatprep.mubr.msk.f32.mxu0 %vm452_vm0, %v423_v57 }
  0x74   : > { %5300 = vmatmul.mubr.msk.f32.gmra.mrb[46].mxu0 %vm452_vm0, %v424_v59 }
  0x75   : > { %5302 = vmatprep.mubr.msk.f32.mxu0 %vm452_vm0, %v425_v60 }
  0x78   : > { %5303 = vmatmul.mubr.msk.f32.gmra.mrb[48].mxu0 %vm452_vm0, %v426_v61 }
  0x79   : > { %5305 = vmatprep.mubr.msk.f32.mxu0 %vm452_vm0, %v427_v62 }
  0x7c   : > { %5306 = vmatmul.mubr.msk.f32.gmra.mrb[50].mxu0 %vm452_vm0, %v428_v63 }
  0x7d   : > { %5308 = vmatprep.mubr.msk.f32.mxu0 %vm452_vm0, %v429_v0 }
  0x80   : > { %5309 = vmatmul.mubr.msk.f32.gmra.mrb[52].mxu0 %vm452_vm0, %v430_v1 }
  0x81   : > { %5311 = vmatprep.mubr.msk.f32.mxu0 %vm452_vm0, %v431_v2 }
  0x84   : > { %5312 = vmatmul.mubr.msk.f32.gmra.mrb[54].mxu0 %vm452_vm0, %v432_v3 }
  0x85   : > { %5314 = vmatprep.mubr.msk.f32.mxu0 %vm452_vm0, %v433_v4 }
  0x88   : > { %5315 = vmatmul.mubr.msk.f32.gmra.mrb[56].mxu0 %vm452_vm0, %v434_v5 }
  0x89   : > { %5317 = vmatprep.mubr.msk.f32.mxu0 %vm452_vm0, %v435_v6 }
  0x8c   : > { %5318 = vmatmul.mubr.msk.f32.gmra.mrb[58].mxu0 %vm452_vm0, %v436_v7 }
  0x8d   : > { %5320 = vmatprep.mubr.msk.f32.mxu0 %vm452_vm0, %v437_v8 }
  0x90   : > { %5321 = vmatmul.mubr.msk.f32.gmra.mrb[60].mxu0 %vm452_vm0, %v438_v9 }
  0x91   : > { %5323 = vmatprep.mubr.msk.f32.mxu0 %vm452_vm0, %v439_v10 }
  0x94   : > { %5324 = vmatmul.mubr.msk.f32.gmra.mrb[62].mxu0 %vm452_vm0, %v440_v11 }
  0xeb   : > { %v5232_v16 = vpop.f32.mrb[0].mxu0 }
  0xec   : > { %v717_v17 = vadd.f32 %v5232_v16, %v6183_v15  ;;  %v711_v18 = vpop.f32.mrb[1].mxu0 }
  0xed   : > { %v712_v19 = vadd.f32 %v6183_v15, %v711_v18 }
  0xee   : > { %v1031_v20 = vmul.f32 0.2, %v717_v17 }
  0xef   : > { %v1030_v21 = vmul.f32 0.2, %v712_v19  ;;  %v5235_v22 = vpop.f32.mrb[2].mxu0 }
  0xf0   : > { %v727_v23 = vadd.f32 %v5235_v22, %v6183_v15  ;;  %v721_v24 = vpop.f32.mrb[3].mxu0  ;;  %v1095_v30 = vmax.f32 %v717_v17, %v1031_v20 }
  0xf1   : > { %v722_v27 = vadd.f32 %v6183_v15, %v721_v24  ;;  %v1094_v28 = vmax.f32 %v712_v19, %v1030_v21 }
  0xf2   : > { %v1033_v31 = vmul.f32 0.2, %v727_v23 }
  0xf3   : > { %v1032_v32 = vmul.f32 0.2, %v722_v27  ;;  %v5238_v33 = vpop.f32.mrb[4].mxu0  ;;  %5334 = vmatprep.mubr.msk.f32.mxu1 %vm452_vm0, %v1094_v28 }
  0xf4   : > { %v737_v34 = vadd.f32 %v5238_v33, %v6183_v15  ;;  %v731_v35 = vpop.f32.mrb[5].mxu0  ;;  %5335 = vmatmul.mubr.msk.f32.vlgmr.msra.gmra.mrb[0].mxu1 %vm452_vm0, %v1095_v30  ;;  %v1097_v38 = vmax.f32 %v727_v23, %v1033_v31 }
  0xf5   : > { %v1096_v36 = vmax.f32 %v722_v27, %v1032_v32  ;;  %v732_v37 = vadd.f32 %v6183_v15, %v731_v35 }
  0xf6   : > { %v1035_v39 = vmul.f32 0.2, %v737_v34 }
  0xf7   : > { %v1034_v40 = vmul.f32 0.2, %v732_v37  ;;  %v5241_v41 = vpop.f32.mrb[6].mxu0  ;;  %5337 = vmatprep.mubr.msk.f32.mxu1 %vm452_vm0, %v1096_v36 }
  0xf8   : > { %v1099_v42 = vmax.f32 %v737_v34, %v1035_v39  ;;  %v747_v43 = vadd.f32 %v5241_v41, %v6183_v15  ;;  %v741_v44 = vpop.f32.mrb[7].mxu0  ;;  %5338 = vmatmul.mubr.msk.f32.gmra.mrb[2].mxu1 %vm452_vm0, %v1097_v38 }
  0xf9   : > { %v1098_v45 = vmax.f32 %v732_v37, %v1034_v40  ;;  %v742_v46 = vadd.f32 %v6183_v15, %v741_v44 }
  0xfa   : > { %v1037_v47 = vmul.f32 0.2, %v747_v43 }
  0xfb   : > { %v1036_v48 = vmul.f32 0.2, %v742_v46  ;;  %v5244_v49 = vpop.f32.mrb[8].mxu0  ;;  %5340 = vmatprep.mubr.msk.f32.mxu1 %vm452_vm0, %v1098_v45 }
  0xfc   : > { %v1101_v50 = vmax.f32 %v747_v43, %v1037_v47  ;;  %v757_v51 = vadd.f32 %v5244_v49, %v6183_v15  ;;  %v751_v52 = vpop.f32.mrb[9].mxu0  ;;  %5341 = vmatmul.mubr.msk.f32.gmra.mrb[4].mxu1 %vm452_vm0, %v1099_v42 }
  0xfd   : > { %v1100_v53 = vmax.f32 %v742_v46, %v1036_v48  ;;  %v752_v54 = vadd.f32 %v6183_v15, %v751_v52 }
  0xfe   : > { %v1039_v55 = vmul.f32 0.2, %v757_v51 }
  0xff   : > { %v1038_v56 = vmul.f32 0.2, %v752_v54  ;;  %v5247_v57 = vpop.f32.mrb[10].mxu0  ;;  %5343 = vmatprep.mubr.msk.f32.mxu1 %vm452_vm0, %v1100_v53 }
 0x100   : > { %v1103_v58 = vmax.f32 %v757_v51, %v1039_v55  ;;  %v767_v59 = vadd.f32 %v5247_v57, %v6183_v15  ;;  %v761_v60 = vpop.f32.mrb[11].mxu0  ;;  %5344 = vmatmul.mubr.msk.f32.gmra.mrb[6].mxu1 %vm452_vm0, %v1101_v50 }
 0x101   : > { %v1102_v61 = vmax.f32 %v752_v54, %v1038_v56  ;;  %v762_v62 = vadd.f32 %v6183_v15, %v761_v60 }
 0x102   : > { %v1041_v63 = vmul.f32 0.2, %v767_v59 }
 0x103   : > { %v1040_v0 = vmul.f32 0.2, %v762_v62  ;;  %v5250_v1 = vpop.f32.mrb[12].mxu0  ;;  %5346 = vmatprep.mubr.msk.f32.mxu1 %vm452_vm0, %v1102_v61 }
 0x104   : > { %v1105_v2 = vmax.f32 %v767_v59, %v1041_v63  ;;  %v777_v3 = vadd.f32 %v5250_v1, %v6183_v15  ;;  %v771_v4 = vpop.f32.mrb[13].mxu0  ;;  %5347 = vmatmul.mubr.msk.f32.gmra.mrb[8].mxu1 %vm452_vm0, %v1103_v58 }
 0x105   : > { %v1104_v5 = vmax.f32 %v762_v62, %v1040_v0  ;;  %v772_v6 = vadd.f32 %v6183_v15, %v771_v4 }
 0x106   : > { %v1043_v7 = vmul.f32 0.2, %v777_v3 }
 0x107   : > { %v1042_v8 = vmul.f32 0.2, %v772_v6  ;;  %v5253_v9 = vpop.f32.mrb[14].mxu0  ;;  %5349 = vmatprep.mubr.msk.f32.mxu1 %vm452_vm0, %v1104_v5 }
 0x108   : > { %v1107_v10 = vmax.f32 %v777_v3, %v1043_v7  ;;  %v787_v11 = vadd.f32 %v5253_v9, %v6183_v15  ;;  %v781_v12 = vpop.f32.mrb[15].mxu0  ;;  %5350 = vmatmul.mubr.msk.f32.gmra.mrb[10].mxu1 %vm452_vm0, %v1105_v2 }
 0x109   : > { %v1106_v13 = vmax.f32 %v772_v6, %v1042_v8  ;;  %v782_v14 = vadd.f32 %v6183_v15, %v781_v12 }
 0x10a   : > { %v1045_v16 = vmul.f32 0.2, %v787_v11 }
 0x10b   : > { %v1044_v17 = vmul.f32 0.2, %v782_v14  ;;  %v5256_v18 = vpop.f32.mrb[16].mxu0  ;;  %5352 = vmatprep.mubr.msk.f32.mxu1 %vm452_vm0, %v1106_v13 }
 0x10c   : > { %v1109_v19 = vmax.f32 %v787_v11, %v1045_v16  ;;  %v797_v20 = vadd.f32 %v5256_v18, %v6183_v15  ;;  %v791_v21 = vpop.f32.mrb[17].mxu0  ;;  %5353 = vmatmul.mubr.msk.f32.gmra.mrb[12].mxu1 %vm452_vm0, %v1107_v10 }
 0x10d   : > { %v1108_v22 = vmax.f32 %v782_v14, %v1044_v17  ;;  %v792_v23 = vadd.f32 %v6183_v15, %v791_v21 }
 0x10e   : > { %v1047_v24 = vmul.f32 0.2, %v797_v20 }
 0x10f   : > { %v1046_v25 = vmul.f32 0.2, %v792_v23  ;;  %v5259_v26 = vpop.f32.mrb[18].mxu0  ;;  %5355 = vmatprep.mubr.msk.f32.mxu1 %vm452_vm0, %v1108_v22 }
 0x110   : > { %v1111_v27 = vmax.f32 %v797_v20, %v1047_v24  ;;  %v807_v28 = vadd.f32 %v5259_v26, %v6183_v15  ;;  %v801_v29 = vpop.f32.mrb[19].mxu0  ;;  %5356 = vmatmul.mubr.msk.f32.gmra.mrb[14].mxu1 %vm452_vm0, %v1109_v19 }
 0x111   : > { %v1110_v30 = vmax.f32 %v792_v23, %v1046_v25  ;;  %v802_v31 = vadd.f32 %v6183_v15, %v801_v29 }
 0x112   : > { %v1049_v32 = vmul.f32 0.2, %v807_v28 }
 0x113   : > { %v1048_v33 = vmul.f32 0.2, %v802_v31  ;;  %v5262_v34 = vpop.f32.mrb[20].mxu0  ;;  %5358 = vmatprep.mubr.msk.f32.mxu1 %vm452_vm0, %v1110_v30 }
 0x114   : > { %v1113_v35 = vmax.f32 %v807_v28, %v1049_v32  ;;  %v817_v36 = vadd.f32 %v5262_v34, %v6183_v15  ;;  %v811_v37 = vpop.f32.mrb[21].mxu0  ;;  %5359 = vmatmul.mubr.msk.f32.gmra.mrb[16].mxu1 %vm452_vm0, %v1111_v27 }
 0x115   : > { %v1112_v38 = vmax.f32 %v802_v31, %v1048_v33  ;;  %v812_v39 = vadd.f32 %v6183_v15, %v811_v37 }
 0x116   : > { %v1051_v40 = vmul.f32 0.2, %v817_v36 }
 0x117   : > { %v1050_v41 = vmul.f32 0.2, %v812_v39  ;;  %v5265_v42 = vpop.f32.mrb[22].mxu0  ;;  %5361 = vmatprep.mubr.msk.f32.mxu1 %vm452_vm0, %v1112_v38 }
 0x118   : > { %v1115_v43 = vmax.f32 %v817_v36, %v1051_v40  ;;  %v827_v44 = vadd.f32 %v5265_v42, %v6183_v15  ;;  %v821_v45 = vpop.f32.mrb[23].mxu0  ;;  %5362 = vmatmul.mubr.msk.f32.gmra.mrb[18].mxu1 %vm452_vm0, %v1113_v35 }
 0x119   : > { %v1114_v46 = vmax.f32 %v812_v39, %v1050_v41  ;;  %v822_v47 = vadd.f32 %v6183_v15, %v821_v45 }
 0x11a   : > { %v1053_v48 = vmul.f32 0.2, %v827_v44 }
 0x11b   : > { %v1052_v49 = vmul.f32 0.2, %v822_v47  ;;  %v5268_v50 = vpop.f32.mrb[24].mxu0  ;;  %5364 = vmatprep.mubr.msk.f32.mxu1 %vm452_vm0, %v1114_v46 }
 0x11c   : > { %v1117_v51 = vmax.f32 %v827_v44, %v1053_v48  ;;  %v837_v52 = vadd.f32 %v5268_v50, %v6183_v15  ;;  %v831_v53 = vpop.f32.mrb[25].mxu0  ;;  %5365 = vmatmul.mubr.msk.f32.gmra.mrb[20].mxu1 %vm452_vm0, %v1115_v43 }
 0x11d   : > { %v1116_v54 = vmax.f32 %v822_v47, %v1052_v49  ;;  %v832_v55 = vadd.f32 %v6183_v15, %v831_v53 }
 0x11e   : > { %v1055_v56 = vmul.f32 0.2, %v837_v52 }
 0x11f   : > { %v1054_v57 = vmul.f32 0.2, %v832_v55  ;;  %v5271_v58 = vpop.f32.mrb[26].mxu0  ;;  %5367 = vmatprep.mubr.msk.f32.mxu1 %vm452_vm0, %v1116_v54 }
 0x120   : > { %v1119_v59 = vmax.f32 %v837_v52, %v1055_v56  ;;  %v847_v60 = vadd.f32 %v5271_v58, %v6183_v15  ;;  %v841_v61 = vpop.f32.mrb[27].mxu0  ;;  %5368 = vmatmul.mubr.msk.f32.gmra.mrb[22].mxu1 %vm452_vm0, %v1117_v51 }
 0x121   : > { %v1118_v62 = vmax.f32 %v832_v55, %v1054_v57  ;;  %v842_v63 = vadd.f32 %v6183_v15, %v841_v61 }
 0x122   : > { %v1057_v0 = vmul.f32 0.2, %v847_v60 }
 0x123   : > { %v1056_v1 = vmul.f32 0.2, %v842_v63  ;;  %v5274_v2 = vpop.f32.mrb[28].mxu0  ;;  %5370 = vmatprep.mubr.msk.f32.mxu1 %vm452_vm0, %v1118_v62 }
 0x124   : > { %v1121_v3 = vmax.f32 %v847_v60, %v1057_v0  ;;  %v857_v4 = vadd.f32 %v5274_v2, %v6183_v15  ;;  %v851_v5 = vpop.f32.mrb[29].mxu0  ;;  %5371 = vmatmul.mubr.msk.f32.gmra.mrb[24].mxu1 %vm452_vm0, %v1119_v59 }
 0x125   : > { %v1120_v6 = vmax.f32 %v842_v63, %v1056_v1  ;;  %v852_v7 = vadd.f32 %v6183_v15, %v851_v5 }
 0x126   : > { %v1059_v8 = vmul.f32 0.2, %v857_v4 }
 0x127   : > { %v1058_v9 = vmul.f32 0.2, %v852_v7  ;;  %v5277_v10 = vpop.f32.mrb[30].mxu0  ;;  %5373 = vmatprep.mubr.msk.f32.mxu1 %vm452_vm0, %v1120_v6 }
 0x128   : > { %v1123_v11 = vmax.f32 %v857_v4, %v1059_v8  ;;  %v867_v12 = vadd.f32 %v5277_v10, %v6183_v15  ;;  %v861_v13 = vpop.f32.mrb[31].mxu0  ;;  %5374 = vmatmul.mubr.msk.f32.gmra.mrb[26].mxu1 %vm452_vm0, %v1121_v3 }
 0x129   : > { %v1122_v14 = vmax.f32 %v852_v7, %v1058_v9  ;;  %v862_v16 = vadd.f32 %v6183_v15, %v861_v13 }
 0x12a   : > { %v1061_v17 = vmul.f32 0.2, %v867_v12 }
 0x12b   : > { %v1060_v18 = vmul.f32 0.2, %v862_v16  ;;  %v5280_v19 = vpop.f32.mrb[32].mxu0  ;;  %5376 = vmatprep.mubr.msk.f32.mxu1 %vm452_vm0, %v1122_v14 }
 0x12c   : > { %v1125_v20 = vmax.f32 %v867_v12, %v1061_v17  ;;  %v877_v21 = vadd.f32 %v5280_v19, %v6183_v15  ;;  %v871_v22 = vpop.f32.mrb[33].mxu0  ;;  %5377 = vmatmul.mubr.msk.f32.gmra.mrb[28].mxu1 %vm452_vm0, %v1123_v11 }
 0x12d   : > { %v1124_v23 = vmax.f32 %v862_v16, %v1060_v18  ;;  %v872_v24 = vadd.f32 %v6183_v15, %v871_v22 }
 0x12e   : > { %v1063_v25 = vmul.f32 0.2, %v877_v21 }
 0x12f   : > { %v1062_v26 = vmul.f32 0.2, %v872_v24  ;;  %v5283_v27 = vpop.f32.mrb[34].mxu0  ;;  %5379 = vmatprep.mubr.msk.f32.mxu1 %vm452_vm0, %v1124_v23 }
 0x130   : > { %v1127_v28 = vmax.f32 %v877_v21, %v1063_v25  ;;  %v887_v29 = vadd.f32 %v5283_v27, %v6183_v15  ;;  %v881_v30 = vpop.f32.mrb[35].mxu0  ;;  %5380 = vmatmul.mubr.msk.f32.gmra.mrb[30].mxu1 %vm452_vm0, %v1125_v20 }
 0x131   : > { %v1126_v31 = vmax.f32 %v872_v24, %v1062_v26  ;;  %v882_v32 = vadd.f32 %v6183_v15, %v881_v30 }
 0x132   : > { %v1065_v33 = vmul.f32 0.2, %v887_v29 }
 0x133   : > { %v1064_v34 = vmul.f32 0.2, %v882_v32  ;;  %v5286_v35 = vpop.f32.mrb[36].mxu0  ;;  %5382 = vmatprep.mubr.msk.f32.mxu1 %vm452_vm0, %v1126_v31 }
 0x134   : > { %v1129_v36 = vmax.f32 %v887_v29, %v1065_v33  ;;  %v897_v37 = vadd.f32 %v5286_v35, %v6183_v15  ;;  %v891_v38 = vpop.f32.mrb[37].mxu0  ;;  %5383 = vmatmul.mubr.msk.f32.gmra.mrb[32].mxu1 %vm452_vm0, %v1127_v28 }
 0x135   : > { %v1128_v39 = vmax.f32 %v882_v32, %v1064_v34  ;;  %v892_v40 = vadd.f32 %v6183_v15, %v891_v38 }
 0x136   : > { %v1067_v41 = vmul.f32 0.2, %v897_v37 }
 0x137   : > { %v1066_v42 = vmul.f32 0.2, %v892_v40  ;;  %v5289_v43 = vpop.f32.mrb[38].mxu0  ;;  %5385 = vmatprep.mubr.msk.f32.mxu1 %vm452_vm0, %v1128_v39 }
 0x138   : > { %v1131_v44 = vmax.f32 %v897_v37, %v1067_v41  ;;  %v907_v45 = vadd.f32 %v5289_v43, %v6183_v15  ;;  %v901_v46 = vpop.f32.mrb[39].mxu0  ;;  %5386 = vmatmul.mubr.msk.f32.gmra.mrb[34].mxu1 %vm452_vm0, %v1129_v36 }
 0x139   : > { %v1130_v47 = vmax.f32 %v892_v40, %v1066_v42  ;;  %v902_v48 = vadd.f32 %v6183_v15, %v901_v46 }
 0x13a   : > { %v1069_v49 = vmul.f32 0.2, %v907_v45 }
 0x13b   : > { %v1068_v50 = vmul.f32 0.2, %v902_v48  ;;  %v5292_v51 = vpop.f32.mrb[40].mxu0  ;;  %5388 = vmatprep.mubr.msk.f32.mxu1 %vm452_vm0, %v1130_v47 }
 0x13c   : > { %v1133_v52 = vmax.f32 %v907_v45, %v1069_v49  ;;  %v917_v53 = vadd.f32 %v5292_v51, %v6183_v15  ;;  %v911_v54 = vpop.f32.mrb[41].mxu0  ;;  %5389 = vmatmul.mubr.msk.f32.gmra.mrb[36].mxu1 %vm452_vm0, %v1131_v44 }
 0x13d   : > { %v1132_v55 = vmax.f32 %v902_v48, %v1068_v50  ;;  %v912_v56 = vadd.f32 %v6183_v15, %v911_v54 }
 0x13e   : > { %v1071_v57 = vmul.f32 0.2, %v917_v53 }
 0x13f   : > { %v1070_v58 = vmul.f32 0.2, %v912_v56  ;;  %v5295_v59 = vpop.f32.mrb[42].mxu0  ;;  %5391 = vmatprep.mubr.msk.f32.mxu1 %vm452_vm0, %v1132_v55 }
 0x140   : > { %v1135_v60 = vmax.f32 %v917_v53, %v1071_v57  ;;  %v927_v61 = vadd.f32 %v5295_v59, %v6183_v15  ;;  %v921_v62 = vpop.f32.mrb[43].mxu0  ;;  %5392 = vmatmul.mubr.msk.f32.gmra.mrb[38].mxu1 %vm452_vm0, %v1133_v52 }
 0x141   : > { %v1134_v63 = vmax.f32 %v912_v56, %v1070_v58  ;;  %v922_v0 = vadd.f32 %v6183_v15, %v921_v62 }
 0x142   : > { %v1073_v1 = vmul.f32 0.2, %v927_v61 }
 0x143   : > { %v1072_v2 = vmul.f32 0.2, %v922_v0  ;;  %v5298_v3 = vpop.f32.mrb[44].mxu0  ;;  %5394 = vmatprep.mubr.msk.f32.mxu1 %vm452_vm0, %v1134_v63 }
 0x144   : > { %v1137_v4 = vmax.f32 %v927_v61, %v1073_v1  ;;  %v937_v5 = vadd.f32 %v5298_v3, %v6183_v15  ;;  %v931_v6 = vpop.f32.mrb[45].mxu0  ;;  %5395 = vmatmul.mubr.msk.f32.gmra.mrb[40].mxu1 %vm452_vm0, %v1135_v60 }
 0x145   : > { %v1136_v7 = vmax.f32 %v922_v0, %v1072_v2  ;;  %v932_v8 = vadd.f32 %v6183_v15, %v931_v6 }
 0x146   : > { %v1075_v9 = vmul.f32 0.2, %v937_v5 }
 0x147   : > { %v1074_v10 = vmul.f32 0.2, %v932_v8  ;;  %v5301_v11 = vpop.f32.mrb[46].mxu0  ;;  %5397 = vmatprep.mubr.msk.f32.mxu1 %vm452_vm0, %v1136_v7 }
 0x148   : > { %v1139_v12 = vmax.f32 %v937_v5, %v1075_v9  ;;  %v947_v13 = vadd.f32 %v5301_v11, %v6183_v15  ;;  %v941_v14 = vpop.f32.mrb[47].mxu0  ;;  %5398 = vmatmul.mubr.msk.f32.gmra.mrb[42].mxu1 %vm452_vm0, %v1137_v4 }
 0x149   : > { %v1138_v16 = vmax.f32 %v932_v8, %v1074_v10  ;;  %v942_v17 = vadd.f32 %v6183_v15, %v941_v14 }
 0x14a   : > { %v1077_v18 = vmul.f32 0.2, %v947_v13 }
 0x14b   : > { %v1076_v19 = vmul.f32 0.2, %v942_v17  ;;  %v5304_v20 = vpop.f32.mrb[48].mxu0  ;;  %5400 = vmatprep.mubr.msk.f32.mxu1 %vm452_vm0, %v1138_v16 }
 0x14c   : > { %v1141_v21 = vmax.f32 %v947_v13, %v1077_v18  ;;  %v957_v22 = vadd.f32 %v5304_v20, %v6183_v15  ;;  %v951_v23 = vpop.f32.mrb[49].mxu0  ;;  %5401 = vmatmul.mubr.msk.f32.gmra.mrb[44].mxu1 %vm452_vm0, %v1139_v12 }
 0x14d   : > { %v1140_v24 = vmax.f32 %v942_v17, %v1076_v19  ;;  %v952_v25 = vadd.f32 %v6183_v15, %v951_v23  ;;  %v2590_v23 = vld [vmem:[%s7441_s7] sm:$0xff] }
 0x14e   : > { %v1079_v26 = vmul.f32 0.2, %v957_v22 }
 0x14f   : > { %v1078_v27 = vmul.f32 0.2, %v952_v25  ;;  %v5307_v28 = vpop.f32.mrb[50].mxu0  ;;  %5403 = vmatprep.mubr.msk.f32.mxu1 %vm452_vm0, %v1140_v24 }
 0x150   : > { %v1143_v29 = vmax.f32 %v957_v22, %v1079_v26  ;;  %v967_v30 = vadd.f32 %v5307_v28, %v6183_v15  ;;  %v961_v31 = vpop.f32.mrb[51].mxu0  ;;  %5404 = vmatmul.mubr.msk.f32.gmra.mrb[46].mxu1 %vm452_vm0, %v1141_v21 }
 0x151   : > { %v1142_v32 = vmax.f32 %v952_v25, %v1078_v27  ;;  %v962_v33 = vadd.f32 %v6183_v15, %v961_v31  ;;  %v6328_v25 = vld [vmem:[%s7438_s4] ss:$0 sm:$0xff] }
 0x152   : > { %v1081_v34 = vmul.f32 0.2, %v967_v30 }
 0x153   : > { %v1080_v35 = vmul.f32 0.2, %v962_v33  ;;  %v5310_v36 = vpop.f32.mrb[52].mxu0  ;;  %5406 = vmatprep.mubr.msk.f32.mxu1 %vm452_vm0, %v1142_v32 }
 0x154   : > { %v1145_v37 = vmax.f32 %v967_v30, %v1081_v34  ;;  %v977_v38 = vadd.f32 %v5310_v36, %v6183_v15  ;;  %v971_v39 = vpop.f32.mrb[53].mxu0  ;;  %5407 = vmatmul.mubr.msk.f32.gmra.mrb[48].mxu1 %vm452_vm0, %v1143_v29  ;;  %v2593_v36 = vld [vmem:[%s7441_s7 + $0x18] sm:$0xff] }
 0x155   : > { %v1144_v40 = vmax.f32 %v962_v33, %v1080_v35  ;;  %v972_v41 = vadd.f32 %v6183_v15, %v971_v39  ;;  %v2592_v35 = vld [vmem:[%s7441_s7 + $0x10] sm:$0xff] }
 0x156   : > { %v1083_v42 = vmul.f32 0.2, %v977_v38  ;;  %v5666_v39 = vpack.c.bf16 %v2593_v36, %v2592_v35 }
 0x157   : > { %v1082_v43 = vmul.f32 0.2, %v972_v41  ;;  %v5313_v44 = vpop.f32.mrb[54].mxu0  ;;  %5409 = vmatprep.mubr.msk.f32.mxu1 %vm452_vm0, %v1144_v40 }
 0x158   : > { %v1147_v45 = vmax.f32 %v977_v38, %v1083_v42  ;;  %v987_v46 = vadd.f32 %v5313_v44, %v6183_v15  ;;  %v981_v47 = vpop.f32.mrb[55].mxu0  ;;  %5410 = vmatmul.mubr.msk.f32.gmra.mrb[50].mxu1 %vm452_vm0, %v1145_v37 }
 0x159   : > { %v1146_v48 = vmax.f32 %v972_v41, %v1082_v43  ;;  %v982_v49 = vadd.f32 %v6183_v15, %v981_v47 }
 0x15a   : > { %v1085_v50 = vmul.f32 0.2, %v987_v46 }
 0x15b   : > { %v1084_v51 = vmul.f32 0.2, %v982_v49  ;;  %v5316_v52 = vpop.f32.mrb[56].mxu0  ;;  %5412 = vmatprep.mubr.msk.f32.mxu1 %vm452_vm0, %v1146_v48 }
 0x15c   : > { %v1149_v53 = vmax.f32 %v987_v46, %v1085_v50  ;;  %v997_v54 = vadd.f32 %v5316_v52, %v6183_v15  ;;  %v991_v55 = vpop.f32.mrb[57].mxu0  ;;  %5413 = vmatmul.mubr.msk.f32.gmra.mrb[52].mxu1 %vm452_vm0, %v1147_v45 }
 0x15d   : > { %v1148_v56 = vmax.f32 %v982_v49, %v1084_v51  ;;  %v992_v57 = vadd.f32 %v6183_v15, %v991_v55 }
 0x15e   : > { %v1087_v58 = vmul.f32 0.2, %v997_v54 }
 0x15f   : > { %v1086_v59 = vmul.f32 0.2, %v992_v57  ;;  %v5319_v60 = vpop.f32.mrb[58].mxu0  ;;  %5415 = vmatprep.mubr.msk.f32.mxu1 %vm452_vm0, %v1148_v56 }
 0x160   : > { %v1151_v61 = vmax.f32 %v997_v54, %v1087_v58  ;;  %v1007_v62 = vadd.f32 %v5319_v60, %v6183_v15  ;;  %v1001_v63 = vpop.f32.mrb[59].mxu0  ;;  %5416 = vmatmul.mubr.msk.f32.gmra.mrb[54].mxu1 %vm452_vm0, %v1149_v53 }
 0x161   : > { %v1150_v0 = vmax.f32 %v992_v57, %v1086_v59  ;;  %v1002_v1 = vadd.f32 %v6183_v15, %v1001_v63 }
 0x162   : > { %v1089_v2 = vmul.f32 0.2, %v1007_v62 }
 0x163   : > { %v1088_v3 = vmul.f32 0.2, %v1002_v1  ;;  %v5322_v4 = vpop.f32.mrb[60].mxu0  ;;  %5418 = vmatprep.mubr.msk.f32.mxu1 %vm452_vm0, %v1150_v0 }
 0x164   : > { %v1153_v5 = vmax.f32 %v1007_v62, %v1089_v2  ;;  %v1017_v6 = vadd.f32 %v5322_v4, %v6183_v15  ;;  %v1011_v7 = vpop.f32.mrb[61].mxu0  ;;  %5419 = vmatmul.mubr.msk.f32.gmra.mrb[56].mxu1 %vm452_vm0, %v1151_v61 }
 0x165   : > { %v1152_v8 = vmax.f32 %v1002_v1, %v1088_v3  ;;  %v1012_v9 = vadd.f32 %v6183_v15, %v1011_v7 }
 0x166   : > { %v1091_v10 = vmul.f32 0.2, %v1017_v6 }
 0x167   : > { %v1090_v11 = vmul.f32 0.2, %v1012_v9  ;;  %v5325_v12 = vpop.f32.mrb[62].mxu0  ;;  %5421 = vmatprep.mubr.msk.f32.mxu1 %vm452_vm0, %v1152_v8 }
 0x168   : > { %v1155_v13 = vmax.f32 %v1017_v6, %v1091_v10  ;;  %v1027_v14 = vadd.f32 %v5325_v12, %v6183_v15  ;;  %v1021_v16 = vpop.f32.mrb[63].mxu0  ;;  %5422 = vmatmul.mubr.msk.f32.gmra.mrb[58].mxu1 %vm452_vm0, %v1153_v5 }
 0x169   : > { %v1154_v17 = vmax.f32 %v1012_v9, %v1090_v11  ;;  %v1022_v18 = vadd.f32 %v6183_v15, %v1021_v16  ;;  %v2591_v15 = vld [vmem:[%s7441_s7 + $0x8] sm:$0xff] }
 0x16a   : > { %v1093_v19 = vmul.f32 0.2, %v1027_v14  ;;  %v5662_v24 = vpack.c.bf16 %v2591_v15, %v2590_v23 }
 0x16b   : > { %v1092_v20 = vmul.f32 0.2, %v1022_v18  ;;  %5424 = vmatprep.mubr.msk.f32.mxu1 %vm452_vm0, %v1154_v17 }
 0x16c   : > { %v1157_v21 = vmax.f32 %v1027_v14, %v1093_v19  ;;  %5425 = vmatmul.mubr.msk.f32.gmra.mrb[60].mxu1 %vm452_vm0, %v1155_v13  ;;  %5663 = vmatprep.subr.bf16.mxu1 %v5662_v24 }
 0x16d   : > { %v1156_v22 = vmax.f32 %v1022_v18, %v1092_v20  ;;  %5665 = vmatpush3.bf16.msra.mxu1 %v5662_v24 }
 0x16e   : > { %5667 = vmatprep.subr.bf16.mxu1 %v5666_v39 }
 0x16f   : > { %5427 = vmatprep.mubr.msk.f32.mxu1 %vm452_vm0, %v1156_v22 }
 0x170   : > { %5428 = vmatmul.mubr.msk.f32.gmra.mrb[62].mxu1 %vm452_vm0, %v1157_v21 }
 0x171   : > { %5669 = vmatpush3.bf16.msra.mxu1 %v5666_v39 }
 0x1c7   : > { %v5336_v26 = vpop.f32.mrb[0].mxu1 }
 0x1c8   : > { %v1433_v27 = vadd.f32 %v5336_v26, %v6328_v25  ;;  %v1427_v28 = vpop.f32.mrb[1].mxu1 }
 0x1c9   : > { %v1428_v29 = vadd.f32 %v6328_v25, %v1427_v28 }
 0x1ca   : > { %v1747_v30 = vmul.f32 0.2, %v1433_v27 }
 0x1cb   : > { %v1746_v31 = vmul.f32 0.2, %v1428_v29  ;;  %v5339_v32 = vpop.f32.mrb[2].mxu1 }
 0x1cc   : > { %v1443_v33 = vadd.f32 %v5339_v32, %v6328_v25  ;;  %v1437_v34 = vpop.f32.mrb[3].mxu1  ;;  %v1811_v40 = vmax.f32 %v1433_v27, %v1747_v30 }
 0x1cd   : > { %v1810_v37 = vmax.f32 %v1428_v29, %v1746_v31  ;;  %v1438_v38 = vadd.f32 %v6328_v25, %v1437_v34 }
 0x1ce   : > { %v1749_v41 = vmul.f32 0.2, %v1443_v33 }
 0x1cf   : > { %v1748_v42 = vmul.f32 0.2, %v1438_v38  ;;  %v5342_v43 = vpop.f32.mrb[4].mxu1  ;;  %5438 = vmatprep.mubr.msk.f32.mxu0 %vm452_vm0, %v1810_v37 }
 0x1d0   : > { %v1453_v44 = vadd.f32 %v5342_v43, %v6328_v25  ;;  %v1447_v45 = vpop.f32.mrb[5].mxu1  ;;  %5439 = vmatmul.mubr.msk.f32.vlgmr.msra.gmra.mrb[64].mxu0 %vm452_vm0, %v1811_v40  ;;  %v1813_v48 = vmax.f32 %v1443_v33, %v1749_v41 }
 0x1d1   : > { %v1812_v46 = vmax.f32 %v1438_v38, %v1748_v42  ;;  %v1448_v47 = vadd.f32 %v6328_v25, %v1447_v45 }
 0x1d2   : > { %v1751_v49 = vmul.f32 0.2, %v1453_v44 }
 0x1d3   : > { %v1750_v50 = vmul.f32 0.2, %v1448_v47  ;;  %v5345_v51 = vpop.f32.mrb[6].mxu1  ;;  %5441 = vmatprep.mubr.msk.f32.mxu0 %vm452_vm0, %v1812_v46 }
 0x1d4   : > { %v1463_v52 = vadd.f32 %v5345_v51, %v6328_v25  ;;  %v1457_v53 = vpop.f32.mrb[7].mxu1  ;;  %5442 = vmatmul.mubr.msk.f32.gmra.mrb[66].mxu0 %vm452_vm0, %v1813_v48  ;;  %v1815_v56 = vmax.f32 %v1453_v44, %v1751_v49 }
 0x1d5   : > { %v1814_v54 = vmax.f32 %v1448_v47, %v1750_v50  ;;  %v1458_v55 = vadd.f32 %v6328_v25, %v1457_v53 }
 0x1d6   : > { %v1753_v57 = vmul.f32 0.2, %v1463_v52 }
 0x1d7   : > { %v1752_v58 = vmul.f32 0.2, %v1458_v55  ;;  %v5348_v59 = vpop.f32.mrb[8].mxu1  ;;  %5444 = vmatprep.mubr.msk.f32.mxu0 %vm452_vm0, %v1814_v54 }
 0x1d8   : > { %v1473_v60 = vadd.f32 %v5348_v59, %v6328_v25  ;;  %v1467_v61 = vpop.f32.mrb[9].mxu1  ;;  %5445 = vmatmul.mubr.msk.f32.gmra.mrb[68].mxu0 %vm452_vm0, %v1815_v56  ;;  %v1817_v0 = vmax.f32 %v1463_v52, %v1753_v57 }
 0x1d9   : > { %v1816_v62 = vmax.f32 %v1458_v55, %v1752_v58  ;;  %v1468_v63 = vadd.f32 %v6328_v25, %v1467_v61 }
 0x1da   : > { %v1755_v1 = vmul.f32 0.2, %v1473_v60 }
 0x1db   : > { %v1754_v2 = vmul.f32 0.2, %v1468_v63  ;;  %v5351_v3 = vpop.f32.mrb[10].mxu1  ;;  %5447 = vmatprep.mubr.msk.f32.mxu0 %vm452_vm0, %v1816_v62 }
 0x1dc   : > { %v1483_v4 = vadd.f32 %v5351_v3, %v6328_v25  ;;  %v1477_v5 = vpop.f32.mrb[11].mxu1  ;;  %5448 = vmatmul.mubr.msk.f32.gmra.mrb[70].mxu0 %vm452_vm0, %v1817_v0  ;;  %v1819_v8 = vmax.f32 %v1473_v60, %v1755_v1 }
 0x1dd   : > { %v1818_v6 = vmax.f32 %v1468_v63, %v1754_v2  ;;  %v1478_v7 = vadd.f32 %v6328_v25, %v1477_v5 }
 0x1de   : > { %v1757_v9 = vmul.f32 0.2, %v1483_v4 }
 0x1df   : > { %v1756_v10 = vmul.f32 0.2, %v1478_v7  ;;  %v5354_v11 = vpop.f32.mrb[12].mxu1  ;;  %5450 = vmatprep.mubr.msk.f32.mxu0 %vm452_vm0, %v1818_v6 }
 0x1e0   : > { %v1493_v12 = vadd.f32 %v5354_v11, %v6328_v25  ;;  %v1487_v13 = vpop.f32.mrb[13].mxu1  ;;  %5451 = vmatmul.mubr.msk.f32.gmra.mrb[72].mxu0 %vm452_vm0, %v1819_v8  ;;  %v1821_v17 = vmax.f32 %v1483_v4, %v1757_v9 }
 0x1e1   : > { %v1820_v14 = vmax.f32 %v1478_v7, %v1756_v10  ;;  %v1488_v16 = vadd.f32 %v6328_v25, %v1487_v13 }
 0x1e2   : > { %v1759_v18 = vmul.f32 0.2, %v1493_v12 }
 0x1e3   : > { %v1758_v19 = vmul.f32 0.2, %v1488_v16  ;;  %v5357_v20 = vpop.f32.mrb[14].mxu1  ;;  %5453 = vmatprep.mubr.msk.f32.mxu0 %vm452_vm0, %v1820_v14 }
 0x1e4   : > { %v1503_v21 = vadd.f32 %v5357_v20, %v6328_v25  ;;  %v1497_v22 = vpop.f32.mrb[15].mxu1  ;;  %5454 = vmatmul.mubr.msk.f32.gmra.mrb[74].mxu0 %vm452_vm0, %v1821_v17  ;;  %v1823_v24 = vmax.f32 %v1493_v12, %v1759_v18 }
 0x1e5   : > { %v1822_v23 = vmax.f32 %v1488_v16, %v1758_v19  ;;  %v1498_v15 = vadd.f32 %v6328_v25, %v1497_v22 }
 0x1e6   : > { %v1761_v26 = vmul.f32 0.2, %v1503_v21 }
 0x1e7   : > { %v1760_v27 = vmul.f32 0.2, %v1498_v15  ;;  %v5360_v28 = vpop.f32.mrb[16].mxu1  ;;  %5456 = vmatprep.mubr.msk.f32.mxu0 %vm452_vm0, %v1822_v23 }
 0x1e8   : > { %v1513_v29 = vadd.f32 %v5360_v28, %v6328_v25  ;;  %v1507_v30 = vpop.f32.mrb[17].mxu1  ;;  %5457 = vmatmul.mubr.msk.f32.gmra.mrb[76].mxu0 %vm452_vm0, %v1823_v24  ;;  %v1825_v33 = vmax.f32 %v1503_v21, %v1761_v26 }
 0x1e9   : > { %v1824_v31 = vmax.f32 %v1498_v15, %v1760_v27  ;;  %v1508_v32 = vadd.f32 %v6328_v25, %v1507_v30 }
 0x1ea   : > { %v1763_v34 = vmul.f32 0.2, %v1513_v29 }
 0x1eb   : > { %v1762_v35 = vmul.f32 0.2, %v1508_v32  ;;  %v5363_v36 = vpop.f32.mrb[18].mxu1  ;;  %5459 = vmatprep.mubr.msk.f32.mxu0 %vm452_vm0, %v1824_v31 }
 0x1ec   : > { %v1523_v37 = vadd.f32 %v5363_v36, %v6328_v25  ;;  %v1517_v38 = vpop.f32.mrb[19].mxu1  ;;  %5460 = vmatmul.mubr.msk.f32.gmra.mrb[78].mxu0 %vm452_vm0, %v1825_v33  ;;  %v1827_v41 = vmax.f32 %v1513_v29, %v1763_v34 }
 0x1ed   : > { %v1826_v39 = vmax.f32 %v1508_v32, %v1762_v35  ;;  %v1518_v40 = vadd.f32 %v6328_v25, %v1517_v38 }
 0x1ee   : > { %v1765_v42 = vmul.f32 0.2, %v1523_v37 }
 0x1ef   : > { %v1764_v43 = vmul.f32 0.2, %v1518_v40  ;;  %v5366_v44 = vpop.f32.mrb[20].mxu1  ;;  %5462 = vmatprep.mubr.msk.f32.mxu0 %vm452_vm0, %v1826_v39 }
 0x1f0   : > { %v1533_v45 = vadd.f32 %v5366_v44, %v6328_v25  ;;  %v1527_v46 = vpop.f32.mrb[21].mxu1  ;;  %5463 = vmatmul.mubr.msk.f32.gmra.mrb[80].mxu0 %vm452_vm0, %v1827_v41  ;;  %v1829_v49 = vmax.f32 %v1523_v37, %v1765_v42 }
 0x1f1   : > { %v1828_v47 = vmax.f32 %v1518_v40, %v1764_v43  ;;  %v1528_v48 = vadd.f32 %v6328_v25, %v1527_v46 }
 0x1f2   : > { %v1767_v50 = vmul.f32 0.2, %v1533_v45 }
 0x1f3   : > { %v1766_v51 = vmul.f32 0.2, %v1528_v48  ;;  %v5369_v52 = vpop.f32.mrb[22].mxu1  ;;  %5465 = vmatprep.mubr.msk.f32.mxu0 %vm452_vm0, %v1828_v47 }
 0x1f4   : > { %v1543_v53 = vadd.f32 %v5369_v52, %v6328_v25  ;;  %v1537_v54 = vpop.f32.mrb[23].mxu1  ;;  %5466 = vmatmul.mubr.msk.f32.gmra.mrb[82].mxu0 %vm452_vm0, %v1829_v49  ;;  %v1831_v57 = vmax.f32 %v1533_v45, %v1767_v50 }
 0x1f5   : > { %v1830_v55 = vmax.f32 %v1528_v48, %v1766_v51  ;;  %v1538_v56 = vadd.f32 %v6328_v25, %v1537_v54 }
 0x1f6   : > { %v1769_v58 = vmul.f32 0.2, %v1543_v53 }
 0x1f7   : > { %v1768_v59 = vmul.f32 0.2, %v1538_v56  ;;  %v5372_v60 = vpop.f32.mrb[24].mxu1  ;;  %5468 = vmatprep.mubr.msk.f32.mxu0 %vm452_vm0, %v1830_v55 }
 0x1f8   : > { %v1553_v61 = vadd.f32 %v5372_v60, %v6328_v25  ;;  %v1547_v62 = vpop.f32.mrb[25].mxu1  ;;  %5469 = vmatmul.mubr.msk.f32.gmra.mrb[84].mxu0 %vm452_vm0, %v1831_v57  ;;  %v1833_v1 = vmax.f32 %v1543_v53, %v1769_v58 }
 0x1f9   : > { %v1832_v63 = vmax.f32 %v1538_v56, %v1768_v59  ;;  %v1548_v0 = vadd.f32 %v6328_v25, %v1547_v62 }
 0x1fa   : > { %v1771_v2 = vmul.f32 0.2, %v1553_v61 }
 0x1fb   : > { %v1770_v3 = vmul.f32 0.2, %v1548_v0  ;;  %v5375_v4 = vpop.f32.mrb[26].mxu1  ;;  %5471 = vmatprep.mubr.msk.f32.mxu0 %vm452_vm0, %v1832_v63 }
 0x1fc   : > { %v1563_v5 = vadd.f32 %v5375_v4, %v6328_v25  ;;  %v1557_v6 = vpop.f32.mrb[27].mxu1  ;;  %5472 = vmatmul.mubr.msk.f32.gmra.mrb[86].mxu0 %vm452_vm0, %v1833_v1  ;;  %v1835_v9 = vmax.f32 %v1553_v61, %v1771_v2 }
 0x1fd   : > { %v1834_v7 = vmax.f32 %v1548_v0, %v1770_v3  ;;  %v1558_v8 = vadd.f32 %v6328_v25, %v1557_v6 }
 0x1fe   : > { %v1773_v10 = vmul.f32 0.2, %v1563_v5 }
 0x1ff   : > { %v1772_v11 = vmul.f32 0.2, %v1558_v8  ;;  %v5378_v12 = vpop.f32.mrb[28].mxu1  ;;  %5474 = vmatprep.mubr.msk.f32.mxu0 %vm452_vm0, %v1834_v7 }
 0x200   : > { %v1573_v13 = vadd.f32 %v5378_v12, %v6328_v25  ;;  %v1567_v14 = vpop.f32.mrb[29].mxu1  ;;  %5475 = vmatmul.mubr.msk.f32.gmra.mrb[88].mxu0 %vm452_vm0, %v1835_v9  ;;  %v1837_v18 = vmax.f32 %v1563_v5, %v1773_v10 }
 0x201   : > { %v1836_v16 = vmax.f32 %v1558_v8, %v1772_v11  ;;  %v1568_v17 = vadd.f32 %v6328_v25, %v1567_v14 }
 0x202   : > { %v1775_v19 = vmul.f32 0.2, %v1573_v13 }
 0x203   : > { %v1774_v20 = vmul.f32 0.2, %v1568_v17  ;;  %v5381_v21 = vpop.f32.mrb[30].mxu1  ;;  %5477 = vmatprep.mubr.msk.f32.mxu0 %vm452_vm0, %v1836_v16 }
 0x204   : > { %v1583_v22 = vadd.f32 %v5381_v21, %v6328_v25  ;;  %v1577_v23 = vpop.f32.mrb[31].mxu1  ;;  %5478 = vmatmul.mubr.msk.f32.gmra.mrb[90].mxu0 %vm452_vm0, %v1837_v18  ;;  %v1839_v26 = vmax.f32 %v1573_v13, %v1775_v19 }
 0x205   : > { %v1838_v15 = vmax.f32 %v1568_v17, %v1774_v20  ;;  %v1578_v24 = vadd.f32 %v6328_v25, %v1577_v23 }
 0x206   : > { %v1777_v27 = vmul.f32 0.2, %v1583_v22 }
 0x207   : > { %v1776_v28 = vmul.f32 0.2, %v1578_v24  ;;  %v5384_v29 = vpop.f32.mrb[32].mxu1  ;;  %5480 = vmatprep.mubr.msk.f32.mxu0 %vm452_vm0, %v1838_v15 }
 0x208   : > { %v1593_v30 = vadd.f32 %v5384_v29, %v6328_v25  ;;  %v1587_v31 = vpop.f32.mrb[33].mxu1  ;;  %5481 = vmatmul.mubr.msk.f32.gmra.mrb[92].mxu0 %vm452_vm0, %v1839_v26  ;;  %v1841_v34 = vmax.f32 %v1583_v22, %v1777_v27 }
 0x209   : > { %v1840_v32 = vmax.f32 %v1578_v24, %v1776_v28  ;;  %v1588_v33 = vadd.f32 %v6328_v25, %v1587_v31 }
 0x20a   : > { %v1779_v35 = vmul.f32 0.2, %v1593_v30 }
 0x20b   : > { %v1778_v36 = vmul.f32 0.2, %v1588_v33  ;;  %v5387_v37 = vpop.f32.mrb[34].mxu1  ;;  %5483 = vmatprep.mubr.msk.f32.mxu0 %vm452_vm0, %v1840_v32 }
 0x20c   : > { %v1603_v38 = vadd.f32 %v5387_v37, %v6328_v25  ;;  %v1597_v39 = vpop.f32.mrb[35].mxu1  ;;  %5484 = vmatmul.mubr.msk.f32.gmra.mrb[94].mxu0 %vm452_vm0, %v1841_v34  ;;  %v1843_v42 = vmax.f32 %v1593_v30, %v1779_v35 }
 0x20d   : > { %v1842_v40 = vmax.f32 %v1588_v33, %v1778_v36  ;;  %v1598_v41 = vadd.f32 %v6328_v25, %v1597_v39 }
 0x20e   : > { %v1781_v43 = vmul.f32 0.2, %v1603_v38 }
 0x20f   : > { %v1780_v44 = vmul.f32 0.2, %v1598_v41  ;;  %v5390_v45 = vpop.f32.mrb[36].mxu1  ;;  %5486 = vmatprep.mubr.msk.f32.mxu0 %vm452_vm0, %v1842_v40 }
 0x210   : > { %v1613_v46 = vadd.f32 %v5390_v45, %v6328_v25  ;;  %v1607_v47 = vpop.f32.mrb[37].mxu1  ;;  %5487 = vmatmul.mubr.msk.f32.gmra.mrb[96].mxu0 %vm452_vm0, %v1843_v42  ;;  %v1845_v50 = vmax.f32 %v1603_v38, %v1781_v43 }
 0x211   : > { %v1844_v48 = vmax.f32 %v1598_v41, %v1780_v44  ;;  %v1608_v49 = vadd.f32 %v6328_v25, %v1607_v47 }
 0x212   : > { %v1783_v51 = vmul.f32 0.2, %v1613_v46 }
 0x213   : > { %v1782_v52 = vmul.f32 0.2, %v1608_v49  ;;  %v5393_v53 = vpop.f32.mrb[38].mxu1  ;;  %5489 = vmatprep.mubr.msk.f32.mxu0 %vm452_vm0, %v1844_v48 }
 0x214   : > { %v1623_v54 = vadd.f32 %v5393_v53, %v6328_v25  ;;  %v1617_v55 = vpop.f32.mrb[39].mxu1  ;;  %5490 = vmatmul.mubr.msk.f32.gmra.mrb[98].mxu0 %vm452_vm0, %v1845_v50  ;;  %v1847_v58 = vmax.f32 %v1613_v46, %v1783_v51 }
 0x215   : > { %v1846_v56 = vmax.f32 %v1608_v49, %v1782_v52  ;;  %v1618_v57 = vadd.f32 %v6328_v25, %v1617_v55 }
 0x216   : > { %v1785_v59 = vmul.f32 0.2, %v1623_v54 }
 0x217   : > { %v1784_v60 = vmul.f32 0.2, %v1618_v57  ;;  %v5396_v61 = vpop.f32.mrb[40].mxu1  ;;  %5492 = vmatprep.mubr.msk.f32.mxu0 %vm452_vm0, %v1846_v56 }
 0x218   : > { %v1633_v62 = vadd.f32 %v5396_v61, %v6328_v25  ;;  %v1627_v63 = vpop.f32.mrb[41].mxu1  ;;  %5493 = vmatmul.mubr.msk.f32.gmra.mrb[100].mxu0 %vm452_vm0, %v1847_v58  ;;  %v1849_v2 = vmax.f32 %v1623_v54, %v1785_v59 }
 0x219   : > { %v1848_v0 = vmax.f32 %v1618_v57, %v1784_v60  ;;  %v1628_v1 = vadd.f32 %v6328_v25, %v1627_v63 }
 0x21a   : > { %v1787_v3 = vmul.f32 0.2, %v1633_v62 }
 0x21b   : > { %v1786_v4 = vmul.f32 0.2, %v1628_v1  ;;  %v5399_v5 = vpop.f32.mrb[42].mxu1  ;;  %5495 = vmatprep.mubr.msk.f32.mxu0 %vm452_vm0, %v1848_v0 }
 0x21c   : > { %v1643_v6 = vadd.f32 %v5399_v5, %v6328_v25  ;;  %v1637_v7 = vpop.f32.mrb[43].mxu1  ;;  %5496 = vmatmul.mubr.msk.f32.gmra.mrb[102].mxu0 %vm452_vm0, %v1849_v2  ;;  %v1851_v10 = vmax.f32 %v1633_v62, %v1787_v3 }
 0x21d   : > { %v1850_v8 = vmax.f32 %v1628_v1, %v1786_v4  ;;  %v1638_v9 = vadd.f32 %v6328_v25, %v1637_v7 }
 0x21e   : > { %v1789_v11 = vmul.f32 0.2, %v1643_v6 }
 0x21f   : > { %v1788_v12 = vmul.f32 0.2, %v1638_v9  ;;  %v5402_v13 = vpop.f32.mrb[44].mxu1  ;;  %5498 = vmatprep.mubr.msk.f32.mxu0 %vm452_vm0, %v1850_v8 }
 0x220   : > { %v1653_v14 = vadd.f32 %v5402_v13, %v6328_v25  ;;  %v1647_v16 = vpop.f32.mrb[45].mxu1  ;;  %5499 = vmatmul.mubr.msk.f32.gmra.mrb[104].mxu0 %vm452_vm0, %v1851_v10  ;;  %v1853_v19 = vmax.f32 %v1643_v6, %v1789_v11 }
 0x221   : > { %v1852_v17 = vmax.f32 %v1638_v9, %v1788_v12  ;;  %v1648_v18 = vadd.f32 %v6328_v25, %v1647_v16 }
 0x222   : > { %v1791_v20 = vmul.f32 0.2, %v1653_v14 }
 0x223   : > { %v1790_v21 = vmul.f32 0.2, %v1648_v18  ;;  %v5405_v22 = vpop.f32.mrb[46].mxu1  ;;  %5501 = vmatprep.mubr.msk.f32.mxu0 %vm452_vm0, %v1852_v17 }
 0x224   : > { %v1663_v23 = vadd.f32 %v5405_v22, %v6328_v25  ;;  %v1657_v15 = vpop.f32.mrb[47].mxu1  ;;  %5502 = vmatmul.mubr.msk.f32.gmra.mrb[106].mxu0 %vm452_vm0, %v1853_v19  ;;  %v1855_v27 = vmax.f32 %v1653_v14, %v1791_v20 }
 0x225   : > { %v1854_v24 = vmax.f32 %v1648_v18, %v1790_v21  ;;  %v1658_v26 = vadd.f32 %v6328_v25, %v1657_v15 }
 0x226   : > { %v1793_v28 = vmul.f32 0.2, %v1663_v23 }
 0x227   : > { %v1792_v29 = vmul.f32 0.2, %v1658_v26  ;;  %v5408_v30 = vpop.f32.mrb[48].mxu1  ;;  %5504 = vmatprep.mubr.msk.f32.mxu0 %vm452_vm0, %v1854_v24 }
 0x228   : > { %v1673_v31 = vadd.f32 %v5408_v30, %v6328_v25  ;;  %v1667_v32 = vpop.f32.mrb[49].mxu1  ;;  %5505 = vmatmul.mubr.msk.f32.gmra.mrb[108].mxu0 %vm452_vm0, %v1855_v27  ;;  %v1857_v35 = vmax.f32 %v1663_v23, %v1793_v28 }
 0x229   : > { %v1856_v33 = vmax.f32 %v1658_v26, %v1792_v29  ;;  %v1668_v34 = vadd.f32 %v6328_v25, %v1667_v32 }
 0x22a   : > { %v1795_v36 = vmul.f32 0.2, %v1673_v31 }
 0x22b   : > { %v1794_v37 = vmul.f32 0.2, %v1668_v34  ;;  %v5411_v38 = vpop.f32.mrb[50].mxu1  ;;  %5507 = vmatprep.mubr.msk.f32.mxu0 %vm452_vm0, %v1856_v33  ;;  %v6467_v33 = vld [vmem:[%s7440_s6] ss:$0 sm:$0xff] }
 0x22c   : > { %v1683_v39 = vadd.f32 %v5411_v38, %v6328_v25  ;;  %v1677_v40 = vpop.f32.mrb[51].mxu1  ;;  %5508 = vmatmul.mubr.msk.f32.gmra.mrb[110].mxu0 %vm452_vm0, %v1857_v35  ;;  %v1859_v43 = vmax.f32 %v1673_v31, %v1795_v36 }
 0x22d   : > { %v1858_v41 = vmax.f32 %v1668_v34, %v1794_v37  ;;  %v1678_v42 = vadd.f32 %v6328_v25, %v1677_v40 }
 0x22e   : > { %v1797_v44 = vmul.f32 0.2, %v1683_v39 }
 0x22f   : > { %v1796_v45 = vmul.f32 0.2, %v1678_v42  ;;  %v5414_v46 = vpop.f32.mrb[52].mxu1  ;;  %5510 = vmatprep.mubr.msk.f32.mxu0 %vm452_vm0, %v1858_v41 }
 0x230   : > { %v1693_v47 = vadd.f32 %v5414_v46, %v6328_v25  ;;  %v1687_v48 = vpop.f32.mrb[53].mxu1  ;;  %5511 = vmatmul.mubr.msk.f32.gmra.mrb[112].mxu0 %vm452_vm0, %v1859_v43  ;;  %v1861_v51 = vmax.f32 %v1683_v39, %v1797_v44 }
 0x231   : > { %v1860_v49 = vmax.f32 %v1678_v42, %v1796_v45  ;;  %v1688_v50 = vadd.f32 %v6328_v25, %v1687_v48 }
 0x232   : > { %v1799_v52 = vmul.f32 0.2, %v1693_v47 }
 0x233   : > { %v1798_v53 = vmul.f32 0.2, %v1688_v50  ;;  %v5417_v54 = vpop.f32.mrb[54].mxu1  ;;  %5513 = vmatprep.mubr.msk.f32.mxu0 %vm452_vm0, %v1860_v49 }
 0x234   : > { %v1703_v55 = vadd.f32 %v5417_v54, %v6328_v25  ;;  %v1697_v56 = vpop.f32.mrb[55].mxu1  ;;  %5514 = vmatmul.mubr.msk.f32.gmra.mrb[114].mxu0 %vm452_vm0, %v1861_v51  ;;  %v1863_v59 = vmax.f32 %v1693_v47, %v1799_v52 }
 0x235   : > { %v1862_v57 = vmax.f32 %v1688_v50, %v1798_v53  ;;  %v1698_v58 = vadd.f32 %v6328_v25, %v1697_v56 }
 0x236   : > { %v1801_v60 = vmul.f32 0.2, %v1703_v55 }
 0x237   : > { %v1800_v61 = vmul.f32 0.2, %v1698_v58  ;;  %v5420_v62 = vpop.f32.mrb[56].mxu1  ;;  %5516 = vmatprep.mubr.msk.f32.mxu0 %vm452_vm0, %v1862_v57 }
 0x238   : > { %v1713_v63 = vadd.f32 %v5420_v62, %v6328_v25  ;;  %v1707_v0 = vpop.f32.mrb[57].mxu1  ;;  %5517 = vmatmul.mubr.msk.f32.gmra.mrb[116].mxu0 %vm452_vm0, %v1863_v59  ;;  %v1865_v3 = vmax.f32 %v1703_v55, %v1801_v60 }
 0x239   : > { %v1864_v1 = vmax.f32 %v1698_v58, %v1800_v61  ;;  %v1708_v2 = vadd.f32 %v6328_v25, %v1707_v0 }
 0x23a   : > { %v1803_v4 = vmul.f32 0.2, %v1713_v63 }
 0x23b   : > { %v1802_v5 = vmul.f32 0.2, %v1708_v2  ;;  %v5423_v6 = vpop.f32.mrb[58].mxu1  ;;  %5519 = vmatprep.mubr.msk.f32.mxu0 %vm452_vm0, %v1864_v1 }
 0x23c   : > { %v1723_v7 = vadd.f32 %v5423_v6, %v6328_v25  ;;  %v1717_v8 = vpop.f32.mrb[59].mxu1  ;;  %5520 = vmatmul.mubr.msk.f32.gmra.mrb[118].mxu0 %vm452_vm0, %v1865_v3  ;;  %v1867_v11 = vmax.f32 %v1713_v63, %v1803_v4 }
 0x23d   : > { %v1866_v9 = vmax.f32 %v1708_v2, %v1802_v5  ;;  %v1718_v10 = vadd.f32 %v6328_v25, %v1717_v8 }
 0x23e   : > { %v1805_v12 = vmul.f32 0.2, %v1723_v7 }
 0x23f   : > { %v1804_v13 = vmul.f32 0.2, %v1718_v10  ;;  %v5426_v14 = vpop.f32.mrb[60].mxu1  ;;  %5522 = vmatprep.mubr.msk.f32.mxu0 %vm452_vm0, %v1866_v9 }
 0x240   : > { %v1733_v16 = vadd.f32 %v5426_v14, %v6328_v25  ;;  %v1727_v17 = vpop.f32.mrb[61].mxu1  ;;  %5523 = vmatmul.mubr.msk.f32.gmra.mrb[120].mxu0 %vm452_vm0, %v1867_v11  ;;  %v1869_v20 = vmax.f32 %v1723_v7, %v1805_v12 }
 0x241   : > { %v1868_v18 = vmax.f32 %v1718_v10, %v1804_v13  ;;  %v1728_v19 = vadd.f32 %v6328_v25, %v1727_v17 }
 0x242   : > { %v1807_v21 = vmul.f32 0.2, %v1733_v16 }
 0x243   : > { %v1806_v22 = vmul.f32 0.2, %v1728_v19  ;;  %v5429_v23 = vpop.f32.mrb[62].mxu1  ;;  %5525 = vmatprep.mubr.msk.f32.mxu0 %vm452_vm0, %v1868_v18 }
 0x244   : > { %v1743_v15 = vadd.f32 %v5429_v23, %v6328_v25  ;;  %v1737_v24 = vpop.f32.mrb[63].mxu1  ;;  %5526 = vmatmul.mubr.msk.f32.gmra.mrb[122].mxu0 %vm452_vm0, %v1869_v20  ;;  %v1871_v28 = vmax.f32 %v1733_v16, %v1807_v21 }
 0x245   : > { %v1870_v26 = vmax.f32 %v1728_v19, %v1806_v22  ;;  %v1738_v27 = vadd.f32 %v6328_v25, %v1737_v24 }
 0x246   : > { %v1809_v29 = vmul.f32 0.2, %v1743_v15 }
 0x247   : > { %v1808_v30 = vmul.f32 0.2, %v1738_v27  ;;  %5528 = vmatprep.mubr.msk.f32.mxu0 %vm452_vm0, %v1870_v26 }
 0x248   : > { %5529 = vmatmul.mubr.msk.f32.gmra.mrb[124].mxu0 %vm452_vm0, %v1871_v28  ;;  %v1873_v32 = vmax.f32 %v1743_v15, %v1809_v29 }
 0x249   : > { %v1872_v31 = vmax.f32 %v1738_v27, %v1808_v30 }
 0x24b   : > { %5531 = vmatprep.mubr.msk.f32.mxu0 %vm452_vm0, %v1872_v31 }
 0x24c   : > { %5532 = vmatmul.mubr.msk.f32.gmra.mrb[126].mxu0 %vm452_vm0, %v1873_v32 }
 0x2a3   : > { %v5440_v34 = vpop.f32.mrb[64].mxu0 }
 0x2a4   : > { %v2149_v25 = vadd.f32 %v5440_v34, %v6467_v33  ;;  %v2143_v35 = vpop.f32.mrb[65].mxu0 }
 0x2a5   : > { %v2144_v36 = vadd.f32 %v6467_v33, %v2143_v35 }
 0x2a6   : > { %v2463_v37 = vmul.f32 0.2, %v2149_v25 }
 0x2a7   : > { %v2462_v38 = vmul.f32 0.2, %v2144_v36  ;;  %v5443_v39 = vpop.f32.mrb[66].mxu0 }
 0x2a8   : > { %v2159_v40 = vadd.f32 %v5443_v39, %v6467_v33  ;;  %v2153_v41 = vpop.f32.mrb[67].mxu0  ;;  %v2527_v44 = vmax.f32 %v2149_v25, %v2463_v37 }
 0x2a9   : > { %v2526_v42 = vmax.f32 %v2144_v36, %v2462_v38  ;;  %v2154_v43 = vadd.f32 %v6467_v33, %v2153_v41 }
 0x2aa   : > { %v2465_v45 = vmul.f32 0.2, %v2159_v40 }
 0x2ab   : > { %v2464_v46 = vmul.f32 0.2, %v2154_v43  ;;  %v5446_v47 = vpop.f32.mrb[68].mxu0  ;;  %5542 = vmatprep.mubr.msk.f32.mxu1 %vm452_vm0, %v2526_v42 }
 0x2ac   : > { %v2169_v48 = vadd.f32 %v5446_v47, %v6467_v33  ;;  %v2163_v49 = vpop.f32.mrb[69].mxu0  ;;  %5543 = vmatmul.mubr.msk.f32.vlgmr.msra.gmra.mrb[64].mxu1 %vm452_vm0, %v2527_v44  ;;  %v2529_v52 = vmax.f32 %v2159_v40, %v2465_v45 }
 0x2ad   : > { %v2528_v50 = vmax.f32 %v2154_v43, %v2464_v46  ;;  %v2164_v51 = vadd.f32 %v6467_v33, %v2163_v49 }
 0x2ae   : > { %v2467_v53 = vmul.f32 0.2, %v2169_v48 }
 0x2af   : > { %v2466_v54 = vmul.f32 0.2, %v2164_v51  ;;  %v5449_v55 = vpop.f32.mrb[70].mxu0  ;;  %5545 = vmatprep.mubr.msk.f32.mxu1 %vm452_vm0, %v2528_v50 }
 0x2b0   : > { %v2179_v56 = vadd.f32 %v5449_v55, %v6467_v33  ;;  %v2173_v57 = vpop.f32.mrb[71].mxu0  ;;  %5546 = vmatmul.mubr.msk.f32.gmra.mrb[66].mxu1 %vm452_vm0, %v2529_v52  ;;  %v2531_v60 = vmax.f32 %v2169_v48, %v2467_v53 }
 0x2b1   : > { %v2530_v58 = vmax.f32 %v2164_v51, %v2466_v54  ;;  %v2174_v59 = vadd.f32 %v6467_v33, %v2173_v57 }
 0x2b2   : > { %v2469_v61 = vmul.f32 0.2, %v2179_v56 }
 0x2b3   : > { %v2468_v62 = vmul.f32 0.2, %v2174_v59  ;;  %v5452_v63 = vpop.f32.mrb[72].mxu0  ;;  %5548 = vmatprep.mubr.msk.f32.mxu1 %vm452_vm0, %v2530_v58 }
 0x2b4   : > { %v2189_v0 = vadd.f32 %v5452_v63, %v6467_v33  ;;  %v2183_v1 = vpop.f32.mrb[73].mxu0  ;;  %5549 = vmatmul.mubr.msk.f32.gmra.mrb[68].mxu1 %vm452_vm0, %v2531_v60  ;;  %v2533_v4 = vmax.f32 %v2179_v56, %v2469_v61 }
 0x2b5   : > { %v2532_v2 = vmax.f32 %v2174_v59, %v2468_v62  ;;  %v2184_v3 = vadd.f32 %v6467_v33, %v2183_v1 }
 0x2b6   : > { %v2471_v5 = vmul.f32 0.2, %v2189_v0 }
 0x2b7   : > { %v2470_v6 = vmul.f32 0.2, %v2184_v3  ;;  %v5455_v7 = vpop.f32.mrb[74].mxu0  ;;  %5551 = vmatprep.mubr.msk.f32.mxu1 %vm452_vm0, %v2532_v2 }
 0x2b8   : > { %v2199_v8 = vadd.f32 %v5455_v7, %v6467_v33  ;;  %v2193_v9 = vpop.f32.mrb[75].mxu0  ;;  %5552 = vmatmul.mubr.msk.f32.gmra.mrb[70].mxu1 %vm452_vm0, %v2533_v4  ;;  %v2535_v12 = vmax.f32 %v2189_v0, %v2471_v5 }
 0x2b9   : > { %v2534_v10 = vmax.f32 %v2184_v3, %v2470_v6  ;;  %v2194_v11 = vadd.f32 %v6467_v33, %v2193_v9 }
 0x2ba   : > { %v2473_v13 = vmul.f32 0.2, %v2199_v8 }
 0x2bb   : > { %v2472_v14 = vmul.f32 0.2, %v2194_v11  ;;  %v5458_v16 = vpop.f32.mrb[76].mxu0  ;;  %5554 = vmatprep.mubr.msk.f32.mxu1 %vm452_vm0, %v2534_v10 }
 0x2bc   : > { %v2209_v17 = vadd.f32 %v5458_v16, %v6467_v33  ;;  %v2203_v18 = vpop.f32.mrb[77].mxu0  ;;  %5555 = vmatmul.mubr.msk.f32.gmra.mrb[72].mxu1 %vm452_vm0, %v2535_v12  ;;  %v2537_v21 = vmax.f32 %v2199_v8, %v2473_v13 }
 0x2bd   : > { %v2536_v19 = vmax.f32 %v2194_v11, %v2472_v14  ;;  %v2204_v20 = vadd.f32 %v6467_v33, %v2203_v18 }
 0x2be   : > { %v2475_v22 = vmul.f32 0.2, %v2209_v17 }
 0x2bf   : > { %v2474_v23 = vmul.f32 0.2, %v2204_v20  ;;  %v5461_v15 = vpop.f32.mrb[78].mxu0  ;;  %5557 = vmatprep.mubr.msk.f32.mxu1 %vm452_vm0, %v2536_v19 }
 0x2c0   : > { %v2219_v24 = vadd.f32 %v5461_v15, %v6467_v33  ;;  %v2213_v26 = vpop.f32.mrb[79].mxu0  ;;  %5558 = vmatmul.mubr.msk.f32.gmra.mrb[74].mxu1 %vm452_vm0, %v2537_v21  ;;  %v2539_v29 = vmax.f32 %v2209_v17, %v2475_v22 }
 0x2c1   : > { %v2538_v27 = vmax.f32 %v2204_v20, %v2474_v23  ;;  %v2214_v28 = vadd.f32 %v6467_v33, %v2213_v26 }
 0x2c2   : > { %v2477_v30 = vmul.f32 0.2, %v2219_v24 }
 0x2c3   : > { %v2476_v31 = vmul.f32 0.2, %v2214_v28  ;;  %v5464_v32 = vpop.f32.mrb[80].mxu0  ;;  %5560 = vmatprep.mubr.msk.f32.mxu1 %vm452_vm0, %v2538_v27 }
 0x2c4   : > { %v2229_v34 = vadd.f32 %v5464_v32, %v6467_v33  ;;  %v2223_v25 = vpop.f32.mrb[81].mxu0  ;;  %5561 = vmatmul.mubr.msk.f32.gmra.mrb[76].mxu1 %vm452_vm0, %v2539_v29  ;;  %v2541_v37 = vmax.f32 %v2219_v24, %v2477_v30 }
 0x2c5   : > { %v2540_v35 = vmax.f32 %v2214_v28, %v2476_v31  ;;  %v2224_v36 = vadd.f32 %v6467_v33, %v2223_v25 }
 0x2c6   : > { %v2479_v38 = vmul.f32 0.2, %v2229_v34 }
 0x2c7   : > { %v2478_v39 = vmul.f32 0.2, %v2224_v36  ;;  %v5467_v40 = vpop.f32.mrb[82].mxu0  ;;  %5563 = vmatprep.mubr.msk.f32.mxu1 %vm452_vm0, %v2540_v35 }
 0x2c8   : > { %v2239_v41 = vadd.f32 %v5467_v40, %v6467_v33  ;;  %v2233_v42 = vpop.f32.mrb[83].mxu0  ;;  %5564 = vmatmul.mubr.msk.f32.gmra.mrb[78].mxu1 %vm452_vm0, %v2541_v37  ;;  %v2543_v45 = vmax.f32 %v2229_v34, %v2479_v38 }
 0x2c9   : > { %v2542_v43 = vmax.f32 %v2224_v36, %v2478_v39  ;;  %v2234_v44 = vadd.f32 %v6467_v33, %v2233_v42 }
 0x2ca   : > { %v2481_v46 = vmul.f32 0.2, %v2239_v41 }
 0x2cb   : > { %v2480_v47 = vmul.f32 0.2, %v2234_v44  ;;  %v5470_v48 = vpop.f32.mrb[84].mxu0  ;;  %5566 = vmatprep.mubr.msk.f32.mxu1 %vm452_vm0, %v2542_v43 }
 0x2cc   : > { %v2249_v49 = vadd.f32 %v5470_v48, %v6467_v33  ;;  %v2243_v50 = vpop.f32.mrb[85].mxu0  ;;  %5567 = vmatmul.mubr.msk.f32.gmra.mrb[80].mxu1 %vm452_vm0, %v2543_v45  ;;  %v2545_v53 = vmax.f32 %v2239_v41, %v2481_v46 }
 0x2cd   : > { %v2544_v51 = vmax.f32 %v2234_v44, %v2480_v47  ;;  %v2244_v52 = vadd.f32 %v6467_v33, %v2243_v50 }
 0x2ce   : > { %v2483_v54 = vmul.f32 0.2, %v2249_v49 }
 0x2cf   : > { %v2482_v55 = vmul.f32 0.2, %v2244_v52  ;;  %v5473_v56 = vpop.f32.mrb[86].mxu0  ;;  %5569 = vmatprep.mubr.msk.f32.mxu1 %vm452_vm0, %v2544_v51 }
 0x2d0   : > { %v2259_v57 = vadd.f32 %v5473_v56, %v6467_v33  ;;  %v2253_v58 = vpop.f32.mrb[87].mxu0  ;;  %5570 = vmatmul.mubr.msk.f32.gmra.mrb[82].mxu1 %vm452_vm0, %v2545_v53  ;;  %v2547_v61 = vmax.f32 %v2249_v49, %v2483_v54 }
 0x2d1   : > { %v2546_v59 = vmax.f32 %v2244_v52, %v2482_v55  ;;  %v2254_v60 = vadd.f32 %v6467_v33, %v2253_v58 }
 0x2d2   : > { %v2485_v62 = vmul.f32 0.2, %v2259_v57 }
 0x2d3   : > { %v2484_v63 = vmul.f32 0.2, %v2254_v60  ;;  %v5476_v0 = vpop.f32.mrb[88].mxu0  ;;  %5572 = vmatprep.mubr.msk.f32.mxu1 %vm452_vm0, %v2546_v59 }
 0x2d4   : > { %v2269_v1 = vadd.f32 %v5476_v0, %v6467_v33  ;;  %v2263_v2 = vpop.f32.mrb[89].mxu0  ;;  %5573 = vmatmul.mubr.msk.f32.gmra.mrb[84].mxu1 %vm452_vm0, %v2547_v61  ;;  %v2549_v5 = vmax.f32 %v2259_v57, %v2485_v62 }
 0x2d5   : > { %v2548_v3 = vmax.f32 %v2254_v60, %v2484_v63  ;;  %v2264_v4 = vadd.f32 %v6467_v33, %v2263_v2 }
 0x2d6   : > { %v2487_v6 = vmul.f32 0.2, %v2269_v1 }
 0x2d7   : > { %v2486_v7 = vmul.f32 0.2, %v2264_v4  ;;  %v5479_v8 = vpop.f32.mrb[90].mxu0  ;;  %5575 = vmatprep.mubr.msk.f32.mxu1 %vm452_vm0, %v2548_v3 }
 0x2d8   : > { %v2279_v9 = vadd.f32 %v5479_v8, %v6467_v33  ;;  %v2273_v10 = vpop.f32.mrb[91].mxu0  ;;  %5576 = vmatmul.mubr.msk.f32.gmra.mrb[86].mxu1 %vm452_vm0, %v2549_v5  ;;  %v2551_v13 = vmax.f32 %v2269_v1, %v2487_v6 }
 0x2d9   : > { %v2550_v11 = vmax.f32 %v2264_v4, %v2486_v7  ;;  %v2274_v12 = vadd.f32 %v6467_v33, %v2273_v10 }
 0x2da   : > { %v2489_v14 = vmul.f32 0.2, %v2279_v9 }
 0x2db   : > { %v2488_v16 = vmul.f32 0.2, %v2274_v12  ;;  %v5482_v17 = vpop.f32.mrb[92].mxu0  ;;  %5578 = vmatprep.mubr.msk.f32.mxu1 %vm452_vm0, %v2550_v11 }
 0x2dc   : > { %v2289_v18 = vadd.f32 %v5482_v17, %v6467_v33  ;;  %v2283_v19 = vpop.f32.mrb[93].mxu0  ;;  %5579 = vmatmul.mubr.msk.f32.gmra.mrb[88].mxu1 %vm452_vm0, %v2551_v13  ;;  %v2553_v22 = vmax.f32 %v2279_v9, %v2489_v14 }
 0x2dd   : > { %v2552_v20 = vmax.f32 %v2274_v12, %v2488_v16  ;;  %v2284_v21 = vadd.f32 %v6467_v33, %v2283_v19 }
 0x2de   : > { %v2491_v23 = vmul.f32 0.2, %v2289_v18 }
 0x2df   : > { %v2490_v15 = vmul.f32 0.2, %v2284_v21  ;;  %v5485_v24 = vpop.f32.mrb[94].mxu0  ;;  %5581 = vmatprep.mubr.msk.f32.mxu1 %vm452_vm0, %v2552_v20 }
 0x2e0   : > { %v2299_v26 = vadd.f32 %v5485_v24, %v6467_v33  ;;  %v2293_v27 = vpop.f32.mrb[95].mxu0  ;;  %5582 = vmatmul.mubr.msk.f32.gmra.mrb[90].mxu1 %vm452_vm0, %v2553_v22  ;;  %v2555_v30 = vmax.f32 %v2289_v18, %v2491_v23 }
 0x2e1   : > { %v2554_v28 = vmax.f32 %v2284_v21, %v2490_v15  ;;  %v2294_v29 = vadd.f32 %v6467_v33, %v2293_v27 }
 0x2e2   : > { %v2493_v31 = vmul.f32 0.2, %v2299_v26 }
 0x2e3   : > { %v2492_v32 = vmul.f32 0.2, %v2294_v29  ;;  %v5488_v34 = vpop.f32.mrb[96].mxu0  ;;  %5584 = vmatprep.mubr.msk.f32.mxu1 %vm452_vm0, %v2554_v28 }
 0x2e4   : > { %v2309_v25 = vadd.f32 %v5488_v34, %v6467_v33  ;;  %v2303_v35 = vpop.f32.mrb[97].mxu0  ;;  %5585 = vmatmul.mubr.msk.f32.gmra.mrb[92].mxu1 %vm452_vm0, %v2555_v30  ;;  %v2557_v38 = vmax.f32 %v2299_v26, %v2493_v31 }
 0x2e5   : > { %v2556_v36 = vmax.f32 %v2294_v29, %v2492_v32  ;;  %v2304_v37 = vadd.f32 %v6467_v33, %v2303_v35 }
 0x2e6   : > { %v2495_v39 = vmul.f32 0.2, %v2309_v25 }
 0x2e7   : > { %v2494_v40 = vmul.f32 0.2, %v2304_v37  ;;  %v5491_v41 = vpop.f32.mrb[98].mxu0  ;;  %5587 = vmatprep.mubr.msk.f32.mxu1 %vm452_vm0, %v2556_v36 }
 0x2e8   : > { %v2319_v42 = vadd.f32 %v5491_v41, %v6467_v33  ;;  %v2313_v43 = vpop.f32.mrb[99].mxu0  ;;  %5588 = vmatmul.mubr.msk.f32.gmra.mrb[94].mxu1 %vm452_vm0, %v2557_v38  ;;  %v2559_v46 = vmax.f32 %v2309_v25, %v2495_v39 }
 0x2e9   : > { %v2558_v44 = vmax.f32 %v2304_v37, %v2494_v40  ;;  %v2314_v45 = vadd.f32 %v6467_v33, %v2313_v43 }
 0x2ea   : > { %v2497_v47 = vmul.f32 0.2, %v2319_v42 }
 0x2eb   : > { %v2496_v48 = vmul.f32 0.2, %v2314_v45  ;;  %v5494_v49 = vpop.f32.mrb[100].mxu0  ;;  %5590 = vmatprep.mubr.msk.f32.mxu1 %vm452_vm0, %v2558_v44 }
 0x2ec   : > { %v2329_v50 = vadd.f32 %v5494_v49, %v6467_v33  ;;  %v2323_v51 = vpop.f32.mrb[101].mxu0  ;;  %5591 = vmatmul.mubr.msk.f32.gmra.mrb[96].mxu1 %vm452_vm0, %v2559_v46  ;;  %v2561_v54 = vmax.f32 %v2319_v42, %v2497_v47 }
 0x2ed   : > { %v2560_v52 = vmax.f32 %v2314_v45, %v2496_v48  ;;  %v2324_v53 = vadd.f32 %v6467_v33, %v2323_v51 }
 0x2ee   : > { %v2499_v55 = vmul.f32 0.2, %v2329_v50 }
 0x2ef   : > { %v2498_v56 = vmul.f32 0.2, %v2324_v53  ;;  %v5497_v57 = vpop.f32.mrb[102].mxu0  ;;  %5593 = vmatprep.mubr.msk.f32.mxu1 %vm452_vm0, %v2560_v52 }
 0x2f0   : > { %v2339_v58 = vadd.f32 %v5497_v57, %v6467_v33  ;;  %v2333_v59 = vpop.f32.mrb[103].mxu0  ;;  %5594 = vmatmul.mubr.msk.f32.gmra.mrb[98].mxu1 %vm452_vm0, %v2561_v54  ;;  %v2563_v62 = vmax.f32 %v2329_v50, %v2499_v55 }
 0x2f1   : > { %v2562_v60 = vmax.f32 %v2324_v53, %v2498_v56  ;;  %v2334_v61 = vadd.f32 %v6467_v33, %v2333_v59 }
 0x2f2   : > { %v2501_v63 = vmul.f32 0.2, %v2339_v58 }
 0x2f3   : > { %v2500_v0 = vmul.f32 0.2, %v2334_v61  ;;  %v5500_v1 = vpop.f32.mrb[104].mxu0  ;;  %5596 = vmatprep.mubr.msk.f32.mxu1 %vm452_vm0, %v2562_v60 }
 0x2f4   : > { %v2349_v2 = vadd.f32 %v5500_v1, %v6467_v33  ;;  %v2343_v3 = vpop.f32.mrb[105].mxu0  ;;  %5597 = vmatmul.mubr.msk.f32.gmra.mrb[100].mxu1 %vm452_vm0, %v2563_v62  ;;  %v2565_v6 = vmax.f32 %v2339_v58, %v2501_v63 }
 0x2f5   : > { %v2564_v4 = vmax.f32 %v2334_v61, %v2500_v0  ;;  %v2344_v5 = vadd.f32 %v6467_v33, %v2343_v3 }
 0x2f6   : > { %v2503_v7 = vmul.f32 0.2, %v2349_v2 }
 0x2f7   : > { %v2502_v8 = vmul.f32 0.2, %v2344_v5  ;;  %v5503_v9 = vpop.f32.mrb[106].mxu0  ;;  %5599 = vmatprep.mubr.msk.f32.mxu1 %vm452_vm0, %v2564_v4 }
 0x2f8   : > { %v2359_v10 = vadd.f32 %v5503_v9, %v6467_v33  ;;  %v2353_v11 = vpop.f32.mrb[107].mxu0  ;;  %5600 = vmatmul.mubr.msk.f32.gmra.mrb[102].mxu1 %vm452_vm0, %v2565_v6  ;;  %v2567_v14 = vmax.f32 %v2349_v2, %v2503_v7 }
 0x2f9   : > { %v2566_v12 = vmax.f32 %v2344_v5, %v2502_v8  ;;  %v2354_v13 = vadd.f32 %v6467_v33, %v2353_v11 }
 0x2fa   : > { %v2505_v16 = vmul.f32 0.2, %v2359_v10 }
 0x2fb   : > { %v2504_v17 = vmul.f32 0.2, %v2354_v13  ;;  %v5506_v18 = vpop.f32.mrb[108].mxu0  ;;  %5602 = vmatprep.mubr.msk.f32.mxu1 %vm452_vm0, %v2566_v12 }
 0x2fc   : > { %v2369_v19 = vadd.f32 %v5506_v18, %v6467_v33  ;;  %v2363_v20 = vpop.f32.mrb[109].mxu0  ;;  %5603 = vmatmul.mubr.msk.f32.gmra.mrb[104].mxu1 %vm452_vm0, %v2567_v14  ;;  %v2569_v23 = vmax.f32 %v2359_v10, %v2505_v16 }
 0x2fd   : > { %v2568_v21 = vmax.f32 %v2354_v13, %v2504_v17  ;;  %v2364_v22 = vadd.f32 %v6467_v33, %v2363_v20 }
 0x2fe   : > { %v2507_v15 = vmul.f32 0.2, %v2369_v19 }
 0x2ff   : > { %v2506_v24 = vmul.f32 0.2, %v2364_v22  ;;  %v5509_v26 = vpop.f32.mrb[110].mxu0  ;;  %5605 = vmatprep.mubr.msk.f32.mxu1 %vm452_vm0, %v2568_v21 }
 0x300   : > { %v2379_v27 = vadd.f32 %v5509_v26, %v6467_v33  ;;  %v2373_v28 = vpop.f32.mrb[111].mxu0  ;;  %5606 = vmatmul.mubr.msk.f32.gmra.mrb[106].mxu1 %vm452_vm0, %v2569_v23  ;;  %v2571_v31 = vmax.f32 %v2369_v19, %v2507_v15  ;;  %v5948_v15 = vmov 0  }
 0x301   : > { %v2570_v29 = vmax.f32 %v2364_v22, %v2506_v24  ;;  %v2374_v30 = vadd.f32 %v6467_v33, %v2373_v28  ;;  %5681 = vset.pattern.permute.xlu0 %v5948_v15  ;;  %5682 = vset.pattern.permute.xlu1 %v5948_v15 }
 0x302   : > { %v2509_v32 = vmul.f32 0.2, %v2379_v27 }
 0x303   : > { %v2508_v34 = vmul.f32 0.2, %v2374_v30  ;;  %v5512_v25 = vpop.f32.mrb[112].mxu0  ;;  %5608 = vmatprep.mubr.msk.f32.mxu1 %vm452_vm0, %v2570_v29 }
 0x304   : > { %v2389_v35 = vadd.f32 %v5512_v25, %v6467_v33  ;;  %v2383_v36 = vpop.f32.mrb[113].mxu0  ;;  %5609 = vmatmul.mubr.msk.f32.gmra.mrb[108].mxu1 %vm452_vm0, %v2571_v31  ;;  %v2573_v39 = vmax.f32 %v2379_v27, %v2509_v32 }
 0x305   : > { %v2572_v37 = vmax.f32 %v2374_v30, %v2508_v34  ;;  %v2384_v38 = vadd.f32 %v6467_v33, %v2383_v36 }
 0x306   : > { %v2511_v40 = vmul.f32 0.2, %v2389_v35 }
 0x307   : > { %v2510_v41 = vmul.f32 0.2, %v2384_v38  ;;  %v5515_v42 = vpop.f32.mrb[114].mxu0  ;;  %5611 = vmatprep.mubr.msk.f32.mxu1 %vm452_vm0, %v2572_v37 }
 0x308   : > { %v2399_v43 = vadd.f32 %v5515_v42, %v6467_v33  ;;  %v2393_v44 = vpop.f32.mrb[115].mxu0  ;;  %5612 = vmatmul.mubr.msk.f32.gmra.mrb[110].mxu1 %vm452_vm0, %v2573_v39  ;;  %v2575_v47 = vmax.f32 %v2389_v35, %v2511_v40 }
 0x309   : > { %v2574_v45 = vmax.f32 %v2384_v38, %v2510_v41  ;;  %v2394_v46 = vadd.f32 %v6467_v33, %v2393_v44  ;;  %v6600_v38 = vld [vmem:[%s7442_s8] ss:$0 sm:$0xff] }
 0x30a   : > { %v2513_v48 = vmul.f32 0.2, %v2399_v43 }
 0x30b   : > { %v2512_v49 = vmul.f32 0.2, %v2394_v46  ;;  %v5518_v50 = vpop.f32.mrb[116].mxu0  ;;  %5614 = vmatprep.mubr.msk.f32.mxu1 %vm452_vm0, %v2574_v45 }
 0x30c   : > { %v2409_v51 = vadd.f32 %v5518_v50, %v6467_v33  ;;  %v2403_v52 = vpop.f32.mrb[117].mxu0  ;;  %5615 = vmatmul.mubr.msk.f32.gmra.mrb[112].mxu1 %vm452_vm0, %v2575_v47  ;;  %v2577_v55 = vmax.f32 %v2399_v43, %v2513_v48 }
 0x30d   : > { %v2576_v53 = vmax.f32 %v2394_v46, %v2512_v49  ;;  %v2404_v54 = vadd.f32 %v6467_v33, %v2403_v52 }
 0x30e   : > { %v2515_v56 = vmul.f32 0.2, %v2409_v51 }
 0x30f   : > { %v2514_v57 = vmul.f32 0.2, %v2404_v54  ;;  %v5521_v58 = vpop.f32.mrb[118].mxu0  ;;  %5617 = vmatprep.mubr.msk.f32.mxu1 %vm452_vm0, %v2576_v53 }
 0x310   : > { %v2419_v59 = vadd.f32 %v5521_v58, %v6467_v33  ;;  %v2413_v60 = vpop.f32.mrb[119].mxu0  ;;  %5618 = vmatmul.mubr.msk.f32.gmra.mrb[114].mxu1 %vm452_vm0, %v2577_v55  ;;  %v2579_v63 = vmax.f32 %v2409_v51, %v2515_v56 }
 0x311   : > { %v2578_v61 = vmax.f32 %v2404_v54, %v2514_v57  ;;  %v2414_v62 = vadd.f32 %v6467_v33, %v2413_v60 }
 0x312   : > { %v2517_v0 = vmul.f32 0.2, %v2419_v59 }
 0x313   : > { %v2516_v1 = vmul.f32 0.2, %v2414_v62  ;;  %v5524_v2 = vpop.f32.mrb[120].mxu0  ;;  %5620 = vmatprep.mubr.msk.f32.mxu1 %vm452_vm0, %v2578_v61 }
 0x314   : > { %v2429_v3 = vadd.f32 %v5524_v2, %v6467_v33  ;;  %v2423_v4 = vpop.f32.mrb[121].mxu0  ;;  %5621 = vmatmul.mubr.msk.f32.gmra.mrb[116].mxu1 %vm452_vm0, %v2579_v63  ;;  %v2581_v7 = vmax.f32 %v2419_v59, %v2517_v0 }
 0x315   : > { %v2580_v5 = vmax.f32 %v2414_v62, %v2516_v1  ;;  %v2424_v6 = vadd.f32 %v6467_v33, %v2423_v4 }
 0x316   : > { %v2519_v8 = vmul.f32 0.2, %v2429_v3 }
 0x317   : > { %v2518_v9 = vmul.f32 0.2, %v2424_v6  ;;  %v5527_v10 = vpop.f32.mrb[122].mxu0  ;;  %5623 = vmatprep.mubr.msk.f32.mxu1 %vm452_vm0, %v2580_v5 }
 0x318   : > { %v2439_v11 = vadd.f32 %v5527_v10, %v6467_v33  ;;  %v2433_v12 = vpop.f32.mrb[123].mxu0  ;;  %5624 = vmatmul.mubr.msk.f32.gmra.mrb[118].mxu1 %vm452_vm0, %v2581_v7  ;;  %v2583_v16 = vmax.f32 %v2429_v3, %v2519_v8 }
 0x319   : > { %v2582_v13 = vmax.f32 %v2424_v6, %v2518_v9  ;;  %v2434_v14 = vadd.f32 %v6467_v33, %v2433_v12 }
 0x31a   : > { %v2521_v17 = vmul.f32 0.2, %v2439_v11 }
 0x31b   : > { %v2520_v18 = vmul.f32 0.2, %v2434_v14  ;;  %v5530_v19 = vpop.f32.mrb[124].mxu0  ;;  %5626 = vmatprep.mubr.msk.f32.mxu1 %vm452_vm0, %v2582_v13 }
 0x31c   : > { %v2449_v20 = vadd.f32 %v5530_v19, %v6467_v33  ;;  %v2443_v21 = vpop.f32.mrb[125].mxu0  ;;  %5627 = vmatmul.mubr.msk.f32.gmra.mrb[120].mxu1 %vm452_vm0, %v2583_v16  ;;  %v2585_v24 = vmax.f32 %v2439_v11, %v2521_v17 }
 0x31d   : > { %v2584_v22 = vmax.f32 %v2434_v14, %v2520_v18  ;;  %v2444_v23 = vadd.f32 %v6467_v33, %v2443_v21 }
 0x31e   : > { %v2523_v26 = vmul.f32 0.2, %v2449_v20 }
 0x31f   : > { %v2522_v27 = vmul.f32 0.2, %v2444_v23  ;;  %v5533_v28 = vpop.f32.mrb[126].mxu0  ;;  %5629 = vmatprep.mubr.msk.f32.mxu1 %vm452_vm0, %v2584_v22 }
 0x320   : > { %v2459_v29 = vadd.f32 %v5533_v28, %v6467_v33  ;;  %v2453_v30 = vpop.f32.mrb[127].mxu0  ;;  %5630 = vmatmul.mubr.msk.f32.gmra.mrb[122].mxu1 %vm452_vm0, %v2585_v24  ;;  %v2587_v34 = vmax.f32 %v2449_v20, %v2523_v26 }
 0x321   : > { %v2586_v31 = vmax.f32 %v2444_v23, %v2522_v27  ;;  %v2454_v32 = vadd.f32 %v6467_v33, %v2453_v30 }
 0x322   : > { %v2525_v25 = vmul.f32 0.2, %v2459_v29 }
 0x323   : > { %v2524_v35 = vmul.f32 0.2, %v2454_v32  ;;  %5632 = vmatprep.mubr.msk.f32.mxu1 %vm452_vm0, %v2586_v31 }
 0x324   : > { %5633 = vmatmul.mubr.msk.f32.gmra.mrb[124].mxu1 %vm452_vm0, %v2587_v34  ;;  %v2589_v37 = vmax.f32 %v2459_v29, %v2525_v25 }
 0x325   : > { %v2588_v36 = vmax.f32 %v2454_v32, %v2524_v35 }
 0x327   : > { %5635 = vmatprep.mubr.msk.f32.mxu1 %vm452_vm0, %v2588_v36 }
 0x328   : > { %5636 = vmatmul.mubr.msk.f32.gmra.mrb[126].mxu1 %vm452_vm0, %v2589_v37 }
 0x37f   : > { %v5544_v39 = vpop.f32.mrb[64].mxu1 }
 0x380   : > { %v6603_v33 = vadd.f32 %v5544_v39, %v6600_v38  ;;  %v2859_v40 = vpop.f32.mrb[65].mxu1 }
 0x381   : > { %v6606_v41 = vadd.f32 %v6600_v38, %v2859_v40 }
 0x382   : > { %v4885_v42 = vmul.f32 -1.442695, %v6603_v33 }
 0x383   : > { %v4884_v43 = vmul.f32 -1.442695, %v6606_v41  ;;  %v5547_v44 = vpop.f32.mrb[66].mxu1 }
 0x384   : > { %5683 = vpow2.f32 %v4885_v42  ;;  %v6611_v45 = vadd.f32 %v5547_v44, %v6600_v38  ;;  %v2869_v46 = vpop.f32.mrb[67].mxu1 }
 0x385   : > { %5685 = vpow2.f32 %v4884_v43  ;;  %v6614_v47 = vadd.f32 %v6600_v38, %v2869_v46 }
 0x386   : > { %v4887_v48 = vmul.f32 -1.442695, %v6611_v45 }
 0x387   : > { %v4886_v49 = vmul.f32 -1.442695, %v6614_v47  ;;  %v5550_v50 = vpop.f32.mrb[68].mxu1 }
 0x388   : > { %5687 = vpow2.f32 %v4887_v48  ;;  %v6619_v51 = vadd.f32 %v5550_v50, %v6600_v38  ;;  %v2879_v52 = vpop.f32.mrb[69].mxu1 }
 0x389   : > { %5689 = vpow2.f32 %v4886_v49  ;;  %v6622_v53 = vadd.f32 %v6600_v38, %v2879_v52 }
 0x38a   : > { %v4889_v54 = vmul.f32 -1.442695, %v6619_v51 }
 0x38b   : > { %v4888_v55 = vmul.f32 -1.442695, %v6622_v53  ;;  %v5553_v56 = vpop.f32.mrb[70].mxu1 }
 0x38c   : > { %5691 = vpow2.f32 %v4889_v54  ;;  %v6627_v57 = vadd.f32 %v5553_v56, %v6600_v38  ;;  %v2889_v58 = vpop.f32.mrb[71].mxu1 }
 0x38d   : > { %5693 = vpow2.f32 %v4888_v55  ;;  %v6630_v59 = vadd.f32 %v6600_v38, %v2889_v58 }
 0x38e   : > { %v5684_v60 = vpop.eup %5683  ;;  %v4891_v61 = vmul.f32 -1.442695, %v6627_v57 }
 0x38f   : > { %v5686_v62 = vpop.eup %5685  ;;  %v3371_v63 = vadd.f32 1.0, %v5684_v60  ;;  %v4890_v0 = vmul.f32 -1.442695, %v6630_v59  ;;  %v5556_v1 = vpop.f32.mrb[72].mxu1 }
 0x390   : > { %v3370_v2 = vadd.f32 1.0, %v5686_v62  ;;  %5695 = vpow2.f32 %v4891_v61  ;;  %v6635_v3 = vadd.f32 %v5556_v1, %v6600_v38  ;;  %v2899_v4 = vpop.f32.mrb[73].mxu1 }
 0x391   : > { %5697 = vrcp.f32 %v3371_v63  ;;  %v6638_v5 = vadd.f32 %v6600_v38, %v2899_v4 }
 0x392   : > { %v5688_v6 = vpop.eup %5687  ;;  %5699 = vrcp.f32 %v3370_v2  ;;  %v4893_v7 = vmul.f32 -1.442695, %v6635_v3 }
 0x393   : > { %v5690_v8 = vpop.eup %5689  ;;  %v3373_v9 = vadd.f32 1.0, %v5688_v6  ;;  %5701 = vpow2.f32 %v4890_v0  ;;  %v4892_v10 = vmul.f32 -1.442695, %v6638_v5  ;;  %v5559_v11 = vpop.f32.mrb[74].mxu1 }
 0x394   : > { %5703 = vpow2.f32 %v4893_v7  ;;  %v6643_v12 = vadd.f32 %v5559_v11, %v6600_v38  ;;  %v2909_v13 = vpop.f32.mrb[75].mxu1  ;;  %v3372_v14 = vadd.f32 1.0, %v5690_v8 }
 0x395   : > { %5705 = vrcp.f32 %v3373_v9  ;;  %v6646_v16 = vadd.f32 %v6600_v38, %v2909_v13 }
 0x396   : > { %v5692_v17 = vpop.eup %5691  ;;  %v4895_v18 = vmul.f32 -1.442695, %v6643_v12  ;;  %5707 = vpow2.f32 %v4892_v10 }
 0x397   : > { %v5694_v19 = vpop.eup %5693  ;;  %v4894_v20 = vmul.f32 -1.442695, %v6646_v16  ;;  %v5562_v21 = vpop.f32.mrb[76].mxu1  ;;  %v3375_v24 = vadd.f32 1.0, %v5692_v17 }
 0x398   : > { %v3374_v22 = vadd.f32 1.0, %v5694_v19  ;;  %5709 = vpow2.f32 %v4895_v18  ;;  %v6651_v23 = vadd.f32 %v5562_v21, %v6600_v38  ;;  %v2919_v15 = vpop.f32.mrb[77].mxu1 }
 0x399   : > { %5711 = vrcp.f32 %v3372_v14  ;;  %v6654_v26 = vadd.f32 %v6600_v38, %v2919_v15 }
 0x39a   : > { %v5696_v27 = vpop.eup %5695  ;;  %5713 = vrcp.f32 %v3374_v22  ;;  %v4897_v28 = vmul.f32 -1.442695, %v6651_v23 }
 0x39b   : > { %v5698_v29 = vpop.eup %5697  ;;  %v3377_v30 = vadd.f32 1.0, %v5696_v27  ;;  %5715 = vpow2.f32 %v4894_v20  ;;  %v4896_v31 = vmul.f32 -1.442695, %v6654_v26  ;;  %v5565_v32 = vpop.f32.mrb[78].mxu1 }
 0x39c   : > { %v5700_v34 = vpop.eup %5699  ;;  %5717 = vpow2.f32 %v4897_v28  ;;  %v6659_v25 = vadd.f32 %v5565_v32, %v6600_v38  ;;  %3569 = vperm.xlu0 %5681, %v5698_v29   ;;  %v2929_v35 = vpop.f32.mrb[79].mxu1 }
 0x39d   : > { %v5702_v36 = vpop.eup %5701  ;;  %5719 = vrcp.f32 %v3375_v24  ;;  %v6662_v37 = vadd.f32 %v6600_v38, %v2929_v35 }
 0x39e   : > { %v5704_v39 = vpop.eup %5703  ;;  %v3376_v40 = vadd.f32 1.0, %v5702_v36  ;;  %5721 = vpow2.f32 %v4896_v31  ;;  %v4899_v42 = vmul.f32 -1.442695, %v6659_v25 }
 0x39f   : > { %v5706_v43 = vpop.eup %5705  ;;  %5723 = vrcp.f32 %v3377_v30  ;;  %v3379_v44 = vadd.f32 1.0, %v5704_v39  ;;  %v4898_v46 = vmul.f32 -1.442695, %v6662_v37  ;;  %v5568_v48 = vpop.f32.mrb[80].mxu1 }
 0x3a0   : > { %5725 = vrcp.f32 %v3376_v40  ;;  %v6667_v49 = vadd.f32 %v5568_v48, %v6600_v38  ;;  %3579 = vperm.xlu1 %5682, %v5706_v43   ;;  %v2939_v50 = vpop.f32.mrb[81].mxu1  ;;  %3564 = vperm.xlu0 %5681, %v5700_v34   ;;  %v5708_v52 = vpop.eup %5707 }
 0x3a1   : > { %5727 = vrcp.f32 %v3379_v44  ;;  %v6670_v54 = vadd.f32 %v6600_v38, %v2939_v50  ;;  %v3378_v56 = vadd.f32 1.0, %v5708_v52 }
 0x3a2   : > { %v5710_v55 = vpop.eup %5709  ;;  %5729 = vpow2.f32 %v4899_v42  ;;  %v4901_v58 = vmul.f32 -1.442695, %v6667_v49 }
 0x3a3   : > { %v5712_v60 = vpop.eup %5711  ;;  %v3381_v61 = vadd.f32 1.0, %v5710_v55  ;;  %5731 = vpow2.f32 %v4898_v46  ;;  %v4900_v62 = vmul.f32 -1.442695, %v6670_v54  ;;  %v5571_v63 = vpop.f32.mrb[82].mxu1 }
 0x3a4   : > { %v5714_v0 = vpop.eup %5713  ;;  %5733 = vrcp.f32 %v3378_v56  ;;  %v6675_v1 = vadd.f32 %v5571_v63, %v6600_v38  ;;  %v2949_v2 = vpop.f32.mrb[83].mxu1  ;;  %3574 = vperm.xlu1 %5682, %v5712_v60  }
 0x3a5   : > { %v5716_v4 = vpop.eup %5715  ;;  %5735 = vrcp.f32 %v3381_v61  ;;  %v6678_v6 = vadd.f32 %v6600_v38, %v2949_v2  ;;  %3584 = vperm.xlu0 %5681, %v5714_v0  }
 0x3a6   : > { %v5718_v7 = vpop.eup %5717  ;;  %v3380_v8 = vadd.f32 1.0, %v5716_v4  ;;  %5737 = vpow2.f32 %v4901_v58  ;;  %v4903_v9 = vmul.f32 -1.442695, %v6675_v1 }
 0x3a7   : > { %v5720_v10 = vpop.eup %5719  ;;  %v3383_v11 = vadd.f32 1.0, %v5718_v7  ;;  %5739 = vpow2.f32 %v4900_v62  ;;  %v5574_v13 = vpop.f32.mrb[84].mxu1  ;;  %v4902_v17 = vmul.f32 -1.442695, %v6678_v6 }
 0x3a8   : > { %v5722_v14 = vpop.eup %5721  ;;  %5741 = vrcp.f32 %v3380_v8  ;;  %v6683_v18 = vadd.f32 %v5574_v13, %v6600_v38  ;;  %v2959_v19 = vpop.f32.mrb[85].mxu1  ;;  %3589 = vperm.xlu1 %5682, %v5720_v10  }
 0x3a9   : > { %v5724_v20 = vpop.eup %5723  ;;  %5743 = vrcp.f32 %v3383_v11  ;;  %v3382_v21 = vadd.f32 1.0, %v5722_v14  ;;  %v6686_v22 = vadd.f32 %v6600_v38, %v2959_v19 }
 0x3aa   : > { %v5726_v15 = vpop.eup %5725  ;;  %5745 = vpow2.f32 %v4903_v9  ;;  %v4905_v24 = vmul.f32 -1.442695, %v6683_v18 }
 0x3ab   : > { %v5728_v27 = vpop.eup %5727  ;;  %5747 = vrcp.f32 %v3382_v21  ;;  %v4904_v28 = vmul.f32 -1.442695, %v6686_v22  ;;  %3594 = vperm.xlu0 %5681, %v5726_v15   ;;  %v5577_v29 = vpop.f32.mrb[86].mxu1 }
 0x3ac   : > { %v5730_v30 = vpop.eup %5729  ;;  %5749 = vpow2.f32 %v4902_v17  ;;  %v6691_v31 = vadd.f32 %v5577_v29, %v6600_v38  ;;  %v2969_v32 = vpop.f32.mrb[87].mxu1  ;;  %3599 = vperm.xlu1 %5682, %v5724_v20  }
 0x3ad   : > { %v5732_v34 = vpop.eup %5731  ;;  %v3385_v35 = vadd.f32 1.0, %v5730_v30  ;;  %5751 = vpow2.f32 %v4905_v24  ;;  %v6694_v36 = vadd.f32 %v6600_v38, %v2969_v32 }
 0x3ae   : > { %v5734_v39 = vpop.eup %5733  ;;  %v3384_v40 = vadd.f32 1.0, %v5732_v34  ;;  %5753 = vpow2.f32 %v4904_v28  ;;  %v4907_v42 = vmul.f32 -1.442695, %v6691_v31 }
 0x3af   : > { %v5736_v43 = vpop.eup %5735  ;;  %5755 = vrcp.f32 %v3385_v35  ;;  %v4906_v44 = vmul.f32 -1.442695, %v6694_v36  ;;  %3604 = vperm.xlu0 %5681, %v5734_v39   ;;  %v5580_v46 = vpop.f32.mrb[88].mxu1 }
 0x3b0   : > { %v5738_v48 = vpop.eup %5737  ;;  %5757 = vrcp.f32 %v3384_v40  ;;  %v6699_v50 = vadd.f32 %v5580_v46, %v6600_v38  ;;  %v2979_v52 = vpop.f32.mrb[89].mxu1  ;;  %3609 = vperm.xlu1 %5682, %v5728_v27  }
 0x3b1   : > { %v5740_v55 = vpop.eup %5739  ;;  %v3387_v56 = vadd.f32 1.0, %v5738_v48  ;;  %5759 = vpow2.f32 %v4907_v42  ;;  %v6702_v58 = vadd.f32 %v6600_v38, %v2979_v52 }
 0x3b2   : > { %v5742_v60 = vpop.eup %5741  ;;  %v3386_v61 = vadd.f32 1.0, %v5740_v55  ;;  %5761 = vpow2.f32 %v4906_v44  ;;  %v4909_v62 = vmul.f32 -1.442695, %v6699_v50 }
 0x3b3   : > { %v5744_v63 = vpop.eup %5743  ;;  %5763 = vrcp.f32 %v3387_v56  ;;  %v4908_v0 = vmul.f32 -1.442695, %v6702_v58  ;;  %3614 = vperm.xlu0 %5681, %v5742_v60   ;;  %v5583_v2 = vpop.f32.mrb[90].mxu1 }
 0x3b4   : > { %v5746_v4 = vpop.eup %5745  ;;  %5765 = vrcp.f32 %v3386_v61  ;;  %v6707_v7 = vadd.f32 %v5583_v2, %v6600_v38  ;;  %v2989_v8 = vpop.f32.mrb[91].mxu1  ;;  %3619 = vperm.xlu1 %5682, %v5736_v43  }
 0x3b5   : > { %v5748_v9 = vpop.eup %5747  ;;  %v3389_v10 = vadd.f32 1.0, %v5746_v4  ;;  %5767 = vpow2.f32 %v4909_v62  ;;  %v6710_v11 = vadd.f32 %v6600_v38, %v2989_v8 }
 0x3b6   : > { %v5750_v13 = vpop.eup %5749  ;;  %5769 = vpow2.f32 %v4908_v0  ;;  %v4911_v14 = vmul.f32 -1.442695, %v6707_v7 }
 0x3b7   : > { %v5752_v17 = vpop.eup %5751  ;;  %5771 = vrcp.f32 %v3389_v10  ;;  %v3388_v19 = vadd.f32 1.0, %v5750_v13  ;;  %3624 = vperm.xlu0 %5681, %v5748_v9   ;;  %v5586_v20 = vpop.f32.mrb[92].mxu1  ;;  %v4910_v24 = vmul.f32 -1.442695, %v6710_v11 }
 0x3b8   : > { %v5754_v21 = vpop.eup %5753  ;;  %v3391_v15 = vadd.f32 1.0, %v5752_v17  ;;  %5773 = vpow2.f32 %v4911_v14  ;;  %v6715_v27 = vadd.f32 %v5586_v20, %v6600_v38  ;;  %v2999_v28 = vpop.f32.mrb[93].mxu1  ;;  %3629 = vperm.xlu1 %5682, %v5744_v63  }
 0x3b9   : > { %v5756_v29 = vpop.eup %5755  ;;  %5775 = vrcp.f32 %v3388_v19  ;;  %v3390_v30 = vadd.f32 1.0, %v5754_v21  ;;  %v6718_v32 = vadd.f32 %v6600_v38, %v2999_v28 }
 0x3ba   : > { %v5758_v34 = vpop.eup %5757  ;;  %5777 = vrcp.f32 %v3391_v15  ;;  %v4913_v35 = vmul.f32 -1.442695, %v6715_v27 }
 0x3bb   : > { %v5760_v39 = vpop.eup %5759  ;;  %5779 = vrcp.f32 %v3390_v30  ;;  %3634 = vperm.xlu0 %5681, %v5758_v34   ;;  %v5589_v40 = vpop.f32.mrb[94].mxu1  ;;  %v4912_v44 = vmul.f32 -1.442695, %v6718_v32 }
 0x3bc   : > { %v5762_v42 = vpop.eup %5761  ;;  %v3393_v43 = vadd.f32 1.0, %v5760_v39  ;;  %5781 = vpow2.f32 %v4910_v24  ;;  %v6723_v46 = vadd.f32 %v5589_v40, %v6600_v38  ;;  %v3009_v48 = vpop.f32.mrb[95].mxu1  ;;  %3639 = vperm.xlu1 %5682, %v5756_v29  }
 0x3bd   : > { %v5764_v52 = vpop.eup %5763  ;;  %v3392_v55 = vadd.f32 1.0, %v5762_v42  ;;  %5783 = vpow2.f32 %v4913_v35  ;;  %v6726_v56 = vadd.f32 %v6600_v38, %v3009_v48 }
 0x3be   : > { %v5766_v60 = vpop.eup %5765  ;;  %5785 = vrcp.f32 %v3393_v43  ;;  %v4915_v61 = vmul.f32 -1.442695, %v6723_v46 }
 0x3bf   : > { %v5768_v62 = vpop.eup %5767  ;;  %5787 = vrcp.f32 %v3392_v55  ;;  %3644 = vperm.xlu0 %5681, %v5766_v60   ;;  %v5592_v63 = vpop.f32.mrb[96].mxu1  ;;  %v4914_v4 = vmul.f32 -1.442695, %v6726_v56 }
 0x3c0   : > { %v5770_v0 = vpop.eup %5769  ;;  %v3395_v2 = vadd.f32 1.0, %v5768_v62  ;;  %5789 = vpow2.f32 %v4912_v44  ;;  %v6731_v8 = vadd.f32 %v5592_v63, %v6600_v38  ;;  %v3019_v9 = vpop.f32.mrb[97].mxu1  ;;  %3649 = vperm.xlu1 %5682, %v5764_v52  }
 0x3c1   : > { %v5772_v10 = vpop.eup %5771  ;;  %v3394_v13 = vadd.f32 1.0, %v5770_v0  ;;  %5791 = vpow2.f32 %v4915_v61  ;;  %v6734_v14 = vadd.f32 %v6600_v38, %v3019_v9 }
 0x3c2   : > { %v5774_v17 = vpop.eup %5773  ;;  %5793 = vrcp.f32 %v3395_v2  ;;  %v4917_v19 = vmul.f32 -1.442695, %v6731_v8 }
 0x3c3   : > { %v5776_v20 = vpop.eup %5775  ;;  %5795 = vrcp.f32 %v3394_v13  ;;  %v3397_v21 = vadd.f32 1.0, %v5774_v17  ;;  %v4916_v15 = vmul.f32 -1.442695, %v6734_v14  ;;  %v5595_v24 = vpop.f32.mrb[98].mxu1 }
 0x3c4   : > { %v5778_v28 = vpop.eup %5777  ;;  %5797 = vpow2.f32 %v4914_v4  ;;  %3654 = vperm.xlu0 %5681, %v5776_v20   ;;  %v6739_v29 = vadd.f32 %v5595_v24, %v6600_v38  ;;  %v3029_v30 = vpop.f32.mrb[99].mxu1  ;;  %3659 = vperm.xlu1 %5682, %v5772_v10  }
 0x3c5   : > { %v5780_v34 = vpop.eup %5779  ;;  %5799 = vrcp.f32 %v3397_v21  ;;  %v6742_v35 = vadd.f32 %v6600_v38, %v3029_v30 }
 0x3c6   : > { %v5782_v39 = vpop.eup %5781  ;;  %5801 = vpow2.f32 %v4917_v19  ;;  %v4919_v40 = vmul.f32 -1.442695, %v6739_v29 }
 0x3c7   : > { %v5784_v42 = vpop.eup %5783  ;;  %v3396_v43 = vadd.f32 1.0, %v5782_v39  ;;  %5803 = vpow2.f32 %v4916_v15  ;;  %v4918_v44 = vmul.f32 -1.442695, %v6742_v35  ;;  %v5598_v48 = vpop.f32.mrb[100].mxu1 }
 0x3c8   : > { %v5786_v52 = vpop.eup %5785  ;;  %v3399_v55 = vadd.f32 1.0, %v5784_v42  ;;  %5805 = vpow2.f32 %v4919_v40  ;;  %3664 = vperm.xlu0 %5681, %v5780_v34   ;;  %v6747_v60 = vadd.f32 %v5598_v48, %v6600_v38  ;;  %v3039_v61 = vpop.f32.mrb[101].mxu1  ;;  %3669 = vperm.xlu1 %5682, %v5778_v28  }
 0x3c9   : > { %v5788_v62 = vpop.eup %5787  ;;  %5807 = vrcp.f32 %v3396_v43  ;;  %v6750_v63 = vadd.f32 %v6600_v38, %v3039_v61 }
 0x3ca   : > { %v5790_v0 = vpop.eup %5789  ;;  %5809 = vrcp.f32 %v3399_v55  ;;  %v4921_v2 = vmul.f32 -1.442695, %v6747_v60 }
 0x3cb   : > { %v5792_v4 = vpop.eup %5791  ;;  %v3398_v9 = vadd.f32 1.0, %v5790_v0  ;;  %5811 = vpow2.f32 %v4918_v44  ;;  %v4920_v10 = vmul.f32 -1.442695, %v6750_v63  ;;  %v5601_v13 = vpop.f32.mrb[102].mxu1 }
 0x3cc   : > { %v5794_v17 = vpop.eup %5793  ;;  %v3401_v19 = vadd.f32 1.0, %v5792_v4  ;;  %5813 = vpow2.f32 %v4921_v2  ;;  %3674 = vperm.xlu0 %5681, %v5788_v62   ;;  %v6755_v20 = vadd.f32 %v5601_v13, %v6600_v38  ;;  %v3049_v21 = vpop.f32.mrb[103].mxu1  ;;  %3679 = vperm.xlu1 %5682, %v5786_v52  }
 0x3cd   : > { %v5796_v15 = vpop.eup %5795  ;;  %5815 = vrcp.f32 %v3398_v9  ;;  %v6758_v24 = vadd.f32 %v6600_v38, %v3049_v21 }
 0x3ce   : > { %v5798_v28 = vpop.eup %5797  ;;  %5817 = vrcp.f32 %v3401_v19  ;;  %v4923_v30 = vmul.f32 -1.442695, %v6755_v20 }
 0x3cf   : > { %v5800_v34 = vpop.eup %5799  ;;  %v3400_v39 = vadd.f32 1.0, %v5798_v28  ;;  %5819 = vpow2.f32 %v4920_v10  ;;  %v4922_v40 = vmul.f32 -1.442695, %v6758_v24  ;;  %v5604_v42 = vpop.f32.mrb[104].mxu1 }
 0x3d0   : > { %v5802_v43 = vpop.eup %5801  ;;  %5821 = vpow2.f32 %v4923_v30  ;;  %3684 = vperm.xlu0 %5681, %v5796_v15   ;;  %v6763_v44 = vadd.f32 %v5604_v42, %v6600_v38  ;;  %v3059_v48 = vpop.f32.mrb[105].mxu1  ;;  %3689 = vperm.xlu1 %5682, %v5794_v17  }
 0x3d1   : > { %v5804_v52 = vpop.eup %5803  ;;  %5823 = vrcp.f32 %v3400_v39  ;;  %v3403_v55 = vadd.f32 1.0, %v5802_v43  ;;  %v6766_v61 = vadd.f32 %v6600_v38, %v3059_v48 }
 0x3d2   : > { %v5806_v62 = vpop.eup %5805  ;;  %v3402_v0 = vadd.f32 1.0, %v5804_v52  ;;  %5825 = vpow2.f32 %v4922_v40  ;;  %v4925_v2 = vmul.f32 -1.442695, %v6763_v44 }
 0x3d3   : > { %v5808_v4 = vpop.eup %5807  ;;  %5827 = vrcp.f32 %v3403_v55  ;;  %v3405_v9 = vadd.f32 1.0, %v5806_v62  ;;  %v4924_v10 = vmul.f32 -1.442695, %v6766_v61  ;;  %v5607_v13 = vpop.f32.mrb[106].mxu1 }
 0x3d4   : > { %v5810_v19 = vpop.eup %5809  ;;  %5829 = vrcp.f32 %v3402_v0  ;;  %3694 = vperm.xlu0 %5681, %v5808_v4   ;;  %v6771_v17 = vadd.f32 %v5607_v13, %v6600_v38  ;;  %v3069_v21 = vpop.f32.mrb[107].mxu1  ;;  %3699 = vperm.xlu1 %5682, %v5800_v34  }
 0x3d5   : > { %v5812_v15 = vpop.eup %5811  ;;  %5831 = vrcp.f32 %v3405_v9  ;;  %v6774_v28 = vadd.f32 %v6600_v38, %v3069_v21 }
 0x3d6   : > { %v5814_v30 = vpop.eup %5813  ;;  %v3404_v39 = vadd.f32 1.0, %v5812_v15  ;;  %5833 = vpow2.f32 %v4925_v2  ;;  %v4927_v40 = vmul.f32 -1.442695, %v6771_v17 }
 0x3d7   : > { %v5816_v42 = vpop.eup %5815  ;;  %v3407_v43 = vadd.f32 1.0, %v5814_v30  ;;  %5835 = vpow2.f32 %v4924_v10  ;;  %v4926_v48 = vmul.f32 -1.442695, %v6774_v28  ;;  %v5610_v52 = vpop.f32.mrb[108].mxu1 }
 0x3d8   : > { %v5818_v55 = vpop.eup %5817  ;;  %5837 = vrcp.f32 %v3404_v39  ;;  %3704 = vperm.xlu0 %5681, %v5816_v42   ;;  %v6779_v34 = vadd.f32 %v5610_v52, %v6600_v38  ;;  %v3079_v62 = vpop.f32.mrb[109].mxu1  ;;  %3709 = vperm.xlu1 %5682, %v5810_v19  }
 0x3d9   : > { %v5820_v0 = vpop.eup %5819  ;;  %5839 = vrcp.f32 %v3407_v43  ;;  %v6782_v2 = vadd.f32 %v6600_v38, %v3079_v62 }
 0x3da   : > { %v5822_v4 = vpop.eup %5821  ;;  %v3406_v9 = vadd.f32 1.0, %v5820_v0  ;;  %5841 = vpow2.f32 %v4927_v40  ;;  %v4929_v10 = vmul.f32 -1.442695, %v6779_v34 }
 0x3db   : > { %7463 = vst [vmem:[#allocation2_spill] sm:$0xff] %v6782_v2  ;;  %v5824_v13 = vpop.eup %5823  ;;  %v3409_v21 = vadd.f32 1.0, %v5822_v4  ;;  %5843 = vpow2.f32 %v4926_v48  ;;  %v5613_v15 = vpop.f32.mrb[110].mxu1  ;;  %v4928_v39 = vmul.f32 -1.442695, %v6782_v2 }
 0x3dc   : > { %v5826_v30 = vpop.eup %5825  ;;  %5845 = vrcp.f32 %v3406_v9  ;;  %3714 = vperm.xlu0 %5681, %v5824_v13   ;;  %v6787_v19 = vadd.f32 %v5613_v15, %v6600_v38  ;;  %v3089_v42 = vpop.f32.mrb[111].mxu1  ;;  %3719 = vperm.xlu1 %5682, %v5818_v55  }
 0x3dd   : > { %v5828_v43 = vpop.eup %5827  ;;  %5847 = vrcp.f32 %v3409_v21  ;;  %v3408_v52 = vadd.f32 1.0, %v5826_v30  ;;  %v6790_v40 = vadd.f32 %v6600_v38, %v3089_v42 }
 0x3de   : > { %7464 = vst [vmem:[#allocation3_spill] sm:$0xff] %v6787_v19  ;;  %v5830_v62 = vpop.eup %5829  ;;  %5849 = vpow2.f32 %v4929_v10  ;;  %v4931_v48 = vmul.f32 -1.442695, %v6787_v19 }
 0x3df   : > { %7465 = vst [vmem:[#allocation4_spill] sm:$0xff] %v6790_v40  ;;  %v5832_v0 = vpop.eup %5831  ;;  %5851 = vrcp.f32 %v3408_v52  ;;  %v4930_v4 = vmul.f32 -1.442695, %v6790_v40  ;;  %v5616_v9 = vpop.f32.mrb[112].mxu1 }
 0x3e0   : > { %v5834_v13 = vpop.eup %5833  ;;  %5853 = vpow2.f32 %v4928_v39  ;;  %3724 = vperm.xlu0 %5681, %v5830_v62   ;;  %v6795_v55 = vadd.f32 %v5616_v9, %v6600_v38  ;;  %v3099_v21 = vpop.f32.mrb[113].mxu1  ;;  %3729 = vperm.xlu1 %5682, %v5828_v43  }
 0x3e1   : > { %v5836_v15 = vpop.eup %5835  ;;  %v3411_v30 = vadd.f32 1.0, %v5834_v13  ;;  %5855 = vpow2.f32 %v4931_v48  ;;  %v6798_v10 = vadd.f32 %v6600_v38, %v3099_v21 }
 0x3e2   : > { %7466 = vst [vmem:[#allocation5_spill] sm:$0xff] %v6795_v55  ;;  %v5838_v42 = vpop.eup %5837  ;;  %v3410_v19 = vadd.f32 1.0, %v5836_v15  ;;  %5857 = vpow2.f32 %v4930_v4  ;;  %v4933_v52 = vmul.f32 -1.442695, %v6795_v55 }
 0x3e3   : > { %7467 = vst [vmem:[#allocation6_spill] sm:$0xff] %v6798_v10  ;;  %v5840_v40 = vpop.eup %5839  ;;  %5859 = vrcp.f32 %v3411_v30  ;;  %v4932_v39 = vmul.f32 -1.442695, %v6798_v10  ;;  %v5619_v62 = vpop.f32.mrb[114].mxu1 }
 0x3e4   : > { %v5842_v9 = vpop.eup %5841  ;;  %5861 = vrcp.f32 %v3410_v19  ;;  %3734 = vperm.xlu0 %5681, %v5838_v42   ;;  %v6803_v43 = vadd.f32 %v5619_v62, %v6600_v38  ;;  %v3109_v48 = vpop.f32.mrb[115].mxu1  ;;  %3739 = vperm.xlu1 %5682, %v5832_v0  }
 0x3e5   : > { %v5844_v13 = vpop.eup %5843  ;;  %v3413_v21 = vadd.f32 1.0, %v5842_v9  ;;  %5863 = vpow2.f32 %v4933_v52  ;;  %v6806_v4 = vadd.f32 %v6600_v38, %v3109_v48 }
 0x3e6   : > { %7468 = vst [vmem:[#allocation7_spill] sm:$0xff] %v6803_v43  ;;  %v5846_v15 = vpop.eup %5845  ;;  %v3412_v55 = vadd.f32 1.0, %v5844_v13  ;;  %5865 = vpow2.f32 %v4932_v39  ;;  %v4935_v30 = vmul.f32 -1.442695, %v6803_v43 }
 0x3e7   : > { %7469 = vst [vmem:[#allocation8_spill] sm:$0xff] %v6806_v4  ;;  %v5848_v10 = vpop.eup %5847  ;;  %5867 = vrcp.f32 %v3413_v21  ;;  %v4934_v19 = vmul.f32 -1.442695, %v6806_v4  ;;  %v5622_v42 = vpop.f32.mrb[116].mxu1 }
 0x3e8   : > { %v5850_v62 = vpop.eup %5849  ;;  %5869 = vrcp.f32 %v3412_v55  ;;  %3744 = vperm.xlu0 %5681, %v5846_v15   ;;  %v6811_v0 = vadd.f32 %v5622_v42, %v6600_v38  ;;  %v3119_v52 = vpop.f32.mrb[117].mxu1  ;;  %3749 = vperm.xlu1 %5682, %v5840_v40  }
 0x3e9   : > { %v5852_v9 = vpop.eup %5851  ;;  %v3415_v48 = vadd.f32 1.0, %v5850_v62  ;;  %5871 = vpow2.f32 %v4935_v30  ;;  %v6814_v39 = vadd.f32 %v6600_v38, %v3119_v52 }
 0x3ea   : > { %v5854_v13 = vpop.eup %5853  ;;  %5873 = vpow2.f32 %v4934_v19  ;;  %v4937_v21 = vmul.f32 -1.442695, %v6811_v0 }
 0x3eb   : > { %7470 = vst [vmem:[#allocation9_spill] sm:$0xff] %v6814_v39  ;;  %v5856_v4 = vpop.eup %5855  ;;  %5875 = vrcp.f32 %v3415_v48  ;;  %v3414_v43 = vadd.f32 1.0, %v5854_v13  ;;  %v5625_v55 = vpop.f32.mrb[118].mxu1  ;;  %v4936_v42 = vmul.f32 -1.442695, %v6814_v39 }
 0x3ec   : > { %v5858_v15 = vpop.eup %5857  ;;  %v3417_v2 = vadd.f32 1.0, %v5856_v4  ;;  %5877 = vpow2.f32 %v4937_v21  ;;  %3754 = vperm.xlu0 %5681, %v5852_v9   ;;  %v6819_v40 = vadd.f32 %v5625_v55, %v6600_v38  ;;  %v3129_v30 = vpop.f32.mrb[119].mxu1  ;;  %3759 = vperm.xlu1 %5682, %v5848_v10  }
 0x3ed   : > { %v5860_v62 = vpop.eup %5859  ;;  %5879 = vrcp.f32 %v3414_v43  ;;  %v3416_v19 = vadd.f32 1.0, %v5858_v15  ;;  %v6822_v52 = vadd.f32 %v6600_v38, %v3129_v30 }
 0x3ee   : > { %7471 = vst [vmem:[#allocation10_spill] sm:$0xff] %v6819_v40  ;;  %v5862_v48 = vpop.eup %5861  ;;  %5881 = vrcp.f32 %v3417_v2  ;;  %v4939_v13 = vmul.f32 -1.442695, %v6819_v40 }
 0x3ef   : > { %7472 = vst [vmem:[#allocation11_spill] sm:$0xff] %v6822_v52  ;;  %v5864_v4 = vpop.eup %5863  ;;  %5883 = vrcp.f32 %v3416_v19  ;;  %v5628_v21 = vpop.f32.mrb[120].mxu1  ;;  %v4938_v55 = vmul.f32 -1.442695, %v6822_v52 }
 0x3f0   : > { %v5866_v39 = vpop.eup %5865  ;;  %v3419_v9 = vadd.f32 1.0, %v5864_v4  ;;  %5885 = vpow2.f32 %v4936_v42  ;;  %3764 = vperm.xlu0 %5681, %v5862_v48   ;;  %v6827_v10 = vadd.f32 %v5628_v21, %v6600_v38  ;;  %v3139_v43 = vpop.f32.mrb[121].mxu1  ;;  %3769 = vperm.xlu1 %5682, %v5860_v62  }
 0x3f1   : > { %v5868_v15 = vpop.eup %5867  ;;  %v3418_v30 = vadd.f32 1.0, %v5866_v39  ;;  %5887 = vpow2.f32 %v4939_v13  ;;  %v6830_v2 = vadd.f32 %v6600_v38, %v3139_v43 }
 0x3f2   : > { %7473 = vst [vmem:[#allocation12_spill] sm:$0xff] %v6827_v10  ;;  %v5870_v40 = vpop.eup %5869  ;;  %5889 = vrcp.f32 %v3419_v9  ;;  %v4941_v19 = vmul.f32 -1.442695, %v6827_v10 }
 0x3f3   : > { %7474 = vst [vmem:[#allocation13_spill] sm:$0xff] %v6830_v2  ;;  %v5872_v4 = vpop.eup %5871  ;;  %5891 = vrcp.f32 %v3418_v30  ;;  %v5631_v42 = vpop.f32.mrb[122].mxu1  ;;  %v4940_v21 = vmul.f32 -1.442695, %v6830_v2 }
 0x3f4   : > { %v5874_v52 = vpop.eup %5873  ;;  %v3421_v48 = vadd.f32 1.0, %v5872_v4  ;;  %5893 = vpow2.f32 %v4938_v55  ;;  %3774 = vperm.xlu0 %5681, %v5870_v40   ;;  %v6835_v62 = vadd.f32 %v5631_v42, %v6600_v38  ;;  %v3149_v39 = vpop.f32.mrb[123].mxu1  ;;  %3779 = vperm.xlu1 %5682, %v5868_v15  }
 0x3f5   : > { %v5876_v13 = vpop.eup %5875  ;;  %v3420_v43 = vadd.f32 1.0, %v5874_v52  ;;  %5895 = vpow2.f32 %v4941_v19  ;;  %v6838_v9 = vadd.f32 %v6600_v38, %v3149_v39 }
 0x3f6   : > { %7475 = vst [vmem:[#allocation14_spill] sm:$0xff] %v6835_v62  ;;  %v5878_v10 = vpop.eup %5877  ;;  %5897 = vrcp.f32 %v3421_v48  ;;  %v4943_v30 = vmul.f32 -1.442695, %v6835_v62 }
 0x3f7   : > { %7476 = vst [vmem:[#allocation15_spill] sm:$0xff] %v6838_v9  ;;  %v5880_v4 = vpop.eup %5879  ;;  %5899 = vrcp.f32 %v3420_v43  ;;  %v3423_v55 = vadd.f32 1.0, %v5878_v10  ;;  %v4942_v40 = vmul.f32 -1.442695, %v6838_v9  ;;  %v5634_v2 = vpop.f32.mrb[124].mxu1 }
 0x3f8   : > { %v5882_v42 = vpop.eup %5881  ;;  %5901 = vpow2.f32 %v4940_v21  ;;  %3784 = vperm.xlu0 %5681, %v5880_v4   ;;  %v6843_v15 = vadd.f32 %v5634_v2, %v6600_v38  ;;  %v3159_v52 = vpop.f32.mrb[125].mxu1  ;;  %3789 = vperm.xlu1 %5682, %v5876_v13  }
 0x3f9   : > { %v5884_v19 = vpop.eup %5883  ;;  %5903 = vrcp.f32 %v3423_v55  ;;  %v6846_v48 = vadd.f32 %v6600_v38, %v3159_v52 }
 0x3fa   : > { %7477 = vst [vmem:[#allocation16_spill] sm:$0xff] %v6843_v15  ;;  %v5886_v39 = vpop.eup %5885  ;;  %5905 = vpow2.f32 %v4943_v30  ;;  %v4945_v10 = vmul.f32 -1.442695, %v6843_v15  ;;  %v5939_v30 = vld [vmem:[%s7442_s8] ss:$0 sm:$0xff] }
 0x3fb   : > { %7478 = vst [vmem:[#allocation17_spill] sm:$0xff] %v6846_v48  ;;  %v5888_v43 = vpop.eup %5887  ;;  %v3422_v9 = vadd.f32 1.0, %v5886_v39  ;;  %5907 = vpow2.f32 %v4942_v40  ;;  %v4944_v21 = vmul.f32 -1.442695, %v6846_v48  ;;  %v5637_v4 = vpop.f32.mrb[126].mxu1 }
 0x3fc   : > { %v5890_v62 = vpop.eup %5889  ;;  %v3425_v2 = vadd.f32 1.0, %v5888_v43  ;;  %5909 = vpow2.f32 %v4945_v10  ;;  %3794 = vperm.xlu0 %5681, %v5884_v19   ;;  %v6851_v13 = vadd.f32 %v5637_v4, %v6600_v38  ;;  %v3169_v55 = vpop.f32.mrb[127].mxu1  ;;  %3799 = vperm.xlu1 %5682, %v5882_v42  }
 0x3fd   : > { %v5892_v52 = vpop.eup %5891  ;;  %5911 = vrcp.f32 %v3422_v9  ;;  %v6856_v39 = vadd.f32 %v5939_v30, %v3169_v55 }
 0x3fe   : > { %7479 = vst [vmem:[#allocation18_spill] sm:$0xff] %v6851_v13  ;;  %v5894_v40 = vpop.eup %5893  ;;  %5913 = vrcp.f32 %v3425_v2  ;;  %v4947_v48 = vmul.f32 -1.442695, %v6851_v13 }
 0x3ff   : > { %7480 = vst [vmem:[#allocation19_spill] sm:$0xff] %v6856_v39  ;;  %v5896_v43 = vpop.eup %5895  ;;  %v3424_v10 = vadd.f32 1.0, %v5894_v40  ;;  %5915 = vpow2.f32 %v4944_v21  ;;  %v4946_v38 = vmul.f32 -1.442695, %v6856_v39 }
 0x400   : > { %v5898_v19 = vpop.eup %5897  ;;  %v3427_v4 = vadd.f32 1.0, %v5896_v43  ;;  %5917 = vpow2.f32 %v4947_v48  ;;  %3804 = vperm.xlu0 %5681, %v5892_v52   ;;  %3809 = vperm.xlu1 %5682, %v5890_v62  }
 0x401   : > { %v5900_v9 = vpop.eup %5899  ;;  %5919 = vrcp.f32 %v3424_v10 }
 0x402   : > { %v5902_v42 = vpop.eup %5901  ;;  %5921 = vpow2.f32 %v4946_v38 }
 0x403   : > { %v5904_v15 = vpop.eup %5903  ;;  %v3426_v55 = vadd.f32 1.0, %v5902_v42  ;;  %5923 = vrcp.f32 %v3427_v4 }
 0x404   : > { %v5906_v30 = vpop.eup %5905  ;;  %3814 = vperm.xlu0 %5681, %v5900_v9   ;;  %3819 = vperm.xlu1 %5682, %v5898_v19  }
 0x405   : > { %v5908_v2 = vpop.eup %5907  ;;  %5925 = vrcp.f32 %v3426_v55  ;;  %v3429_v21 = vadd.f32 1.0, %v5906_v30 }
 0x406   : > { %v5910_v40 = vpop.eup %5909  ;;  %v3428_v39 = vadd.f32 1.0, %v5908_v2 }
 0x407   : > { %v5912_v13 = vpop.eup %5911  ;;  %v3431_v48 = vadd.f32 1.0, %v5910_v40 }
 0x408   : > { %v5914_v43 = vpop.eup %5913  ;;  %5927 = vrcp.f32 %v3428_v39  ;;  %3824 = vperm.xlu0 %5681, %v5912_v13   ;;  %3829 = vperm.xlu1 %5682, %v5904_v15  }
 0x409   : > { %v5916_v62 = vpop.eup %5915  ;;  %5929 = vrcp.f32 %v3429_v21 }
 0x40a   : > { %v5918_v52 = vpop.eup %5917  ;;  %v3430_v10 = vadd.f32 1.0, %v5916_v62 }
 0x40b   : > { %v5920_v38 = vpop.eup %5919  ;;  %v3433_v4 = vadd.f32 1.0, %v5918_v52 }
 0x40c   : > { %5931 = vrcp.f32 %v3430_v10  ;;  %3834 = vperm.xlu0 %5681, %v5920_v38   ;;  %3839 = vperm.xlu1 %5682, %v5914_v43   ;;  %v5922_v19 = vpop.eup %5921 }
 0x40d   : > { %5933 = vrcp.f32 %v3431_v48  ;;  %v5924_v9 = vpop.eup %5923  ;;  %v3432_v42 = vadd.f32 1.0, %v5922_v19 }
 0x40f   : > { %v5926_v55 = vpop.eup %5925  ;;  %5935 = vrcp.f32 %v3432_v42 }
 0x410   : > { %3844 = vperm.xlu0 %5681, %v5926_v55   ;;  %3849 = vperm.xlu1 %5682, %v5924_v9   ;;  %5937 = vrcp.f32 %v3433_v4 }
 0x412   : > { %v5928_v15 = vpop.eup %5927 }
 0x413   : > { %v5930_v13 = vpop.eup %5929 }
 0x414   : > { %3854 = vperm.xlu0 %5681, %v5928_v15   ;;  %3859 = vperm.xlu1 %5682, %v5930_v13  }
 0x416   : > { %v5932_v39 = vpop.eup %5931 }
 0x417   : > { %v5934_v30 = vpop.eup %5933 }
 0x418   : > { %3864 = vperm.xlu0 %5681, %v5932_v39   ;;  %3869 = vperm.xlu1 %5682, %v5934_v30  }
 0x419   : > { %v5936_v2 = vpop.eup %5935 }
 0x41a   : > { %v5938_v21 = vpop.eup %5937 }
 0x41b   : > { %v3570_v40 = vpop.permute.xlu0 %3569 }
 0x41c   : > { %3874 = vperm.xlu0 %5681, %v5936_v2   ;;  %3879 = vperm.xlu1 %5682, %v5938_v21   ;;  %v3883_v43 = vmul.f32 %v3570_v40, %v6603_v33 }
 0x41f   : > { %v3580_v62 = vpop.permute.xlu1 %3579  ;;  %v3565_v48 = vpop.permute.xlu0 %3564 }
 0x420   : > { %v3882_v52 = vmul.f32 %v3565_v48, %v6606_v41  ;;  %4012 = vrot.lane.b32.xlu1 %v3883_v43, %s5949_s26  ;;  %v3885_v19 = vmul.f32 %v3580_v62, %v6611_v45 }
 0x422   : > { %4010 = vrot.lane.b32.xlu0 %v3882_v52, %s5949_s26 }
 0x423   : > { %v3575_v10 = vpop.permute.xlu1 %3574 }
 0x424   : > { %4269 = vrot.lane.b32.xlu1 %v3883_v43, %s5950_s27  ;;  %v3585_v38 = vpop.permute.xlu0 %3584  ;;  %v3884_v33 = vmul.f32 %v3575_v10, %v6614_v47 }
 0x425   : > { %v3886_v45 = vmul.f32 %v3585_v38, %v6622_v53 }
 0x426   : > { %4267 = vrot.lane.b32.xlu0 %v3882_v52, %s5950_s27 }
 0x427   : > { %v3590_v4 = vpop.permute.xlu1 %3589 }
 0x428   : > { %4016 = vrot.lane.b32.xlu1 %v3885_v19, %s5949_s26  ;;  %v3887_v42 = vmul.f32 %v3590_v4, %v6619_v51 }
 0x42a   : > { %v3595_v41 = vpop.permute.xlu0 %3594  ;;  %4014 = vrot.lane.b32.xlu0 %v3884_v33, %s5949_s26 }
 0x42b   : > { %v3600_v9 = vpop.permute.xlu1 %3599  ;;  %v3888_v2 = vmul.f32 %v3595_v41, %v6630_v59 }
 0x42c   : > { %4273 = vrot.lane.b32.xlu1 %v3885_v19, %s5950_s27  ;;  %v3889_v39 = vmul.f32 %v3600_v9, %v6627_v57 }
 0x42e   : > { %v3605_v55 = vpop.permute.xlu0 %3604  ;;  %4271 = vrot.lane.b32.xlu0 %v3884_v33, %s5950_s27 }
 0x42f   : > { %v3610_v15 = vpop.permute.xlu1 %3609  ;;  %v3890_v62 = vmul.f32 %v3605_v55, %v6638_v5 }
 0x430   : > { %4020 = vrot.lane.b32.xlu1 %v3887_v42, %s5949_s26  ;;  %v3891_v40 = vmul.f32 %v3610_v15, %v6635_v3 }
 0x432   : > { %v3615_v13 = vpop.permute.xlu0 %3614  ;;  %4018 = vrot.lane.b32.xlu0 %v3886_v45, %s5949_s26 }
 0x433   : > { %v3620_v47 = vpop.permute.xlu1 %3619  ;;  %v3892_v38 = vmul.f32 %v3615_v13, %v6646_v16 }
 0x434   : > { %4277 = vrot.lane.b32.xlu1 %v3887_v42, %s5950_s27  ;;  %v3893_v52 = vmul.f32 %v3620_v47, %v6643_v12 }
 0x436   : > { %v3625_v30 = vpop.permute.xlu0 %3624  ;;  %4275 = vrot.lane.b32.xlu0 %v3886_v45, %s5950_s27 }
 0x437   : > { %v3630_v51 = vpop.permute.xlu1 %3629  ;;  %v3894_v41 = vmul.f32 %v3625_v30, %v6654_v26 }
 0x438   : > { %4024 = vrot.lane.b32.xlu1 %v3889_v39, %s5949_s26  ;;  %v3895_v4 = vmul.f32 %v3630_v51, %v6651_v23 }
 0x43a   : > { %v3635_v21 = vpop.permute.xlu0 %3634  ;;  %4022 = vrot.lane.b32.xlu0 %v3888_v2, %s5949_s26 }
 0x43b   : > { %v3640_v53 = vpop.permute.xlu1 %3639  ;;  %v3896_v15 = vmul.f32 %v3635_v21, %v6662_v37 }
 0x43c   : > { %4281 = vrot.lane.b32.xlu1 %v3889_v39, %s5950_s27  ;;  %v3897_v42 = vmul.f32 %v3640_v53, %v6659_v25 }
 0x43e   : > { %v3645_v43 = vpop.permute.xlu0 %3644  ;;  %4279 = vrot.lane.b32.xlu0 %v3888_v2, %s5950_s27 }
 0x43f   : > { %v3650_v57 = vpop.permute.xlu1 %3649  ;;  %v3898_v37 = vmul.f32 %v3645_v43, %v6670_v54 }
 0x440   : > { %4028 = vrot.lane.b32.xlu1 %v3891_v40, %s5949_s26  ;;  %v3899_v25 = vmul.f32 %v3650_v57, %v6667_v49 }
 0x442   : > { %4026 = vrot.lane.b32.xlu0 %v3890_v62, %s5949_s26 }
 0x443   : > { %v3655_v59 = vpop.permute.xlu0 %3654  ;;  %v3660_v48 = vpop.permute.xlu1 %3659 }
 0x444   : > { %4285 = vrot.lane.b32.xlu1 %v3891_v40, %s5950_s27  ;;  %v3901_v49 = vmul.f32 %v3660_v48, %v6675_v1  ;;  %v3900_v54 = vmul.f32 %v3655_v59, %v6678_v6 }
 0x446   : > { %4283 = vrot.lane.b32.xlu0 %v3890_v62, %s5950_s27 }
 0x447   : > { %v3665_v10 = vpop.permute.xlu0 %3664  ;;  %v3670_v3 = vpop.permute.xlu1 %3669 }
 0x448   : > { %4032 = vrot.lane.b32.xlu1 %v3893_v52, %s5949_s26  ;;  %v3903_v1 = vmul.f32 %v3670_v3, %v6683_v18  ;;  %v3902_v6 = vmul.f32 %v3665_v10, %v6686_v22 }
 0x44a   : > { %4030 = vrot.lane.b32.xlu0 %v3892_v38, %s5949_s26 }
 0x44b   : > { %v3675_v5 = vpop.permute.xlu0 %3674  ;;  %v3680_v19 = vpop.permute.xlu1 %3679 }
 0x44c   : > { %4289 = vrot.lane.b32.xlu1 %v3893_v52, %s5950_s27  ;;  %v3905_v18 = vmul.f32 %v3680_v19, %v6691_v31  ;;  %v3904_v22 = vmul.f32 %v3675_v5, %v6694_v36 }
 0x44e   : > { %4287 = vrot.lane.b32.xlu0 %v3892_v38, %s5950_s27 }
 0x44f   : > { %v3685_v33 = vpop.permute.xlu0 %3684  ;;  %v3690_v12 = vpop.permute.xlu1 %3689 }
 0x450   : > { %4036 = vrot.lane.b32.xlu1 %v3895_v4, %s5949_s26  ;;  %v3907_v31 = vmul.f32 %v3690_v12, %v6699_v50  ;;  %v3906_v36 = vmul.f32 %v3685_v33, %v6702_v58 }
 0x452   : > { %4034 = vrot.lane.b32.xlu0 %v3894_v41, %s5949_s26 }
 0x453   : > { %v6900_v16 = vpop.permute.xlu0 %3694  ;;  %v3700_v9 = vpop.permute.xlu1 %3699 }
 0x454   : > { %4293 = vrot.lane.b32.xlu1 %v3895_v4, %s5950_s27  ;;  %v3909_v50 = vmul.f32 %v3700_v9, %v6707_v7  ;;  %v3908_v58 = vmul.f32 %v6900_v16, %v6710_v11 }
 0x456   : > { %4291 = vrot.lane.b32.xlu0 %v3894_v41, %s5950_s27 }
 0x457   : > { %v6905_v23 = vpop.permute.xlu0 %3704  ;;  %v6907_v55 = vpop.permute.xlu1 %3709 }
 0x458   : > { %4040 = vrot.lane.b32.xlu1 %v3897_v42, %s5949_s26  ;;  %v3911_v7 = vmul.f32 %v6907_v55, %v6715_v27  ;;  %v3910_v11 = vmul.f32 %v6905_v23, %v6718_v32 }
 0x45a   : > { %4038 = vrot.lane.b32.xlu0 %v3896_v15, %s5949_s26 }
 0x45b   : > { %v6912_v26 = vpop.permute.xlu0 %3714  ;;  %v6914_v45 = vpop.permute.xlu1 %3719 }
 0x45c   : > { %4297 = vrot.lane.b32.xlu1 %v3897_v42, %s5950_s27  ;;  %v3913_v27 = vmul.f32 %v6914_v45, %v6723_v46  ;;  %v3912_v32 = vmul.f32 %v6912_v26, %v6726_v56 }
 0x45e   : > { %4295 = vrot.lane.b32.xlu0 %v3896_v15, %s5950_s27 }
 0x45f   : > { %v6919_v13 = vpop.permute.xlu0 %3724  ;;  %v6921_v47 = vpop.permute.xlu1 %3729 }
 0x460   : > { %4044 = vrot.lane.b32.xlu1 %v3899_v25, %s5949_s26  ;;  %v3915_v46 = vmul.f32 %v6921_v47, %v6731_v8  ;;  %v3914_v45 = vmul.f32 %v6919_v13, %v6734_v14 }
 0x462   : > { %4042 = vrot.lane.b32.xlu0 %v3898_v37, %s5949_s26 }
 0x463   : > { %v6926_v39 = vpop.permute.xlu0 %3734  ;;  %v6928_v30 = vpop.permute.xlu1 %3739 }
 0x464   : > { %4301 = vrot.lane.b32.xlu1 %v3899_v25, %s5950_s27  ;;  %v3917_v13 = vmul.f32 %v6928_v30, %v6739_v29 }
 0x466   : > { %4299 = vrot.lane.b32.xlu0 %v3898_v37, %s5950_s27 }
 0x467   : > { %v6933_v51 = vpop.permute.xlu0 %3744  ;;  %v6935_v2 = vpop.permute.xlu1 %3749 }
 0x468   : > { %4048 = vrot.lane.b32.xlu1 %v3901_v49, %s5949_s26 }
 0x46a   : > { %4046 = vrot.lane.b32.xlu0 %v3900_v54, %s5949_s26 }
 0x46b   : > { %v6940_v21 = vpop.permute.xlu0 %3754  ;;  %v6942_v53 = vpop.permute.xlu1 %3759 }
 0x46c   : > { %4305 = vrot.lane.b32.xlu1 %v3901_v49, %s5950_s27 }
 0x46e   : > { %4303 = vrot.lane.b32.xlu0 %v3900_v54, %s5950_s27  ;;  %v3916_v54 = vmul.f32 %v6926_v39, %v6742_v35  ;;  %v3919_v35 = vmul.f32 %v6935_v2, %v6747_v60 }
 0x46f   : > { %v6947_v40 = vpop.permute.xlu0 %3764  ;;  %v6949_v43 = vpop.permute.xlu1 %3769 }
 0x470   : > { %4052 = vrot.lane.b32.xlu1 %v3903_v1, %s5949_s26 }
 0x472   : > { %4050 = vrot.lane.b32.xlu0 %v3902_v6, %s5949_s26 }
 0x473   : > { %v6954_v57 = vpop.permute.xlu0 %3774  ;;  %v6956_v62 = vpop.permute.xlu1 %3779 }
 0x474   : > { %4309 = vrot.lane.b32.xlu1 %v3903_v1, %s5950_s27 }
 0x476   : > { %4307 = vrot.lane.b32.xlu0 %v3902_v6, %s5950_s27  ;;  %v3918_v6 = vmul.f32 %v6933_v51, %v6750_v63  ;;  %v3921_v63 = vmul.f32 %v6942_v53, %v6755_v20 }
 0x477   : > { %v6961_v59 = vpop.permute.xlu0 %3784  ;;  %v6963_v48 = vpop.permute.xlu1 %3789 }
 0x478   : > { %4056 = vrot.lane.b32.xlu1 %v3905_v18, %s5949_s26 }
 0x47a   : > { %4054 = vrot.lane.b32.xlu0 %v3904_v22, %s5949_s26 }
 0x47b   : > { %v6968_v52 = vpop.permute.xlu0 %3794  ;;  %v6970_v10 = vpop.permute.xlu1 %3799 }
 0x47c   : > { %4313 = vrot.lane.b32.xlu1 %v3905_v18, %s5950_s27 }
 0x47e   : > { %4311 = vrot.lane.b32.xlu0 %v3904_v22, %s5950_s27  ;;  %v3920_v22 = vmul.f32 %v6940_v21, %v6758_v24  ;;  %v3923_v24 = vmul.f32 %v6949_v43, %v6763_v44 }
 0x47f   : > { %v6975_v3 = vpop.permute.xlu0 %3804  ;;  %v6977_v38 = vpop.permute.xlu1 %3809 }
 0x480   : > { %4060 = vrot.lane.b32.xlu1 %v3907_v31, %s5949_s26 }
 0x482   : > { %4058 = vrot.lane.b32.xlu0 %v3906_v36, %s5949_s26 }
 0x483   : > { %v6982_v5 = vpop.permute.xlu0 %3814  ;;  %v6984_v19 = vpop.permute.xlu1 %3819 }
 0x484   : > { %4317 = vrot.lane.b32.xlu1 %v3907_v31, %s5950_s27 }
 0x486   : > { %4315 = vrot.lane.b32.xlu0 %v3906_v36, %s5950_s27  ;;  %v3922_v36 = vmul.f32 %v6947_v40, %v6766_v61  ;;  %v3925_v61 = vmul.f32 %v6956_v62, %v6771_v17 }
 0x487   : > { %v6989_v4 = vpop.permute.xlu0 %3824  ;;  %v6991_v12 = vpop.permute.xlu1 %3829 }
 0x488   : > { %4064 = vrot.lane.b32.xlu1 %v3909_v50, %s5949_s26 }
 0x48a   : > { %4062 = vrot.lane.b32.xlu0 %v3908_v58, %s5949_s26 }
 0x48b   : > { %v6997_v33 = vpop.permute.xlu0 %3834  ;;  %v6999_v41 = vpop.permute.xlu1 %3839 }
 0x48c   : > { %4321 = vrot.lane.b32.xlu1 %v3909_v50, %s5950_s27 }
 0x48e   : > { %4319 = vrot.lane.b32.xlu0 %v3908_v58, %s5950_s27  ;;  %v3924_v58 = vmul.f32 %v6954_v57, %v6774_v28  ;;  %v3927_v28 = vmul.f32 %v6963_v48, %v6779_v34 }
 0x48f   : > { %v7005_v9 = vpop.permute.xlu0 %3844  ;;  %v7007_v42 = vpop.permute.xlu1 %3849 }
 0x490   : > { %4068 = vrot.lane.b32.xlu1 %v3911_v7, %s5949_s26 }
 0x492   : > { %4066 = vrot.lane.b32.xlu0 %v3910_v11, %s5949_s26 }
 0x493   : > { %v7013_v16 = vpop.permute.xlu0 %3854  ;;  %v7015_v15 = vpop.permute.xlu1 %3859 }
 0x494   : > { %4325 = vrot.lane.b32.xlu1 %v3911_v7, %s5950_s27 }
 0x496   : > { %4323 = vrot.lane.b32.xlu0 %v3910_v11, %s5950_s27  ;;  %v7481_v11 = vld [vmem:[#allocation2_spill] sm:$0xff] }
 0x497   : > { %v7021_v55 = vpop.permute.xlu0 %3864  ;;  %v7023_v25 = vpop.permute.xlu1 %3869 }
 0x498   : > { %4072 = vrot.lane.b32.xlu1 %v3913_v27, %s5949_s26 }
 0x49a   : > { %4070 = vrot.lane.b32.xlu0 %v3912_v32, %s5949_s26 }
 0x49b   : > { %v7029_v23 = vpop.permute.xlu0 %3874  ;;  %v7031_v37 = vpop.permute.xlu1 %3879 }
 0x49c   : > { %4329 = vrot.lane.b32.xlu1 %v3913_v27, %s5950_s27  ;;  %v3926_v27 = vmul.f32 %v6961_v59, %v7481_v11  ;;  %v7482_v59 = vld [vmem:[#allocation3_spill] sm:$0xff] }
 0x49d   : > { %v3929_v48 = vmul.f32 %v6970_v10, %v7482_v59 }
 0x49e   : > { %4327 = vrot.lane.b32.xlu0 %v3912_v32, %s5950_s27 }
 0x49f   : > { %v4011_v56 = vpop.permute.xlu0 %4010  ;;  %v4013_v26 = vpop.permute.xlu1 %4012 }
 0x4a0   : > { %4203 = vst.msk [vmem:[%s7038_s30] sm:$0xff] %vm4202_vm1, %v4011_v56  ;;  %4204 = vst.msk [vmem:[%s7038_s30 + $0x8] sm:$0xff] %vm4202_vm1, %v4013_v26  ;;  %4076 = vrot.lane.b32.xlu1 %v3915_v46, %s5949_s26  ;;  %v7483_v26 = vld [vmem:[#allocation4_spill] sm:$0xff] }
 0x4a2   : > { %4074 = vrot.lane.b32.xlu0 %v3914_v45, %s5949_s26 }
 0x4a3   : > { %v4268_v8 = vpop.permute.xlu0 %4267  ;;  %v4270_v14 = vpop.permute.xlu1 %4269 }
 0x4a4   : > { %4459 = vst.msk [vmem:[%s7054_s14] sm:$0xff] %vm4202_vm1, %v4268_v8  ;;  %4460 = vst.msk [vmem:[%s7054_s14 + $0x8] sm:$0xff] %vm4202_vm1, %v4270_v14  ;;  %4333 = vrot.lane.b32.xlu1 %v3915_v46, %s5950_s27 }
 0x4a6   : > { %4331 = vrot.lane.b32.xlu0 %v3914_v45, %s5950_s27  ;;  %v3928_v45 = vmul.f32 %v6968_v52, %v7483_v26  ;;  %v7484_v52 = vld [vmem:[#allocation5_spill] sm:$0xff] }
 0x4a7   : > { %v4015_v47 = vpop.permute.xlu0 %4014  ;;  %v4017_v49 = vpop.permute.xlu1 %4016  ;;  %v3931_v14 = vmul.f32 %v6977_v38, %v7484_v52 }
 0x4a8   : > { %4205 = vst.msk [vmem:[%s7038_s30 + $0x10] sm:$0xff] %vm4202_vm1, %v4015_v47  ;;  %4206 = vst.msk [vmem:[%s7038_s30 + $0x18] sm:$0xff] %vm4202_vm1, %v4017_v49  ;;  %4080 = vrot.lane.b32.xlu1 %v3917_v13, %s5949_s26  ;;  %v7485_v49 = vld [vmem:[#allocation6_spill] sm:$0xff] }
 0x4aa   : > { %4078 = vrot.lane.b32.xlu0 %v3916_v54, %s5949_s26 }
 0x4ab   : > { %v4272_v1 = vpop.permute.xlu0 %4271  ;;  %v4274_v29 = vpop.permute.xlu1 %4273 }
 0x4ac   : > { %4461 = vst.msk [vmem:[%s7054_s14 + $0x10] sm:$0xff] %vm4202_vm1, %v4272_v1  ;;  %4462 = vst.msk [vmem:[%s7054_s14 + $0x18] sm:$0xff] %vm4202_vm1, %v4274_v29  ;;  %4337 = vrot.lane.b32.xlu1 %v3917_v13, %s5950_s27 }
 0x4ae   : > { %4335 = vrot.lane.b32.xlu0 %v3916_v54, %s5950_s27  ;;  %v3930_v54 = vmul.f32 %v6975_v3, %v7485_v49  ;;  %v7486_v3 = vld [vmem:[#allocation7_spill] sm:$0xff] }
 0x4af   : > { %v4019_v39 = vpop.permute.xlu0 %4018  ;;  %v4021_v30 = vpop.permute.xlu1 %4020  ;;  %v3933_v29 = vmul.f32 %v6984_v19, %v7486_v3 }
 0x4b0   : > { %4207 = vst.msk [vmem:[%s7038_s30 + $0x20] sm:$0xff] %vm4202_vm1, %v4019_v39  ;;  %4208 = vst.msk [vmem:[%s7038_s30 + $0x28] sm:$0xff] %vm4202_vm1, %v4021_v30  ;;  %4084 = vrot.lane.b32.xlu1 %v3919_v35, %s5949_s26  ;;  %v7487_v30 = vld [vmem:[#allocation8_spill] sm:$0xff] }
 0x4b2   : > { %4082 = vrot.lane.b32.xlu0 %v3918_v6, %s5949_s26 }
 0x4b3   : > { %v4276_v18 = vpop.permute.xlu0 %4275  ;;  %v4278_v60 = vpop.permute.xlu1 %4277 }
 0x4b4   : > { %4463 = vst.msk [vmem:[%s7054_s14 + $0x20] sm:$0xff] %vm4202_vm1, %v4276_v18  ;;  %4464 = vst.msk [vmem:[%s7054_s14 + $0x28] sm:$0xff] %vm4202_vm1, %v4278_v60  ;;  %4341 = vrot.lane.b32.xlu1 %v3919_v35, %s5950_s27 }
 0x4b6   : > { %4339 = vrot.lane.b32.xlu0 %v3918_v6, %s5950_s27  ;;  %v3932_v6 = vmul.f32 %v6982_v5, %v7487_v30  ;;  %v3935_v5 = vmul.f32 %v6991_v12, %v6811_v0 }
 0x4b7   : > { %v4023_v51 = vpop.permute.xlu0 %4022  ;;  %v4025_v2 = vpop.permute.xlu1 %4024 }
 0x4b8   : > { %4209 = vst.msk [vmem:[%s7038_s30 + $0x30] sm:$0xff] %vm4202_vm1, %v4023_v51  ;;  %4210 = vst.msk [vmem:[%s7038_s30 + $0x38] sm:$0xff] %vm4202_vm1, %v4025_v2  ;;  %4088 = vrot.lane.b32.xlu1 %v3921_v63, %s5949_s26  ;;  %v7488_v51 = vld [vmem:[#allocation9_spill] sm:$0xff] }
 0x4b9   : > { %v3934_v2 = vmul.f32 %v6989_v4, %v7488_v51  ;;  %v7489_v4 = vld [vmem:[#allocation10_spill] sm:$0xff] }
 0x4ba   : > { %4086 = vrot.lane.b32.xlu0 %v3920_v22, %s5949_s26  ;;  %v3937_v12 = vmul.f32 %v6999_v41, %v7489_v4 }
 0x4bb   : > { %v4280_v31 = vpop.permute.xlu0 %4279  ;;  %v4282_v20 = vpop.permute.xlu1 %4281 }
 0x4bc   : > { %4465 = vst.msk [vmem:[%s7054_s14 + $0x30] sm:$0xff] %vm4202_vm1, %v4280_v31  ;;  %4466 = vst.msk [vmem:[%s7054_s14 + $0x38] sm:$0xff] %vm4202_vm1, %v4282_v20  ;;  %4345 = vrot.lane.b32.xlu1 %v3921_v63, %s5950_s27 }
 0x4be   : > { %4343 = vrot.lane.b32.xlu0 %v3920_v22, %s5950_s27 }
 0x4bf   : > { %v4027_v21 = vpop.permute.xlu0 %4026  ;;  %v4029_v53 = vpop.permute.xlu1 %4028 }
 0x4c0   : > { %4211 = vst.msk [vmem:[%s7038_s30 + $0x40] sm:$0xff] %vm4202_vm1, %v4027_v21  ;;  %4212 = vst.msk [vmem:[%s7038_s30 + $0x48] sm:$0xff] %vm4202_vm1, %v4029_v53  ;;  %4092 = vrot.lane.b32.xlu1 %v3923_v24, %s5949_s26 }
 0x4c2   : > { %4090 = vrot.lane.b32.xlu0 %v3922_v36, %s5949_s26 }
 0x4c3   : > { %v4284_v50 = vpop.permute.xlu0 %4283  ;;  %v4286_v44 = vpop.permute.xlu1 %4285 }
 0x4c4   : > { %4467 = vst.msk [vmem:[%s7054_s14 + $0x40] sm:$0xff] %vm4202_vm1, %v4284_v50  ;;  %4468 = vst.msk [vmem:[%s7054_s14 + $0x48] sm:$0xff] %vm4202_vm1, %v4286_v44  ;;  %4349 = vrot.lane.b32.xlu1 %v3923_v24, %s5950_s27  ;;  %v7490_v24 = vld [vmem:[#allocation11_spill] sm:$0xff] }
 0x4c5   : > { %v3936_v21 = vmul.f32 %v6997_v33, %v7490_v24  ;;  %v7491_v33 = vld [vmem:[#allocation12_spill] sm:$0xff] }
 0x4c6   : > { %4347 = vrot.lane.b32.xlu0 %v3922_v36, %s5950_s27  ;;  %v3939_v36 = vmul.f32 %v7007_v42, %v7491_v33 }
 0x4c7   : > { %v4031_v40 = vpop.permute.xlu0 %4030  ;;  %v4033_v43 = vpop.permute.xlu1 %4032 }
 0x4c8   : > { %4213 = vst.msk [vmem:[%s7038_s30 + $0x50] sm:$0xff] %vm4202_vm1, %v4031_v40  ;;  %4214 = vst.msk [vmem:[%s7038_s30 + $0x58] sm:$0xff] %vm4202_vm1, %v4033_v43  ;;  %4096 = vrot.lane.b32.xlu1 %v3925_v61, %s5949_s26 }
 0x4ca   : > { %4094 = vrot.lane.b32.xlu0 %v3924_v58, %s5949_s26 }
 0x4cb   : > { %v4288_v7 = vpop.permute.xlu0 %4287  ;;  %v4290_v17 = vpop.permute.xlu1 %4289 }
 0x4cc   : > { %4469 = vst.msk [vmem:[%s7054_s14 + $0x50] sm:$0xff] %vm4202_vm1, %v4288_v7  ;;  %4470 = vst.msk [vmem:[%s7054_s14 + $0x58] sm:$0xff] %vm4202_vm1, %v4290_v17  ;;  %4353 = vrot.lane.b32.xlu1 %v3925_v61, %s5950_s27  ;;  %v7492_v61 = vld [vmem:[#allocation13_spill] sm:$0xff] }
 0x4cd   : > { %v3938_v40 = vmul.f32 %v7005_v9, %v7492_v61  ;;  %v7493_v9 = vld [vmem:[#allocation14_spill] sm:$0xff] }
 0x4ce   : > { %4351 = vrot.lane.b32.xlu0 %v3924_v58, %s5950_s27  ;;  %v3941_v58 = vmul.f32 %v7015_v15, %v7493_v9 }
 0x4cf   : > { %v4035_v57 = vpop.permute.xlu0 %4034  ;;  %v4037_v62 = vpop.permute.xlu1 %4036 }
 0x4d0   : > { %4215 = vst.msk [vmem:[%s7038_s30 + $0x60] sm:$0xff] %vm4202_vm1, %v4035_v57  ;;  %4216 = vst.msk [vmem:[%s7038_s30 + $0x68] sm:$0xff] %vm4202_vm1, %v4037_v62  ;;  %4100 = vrot.lane.b32.xlu1 %v3927_v28, %s5949_s26 }
 0x4d2   : > { %4098 = vrot.lane.b32.xlu0 %v3926_v27, %s5949_s26 }
 0x4d3   : > { %v4292_v32 = vpop.permute.xlu0 %4291  ;;  %v4294_v34 = vpop.permute.xlu1 %4293 }
 0x4d4   : > { %4471 = vst.msk [vmem:[%s7054_s14 + $0x60] sm:$0xff] %vm4202_vm1, %v4292_v32  ;;  %4472 = vst.msk [vmem:[%s7054_s14 + $0x68] sm:$0xff] %vm4202_vm1, %v4294_v34  ;;  %4357 = vrot.lane.b32.xlu1 %v3927_v28, %s5950_s27  ;;  %v7494_v28 = vld [vmem:[#allocation15_spill] sm:$0xff]  ;;  %v7496_v34 = vld [vmem:[#allocation17_spill] sm:$0xff] }
 0x4d5   : > { %v3940_v57 = vmul.f32 %v7013_v16, %v7494_v28  ;;  %v7495_v16 = vld [vmem:[#allocation16_spill] sm:$0xff]  ;;  %v3942_v59 = vmul.f32 %v7021_v55, %v7496_v34  ;;  %v7497_v55 = vld [vmem:[#allocation18_spill] sm:$0xff] }
 0x4d6   : > { %4355 = vrot.lane.b32.xlu0 %v3926_v27, %s5950_s27  ;;  %v3943_v11 = vmul.f32 %v7023_v25, %v7495_v16 }
 0x4d7   : > { %v4039_v46 = vpop.permute.xlu0 %4038  ;;  %v4041_v56 = vpop.permute.xlu1 %4040 }
 0x4d8   : > { %4217 = vst.msk [vmem:[%s7038_s30 + $0x70] sm:$0xff] %vm4202_vm1, %v4039_v46  ;;  %4218 = vst.msk [vmem:[%s7038_s30 + $0x78] sm:$0xff] %vm4202_vm1, %v4041_v56  ;;  %4104 = vrot.lane.b32.xlu1 %v3929_v48, %s5949_s26  ;;  %v3945_v46 = vmul.f32 %v7031_v37, %v7497_v55 }
 0x4da   : > { %4102 = vrot.lane.b32.xlu0 %v3928_v45, %s5949_s26 }
 0x4db   : > { %v4296_v8 = vpop.permute.xlu0 %4295  ;;  %v4298_v10 = vpop.permute.xlu1 %4297 }
 0x4dc   : > { %4473 = vst.msk [vmem:[%s7054_s14 + $0x70] sm:$0xff] %vm4202_vm1, %v4296_v8  ;;  %4474 = vst.msk [vmem:[%s7054_s14 + $0x78] sm:$0xff] %vm4202_vm1, %v4298_v10  ;;  %4361 = vrot.lane.b32.xlu1 %v3929_v48, %s5950_s27 }
 0x4de   : > { %4359 = vrot.lane.b32.xlu0 %v3928_v45, %s5950_s27  ;;  %v7498_v45 = vld [vmem:[#allocation19_spill] sm:$0xff] }
 0x4df   : > { %v4043_v13 = vpop.permute.xlu0 %4042  ;;  %v4045_v47 = vpop.permute.xlu1 %4044  ;;  %v3944_v8 = vmul.f32 %v7029_v23, %v7498_v45 }
 0x4e0   : > { %4219 = vst.msk [vmem:[%s7038_s30 + $0x80] sm:$0xff] %vm4202_vm1, %v4043_v13  ;;  %4220 = vst.msk [vmem:[%s7038_s30 + $0x88] sm:$0xff] %vm4202_vm1, %v4045_v47  ;;  %4108 = vrot.lane.b32.xlu1 %v3931_v14, %s5949_s26 }
 0x4e2   : > { %4106 = vrot.lane.b32.xlu0 %v3930_v54, %s5949_s26 }
 0x4e3   : > { %v4300_v1 = vpop.permute.xlu0 %4299  ;;  %v4302_v38 = vpop.permute.xlu1 %4301 }
 0x4e4   : > { %4475 = vst.msk [vmem:[%s7054_s14 + $0x80] sm:$0xff] %vm4202_vm1, %v4300_v1  ;;  %4476 = vst.msk [vmem:[%s7054_s14 + $0x88] sm:$0xff] %vm4202_vm1, %v4302_v38  ;;  %4365 = vrot.lane.b32.xlu1 %v3931_v14, %s5950_s27 }
 0x4e6   : > { %4363 = vrot.lane.b32.xlu0 %v3930_v54, %s5950_s27 }
 0x4e7   : > { %v4047_v35 = vpop.permute.xlu0 %4046  ;;  %v4049_v39 = vpop.permute.xlu1 %4048 }
 0x4e8   : > { %4221 = vst.msk [vmem:[%s7038_s30 + $0x90] sm:$0xff] %vm4202_vm1, %v4047_v35  ;;  %4222 = vst.msk [vmem:[%s7038_s30 + $0x98] sm:$0xff] %vm4202_vm1, %v4049_v39  ;;  %4112 = vrot.lane.b32.xlu1 %v3933_v29, %s5949_s26 }
 0x4ea   : > { %4110 = vrot.lane.b32.xlu0 %v3932_v6, %s5949_s26 }
 0x4eb   : > { %v4304_v18 = vpop.permute.xlu0 %4303  ;;  %v4306_v19 = vpop.permute.xlu1 %4305 }
 0x4ec   : > { %4477 = vst.msk [vmem:[%s7054_s14 + $0x90] sm:$0xff] %vm4202_vm1, %v4304_v18  ;;  %4478 = vst.msk [vmem:[%s7054_s14 + $0x98] sm:$0xff] %vm4202_vm1, %v4306_v19  ;;  %4369 = vrot.lane.b32.xlu1 %v3933_v29, %s5950_s27 }
 0x4ee   : > { %4367 = vrot.lane.b32.xlu0 %v3932_v6, %s5950_s27 }
 0x4ef   : > { %v4051_v60 = vpop.permute.xlu0 %4050  ;;  %v4053_v63 = vpop.permute.xlu1 %4052 }
 0x4f0   : > { %4223 = vst.msk [vmem:[%s7038_s30 + $0xa0] sm:$0xff] %vm4202_vm1, %v4051_v60  ;;  %4224 = vst.msk [vmem:[%s7038_s30 + $0xa8] sm:$0xff] %vm4202_vm1, %v4053_v63  ;;  %4116 = vrot.lane.b32.xlu1 %v3935_v5, %s5949_s26 }
 0x4f2   : > { %4114 = vrot.lane.b32.xlu0 %v3934_v2, %s5949_s26 }
 0x4f3   : > { %v4308_v22 = vpop.permute.xlu0 %4307  ;;  %v4310_v0 = vpop.permute.xlu1 %4309 }
 0x4f4   : > { %4479 = vst.msk [vmem:[%s7054_s14 + $0xa0] sm:$0xff] %vm4202_vm1, %v4308_v22  ;;  %4480 = vst.msk [vmem:[%s7054_s14 + $0xa8] sm:$0xff] %vm4202_vm1, %v4310_v0  ;;  %4373 = vrot.lane.b32.xlu1 %v3935_v5, %s5950_s27 }
 0x4f6   : > { %4371 = vrot.lane.b32.xlu0 %v3934_v2, %s5950_s27 }
 0x4f7   : > { %v4055_v31 = vpop.permute.xlu0 %4054  ;;  %v4057_v20 = vpop.permute.xlu1 %4056 }
 0x4f8   : > { %4225 = vst.msk [vmem:[%s7038_s30 + $0xb0] sm:$0xff] %vm4202_vm1, %v4055_v31  ;;  %4226 = vst.msk [vmem:[%s7038_s30 + $0xb8] sm:$0xff] %vm4202_vm1, %v4057_v20  ;;  %4120 = vrot.lane.b32.xlu1 %v3937_v12, %s5949_s26 }
 0x4fa   : > { %4118 = vrot.lane.b32.xlu0 %v3936_v21, %s5949_s26 }
 0x4fb   : > { %v4312_v53 = vpop.permute.xlu0 %4311  ;;  %v4314_v41 = vpop.permute.xlu1 %4313 }
 0x4fc   : > { %4481 = vst.msk [vmem:[%s7054_s14 + $0xb0] sm:$0xff] %vm4202_vm1, %v4312_v53  ;;  %4482 = vst.msk [vmem:[%s7054_s14 + $0xb8] sm:$0xff] %vm4202_vm1, %v4314_v41  ;;  %4377 = vrot.lane.b32.xlu1 %v3937_v12, %s5950_s27 }
 0x4fe   : > { %4375 = vrot.lane.b32.xlu0 %v3936_v21, %s5950_s27 }
 0x4ff   : > { %v4059_v50 = vpop.permute.xlu0 %4058  ;;  %v4061_v44 = vpop.permute.xlu1 %4060 }
 0x500   : > { %4227 = vst.msk [vmem:[%s7038_s30 + $0xc0] sm:$0xff] %vm4202_vm1, %v4059_v50  ;;  %4228 = vst.msk [vmem:[%s7038_s30 + $0xc8] sm:$0xff] %vm4202_vm1, %v4061_v44  ;;  %4124 = vrot.lane.b32.xlu1 %v3939_v36, %s5949_s26 }
 0x502   : > { %4122 = vrot.lane.b32.xlu0 %v3938_v40, %s5949_s26 }
 0x503   : > { %v4316_v43 = vpop.permute.xlu0 %4315  ;;  %v4318_v42 = vpop.permute.xlu1 %4317 }
 0x504   : > { %4483 = vst.msk [vmem:[%s7054_s14 + $0xc0] sm:$0xff] %vm4202_vm1, %v4316_v43  ;;  %4484 = vst.msk [vmem:[%s7054_s14 + $0xc8] sm:$0xff] %vm4202_vm1, %v4318_v42  ;;  %4381 = vrot.lane.b32.xlu1 %v3939_v36, %s5950_s27 }
 0x506   : > { %4379 = vrot.lane.b32.xlu0 %v3938_v40, %s5950_s27 }
 0x507   : > { %v4063_v7 = vpop.permute.xlu0 %4062  ;;  %v4065_v17 = vpop.permute.xlu1 %4064 }
 0x508   : > { %4229 = vst.msk [vmem:[%s7038_s30 + $0xd0] sm:$0xff] %vm4202_vm1, %v4063_v7  ;;  %4230 = vst.msk [vmem:[%s7038_s30 + $0xd8] sm:$0xff] %vm4202_vm1, %v4065_v17  ;;  %4128 = vrot.lane.b32.xlu1 %v3941_v58, %s5949_s26 }
 0x50a   : > { %4126 = vrot.lane.b32.xlu0 %v3940_v57, %s5949_s26 }
 0x50b   : > { %v4320_v62 = vpop.permute.xlu0 %4319  ;;  %v4322_v15 = vpop.permute.xlu1 %4321 }
 0x50c   : > { %4485 = vst.msk [vmem:[%s7054_s14 + $0xd0] sm:$0xff] %vm4202_vm1, %v4320_v62  ;;  %4486 = vst.msk [vmem:[%s7054_s14 + $0xd8] sm:$0xff] %vm4202_vm1, %v4322_v15  ;;  %4385 = vrot.lane.b32.xlu1 %v3941_v58, %s5950_s27 }
 0x50e   : > { %4383 = vrot.lane.b32.xlu0 %v3940_v57, %s5950_s27 }
 0x50f   : > { %v4067_v27 = vpop.permute.xlu0 %4066  ;;  %v4069_v32 = vpop.permute.xlu1 %4068 }
 0x510   : > { %4231 = vst.msk [vmem:[%s7038_s30 + $0xe0] sm:$0xff] %vm4202_vm1, %v4067_v27  ;;  %4232 = vst.msk [vmem:[%s7038_s30 + $0xe8] sm:$0xff] %vm4202_vm1, %v4069_v32  ;;  %4132 = vrot.lane.b32.xlu1 %v3943_v11, %s5949_s26 }
 0x512   : > { %4130 = vrot.lane.b32.xlu0 %v3942_v59, %s5949_s26 }
 0x513   : > { %v4324_v48 = vpop.permute.xlu0 %4323  ;;  %v4326_v25 = vpop.permute.xlu1 %4325 }
 0x514   : > { %4487 = vst.msk [vmem:[%s7054_s14 + $0xe0] sm:$0xff] %vm4202_vm1, %v4324_v48  ;;  %4488 = vst.msk [vmem:[%s7054_s14 + $0xe8] sm:$0xff] %vm4202_vm1, %v4326_v25  ;;  %4389 = vrot.lane.b32.xlu1 %v3943_v11, %s5950_s27 }
 0x516   : > { %4387 = vrot.lane.b32.xlu0 %v3942_v59, %s5950_s27 }
 0x517   : > { %v4071_v56 = vpop.permute.xlu0 %4070  ;;  %v4073_v26 = vpop.permute.xlu1 %4072 }
 0x518   : > { %4233 = vst.msk [vmem:[%s7038_s30 + $0xf0] sm:$0xff] %vm4202_vm1, %v4071_v56  ;;  %4234 = vst.msk [vmem:[%s7038_s30 + $0xf8] sm:$0xff] %vm4202_vm1, %v4073_v26  ;;  %4136 = vrot.lane.b32.xlu1 %v3945_v46, %s5949_s26 }
 0x51a   : > { %4134 = vrot.lane.b32.xlu0 %v3944_v8, %s5949_s26 }
 0x51b   : > { %v4328_v37 = vpop.permute.xlu0 %4327  ;;  %v4330_v10 = vpop.permute.xlu1 %4329 }
 0x51c   : > { %4489 = vst.msk [vmem:[%s7054_s14 + $0xf0] sm:$0xff] %vm4202_vm1, %v4328_v37  ;;  %4490 = vst.msk [vmem:[%s7054_s14 + $0xf8] sm:$0xff] %vm4202_vm1, %v4330_v10  ;;  %4393 = vrot.lane.b32.xlu1 %v3945_v46, %s5950_s27 }
 0x51e   : > { %4391 = vrot.lane.b32.xlu0 %v3944_v8, %s5950_s27 }
 0x51f   : > { %v4075_v23 = vpop.permute.xlu0 %4074  ;;  %v4077_v52 = vpop.permute.xlu1 %4076 }
 0x520   : > { %4235 = vst.msk [vmem:[%s7038_s30 + $0x100] sm:$0xff] %vm4202_vm1, %v4075_v23  ;;  %4236 = vst.msk [vmem:[%s7038_s30 + $0x108] sm:$0xff] %vm4202_vm1, %v4077_v52 }
 0x523   : > { %v4332_v14 = vpop.permute.xlu0 %4331  ;;  %v4334_v13 = vpop.permute.xlu1 %4333 }
 0x524   : > { %4491 = vst.msk [vmem:[%s7054_s14 + $0x100] sm:$0xff] %vm4202_vm1, %v4332_v14  ;;  %4492 = vst.msk [vmem:[%s7054_s14 + $0x108] sm:$0xff] %vm4202_vm1, %v4334_v13 }
 0x527   : > { %v4079_v47 = vpop.permute.xlu0 %4078  ;;  %v4081_v49 = vpop.permute.xlu1 %4080 }
 0x528   : > { %4237 = vst.msk [vmem:[%s7038_s30 + $0x110] sm:$0xff] %vm4202_vm1, %v4079_v47  ;;  %4238 = vst.msk [vmem:[%s7038_s30 + $0x118] sm:$0xff] %vm4202_vm1, %v4081_v49 }
 0x52b   : > { %v4336_v54 = vpop.permute.xlu0 %4335  ;;  %v4338_v1 = vpop.permute.xlu1 %4337 }
 0x52c   : > { %4493 = vst.msk [vmem:[%s7054_s14 + $0x110] sm:$0xff] %vm4202_vm1, %v4336_v54  ;;  %4494 = vst.msk [vmem:[%s7054_s14 + $0x118] sm:$0xff] %vm4202_vm1, %v4338_v1 }
 0x52f   : > { %v4083_v38 = vpop.permute.xlu0 %4082  ;;  %v4085_v3 = vpop.permute.xlu1 %4084 }
 0x530   : > { %4239 = vst.msk [vmem:[%s7038_s30 + $0x120] sm:$0xff] %vm4202_vm1, %v4083_v38  ;;  %4240 = vst.msk [vmem:[%s7038_s30 + $0x128] sm:$0xff] %vm4202_vm1, %v4085_v3 }
 0x533   : > { %v4340_v29 = vpop.permute.xlu0 %4339  ;;  %v4342_v35 = vpop.permute.xlu1 %4341 }
 0x534   : > { %4495 = vst.msk [vmem:[%s7054_s14 + $0x120] sm:$0xff] %vm4202_vm1, %v4340_v29  ;;  %4496 = vst.msk [vmem:[%s7054_s14 + $0x128] sm:$0xff] %vm4202_vm1, %v4342_v35 }
 0x537   : > { %v4087_v39 = vpop.permute.xlu0 %4086  ;;  %v4089_v30 = vpop.permute.xlu1 %4088 }
 0x538   : > { %4241 = vst.msk [vmem:[%s7038_s30 + $0x130] sm:$0xff] %vm4202_vm1, %v4087_v39  ;;  %4242 = vst.msk [vmem:[%s7038_s30 + $0x138] sm:$0xff] %vm4202_vm1, %v4089_v30 }
 0x53b   : > { %v4344_v6 = vpop.permute.xlu0 %4343  ;;  %v4346_v18 = vpop.permute.xlu1 %4345 }
 0x53c   : > { %4497 = vst.msk [vmem:[%s7054_s14 + $0x130] sm:$0xff] %vm4202_vm1, %v4344_v6  ;;  %4498 = vst.msk [vmem:[%s7054_s14 + $0x138] sm:$0xff] %vm4202_vm1, %v4346_v18 }
 0x53f   : > { %v4091_v19 = vpop.permute.xlu0 %4090  ;;  %v4093_v5 = vpop.permute.xlu1 %4092 }
 0x540   : > { %4243 = vst.msk [vmem:[%s7038_s30 + $0x140] sm:$0xff] %vm4202_vm1, %v4091_v19  ;;  %4244 = vst.msk [vmem:[%s7038_s30 + $0x148] sm:$0xff] %vm4202_vm1, %v4093_v5 }
 0x543   : > { %v4348_v60 = vpop.permute.xlu0 %4347  ;;  %v4350_v63 = vpop.permute.xlu1 %4349 }
 0x544   : > { %4499 = vst.msk [vmem:[%s7054_s14 + $0x140] sm:$0xff] %vm4202_vm1, %v4348_v60  ;;  %4500 = vst.msk [vmem:[%s7054_s14 + $0x148] sm:$0xff] %vm4202_vm1, %v4350_v63 }
 0x547   : > { %v4095_v51 = vpop.permute.xlu0 %4094  ;;  %v4097_v2 = vpop.permute.xlu1 %4096 }
 0x548   : > { %4245 = vst.msk [vmem:[%s7038_s30 + $0x150] sm:$0xff] %vm4202_vm1, %v4095_v51  ;;  %4246 = vst.msk [vmem:[%s7038_s30 + $0x158] sm:$0xff] %vm4202_vm1, %v4097_v2 }
 0x54b   : > { %v4352_v22 = vpop.permute.xlu0 %4351  ;;  %v4354_v0 = vpop.permute.xlu1 %4353 }
 0x54c   : > { %4501 = vst.msk [vmem:[%s7054_s14 + $0x150] sm:$0xff] %vm4202_vm1, %v4352_v22  ;;  %4502 = vst.msk [vmem:[%s7054_s14 + $0x158] sm:$0xff] %vm4202_vm1, %v4354_v0 }
 0x54f   : > { %v4099_v4 = vpop.permute.xlu0 %4098  ;;  %v4101_v12 = vpop.permute.xlu1 %4100 }
 0x550   : > { %4247 = vst.msk [vmem:[%s7038_s30 + $0x160] sm:$0xff] %vm4202_vm1, %v4099_v4  ;;  %4248 = vst.msk [vmem:[%s7038_s30 + $0x168] sm:$0xff] %vm4202_vm1, %v4101_v12 }
 0x553   : > { %v4356_v31 = vpop.permute.xlu0 %4355  ;;  %v4358_v20 = vpop.permute.xlu1 %4357 }
 0x554   : > { %4503 = vst.msk [vmem:[%s7054_s14 + $0x160] sm:$0xff] %vm4202_vm1, %v4356_v31  ;;  %4504 = vst.msk [vmem:[%s7054_s14 + $0x168] sm:$0xff] %vm4202_vm1, %v4358_v20 }
 0x557   : > { %v4103_v24 = vpop.permute.xlu0 %4102  ;;  %v4105_v21 = vpop.permute.xlu1 %4104 }
 0x558   : > { %4249 = vst.msk [vmem:[%s7038_s30 + $0x170] sm:$0xff] %vm4202_vm1, %v4103_v24  ;;  %4250 = vst.msk [vmem:[%s7038_s30 + $0x178] sm:$0xff] %vm4202_vm1, %v4105_v21 }
 0x55b   : > { %v4360_v53 = vpop.permute.xlu0 %4359  ;;  %v4362_v41 = vpop.permute.xlu1 %4361 }
 0x55c   : > { %4505 = vst.msk [vmem:[%s7054_s14 + $0x170] sm:$0xff] %vm4202_vm1, %v4360_v53  ;;  %4506 = vst.msk [vmem:[%s7054_s14 + $0x178] sm:$0xff] %vm4202_vm1, %v4362_v41 }
 0x55f   : > { %v4107_v33 = vpop.permute.xlu0 %4106  ;;  %v4109_v36 = vpop.permute.xlu1 %4108 }
 0x560   : > { %4251 = vst.msk [vmem:[%s7038_s30 + $0x180] sm:$0xff] %vm4202_vm1, %v4107_v33  ;;  %4252 = vst.msk [vmem:[%s7038_s30 + $0x188] sm:$0xff] %vm4202_vm1, %v4109_v36 }
 0x563   : > { %v4364_v50 = vpop.permute.xlu0 %4363  ;;  %v4366_v44 = vpop.permute.xlu1 %4365 }
 0x564   : > { %4507 = vst.msk [vmem:[%s7054_s14 + $0x180] sm:$0xff] %vm4202_vm1, %v4364_v50  ;;  %4508 = vst.msk [vmem:[%s7054_s14 + $0x188] sm:$0xff] %vm4202_vm1, %v4366_v44 }
 0x567   : > { %v4111_v61 = vpop.permute.xlu0 %4110  ;;  %v4113_v40 = vpop.permute.xlu1 %4112 }
 0x568   : > { %4253 = vst.msk [vmem:[%s7038_s30 + $0x190] sm:$0xff] %vm4202_vm1, %v4111_v61  ;;  %4254 = vst.msk [vmem:[%s7038_s30 + $0x198] sm:$0xff] %vm4202_vm1, %v4113_v40 }
 0x56b   : > { %v4368_v43 = vpop.permute.xlu0 %4367  ;;  %v4370_v42 = vpop.permute.xlu1 %4369 }
 0x56c   : > { %4509 = vst.msk [vmem:[%s7054_s14 + $0x190] sm:$0xff] %vm4202_vm1, %v4368_v43  ;;  %4510 = vst.msk [vmem:[%s7054_s14 + $0x198] sm:$0xff] %vm4202_vm1, %v4370_v42 }
 0x56f   : > { %v4115_v9 = vpop.permute.xlu0 %4114  ;;  %v4117_v58 = vpop.permute.xlu1 %4116 }
 0x570   : > { %4255 = vst.msk [vmem:[%s7038_s30 + $0x1a0] sm:$0xff] %vm4202_vm1, %v4115_v9  ;;  %4256 = vst.msk [vmem:[%s7038_s30 + $0x1a8] sm:$0xff] %vm4202_vm1, %v4117_v58 }
 0x573   : > { %v4372_v7 = vpop.permute.xlu0 %4371  ;;  %v4374_v17 = vpop.permute.xlu1 %4373 }
 0x574   : > { %4511 = vst.msk [vmem:[%s7054_s14 + $0x1a0] sm:$0xff] %vm4202_vm1, %v4372_v7  ;;  %4512 = vst.msk [vmem:[%s7054_s14 + $0x1a8] sm:$0xff] %vm4202_vm1, %v4374_v17 }
 0x577   : > { %v4119_v28 = vpop.permute.xlu0 %4118  ;;  %v4121_v57 = vpop.permute.xlu1 %4120 }
 0x578   : > { %4257 = vst.msk [vmem:[%s7038_s30 + $0x1b0] sm:$0xff] %vm4202_vm1, %v4119_v28  ;;  %4258 = vst.msk [vmem:[%s7038_s30 + $0x1b8] sm:$0xff] %vm4202_vm1, %v4121_v57 }
 0x57b   : > { %v4376_v62 = vpop.permute.xlu0 %4375  ;;  %v4378_v15 = vpop.permute.xlu1 %4377 }
 0x57c   : > { %4513 = vst.msk [vmem:[%s7054_s14 + $0x1b0] sm:$0xff] %vm4202_vm1, %v4376_v62  ;;  %4514 = vst.msk [vmem:[%s7054_s14 + $0x1b8] sm:$0xff] %vm4202_vm1, %v4378_v15 }
 0x57f   : > { %v4123_v16 = vpop.permute.xlu0 %4122  ;;  %v4125_v11 = vpop.permute.xlu1 %4124 }
 0x580   : > { %4259 = vst.msk [vmem:[%s7038_s30 + $0x1c0] sm:$0xff] %vm4202_vm1, %v4123_v16  ;;  %4260 = vst.msk [vmem:[%s7038_s30 + $0x1c8] sm:$0xff] %vm4202_vm1, %v4125_v11 }
 0x583   : > { %v4380_v27 = vpop.permute.xlu0 %4379  ;;  %v4382_v32 = vpop.permute.xlu1 %4381 }
 0x584   : > { %4515 = vst.msk [vmem:[%s7054_s14 + $0x1c0] sm:$0xff] %vm4202_vm1, %v4380_v27  ;;  %4516 = vst.msk [vmem:[%s7054_s14 + $0x1c8] sm:$0xff] %vm4202_vm1, %v4382_v32 }
 0x587   : > { %v4127_v34 = vpop.permute.xlu0 %4126  ;;  %v4129_v59 = vpop.permute.xlu1 %4128 }
 0x588   : > { %4261 = vst.msk [vmem:[%s7038_s30 + $0x1d0] sm:$0xff] %vm4202_vm1, %v4127_v34  ;;  %4262 = vst.msk [vmem:[%s7038_s30 + $0x1d8] sm:$0xff] %vm4202_vm1, %v4129_v59 }
 0x58b   : > { %v4384_v48 = vpop.permute.xlu0 %4383  ;;  %v4386_v25 = vpop.permute.xlu1 %4385 }
 0x58c   : > { %4517 = vst.msk [vmem:[%s7054_s14 + $0x1d0] sm:$0xff] %vm4202_vm1, %v4384_v48  ;;  %4518 = vst.msk [vmem:[%s7054_s14 + $0x1d8] sm:$0xff] %vm4202_vm1, %v4386_v25 }
 0x58f   : > { %v4131_v55 = vpop.permute.xlu0 %4130  ;;  %v4133_v46 = vpop.permute.xlu1 %4132 }
 0x590   : > { %4263 = vst.msk [vmem:[%s7038_s30 + $0x1e0] sm:$0xff] %vm4202_vm1, %v4131_v55  ;;  %4264 = vst.msk [vmem:[%s7038_s30 + $0x1e8] sm:$0xff] %vm4202_vm1, %v4133_v46 }
 0x593   : > { %v4388_v56 = vpop.permute.xlu0 %4387  ;;  %v4390_v26 = vpop.permute.xlu1 %4389 }
 0x594   : > { %4519 = vst.msk [vmem:[%s7054_s14 + $0x1e0] sm:$0xff] %vm4202_vm1, %v4388_v56  ;;  %4520 = vst.msk [vmem:[%s7054_s14 + $0x1e8] sm:$0xff] %vm4202_vm1, %v4390_v26 }
 0x597   : > { %v4135_v45 = vpop.permute.xlu0 %4134  ;;  %v4137_v8 = vpop.permute.xlu1 %4136 }
 0x598   : > { %4265 = vst.msk [vmem:[%s7038_s30 + $0x1f0] sm:$0xff] %vm4202_vm1, %v4135_v45  ;;  %4266 = vst.msk [vmem:[%s7038_s30 + $0x1f8] sm:$0xff] %vm4202_vm1, %v4137_v8 }
 0x59b   : > { %v4392_v37 = vpop.permute.xlu0 %4391  ;;  %v4394_v10 = vpop.permute.xlu1 %4393 }
 0x59c   : > { %4521 = vst.msk [vmem:[%s7054_s14 + $0x1f0] sm:$0xff] %vm4202_vm1, %v4392_v37  ;;  %4522 = vst.msk [vmem:[%s7054_s14 + $0x1f8] sm:$0xff] %vm4202_vm1, %v4394_v10 }
 0x59d PF: > { %s21_s13 = sadd.s32 1, %s5946_s13  }
 0x59e   : > { %p18_p4 = scmp.ge.s32.totalorder %s21_s13, 4  }
 0x5a0   :  { %20 = sbr.rel (!%p18_p4) target bundleno = 1 (0x1), region = 98 }

// kernel: allconv_forward.3
= control target key start
LH: loop header
LB: loop body
LE: loop exit
PB: predicated region body
PF: predicated region fallthrough
CT: control target
= control target key end

     0   :  { %s10140_s0 = inlined_call_operand.vmem [shape: s32[1,1024], index: 0, kind: input, shape index: {}]   ;;  %s10141_s1 = inlined_call_operand.vmem [shape: f32[1024,10], index: 1, kind: input, shape index: {}]   ;;  %s10142_s2 = inlined_call_operand.vmem [shape: f32[10,1024], index: 2, kind: input, shape index: {}]   ;;  %s10143_s3 = inlined_call_operand.vmem [shape: f32[256,8], index: 3, kind: input, shape index: {}]   ;;  %s10144_s4 = inlined_call_operand.vmem [shape: f32[8,32], index: 4, kind: input, shape index: {}]   ;;  %s10145_s5 = inlined_call_operand.vmem [shape: f32[10,32], index: 5, kind: input, shape index: {}]   ;;  %s10146_s6 = inlined_call_operand.vmem [shape: f32[10,32], index: 6, kind: input, shape index: {}]   ;;  %s10147_s7 = inlined_call_operand.vmem [shape: f32[1,32], index: 7, kind: input, shape index: {}]   ;;  %s10148_s8 = inlined_call_operand.vmem [shape: f32[32,32], index: 8, kind: input, shape index: {}]   ;;  %s10149_s9 = inlined_call_operand.vmem [shape: f32[1,32], index: 9, kind: input, shape index: {}]   ;;  %s10150_s10 = inlined_call_operand.vmem [shape: f32[32,32], index: 10, kind: input, shape index: {}]   ;;  %s10151_s11 = inlined_call_operand.vmem [shape: f32[1,32], index: 11, kind: input, shape index: {}]   ;;  %s10152_s12 = inlined_call_operand.vmem [shape: f32[32,128], index: 12, kind: input, shape index: {}]   ;;  %s10153_s13 = inlined_call_operand.vmem [shape: f32[1,128], index: 13, kind: input, shape index: {}]   ;;  %s10154_s14 = inlined_call_operand.vmem [shape: f32[256,128], index: 14, kind: output, shape index: {}]  }
   0x1   :  { %10595 = sst [smem:[#allocation107_spill]] %s10142_s2 }
   0x2   :  { %10596 = sst [smem:[#allocation108_spill]] %s10151_s11 }
   0x3   :  { %10597 = sst [smem:[#allocation109_spill]] %s10153_s13 }
   0x4   :  { %s5905_s29 = smov 0   ;;  %s5907_s30 = smov 0  }
   0x5   :  { %s5909_s15 = smov 0   ;;  %s5911_s16 = smov 0  }
   0x6   :  { %s5913_s17 = smov 0   ;;  %s5915_s18 = smov 0  }
   0x7   :  { %s5917_s19 = smov 0  }
   0x8 LB: > { %10598 = sst [smem:[#allocation5_spill]] %s5801_s30  ;;  %s33_s20 = sadd.s32 1, %s5813_s17  ;;  %s5821_s19 = sphi %s5917_s19, %s24_s19   ;;  %s5817_s18 = sphi %s5915_s18, %s11948_s18   ;;  %s5813_s17 = sphi %s5913_s17, %s11947_s17   ;;  %s5809_s16 = sphi %s5911_s16, %s11946_s16   ;;  %s5805_s15 = sphi %s5909_s15, %s11945_s15   ;;  %s5801_s30 = sphi %s5907_s30, %s11944_s30   ;;  %s5797_s29 = sphi %s5905_s29, %s11943_s29  }
   0x9   : > { %10599 = sst [smem:[#allocation6_spill]] %s5813_s17  ;;  %s36_s21 = sadd.s32 1, %s5817_s18 }
   0xa   : > { %10600 = sst [smem:[#allocation7_spill]] %s5817_s18  ;;  %p34_p0 = scmp.ge.s32.totalorder %s33_s20, 2 }
   0xb   : > { %10601 = sst [smem:[#allocation8_spill]] %s5821_s19  ;;  %s95_s22 = sadd.s32 1, %s5801_s30 }
   0xc   : > { %p102_p1 = scmp.ne.s32.totalorder %s5801_s30, %s5797_s29  ;;  %p103_p2 = scmp.eq.s32.totalorder %s5821_s19, 0 }
   0xd   : > { %s11950_s20 = smov (%p34_p0, %s33_s20), 0  ;;  %s11952_s21 = smov (!%p34_p0, %s36_s21), %s5817_s18 }
   0xe   : > { %10602 = sst [smem:[#allocation9_spill]] %s11950_s20  ;;  %s92_s23 = ssub.s32 %s5813_s17, %s11950_s20 }
   0xf   : > { %p104_p3 = por %p103_p2, %p102_p1  ;;  %p38_p4 = scmp.ge.s32.totalorder %s11952_s21, 2 }
  0x10   : > { %p93_p5 = scmp.eq.s32.totalorder %s92_s23, 0  ;;  %p4860_p6 = scmp.ge.s32.totalorder %s5821_s19, 4 }
  0x11   : > { %s11954_s21 = smov (%p38_p4, %s11952_s21), 0 }
  0x12   : > { %10603 = sst [smem:[#allocation10_spill]] %s11954_s21  ;;  %420 = sbr.rel (%p4860_p6) target bundleno = 39 (0x27), region = 56 }
  0x13   : > { %s5954_s24 = scalar_select %p93_p5, %s5801_s30, %s95_s22  }
  0x15   : > { %10604 = sst [smem:[#allocation11_spill]] %s5954_s24 }
  0x19   : > { %440 = sbr.rel (!%p104_p3) target bundleno = 39 (0x27), region = 68  ;;  %s442_s25 = sand.u32 (%p104_p3), 1, %s5801_s30  }
  0x1a   : > { %s5117_s26 = sshll.u32 (%p104_p3), %s5813_s17, 5  ;;  %s4861_s27 = sshll.u32 (%p104_p3), %s442_s25, 6 }
  0x1b   : > { %s10605_s2 = sld [smem:[#allocation107_spill]] (%p104_p3)  ;;  %s444_s23 = scalar_lea.vmem (%p104_p3), [#allocation4], %s4861_s27 }
  0x21   : > { %s447_s20 = scalar_lea.vmem %s10605_s2, %s5117_s26 }
  0x22   : > { %v460_v0 = vld [vmem:[%s447_s20] sm:$0xff]  ;;  %v462_v1 = vld [vmem:[%s447_s20 + $0x8] sm:$0xff]  ;;  %v464_v2 = vld [vmem:[%s447_s20 + $0x10] sm:$0xff] }
  0x23   : > { %461 = vst [vmem:[%s444_s23] sm:$0xff] %v460_v0  ;;  %463 = vst [vmem:[%s444_s23 + $0x8] sm:$0xff] %v462_v1  ;;  %v466_v3 = vld [vmem:[%s447_s20 + $0x18] sm:$0xff]  ;;  %v468_v4 = vld [vmem:[%s447_s20 + $0x40] sm:$0xff] }
  0x24   : > { %465 = vst [vmem:[%s444_s23 + $0x10] sm:$0xff] %v464_v2  ;;  %v470_v5 = vld [vmem:[%s447_s20 + $0x48] sm:$0xff]  ;;  %467 = vst [vmem:[%s444_s23 + $0x18] sm:$0xff] %v466_v3  ;;  %v472_v6 = vld [vmem:[%s447_s20 + $0x50] sm:$0xff] }
  0x25   : > { %469 = vst [vmem:[%s444_s23 + $0x20] sm:$0xff] %v468_v4  ;;  %471 = vst [vmem:[%s444_s23 + $0x28] sm:$0xff] %v470_v5  ;;  %v474_v7 = vld [vmem:[%s447_s20 + $0x58] sm:$0xff] }
  0x26   : > { %473 = vst [vmem:[%s444_s23 + $0x30] sm:$0xff] %v472_v6  ;;  %475 = vst [vmem:[%s444_s23 + $0x38] sm:$0xff] %v474_v7 }
  0x27 PF: > { %p4864_p7 = scmp.ge.s32.totalorder %s5821_s19, 1  ;;  %p489_p8 = scmp.lt.s32.totalorder %s5821_s19, 5 }
  0x29   : > { %p490_p9 = pnand %p4864_p7, %p489_p8 }
  0x2b   : > { %493 = sbr.rel (%p490_p9) target bundleno = 1836 (0x72c), region = 95 }
  0x32   : > { %s496_s13 = sand.u32 1, %s5797_s29   ;;  %s4866_s22 = sshll.u32 %s5805_s15, 2 }
  0x33   : > { %s4865_s25 = sshll.u32 %s496_s13, 6  ;;  %p556_p10 = scmp.lt.s32.totalorder %s4866_s22, 7 }
  0x34   : > { %s4867_s26 = sshll.u32 %s5805_s15, 6  ;;  %s4869_s20 = sshll.u32 %s5809_s16, 4 }
  0x35   : > { %s11956_s22 = smov (!%p556_p10, %s4866_s22), 7  ;;  %p561_p11 = scmp.lt.s32.totalorder %s4867_s26, 127 }
  0x36   : > { %s558_s23 = scalar_lea.vmem %s10140_s0, %s11956_s22  ;;  %p568_p12 = scmp.lt.s32.totalorder %s4869_s20, 31 }
  0x37   : > { %s11958_s26 = smov (!%p561_p11, %s4867_s26), 127  ;;  %s5989_s28 = scalar_lea.vmem [#allocation4], %s4865_s25 }
  0x38   : > { %s11960_s20 = smov (!%p568_p12, %s4869_s20), 31  ;;  %s4868_s2 = sshll.u32 %s11958_s26, 3 }
  0x39   : > { %s5977_s29 = scalar_lea.vmem %s10141_s1, %s4868_s2  ;;  %s4870_s13 = sshll.u32 %s11960_s20, 3 }
  0x3a   : > { %s5982_s30 = scalar_lea.vmem %s10143_s3, %s4870_s13  ;;  %s5987_s27 = scalar_lea.vmem %s10154_s14, %s4870_s13 }
  0x3b   : > { %p4873_p13 = scmp.ne.s32.totalorder %s5805_s15, 0 }
  0x3c   : > { %vm583_vm0 = vcmask (!%p4873_p13), 89088   ;;  %vm600_vm1 = vcmask (!%p4873_p13), 80896   ;;  %v5823_v8 = vmov (!%p4873_p13), 0.0   ;;  %v5824_v9 = vmov (!%p4873_p13), -1e+30  }
  0x3d   : > { %582 = sbr.rel (%p4873_p13) target bundleno = 77 (0x4d), region = 103  ;;  %584 = vst.msk [vmem:[#allocation2] sm:$0xff] (!%p4873_p13), %vm583_vm0, %v5823_v8  ;;  %585 = vst.msk [vmem:[#allocation2 + $0x8] sm:$0xff] (!%p4873_p13), %vm583_vm0, %v5823_v8 }
  0x3e   : > { %586 = vst.msk [vmem:[#allocation2 + $0x10] sm:$0xff] (!%p4873_p13), %vm583_vm0, %v5823_v8  ;;  %587 = vst.msk [vmem:[#allocation2 + $0x18] sm:$0xff] (!%p4873_p13), %vm583_vm0, %v5823_v8 }
  0x3f   : > { %588 = vst.msk [vmem:[#allocation2 + $0x20] sm:$0xff] (!%p4873_p13), %vm583_vm0, %v5823_v8  ;;  %589 = vst.msk [vmem:[#allocation2 + $0x28] sm:$0xff] (!%p4873_p13), %vm583_vm0, %v5823_v8 }
  0x40   : > { %590 = vst.msk [vmem:[#allocation2 + $0x30] sm:$0xff] (!%p4873_p13), %vm583_vm0, %v5823_v8  ;;  %591 = vst.msk [vmem:[#allocation2 + $0x38] sm:$0xff] (!%p4873_p13), %vm583_vm0, %v5823_v8 }
  0x41   : > { %592 = vst.msk [vmem:[#allocation2 + $0x40] sm:$0xff] (!%p4873_p13), %vm583_vm0, %v5823_v8  ;;  %593 = vst.msk [vmem:[#allocation2 + $0x48] sm:$0xff] (!%p4873_p13), %vm583_vm0, %v5823_v8 }
  0x42   : > { %594 = vst.msk [vmem:[#allocation2 + $0x50] sm:$0xff] (!%p4873_p13), %vm583_vm0, %v5823_v8  ;;  %595 = vst.msk [vmem:[#allocation2 + $0x58] sm:$0xff] (!%p4873_p13), %vm583_vm0, %v5823_v8 }
  0x43   : > { %596 = vst.msk [vmem:[#allocation2 + $0x60] sm:$0xff] (!%p4873_p13), %vm583_vm0, %v5823_v8  ;;  %597 = vst.msk [vmem:[#allocation2 + $0x68] sm:$0xff] (!%p4873_p13), %vm583_vm0, %v5823_v8 }
  0x44   : > { %598 = vst.msk [vmem:[#allocation2 + $0x70] sm:$0xff] %vm583_vm0, %v5823_v8  ;;  %599 = vst.msk [vmem:[#allocation2 + $0x78] sm:$0xff] %vm583_vm0, %v5823_v8 }
  0x45   : > { %601 = vst.msk [vmem:[#allocation3] sm:$0xff] %vm600_vm1, %v5824_v9  ;;  %602 = vst.msk [vmem:[#allocation3 + $0x8] sm:$0xff] %vm600_vm1, %v5824_v9 }
  0x46   : > { %603 = vst.msk [vmem:[#allocation3 + $0x10] sm:$0xff] %vm600_vm1, %v5824_v9  ;;  %604 = vst.msk [vmem:[#allocation3 + $0x18] sm:$0xff] %vm600_vm1, %v5824_v9 }
  0x47   : > { %605 = vst.msk [vmem:[#allocation3 + $0x20] sm:$0xff] %vm600_vm1, %v5824_v9  ;;  %606 = vst.msk [vmem:[#allocation3 + $0x28] sm:$0xff] %vm600_vm1, %v5824_v9 }
  0x48   : > { %607 = vst.msk [vmem:[#allocation3 + $0x30] sm:$0xff] %vm600_vm1, %v5824_v9  ;;  %608 = vst.msk [vmem:[#allocation3 + $0x38] sm:$0xff] %vm600_vm1, %v5824_v9 }
  0x49   : > { %609 = vst.msk [vmem:[#allocation3 + $0x40] sm:$0xff] %vm600_vm1, %v5824_v9  ;;  %610 = vst.msk [vmem:[#allocation3 + $0x48] sm:$0xff] %vm600_vm1, %v5824_v9 }
  0x4a   : > { %611 = vst.msk [vmem:[#allocation3 + $0x50] sm:$0xff] %vm600_vm1, %v5824_v9  ;;  %612 = vst.msk [vmem:[#allocation3 + $0x58] sm:$0xff] %vm600_vm1, %v5824_v9 }
  0x4b   : > { %613 = vst.msk [vmem:[#allocation3 + $0x60] sm:$0xff] %vm600_vm1, %v5824_v9  ;;  %614 = vst.msk [vmem:[#allocation3 + $0x68] sm:$0xff] %vm600_vm1, %v5824_v9 }
  0x4c   : > { %615 = vst.msk [vmem:[#allocation3 + $0x70] sm:$0xff] %vm600_vm1, %v5824_v9  ;;  %616 = vst.msk [vmem:[#allocation3 + $0x78] sm:$0xff] %vm600_vm1, %v5824_v9 }
  0x4d PF: > { %v877_v10 = vld [vmem:[%s5977_s29 + $0x80] sm:$0xff]  ;;  %v878_v11 = vld [vmem:[%s5977_s29 + $0x88] sm:$0xff]  ;;  %s4874_s2 = sshll.u32 %s5809_s16, 7  ;;  %v618_v13 = vlaneseq  ;;  %v879_v22 = vld [vmem:[%s5977_s29 + $0x90] sm:$0xff]  ;;  %p5012_p0 = scmp.ne.s32.totalorder %s5805_s15, 1 }
  0x4e   : > { %v909_v12 = vld [vmem:[%s5977_s29 + $0x180] sm:$0xff]  ;;  %v5569_v14 = vpack.c.bf16 %v878_v11, %v877_v10  ;;  %v910_v15 = vld [vmem:[%s5977_s29 + $0x188] sm:$0xff]  ;;  %v880_v25 = vld [vmem:[%s5977_s29 + $0x98] sm:$0xff]  ;;  %v6039_v28 = vstv %s4874_s2  ;;  %s11940_s21 = sld [smem:[#allocation108_spill]] (!%p5012_p0)  ;;  %s11941_s25 = sld [smem:[#allocation109_spill]] (!%p5012_p0) }
  0x4f   : > { %v861_v16 = vld [vmem:[%s5977_s29] sm:$0xff]  ;;  %v862_v17 = vld [vmem:[%s5977_s29 + $0x8] sm:$0xff]  ;;  %v5601_v18 = vpack.c.bf16 %v910_v15, %v909_v12  ;;  %v6034_v23 = vshrl.u32 %v618_v13, 7  ;;  %v911_v26 = vld [vmem:[%s5977_s29 + $0x190] sm:$0xff]  ;;  %v5573_v29 = vpack.c.bf16 %v880_v25, %v879_v22  ;;  %v10610_v25 = vmov 0 }
  0x50   : > { %v5571_v19 = vpack.c.bf16 %v862_v17, %v861_v16  ;;  %v893_v20 = vld [vmem:[%s5977_s29 + $0x100] sm:$0xff]  ;;  %v894_v21 = vld [vmem:[%s5977_s29 + $0x108] sm:$0xff]  ;;  %5570 = vmatprep.subr.bf16.mxu0 %v5569_v14  ;;  %v912_v27 = vld [vmem:[%s5977_s29 + $0x198] sm:$0xff] }
  0x51   : > { %v5603_v24 = vpack.c.bf16 %v894_v21, %v893_v20  ;;  %5602 = vmatprep.subr.bf16.mxu1 %v5601_v18  ;;  %v5605_v30 = vpack.c.bf16 %v912_v27, %v911_v26  ;;  %v863_v31 = vld [vmem:[%s5977_s29 + $0x10] sm:$0xff]  ;;  %v864_v32 = vld [vmem:[%s5977_s29 + $0x18] sm:$0xff]  ;;  %v621_v34 = vadd.s32 16, %v6034_v23  ;;  %v6046_v35 = vsub.s32 0, %v6034_v23  ;;  %v881_v38 = vld [vmem:[%s5977_s29 + $0xa0] sm:$0xff] }
  0x52   : > { %5572 = vmatpush3.bf16.msra.mxu0 %v5571_v19  ;;  %v895_v33 = vld [vmem:[%s5977_s29 + $0x110] sm:$0xff]  ;;  %v5575_v36 = vpack.c.bf16 %v864_v32, %v863_v31  ;;  %v896_v37 = vld [vmem:[%s5977_s29 + $0x118] sm:$0xff]  ;;  %v882_v39 = vld [vmem:[%s5977_s29 + $0xa8] sm:$0xff]  ;;  %v6052_v40 = vsub.s32 1, %v6034_v23  ;;  %v6055_v41 = vsub.s32 2, %v6034_v23  ;;  %v6058_v42 = vsub.s32 3, %v6034_v23 }
  0x53   : > { %10606 = vst [vmem:[#allocation12_spill] sm:$0xff] %v6046_v35  ;;  %5604 = vmatpush3.bf16.msra.mxu1 %v5603_v24  ;;  %5574 = vmatprep.subr.bf16.mxu0 %v5573_v29  ;;  %v5607_v43 = vpack.c.bf16 %v896_v37, %v895_v33  ;;  %v5577_v44 = vpack.c.bf16 %v882_v39, %v881_v38  ;;  %v913_v45 = vld [vmem:[%s5977_s29 + $0x1a0] sm:$0xff]  ;;  %v914_v46 = vld [vmem:[%s5977_s29 + $0x1a8] sm:$0xff]  ;;  %v622_v49 = vadd.s32 24, %v6034_v23  ;;  %v620_v55 = vadd.s32 8, %v6034_v23  ;;  %v883_v59 = vld [vmem:[%s5977_s29 + $0xb0] sm:$0xff] }
  0x54   : > { %10607 = vst [vmem:[#allocation13_spill] sm:$0xff] %v6052_v40  ;;  %10608 = vst [vmem:[#allocation14_spill] sm:$0xff] %v6055_v41  ;;  %5606 = vmatprep.subr.bf16.mxu1 %v5605_v30  ;;  %v865_v47 = vld [vmem:[%s5977_s29 + $0x20] sm:$0xff]  ;;  %v638_v48 = vadd.s32 %v6039_v28, %v621_v34  ;;  %v5609_v50 = vpack.c.bf16 %v914_v46, %v913_v45  ;;  %v866_v51 = vld [vmem:[%s5977_s29 + $0x28] sm:$0xff]  ;;  %v6070_v54 = vadd.s32 %v6039_v28, %v6034_v23  ;;  %v10613_v26 = vmov 0 }
  0x55   : > { %10609 = vst [vmem:[#allocation15_spill] sm:$0xff] %v6058_v42  ;;  %v897_v52 = vld [vmem:[%s5977_s29 + $0x120] sm:$0xff]  ;;  %v898_v53 = vld [vmem:[%s5977_s29 + $0x128] sm:$0xff]  ;;  %v624_v56 = vadd.s32 40, %v6034_v23  ;;  %v5579_v57 = vpack.c.bf16 %v866_v51, %v865_v47  ;;  %v884_v60 = vld [vmem:[%s5977_s29 + $0xb8] sm:$0xff]  ;;  %v6078_v62 = vadd.s32 %v6039_v28, %v622_v49  ;;  %v623_v63 = vadd.s32 32, %v6034_v23 }
  0x56   : > { %5576 = vmatpush3.bf16.msra.mxu0 %v5575_v36  ;;  %v5611_v58 = vpack.c.bf16 %v898_v53, %v897_v52  ;;  %v915_v61 = vld [vmem:[%s5977_s29 + $0x1b0] sm:$0xff]  ;;  %v5581_v0 = vpack.c.bf16 %v884_v60, %v883_v59  ;;  %v916_v1 = vld [vmem:[%s5977_s29 + $0x1b8] sm:$0xff]  ;;  %v6085_v4 = vadd.s32 %v6039_v28, %v620_v55  ;;  %v626_v6 = vadd.s32 56, %v6034_v23  ;;  %v652_v11 = vld [vmem:[%s558_s23] sm:$0xf] }
  0x57   : > { %5608 = vmatpush3.bf16.msra.mxu1 %v5607_v43  ;;  %5578 = vmatprep.subr.bf16.mxu0 %v5577_v44  ;;  %v867_v2 = vld [vmem:[%s5977_s29 + $0x30] sm:$0xff]  ;;  %v868_v3 = vld [vmem:[%s5977_s29 + $0x38] sm:$0xff]  ;;  %v6088_v5 = vadd.s32 %v6039_v28, %v624_v56  ;;  %v5613_v7 = vpack.c.bf16 %v916_v1, %v915_v61  ;;  %v6099_v12 = vadd.s32 %v6039_v28, %v623_v63  ;;  %v625_v13 = vadd.s32 48, %v6034_v23  ;;  %v885_v18 = vld [vmem:[%s5977_s29 + $0xc0] sm:$0xff] }
  0x58   : > { %5610 = vmatprep.subr.bf16.mxu1 %v5609_v50  ;;  %v5583_v8 = vpack.c.bf16 %v868_v3, %v867_v2  ;;  %v899_v9 = vld [vmem:[%s5977_s29 + $0x130] sm:$0xff]  ;;  %v900_v10 = vld [vmem:[%s5977_s29 + $0x138] sm:$0xff]  ;;  %v6103_v15 = vrot.slane %v652_v11, %v6046_v35  ;;  %v6106_v16 = vrot.slane %v652_v11, %v6052_v40  ;;  %v6109_v17 = vrot.slane %v652_v11, %v6055_v41  ;;  %v886_v19 = vld [vmem:[%s5977_s29 + $0xc8] sm:$0xff] }
  0x59   : > { %v5615_v14 = vpack.c.bf16 %v900_v10, %v899_v9  ;;  %v6114_v20 = vrot.slane %v652_v11, %v6058_v42  ;;  %v5585_v21 = vpack.c.bf16 %v886_v19, %v885_v18  ;;  %v6117_v22 = vadd.s32 %v6039_v28, %v626_v6  ;;  %v917_v36 = vld [vmem:[%s5977_s29 + $0x1c0] sm:$0xff]  ;;  %v918_v37 = vld [vmem:[%s5977_s29 + $0x1c8] sm:$0xff]  ;;  %v887_v9 = vld [vmem:[%s5977_s29 + $0xd0] sm:$0xff] }
  0x5a   : > { %5580 = vmatpush3.bf16.msra.mxu0 %v5579_v57  ;;  %v6120_v24 = vadd.s32 %v6039_v28, %v625_v13  ;;  %vm6123_vm2 = vcmp.eq.s32.totalorder %v638_v48, %v6103_v15  ;;  %vm6128_vm3 = vcmp.eq.s32.totalorder %v638_v48, %v6106_v16  ;;  %vm6133_vm4 = vcmp.eq.s32.totalorder %v638_v48, %v6109_v17  ;;  %v869_v38 = vld [vmem:[%s5977_s29 + $0x40] sm:$0xff]  ;;  %v870_v46 = vld [vmem:[%s5977_s29 + $0x48] sm:$0xff]  ;;  %v888_v10 = vld [vmem:[%s5977_s29 + $0xd8] sm:$0xff] }
  0x5b   : > { %5612 = vmatpush3.bf16.msra.mxu1 %v5611_v58  ;;  %5582 = vmatprep.subr.bf16.mxu0 %v5581_v0  ;;  %v10611_v25 = vsel %vm6123_vm2, 4294967295, %v10610_v25  ;;  %v10614_v26 = vsel %vm6128_vm3, 4294967295, %v10613_v26  ;;  %v10616_v27 = vmov 0  ;;  %v6138_v29 = vadd.s32 72, %v6034_v23  ;;  %v901_v47 = vld [vmem:[%s5977_s29 + $0x140] sm:$0xff]  ;;  %v920_v19 = vld [vmem:[%s5977_s29 + $0x1d8] sm:$0xff] }
  0x5c   : > { %10612 = vst [vmem:[#allocation16_spill] sm:$0xff] %v10611_v25  ;;  %10615 = vst [vmem:[#allocation17_spill] sm:$0xff] %v10614_v26  ;;  %v10617_v27 = vsel %vm6133_vm4, 4294967295, %v10616_v27  ;;  %5614 = vmatprep.subr.bf16.mxu1 %v5613_v7  ;;  %vm6141_vm5 = vcmp.eq.s32.totalorder %v638_v48, %v6114_v20  ;;  %v10619_v30 = vmov 0  ;;  %v10204_v31 = vmov 0.0   ;;  %v902_v48 = vld [vmem:[%s5977_s29 + $0x148] sm:$0xff] }
  0x5d   : > { %10618 = vst [vmem:[#allocation18_spill] sm:$0xff] %v10617_v27  ;;  %v10620_v30 = vsel %vm6141_vm5, 4294967295, %v10619_v30  ;;  %v4883_v32 = vsel %vm6123_vm2, 1.0, %v10204_v31  ;;  %v4884_v33 = vsel %vm6128_vm3, 1.0, %v10204_v31  ;;  %v4885_v34 = vsel %vm6133_vm4, 1.0, %v10204_v31 }
  0x5e   : > { %10621 = vst [vmem:[#allocation19_spill] sm:$0xff] %v10620_v30  ;;  %v4886_v39 = vsel %vm6141_vm5, 1.0, %v10204_v31  ;;  %v1225_v43 = vadd.f32 %v4884_v33, %v4883_v32  ;;  %vm6162_vm6 = vcmp.eq.s32.totalorder %v6070_v54, %v6103_v15  ;;  %v10622_v44 = vmov 0  ;;  %5584 = vmatpush3.bf16.msra.mxu0 %v5583_v8  ;;  %v872_v32 = vld [vmem:[%s5977_s29 + $0x58] sm:$0xff] }
  0x5f   : > { %v10623_v44 = vsel %vm6162_vm6, 4294967295, %v10622_v44  ;;  %vm6168_vm7 = vcmp.eq.s32.totalorder %v6070_v54, %v6106_v16  ;;  %v10625_v45 = vmov 0  ;;  %vm6177_vm8 = vcmp.eq.s32.totalorder %v6070_v54, %v6109_v17  ;;  %5616 = vmatpush3.bf16.msra.mxu1 %v5615_v14  ;;  %5586 = vmatprep.subr.bf16.mxu0 %v5585_v21  ;;  %v871_v21 = vld [vmem:[%s5977_s29 + $0x50] sm:$0xff] }
  0x60   : > { %10624 = vst [vmem:[#allocation20_spill] sm:$0xff] %v10623_v44  ;;  %v10626_v45 = vsel %vm6168_vm7, 4294967295, %v10625_v45  ;;  %v10628_v49 = vmov 0  ;;  %vm6183_vm9 = vcmp.eq.s32.totalorder %v6070_v54, %v6114_v20  ;;  %v10631_v50 = vmov 0 }
  0x61   : > { %10627 = vst [vmem:[#allocation21_spill] sm:$0xff] %v10626_v45  ;;  %v10629_v49 = vsel %vm6177_vm8, 4294967295, %v10628_v49  ;;  %v10632_v50 = vsel %vm6183_vm9, 4294967295, %v10631_v50  ;;  %v4875_v51 = vsel %vm6162_vm6, 1.0, %v10204_v31  ;;  %v4876_v52 = vsel %vm6168_vm7, 1.0, %v10204_v31 }
  0x62   : > { %10630 = vst [vmem:[#allocation22_spill] sm:$0xff] %v10629_v49  ;;  %10633 = vst [vmem:[#allocation23_spill] sm:$0xff] %v10632_v50  ;;  %v10192_v53 = vmov 1.0   ;;  %v1226_v55 = vadd.f32 %v4885_v34, %v1225_v43  ;;  %v4877_v54 = vsel %vm6177_vm8, 1.0, %v10204_v31  ;;  %v4878_v56 = vsel %vm6183_vm9, 1.0, %v10204_v31 }
  0x63   : > { %4939 = vmatprep.mubr.msk.f32.mxu0 %vm6168_vm7, %v10192_v53  ;;  %v1215_v57 = vadd.f32 %v4876_v52, %v4875_v51  ;;  %v5617_v58 = vpack.c.bf16 %v918_v37, %v917_v36  ;;  %v5587_v59 = vpack.c.bf16 %v870_v46, %v869_v38  ;;  %v5619_v60 = vpack.c.bf16 %v902_v48, %v901_v47  ;;  %v903_v38 = vld [vmem:[%s5977_s29 + $0x150] sm:$0xff] }
  0x64   : > { %vm6204_vm10 = vcmp.eq.s32.totalorder %v6078_v62, %v6103_v15  ;;  %v10634_v61 = vmov 0  ;;  %4971 = vmatprep.mubr.msk.f32.mxu1 %vm6183_vm9, %v10192_v53  ;;  %v1227_v63 = vadd.f32 %v4886_v39, %v1226_v55  ;;  %vm6213_vm11 = vcmp.eq.s32.totalorder %v6078_v62, %v6106_v16  ;;  %v904_v39 = vld [vmem:[%s5977_s29 + $0x158] sm:$0xff] }
  0x65   : > { %v10635_v61 = vsel %vm6204_vm10, 4294967295, %v10634_v61  ;;  %v1216_v0 = vadd.f32 %v4877_v54, %v1215_v57  ;;  %v10637_v1 = vmov 0  ;;  %vm6219_vm12 = vcmp.eq.s32.totalorder %v6078_v62, %v6109_v17  ;;  %5618 = vmatprep.subr.bf16.mxu1 %v5617_v58  ;;  %5588 = vmatpush3.bf16.msra.mxu0 %v5587_v59 }
  0x66   : > { %10636 = vst [vmem:[#allocation24_spill] sm:$0xff] %v10635_v61  ;;  %v10638_v1 = vsel %vm6213_vm11, 4294967295, %v10637_v1  ;;  %v10640_v2 = vmov 0  ;;  %vm6225_vm13 = vcmp.eq.s32.totalorder %v6078_v62, %v6114_v20  ;;  %v10643_v3 = vmov 0  ;;  %v919_v62 = vld [vmem:[%s5977_s29 + $0x1d0] sm:$0xff]  ;;  %1228 = vadd.xlane.f32.xlu1 %v1227_v63  ;;  %5620 = vmatpush3.bf16.msra.mxu1 %v5619_v60 }
  0x67   : > { %10639 = vst [vmem:[#allocation25_spill] sm:$0xff] %v10638_v1  ;;  %v10641_v2 = vsel %vm6219_vm12, 4294967295, %v10640_v2  ;;  %v10644_v3 = vsel %vm6225_vm13, 4294967295, %v10643_v3  ;;  %v4887_v6 = vsel %vm6204_vm10, 1.0, %v10204_v31  ;;  %v4888_v7 = vsel %vm6213_vm11, 1.0, %v10204_v31 }
  0x68   : > { %10642 = vst [vmem:[#allocation26_spill] sm:$0xff] %v10641_v2  ;;  %10645 = vst [vmem:[#allocation27_spill] sm:$0xff] %v10644_v3  ;;  %v4889_v8 = vsel %vm6219_vm12, 1.0, %v10204_v31  ;;  %v1217_v11 = vadd.f32 %v4878_v56, %v1216_v0  ;;  %v4890_v13 = vsel %vm6225_vm13, 1.0, %v10204_v31  ;;  %v1230_v14 = vadd.f32 %v4888_v7, %v4887_v6  ;;  %v889_v6 = vld [vmem:[%s5977_s29 + $0xe0] sm:$0xff]  ;;  %v890_v7 = vld [vmem:[%s5977_s29 + $0xe8] sm:$0xff] }
  0x69   : > { %vm6246_vm14 = vcmp.eq.s32.totalorder %v6085_v4, %v6103_v15  ;;  %v10646_v18 = vmov 0  ;;  %vm6255_vm15 = vcmp.eq.s32.totalorder %v6085_v4, %v6106_v16  ;;  %v10649_v33 = vmov 0 }
  0x6a   : > { %v10647_v18 = vsel %vm6246_vm14, 4294967295, %v10646_v18  ;;  %v10650_v33 = vsel %vm6255_vm15, 4294967295, %v10649_v33  ;;  %vm6261_vm0 = vcmp.eq.s32.totalorder %v6085_v4, %v6109_v17  ;;  %v10652_v34 = vmov 0  ;;  %1218 = vadd.xlane.f32.xlu0 %v1217_v11  ;;  %v922_v11 = vld [vmem:[%s5977_s29 + $0x1e8] sm:$0xff] }
  0x6b   : > { %10648 = vst [vmem:[#allocation28_spill] sm:$0xff] %v10647_v18  ;;  %10651 = vst [vmem:[#allocation29_spill] sm:$0xff] %v10650_v33  ;;  %v10653_v34 = vsel %vm6261_vm0, 4294967295, %v10652_v34  ;;  %vm6267_vm1 = vcmp.eq.s32.totalorder %v6085_v4, %v6114_v20  ;;  %v10655_v36 = vmov 0  ;;  %v4879_v37 = vsel %vm6246_vm14, 1.0, %v10204_v31 }
  0x6c   : > { %10654 = vst [vmem:[#allocation30_spill] sm:$0xff] %v10653_v34  ;;  %v10656_v36 = vsel %vm6267_vm1, 4294967295, %v10655_v36  ;;  %v1231_v43 = vadd.f32 %v4889_v8, %v1230_v14  ;;  %v4880_v46 = vsel %vm6255_vm15, 1.0, %v10204_v31  ;;  %v4881_v47 = vsel %vm6261_vm0, 1.0, %v10204_v31 }
  0x6d   : > { %10657 = vst [vmem:[#allocation31_spill] sm:$0xff] %v10656_v36  ;;  %v4882_v4 = vsel %vm6267_vm1, 1.0, %v10204_v31  ;;  %v1220_v48 = vadd.f32 %v4880_v46, %v4879_v37  ;;  %v5589_v51 = vpack.c.bf16 %v888_v10, %v887_v9  ;;  %v5621_v52 = vpack.c.bf16 %v920_v19, %v919_v62  ;;  %v921_v62 = vld [vmem:[%s5977_s29 + $0x1e0] sm:$0xff]  ;;  %v874_v37 = vld [vmem:[%s5977_s29 + $0x68] sm:$0xff] }
  0x6e   : > { %v5591_v55 = vpack.c.bf16 %v872_v32, %v871_v21  ;;  %v1232_v54 = vadd.f32 %v4890_v13, %v1231_v43  ;;  %v5623_v56 = vpack.c.bf16 %v904_v39, %v903_v38  ;;  %vm6287_vm9 = vcmp.eq.s32.totalorder %v6088_v5, %v6103_v15  ;;  %v873_v13 = vld [vmem:[%s5977_s29 + $0x60] sm:$0xff]  ;;  %v906_v39 = vld [vmem:[%s5977_s29 + $0x168] sm:$0xff] }
  0x6f   : > { %v10658_v57 = vmov 0  ;;  %vm6293_vm7 = vcmp.eq.s32.totalorder %v6088_v5, %v6106_v16  ;;  %v10661_v58 = vmov 0  ;;  %v1221_v59 = vadd.f32 %v4881_v47, %v1220_v48  ;;  %5590 = vmatprep.subr.bf16.mxu0 %v5589_v51  ;;  %5622 = vmatprep.subr.bf16.mxu1 %v5621_v52  ;;  %v905_v38 = vld [vmem:[%s5977_s29 + $0x160] sm:$0xff] }
  0x70   : > { %v10659_v57 = vsel %vm6287_vm9, 4294967295, %v10658_v57  ;;  %v10662_v58 = vsel %vm6293_vm7, 4294967295, %v10661_v58  ;;  %vm6299_vm12 = vcmp.eq.s32.totalorder %v6088_v5, %v6109_v17  ;;  %v10664_v60 = vmov 0  ;;  %1233 = vadd.xlane.f32.xlu1 %v1232_v54  ;;  %5592 = vmatpush3.bf16.msra.mxu0 %v5591_v55 }
  0x71   : > { %10660 = vst [vmem:[#allocation32_spill] sm:$0xff] %v10659_v57  ;;  %10663 = vst [vmem:[#allocation33_spill] sm:$0xff] %v10662_v58  ;;  %v10665_v60 = vsel %vm6299_vm12, 4294967295, %v10664_v60  ;;  %vm6305_vm10 = vcmp.eq.s32.totalorder %v6088_v5, %v6114_v20  ;;  %v10667_v63 = vmov 0  ;;  %v4895_v0 = vsel %vm6287_vm9, 1.0, %v10204_v31  ;;  %5624 = vmatpush3.bf16.msra.mxu1 %v5623_v56 }
  0x72   : > { %10666 = vst [vmem:[#allocation34_spill] sm:$0xff] %v10665_v60  ;;  %v10668_v63 = vsel %vm6305_vm10, 4294967295, %v10667_v63  ;;  %v4896_v8 = vsel %vm6293_vm7, 1.0, %v10204_v31  ;;  %v4897_v5 = vsel %vm6299_vm12, 1.0, %v10204_v31  ;;  %v4898_v9 = vsel %vm6305_vm10, 1.0, %v10204_v31 }
  0x73   : > { %10669 = vst [vmem:[#allocation35_spill] sm:$0xff] %v10668_v63  ;;  %vm6325_vm9 = vcmp.eq.s32.totalorder %v6099_v12, %v6103_v15  ;;  %v10670_v10 = vmov 0  ;;  %v1222_v14 = vadd.f32 %v4882_v4, %v1221_v59  ;;  %v1240_v19 = vadd.f32 %v4896_v8, %v4895_v0 }
  0x74   : > { %v10671_v10 = vsel %vm6325_vm9, 4294967295, %v10670_v10  ;;  %vm6334_vm7 = vcmp.eq.s32.totalorder %v6099_v12, %v6106_v16  ;;  %v10673_v21 = vmov 0  ;;  %vm6340_vm12 = vcmp.eq.s32.totalorder %v6099_v12, %v6109_v17 }
  0x75   : > { %10672 = vst [vmem:[#allocation36_spill] sm:$0xff] %v10671_v10  ;;  %v10674_v21 = vsel %vm6334_vm7, 4294967295, %v10673_v21  ;;  %v10676_v32 = vmov 0  ;;  %vm6349_vm10 = vcmp.eq.s32.totalorder %v6099_v12, %v6114_v20  ;;  %v10679_v43 = vmov 0  ;;  %1223 = vadd.xlane.f32.xlu0 %v1222_v14  ;;  %v892_v14 = vld [vmem:[%s5977_s29 + $0xf8] sm:$0xff] }
  0x76   : > { %10675 = vst [vmem:[#allocation37_spill] sm:$0xff] %v10674_v21  ;;  %v10677_v32 = vsel %vm6340_vm12, 4294967295, %v10676_v32  ;;  %v10680_v43 = vsel %vm6349_vm10, 4294967295, %v10679_v43  ;;  %v4891_v46 = vsel %vm6325_vm9, 1.0, %v10204_v31  ;;  %v4892_v47 = vsel %vm6334_vm7, 1.0, %v10204_v31 }
  0x77   : > { %10678 = vst [vmem:[#allocation38_spill] sm:$0xff] %v10677_v32  ;;  %10681 = vst [vmem:[#allocation39_spill] sm:$0xff] %v10680_v43  ;;  %v4893_v4 = vsel %vm6340_vm12, 1.0, %v10204_v31  ;;  %v1241_v48 = vadd.f32 %v4897_v5, %v1240_v19  ;;  %v4894_v12 = vsel %vm6349_vm10, 1.0, %v10204_v31  ;;  %v1235_v51 = vadd.f32 %v4892_v47, %v4891_v46  ;;  %v924_v46 = vld [vmem:[%s5977_s29 + $0x1f8] sm:$0xff]  ;;  %v875_v47 = vld [vmem:[%s5977_s29 + $0x70] sm:$0xff] }
  0x78   : > { %v5593_v52 = vpack.c.bf16 %v890_v7, %v889_v6  ;;  %v5625_v55 = vpack.c.bf16 %v922_v11, %v921_v62  ;;  %v5595_v54 = vpack.c.bf16 %v874_v37, %v873_v13  ;;  %v5627_v56 = vpack.c.bf16 %v906_v39, %v905_v38  ;;  %v891_v13 = vld [vmem:[%s5977_s29 + $0xf0] sm:$0xff] }
  0x79   : > { %vm6367_vm9 = vcmp.eq.s32.totalorder %v6117_v22, %v6103_v15  ;;  %v10682_v59 = vmov 0  ;;  %v1242_v0 = vadd.f32 %v4898_v9, %v1241_v48  ;;  %v1236_v8 = vadd.f32 %v4893_v4, %v1235_v51  ;;  %v876_v4 = vld [vmem:[%s5977_s29 + $0x78] sm:$0xff] }
  0x7a   : > { %v10683_v59 = vsel %vm6367_vm9, 4294967295, %v10682_v59  ;;  %5594 = vmatprep.subr.bf16.mxu0 %v5593_v52  ;;  %vm6373_vm12 = vcmp.eq.s32.totalorder %v6117_v22, %v6106_v16  ;;  %v10685_v5 = vmov 0  ;;  %vm6379_vm10 = vcmp.eq.s32.totalorder %v6117_v22, %v6109_v17  ;;  %5626 = vmatprep.subr.bf16.mxu1 %v5625_v55  ;;  %v907_v55 = vld [vmem:[%s5977_s29 + $0x170] sm:$0xff] }
  0x7b   : > { %10684 = vst [vmem:[#allocation40_spill] sm:$0xff] %v10683_v59  ;;  %v10686_v5 = vsel %vm6373_vm12, 4294967295, %v10685_v5  ;;  %v10688_v6 = vmov 0  ;;  %5596 = vmatpush3.bf16.msra.mxu0 %v5595_v54  ;;  %vm6385_vm7 = vcmp.eq.s32.totalorder %v6117_v22, %v6114_v20  ;;  %v10691_v7 = vmov 0  ;;  %v923_v22 = vld [vmem:[%s5977_s29 + $0x1f0] sm:$0xff]  ;;  %1243 = vadd.xlane.f32.xlu1 %v1242_v0  ;;  %v908_v54 = vld [vmem:[%s5977_s29 + $0x178] sm:$0xff] }
  0x7c   : > { %10687 = vst [vmem:[#allocation41_spill] sm:$0xff] %v10686_v5  ;;  %v10689_v6 = vsel %vm6379_vm10, 4294967295, %v10688_v6  ;;  %v10692_v7 = vsel %vm6385_vm7, 4294967295, %v10691_v7  ;;  %v4903_v9 = vsel %vm6367_vm9, 1.0, %v10204_v31  ;;  %v4904_v62 = vsel %vm6373_vm12, 1.0, %v10204_v31  ;;  %5628 = vmatpush3.bf16.msra.mxu1 %v5627_v56 }
  0x7d   : > { %10690 = vst [vmem:[#allocation42_spill] sm:$0xff] %v10689_v6  ;;  %10693 = vst [vmem:[#allocation43_spill] sm:$0xff] %v10692_v7  ;;  %v4905_v11 = vsel %vm6379_vm10, 1.0, %v10204_v31  ;;  %v1237_v19 = vadd.f32 %v4894_v12, %v1236_v8  ;;  %v4906_v37 = vsel %vm6385_vm7, 1.0, %v10204_v31  ;;  %v1250_v38 = vadd.f32 %v4904_v62, %v4903_v9 }
  0x7e   : > { %vm6406_vm9 = vcmp.eq.s32.totalorder %v6120_v24, %v6103_v15  ;;  %v10694_v39 = vmov 0  ;;  %vm6415_vm10 = vcmp.eq.s32.totalorder %v6120_v24, %v6106_v16  ;;  %v10697_v48 = vmov 0 }
  0x7f   : > { %v10695_v39 = vsel %vm6406_vm9, 4294967295, %v10694_v39  ;;  %v10698_v48 = vsel %vm6415_vm10, 4294967295, %v10697_v48  ;;  %vm6421_vm12 = vcmp.eq.s32.totalorder %v6120_v24, %v6109_v17  ;;  %v10700_v12 = vmov 0  ;;  %1238 = vadd.xlane.f32.xlu0 %v1237_v19 }
  0x80   : > { %10696 = vst [vmem:[#allocation44_spill] sm:$0xff] %v10695_v39  ;;  %10699 = vst [vmem:[#allocation45_spill] sm:$0xff] %v10698_v48  ;;  %v10701_v12 = vsel %vm6421_vm12, 4294967295, %v10700_v12  ;;  %vm6427_vm7 = vcmp.eq.s32.totalorder %v6120_v24, %v6114_v20  ;;  %v10703_v51 = vmov 0  ;;  %v4899_v52 = vsel %vm6406_vm9, 1.0, %v10204_v31 }
  0x81   : > { %10702 = vst [vmem:[#allocation46_spill] sm:$0xff] %v10701_v12  ;;  %v10704_v51 = vsel %vm6427_vm7, 4294967295, %v10703_v51  ;;  %v1251_v56 = vadd.f32 %v4905_v11, %v1250_v38  ;;  %v4900_v0 = vsel %vm6415_vm10, 1.0, %v10204_v31  ;;  %v4901_v8 = vsel %vm6421_vm12, 1.0, %v10204_v31 }
  0x82   : > { %10705 = vst [vmem:[#allocation47_spill] sm:$0xff] %v10704_v51  ;;  %v4902_v24 = vsel %vm6427_vm7, 1.0, %v10204_v31  ;;  %v1245_v9 = vadd.f32 %v4900_v0, %v4899_v52  ;;  %v5597_v62 = vpack.c.bf16 %v892_v14, %v891_v13  ;;  %v5629_v53 = vpack.c.bf16 %v924_v46, %v923_v22 }
  0x83   : > { %v5599_v6 = vpack.c.bf16 %v876_v4, %v875_v47  ;;  %v1252_v59 = vadd.f32 %v4906_v37, %v1251_v56  ;;  %v5631_v7 = vpack.c.bf16 %v908_v54, %v907_v55  ;;  %v645_v11 = vadd.s32 %v6039_v28, %v6138_v29 }
  0x84   : > { %v627_v19 = vadd.s32 64, %v6034_v23  ;;  %v1246_v38 = vadd.f32 %v4901_v8, %v1245_v9  ;;  %5598 = vmatprep.subr.bf16.mxu0 %v5597_v62  ;;  %5630 = vmatprep.subr.bf16.mxu1 %v5629_v53  ;;  %v630_v12 = vadd.s32 88, %v6034_v23  ;;  %v629_v5 = vadd.s32 80, %v6034_v23 }
  0x85   : > { %v632_v31 = vadd.s32 104, %v6034_v23  ;;  %1253 = vadd.xlane.f32.xlu1 %v1252_v59  ;;  %5600 = vmatpush3.bf16.msra.mxu0 %v5599_v6  ;;  %vm6452_vm12 = vcmp.eq.s32.totalorder %v645_v11, %v6103_v15  ;;  %v10706_v13 = vmov 0  ;;  %vm6457_vm9 = vcmp.eq.s32.totalorder %v645_v11, %v6106_v16 }
  0x86   : > { %v10707_v13 = vsel %vm6452_vm12, 4294967295, %v10706_v13  ;;  %v10709_v29 = vmov 0  ;;  %vm6462_vm7 = vcmp.eq.s32.totalorder %v645_v11, %v6109_v17  ;;  %v10712_v53 = vmov 0  ;;  %5632 = vmatpush3.bf16.msra.mxu1 %v5631_v7 }
  0x87   : > { %10708 = vst [vmem:[#allocation48_spill] sm:$0xff] %v10707_v13  ;;  %v10710_v29 = vsel %vm6457_vm9, 4294967295, %v10709_v29  ;;  %v10713_v53 = vsel %vm6462_vm7, 4294967295, %v10712_v53  ;;  %v6467_v14 = vadd.s32 96, %v6034_v23  ;;  %v1247_v59 = vadd.f32 %v4902_v24, %v1246_v38 }
  0x88   : > { %10711 = vst [vmem:[#allocation49_spill] sm:$0xff] %v10710_v29  ;;  %10714 = vst [vmem:[#allocation50_spill] sm:$0xff] %v10713_v53  ;;  %vm6470_vm10 = vcmp.eq.s32.totalorder %v645_v11, %v6114_v20  ;;  %v10715_v6 = vmov 0  ;;  %v10718_v22 = vmov 0.0   ;;  %v644_v52 = vadd.s32 %v6039_v28, %v627_v19 }
  0x89   : > { %v10716_v6 = vsel %vm6470_vm10, 4294967295, %v10715_v6  ;;  %v4911_v37 = vsel %vm6452_vm12, 1.0, %v10718_v22  ;;  %v4912_v46 = vsel %vm6457_vm9, 1.0, %v10718_v22  ;;  %v4913_v47 = vsel %vm6462_vm7, 1.0, %v10718_v22  ;;  %1248 = vadd.xlane.f32.xlu0 %v1247_v59 }
  0x8a   : > { %10717 = vst [vmem:[#allocation51_spill] sm:$0xff] %v10716_v6  ;;  %v4914_v7 = vsel %vm6470_vm10, 1.0, %v10718_v22  ;;  %v1260_v4 = vadd.f32 %v4912_v46, %v4911_v37  ;;  %v10719_v55 = vmov 1.0   ;;  %v647_v54 = vadd.s32 %v6039_v28, %v630_v12 }
  0x8b   : > { %4940 = vmatmul.mubr.msk.f32.vlgmr.msra.gmra.mrb[0].mxu0 %vm6162_vm6, %v10719_v55  ;;  %v646_v56 = vadd.s32 %v6039_v28, %v629_v5  ;;  %v649_v0 = vadd.s32 %v6039_v28, %v632_v31  ;;  %v634_v8 = vadd.s32 120, %v6034_v23  ;;  %vm6495_vm7 = vcmp.eq.s32.totalorder %v644_v52, %v6103_v15  ;;  %4972 = vmatmul.mubr.msk.f32.vlgmr.msra.gmra.mrb[0].mxu1 %vm6177_vm8, %v10719_v55 }
  0x8c   : > { %v1261_v24 = vadd.f32 %v4913_v47, %v1260_v4  ;;  %v10720_v9 = vmov 0  ;;  %vm6500_vm12 = vcmp.eq.s32.totalorder %v644_v52, %v6106_v16  ;;  %v10723_v62 = vmov 0  ;;  %4941 = vmatprep.mubr.msk.f32.mxu0 %vm6255_vm15, %v10719_v55  ;;  %4973 = vmatprep.mubr.msk.f32.mxu1 %vm6267_vm1, %v10719_v55 }
  0x8d   : > { %v10721_v9 = vsel %vm6495_vm7, 4294967295, %v10720_v9  ;;  %v10724_v62 = vsel %vm6500_vm12, 4294967295, %v10723_v62  ;;  %vm6505_vm10 = vcmp.eq.s32.totalorder %v644_v52, %v6109_v17  ;;  %v10726_v12 = vmov 0 }
  0x8e   : > { %10722 = vst [vmem:[#allocation52_spill] sm:$0xff] %v10721_v9  ;;  %10725 = vst [vmem:[#allocation53_spill] sm:$0xff] %v10724_v62  ;;  %v10727_v12 = vsel %vm6505_vm10, 4294967295, %v10726_v12  ;;  %vm6513_vm9 = vcmp.eq.s32.totalorder %v644_v52, %v6114_v20  ;;  %v10729_v31 = vmov 0  ;;  %v4907_v5 = vsel %vm6495_vm7, 1.0, %v10718_v22 }
  0x8f   : > { %10728 = vst [vmem:[#allocation54_spill] sm:$0xff] %v10727_v12  ;;  %v10730_v31 = vsel %vm6513_vm9, 4294967295, %v10729_v31  ;;  %v4908_v11 = vsel %vm6500_vm12, 1.0, %v10718_v22  ;;  %v4909_v19 = vsel %vm6505_vm10, 1.0, %v10718_v22  ;;  %v1262_v38 = vadd.f32 %v4914_v7, %v1261_v24  ;;  %4942 = vmatmul.mubr.msk.f32.gmra.mrb[2].mxu0 %vm6246_vm14, %v10719_v55  ;;  %4974 = vmatmul.mubr.msk.f32.gmra.mrb[2].mxu1 %vm6261_vm0, %v10719_v55 }
  0x90   : > { %10731 = vst [vmem:[#allocation55_spill] sm:$0xff] %v10730_v31  ;;  %v4910_v59 = vsel %vm6513_vm9, 1.0, %v10718_v22  ;;  %v1255_v37 = vadd.f32 %v4908_v11, %v4907_v5  ;;  %vm6536_vm7 = vcmp.eq.s32.totalorder %v647_v54, %v6103_v15  ;;  %v10732_v46 = vmov 0  ;;  %4943 = vmatprep.mubr.msk.f32.mxu0 %vm6128_vm3, %v10719_v55  ;;  %4975 = vmatprep.mubr.msk.f32.mxu1 %vm6141_vm5, %v10719_v55 }
  0x91   : > { %v10733_v46 = vsel %vm6536_vm7, 4294967295, %v10732_v46  ;;  %vm6541_vm10 = vcmp.eq.s32.totalorder %v647_v54, %v6106_v16  ;;  %v10735_v47 = vmov 0  ;;  %vm6546_vm12 = vcmp.eq.s32.totalorder %v647_v54, %v6109_v17  ;;  %1263 = vadd.xlane.f32.xlu1 %v1262_v38 }
  0x92   : > { %10734 = vst [vmem:[#allocation56_spill] sm:$0xff] %v10733_v46  ;;  %v10736_v47 = vsel %vm6541_vm10, 4294967295, %v10735_v47  ;;  %v10738_v4 = vmov 0  ;;  %vm6551_vm8 = vcmp.eq.s32.totalorder %v647_v54, %v6114_v20  ;;  %v10741_v7 = vmov 0 }
  0x93   : > { %10737 = vst [vmem:[#allocation57_spill] sm:$0xff] %v10736_v47  ;;  %v10739_v4 = vsel %vm6546_vm12, 4294967295, %v10738_v4  ;;  %v10742_v7 = vsel %vm6551_vm8, 4294967295, %v10741_v7  ;;  %v4919_v52 = vsel %vm6536_vm7, 1.0, %v10718_v22  ;;  %v1256_v24 = vadd.f32 %v4909_v19, %v1255_v37  ;;  %4944 = vmatmul.mubr.msk.f32.gmra.mrb[4].mxu0 %vm6123_vm2, %v10719_v55  ;;  %4976 = vmatmul.mubr.msk.f32.gmra.mrb[4].mxu1 %vm6133_vm4, %v10719_v55 }
  0x94   : > { %10740 = vst [vmem:[#allocation58_spill] sm:$0xff] %v10739_v4  ;;  %10743 = vst [vmem:[#allocation59_spill] sm:$0xff] %v10742_v7  ;;  %v4920_v5 = vsel %vm6541_vm10, 1.0, %v10718_v22  ;;  %v4921_v54 = vsel %vm6546_vm12, 1.0, %v10718_v22  ;;  %v4922_v11 = vsel %vm6551_vm8, 1.0, %v10718_v22  ;;  %vm6574_vm7 = vcmp.eq.s32.totalorder %v646_v56, %v6103_v15  ;;  %4945 = vmatprep.mubr.msk.f32.mxu0 %vm6213_vm11, %v10719_v55  ;;  %4977 = vmatprep.mubr.msk.f32.mxu1 %vm6225_vm13, %v10719_v55 }
  0x95   : > { %v1270_v46 = vadd.f32 %v4920_v5, %v4919_v52  ;;  %v10744_v19 = vmov 0  ;;  %vm6579_vm10 = vcmp.eq.s32.totalorder %v646_v56, %v6106_v16  ;;  %v10747_v38 = vmov 0 }
  0x96   : > { %v10745_v19 = vsel %vm6574_vm7, 4294967295, %v10744_v19  ;;  %v10748_v38 = vsel %vm6579_vm10, 4294967295, %v10747_v38  ;;  %vm6584_vm12 = vcmp.eq.s32.totalorder %v646_v56, %v6109_v17  ;;  %v10750_v37 = vmov 0 }
  0x97   : > { %10746 = vst [vmem:[#allocation60_spill] sm:$0xff] %v10745_v19  ;;  %10749 = vst [vmem:[#allocation61_spill] sm:$0xff] %v10748_v38  ;;  %v10751_v37 = vsel %vm6584_vm12, 4294967295, %v10750_v37  ;;  %v1257_v52 = vadd.f32 %v4910_v59, %v1256_v24  ;;  %vm6592_vm8 = vcmp.eq.s32.totalorder %v646_v56, %v6114_v20  ;;  %v10753_v5 = vmov 0 }
  0x98   : > { %10752 = vst [vmem:[#allocation62_spill] sm:$0xff] %v10751_v37  ;;  %v10754_v5 = vsel %vm6592_vm8, 4294967295, %v10753_v5  ;;  %v4915_v7 = vsel %vm6574_vm7, 1.0, %v10718_v22  ;;  %v4916_v4 = vsel %vm6579_vm10, 1.0, %v10718_v22  ;;  %v1271_v47 = vadd.f32 %v4921_v54, %v1270_v46 }
  0x99   : > { %10755 = vst [vmem:[#allocation63_spill] sm:$0xff] %v10754_v5  ;;  %v4917_v56 = vsel %vm6584_vm12, 1.0, %v10718_v22  ;;  %v4918_v59 = vsel %vm6592_vm8, 1.0, %v10718_v22  ;;  %v1265_v24 = vadd.f32 %v4916_v4, %v4915_v7  ;;  %1258 = vadd.xlane.f32.xlu0 %v1257_v52  ;;  %vm6615_vm7 = vcmp.eq.s32.totalorder %v649_v0, %v6103_v15  ;;  %v1361_v7 = vld [vmem:[%s5989_s28] ss:$8 sm:$0xf] }
  0x9a   : > { %v10756_v19 = vmov 0  ;;  %vm6620_vm10 = vcmp.eq.s32.totalorder %v649_v0, %v6106_v16  ;;  %v10759_v46 = vmov 0  ;;  %vm6625_vm12 = vcmp.eq.s32.totalorder %v649_v0, %v6109_v17 }
  0x9b   : > { %v10757_v19 = vsel %vm6615_vm7, 4294967295, %v10756_v19  ;;  %v10760_v46 = vsel %vm6620_vm10, 4294967295, %v10759_v46  ;;  %v10762_v54 = vmov 0  ;;  %vm6630_vm8 = vcmp.eq.s32.totalorder %v649_v0, %v6114_v20 }
  0x9c   : > { %10758 = vst [vmem:[#allocation64_spill] sm:$0xff] %v10757_v19  ;;  %10761 = vst [vmem:[#allocation65_spill] sm:$0xff] %v10760_v46  ;;  %v10763_v54 = vsel %vm6625_vm12, 4294967295, %v10762_v54  ;;  %v10765_v4 = vmov 0  ;;  %v1272_v52 = vadd.f32 %v4922_v11, %v1271_v47  ;;  %v1266_v37 = vadd.f32 %v4917_v56, %v1265_v24 }
  0x9d   : > { %10764 = vst [vmem:[#allocation66_spill] sm:$0xff] %v10763_v54  ;;  %v10766_v4 = vsel %vm6630_vm8, 4294967295, %v10765_v4  ;;  %v4927_v5 = vsel %vm6615_vm7, 1.0, %v10718_v22  ;;  %v4928_v38 = vsel %vm6620_vm10, 1.0, %v10718_v22  ;;  %v4929_v0 = vsel %vm6625_vm12, 1.0, %v10718_v22 }
  0x9e   : > { %10767 = vst [vmem:[#allocation67_spill] sm:$0xff] %v10766_v4  ;;  %v4930_v47 = vsel %vm6630_vm8, 1.0, %v10718_v22  ;;  %v1280_v11 = vadd.f32 %v4928_v38, %v4927_v5  ;;  %v648_v56 = vadd.s32 %v6039_v28, %v6467_v14  ;;  %1273 = vadd.xlane.f32.xlu1 %v1272_v52  ;;  %v1267_v24 = vadd.f32 %v4918_v59, %v1266_v37 }
  0x9f   : > { %v651_v46 = vadd.s32 %v6039_v28, %v634_v8  ;;  %v633_v19 = vadd.s32 112, %v6034_v23  ;;  %vm10768_vm12 = vnez %v10635_v61  ;;  %v6664_v4 = vrot.slane %v1361_v7, %v6046_v35  ;;  %v10822_v61 = vld [vmem:[#allocation46_spill] sm:$0xff] }
  0xa0   : > { %4946 = vmatmul.mubr.msk.f32.gmra.mrb[6].mxu0 %vm10768_vm12, %v10719_v55  ;;  %v1281_v38 = vadd.f32 %v4929_v0, %v1280_v11  ;;  %vm6667_vm8 = vcmp.eq.s32.totalorder %v648_v56, %v6103_v15  ;;  %v10769_v14 = vmov 0  ;;  %vm6672_vm10 = vcmp.eq.s32.totalorder %v648_v56, %v6106_v16  ;;  %1268 = vadd.xlane.f32.xlu0 %v1267_v24 }
  0xa1   : > { %v10770_v14 = vsel %vm6667_vm8, 4294967295, %v10769_v14  ;;  %v10772_v37 = vmov 0  ;;  %vm6677_vm7 = vcmp.eq.s32.totalorder %v648_v56, %v6109_v17  ;;  %v10775_v23 = vmov 0 }
  0xa2   : > { %10771 = vst [vmem:[#allocation68_spill] sm:$0xff] %v10770_v14  ;;  %v10773_v37 = vsel %vm6672_vm10, 4294967295, %v10772_v37  ;;  %v10776_v23 = vsel %vm6677_vm7, 4294967295, %v10775_v23  ;;  %vm10778_vm9 = vnez %v10674_v21  ;;  %vm6685_vm5 = vcmp.eq.s32.totalorder %v648_v56, %v6114_v20 }
  0xa3   : > { %10774 = vst [vmem:[#allocation69_spill] sm:$0xff] %v10773_v37  ;;  %10777 = vst [vmem:[#allocation70_spill] sm:$0xff] %v10776_v23  ;;  %4947 = vmatprep.mubr.msk.f32.mxu0 %vm10778_vm9, %v10719_v55  ;;  %v10779_v8 = vmov 0  ;;  %v4923_v5 = vsel %vm6667_vm8, 1.0, %v10718_v22  ;;  %v4924_v59 = vsel %vm6672_vm10, 1.0, %v10718_v22  ;;  %v4925_v52 = vsel %vm6677_vm7, 1.0, %v10718_v22 }
  0xa4   : > { %v10780_v8 = vsel %vm6685_vm5, 4294967295, %v10779_v8  ;;  %vm10782_vm9 = vnez %v10641_v2  ;;  %v1282_v0 = vadd.f32 %v4930_v47, %v1281_v38  ;;  %v4926_v11 = vsel %vm6685_vm5, 1.0, %v10718_v22 }
  0xa5   : > { %10781 = vst [vmem:[#allocation71_spill] sm:$0xff] %v10780_v8  ;;  %4978 = vmatmul.mubr.msk.f32.gmra.mrb[6].mxu1 %vm10782_vm9, %v10719_v55  ;;  %v1275_v56 = vadd.f32 %v4924_v59, %v4923_v5  ;;  %vm6705_vm8 = vcmp.eq.s32.totalorder %v651_v46, %v6103_v15  ;;  %v10783_v24 = vmov 0  ;;  %vm10786_vm10 = vnez %v10680_v43 }
  0xa6   : > { %v10784_v24 = vsel %vm6705_vm8, 4294967295, %v10783_v24  ;;  %4979 = vmatprep.mubr.msk.f32.mxu1 %vm10786_vm10, %v10719_v55  ;;  %vm6713_vm7 = vcmp.eq.s32.totalorder %v651_v46, %v6106_v16  ;;  %v10787_v23 = vmov 0  ;;  %vm6718_vm4 = vcmp.eq.s32.totalorder %v651_v46, %v6109_v17  ;;  %1283 = vadd.xlane.f32.xlu1 %v1282_v0 }
  0xa7   : > { %10785 = vst [vmem:[#allocation72_spill] sm:$0xff] %v10784_v24  ;;  %v10788_v23 = vsel %vm6713_vm7, 4294967295, %v10787_v23  ;;  %v10790_v47 = vmov 0  ;;  %vm6723_vm5 = vcmp.eq.s32.totalorder %v651_v46, %v6114_v20  ;;  %v10793_v38 = vmov 0 }
  0xa8   : > { %10789 = vst [vmem:[#allocation73_spill] sm:$0xff] %v10788_v23  ;;  %v10791_v47 = vsel %vm6718_vm4, 4294967295, %v10790_v47  ;;  %v10794_v38 = vsel %vm6723_vm5, 4294967295, %v10793_v38  ;;  %v4935_v5 = vsel %vm6705_vm8, 1.0, %v10718_v22  ;;  %vm10796_vm10 = vnez %v10671_v10 }
  0xa9   : > { %10792 = vst [vmem:[#allocation74_spill] sm:$0xff] %v10791_v47  ;;  %10795 = vst [vmem:[#allocation75_spill] sm:$0xff] %v10794_v38  ;;  %4948 = vmatmul.mubr.msk.f32.gmra.mrb[8].mxu0 %vm10796_vm10, %v10719_v55  ;;  %v1276_v59 = vadd.f32 %v4925_v52, %v1275_v56  ;;  %v4936_v8 = vsel %vm6713_vm7, 1.0, %v10718_v22  ;;  %v4937_v46 = vsel %vm6718_vm4, 1.0, %v10718_v22  ;;  %v4938_v14 = vsel %vm6723_vm5, 1.0, %v10718_v22 }
  0xaa   : > { %vm10797_vm8 = vnez %v10662_v58  ;;  %v1290_v24 = vadd.f32 %v4936_v8, %v4935_v5  ;;  %v650_v0 = vadd.s32 %v6039_v28, %v633_v19  ;;  %v6747_v52 = vrot.slane %v1361_v7, %v6052_v40 }
  0xab   : > { %4949 = vmatprep.mubr.msk.f32.mxu0 %vm10797_vm8, %v10719_v55  ;;  %v6750_v56 = vrot.slane %v1361_v7, %v6055_v41  ;;  %vm10798_vm4 = vnez %v10677_v32  ;;  %v1277_v47 = vadd.f32 %v4926_v11, %v1276_v59  ;;  %v6756_v38 = vrot.slane %v1361_v7, %v6058_v42 }
  0xac   : > { %4980 = vmatmul.mubr.msk.f32.gmra.mrb[8].mxu1 %vm10798_vm4, %v10719_v55  ;;  %v1387_v8 = vsel %vm6246_vm14, %v6664_v4, -1e+30  ;;  %v1383_v28 = vsel %vm6162_vm6, %v6664_v4, -1e+30  ;;  %vm10799_vm5 = vnez %v10668_v63  ;;  %v1291_v19 = vadd.f32 %v4937_v46, %v1290_v24 }
  0xad   : > { %4981 = vmatprep.mubr.msk.f32.mxu1 %vm10799_vm5, %v10719_v55  ;;  %vm6768_vm7 = vcmp.eq.s32.totalorder %v650_v0, %v6103_v15  ;;  %v10800_v5 = vmov 0  ;;  %vm6773_vm4 = vcmp.eq.s32.totalorder %v650_v0, %v6106_v16  ;;  %v10803_v7 = vmov 0  ;;  %1278 = vadd.xlane.f32.xlu0 %v1277_v47 }
  0xae   : > { %v10801_v5 = vsel %vm6768_vm7, 4294967295, %v10800_v5  ;;  %v10804_v7 = vsel %vm6773_vm4, 4294967295, %v10803_v7  ;;  %vm6778_vm14 = vcmp.eq.s32.totalorder %v650_v0, %v6109_v17  ;;  %v10806_v11 = vmov 0 }
  0xaf   : > { %10802 = vst [vmem:[#allocation76_spill] sm:$0xff] %v10801_v5  ;;  %10805 = vst [vmem:[#allocation77_spill] sm:$0xff] %v10804_v7  ;;  %v10807_v11 = vsel %vm6778_vm14, 4294967295, %v10806_v11  ;;  %vm10809_vm6 = vnez %v10659_v57  ;;  %vm6786_vm10 = vcmp.eq.s32.totalorder %v650_v0, %v6114_v20  ;;  %v10810_v15 = vmov 0 }
  0xb0   : > { %10808 = vst [vmem:[#allocation78_spill] sm:$0xff] %v10807_v11  ;;  %4950 = vmatmul.mubr.msk.f32.gmra.mrb[10].mxu0 %vm10809_vm6, %v10719_v55  ;;  %v10811_v15 = vsel %vm6786_vm10, 4294967295, %v10810_v15  ;;  %v4931_v16 = vsel %vm6768_vm7, 1.0, %v10718_v22  ;;  %v4932_v17 = vsel %vm6773_vm4, 1.0, %v10718_v22  ;;  %v4933_v24 = vsel %vm6778_vm14, 1.0, %v10718_v22 }
  0xb1   : > { %10812 = vst [vmem:[#allocation79_spill] sm:$0xff] %v10811_v15  ;;  %vm10813_vm5 = vnez %v10698_v48  ;;  %v1292_v20 = vadd.f32 %v4938_v14, %v1291_v19  ;;  %v4934_v47 = vsel %vm6786_vm10, 1.0, %v10718_v22  ;;  %v1285_v59 = vadd.f32 %v4932_v17, %v4931_v16 }
  0xb2   : > { %4951 = vmatprep.mubr.msk.f32.mxu0 %vm10813_vm5, %v10719_v55  ;;  %v1388_v46 = vsel %vm6255_vm15, %v6747_v52, -1e+30  ;;  %vm10814_vm4 = vnez %v10665_v60  ;;  %v1389_v0 = vsel %vm6261_vm0, %v6750_v56, -1e+30  ;;  %v1390_v14 = vsel %vm6267_vm1, %v6756_v38, -1e+30 }
  0xb3   : > { %4982 = vmatmul.mubr.msk.f32.gmra.mrb[10].mxu1 %vm10814_vm4, %v10719_v55  ;;  %v1452_v19 = vmax.f32 %v1387_v8, %v1388_v46  ;;  %vm10815_vm10 = vnez %v10626_v45  ;;  %vm10816_vm15 = vnez %v10704_v51  ;;  %1293 = vadd.xlane.f32.xlu1 %v1292_v20  ;;  %v1286_v16 = vadd.f32 %v4933_v24, %v1285_v59  ;;  %v10820_v59 = vld [vmem:[#allocation41_spill] sm:$0xff] }
  0xb4   : > { %v1384_v22 = vsel %vm10815_vm10, %v6747_v52, -1e+30  ;;  %4983 = vmatprep.mubr.msk.f32.mxu1 %vm10816_vm15, %v10719_v55  ;;  %vm10817_vm14 = vnez %v10629_v49  ;;  %vm10818_vm0 = vnez %v10632_v50  ;;  %vm10819_vm1 = vnez %v10695_v39 }
  0xb5   : > { %v1385_v17 = vsel %vm10817_vm14, %v6750_v56, -1e+30  ;;  %v1386_v44 = vsel %vm10818_vm0, %v6756_v38, -1e+30  ;;  %v1447_v36 = vmax.f32 %v1383_v28, %v1384_v22  ;;  %4952 = vmatmul.mubr.msk.f32.gmra.mrb[12].mxu0 %vm10819_vm1, %v10719_v55  ;;  %v1453_v8 = vmax.f32 %v1452_v19, %v1389_v0 }
  0xb6   : > { %v1395_v46 = vsel %vm10768_vm12, %v6664_v4, -1e+30  ;;  %v1396_v24 = vsel %vm6213_vm11, %v6747_v52, -1e+30  ;;  %v1397_v20 = vsel %vm10782_vm9, %v6750_v56, -1e+30  ;;  %vm10821_vm0 = vnez %v10820_v59 }
  0xb7   : > { %4953 = vmatprep.mubr.msk.f32.mxu0 %vm10821_vm0, %v10719_v55  ;;  %v1287_v28 = vadd.f32 %v4934_v47, %v1286_v16  ;;  %v1448_v22 = vmax.f32 %v1447_v36, %v1385_v17  ;;  %v1398_v0 = vsel %vm6225_vm13, %v6756_v38, -1e+30  ;;  %v1462_v19 = vmax.f32 %v1395_v46, %v1396_v24  ;;  %v10825_v47 = vld [vmem:[#allocation43_spill] sm:$0xff]  ;;  %v10828_v46 = vld [vmem:[#allocation40_spill] sm:$0xff] }
  0xb8   : > { %vm10823_vm12 = vnez %v10822_v61  ;;  %v1454_v1 = vmax.f32 %v1453_v8, %v1390_v14  ;;  %v1391_v2 = vsel %vm6123_vm2, %v6664_v4, -1e+30  ;;  %v1392_v50 = vsel %vm6128_vm3, %v6747_v52, -1e+30 }
  0xb9   : > { %4984 = vmatmul.mubr.msk.f32.gmra.mrb[12].mxu1 %vm10823_vm12, %v10719_v55  ;;  %vm10824_vm9 = vnez %v10617_v27  ;;  %vm10826_vm13 = vnez %v10825_v47  ;;  %1288 = vadd.xlane.f32.xlu0 %v1287_v28  ;;  %v1449_v16 = vmax.f32 %v1448_v22, %v1386_v44  ;;  %v1463_v17 = vmax.f32 %v1462_v19, %v1397_v20  ;;  %v10832_v22 = vld [vmem:[#allocation42_spill] sm:$0xff] }
  0xba   : > { %v1393_v36 = vsel %vm10824_vm9, %v6750_v56, -1e+30  ;;  %4985 = vmatprep.mubr.msk.f32.mxu1 %vm10826_vm13, %v10719_v55  ;;  %vm10827_vm11 = vnez %v10620_v30  ;;  %v1457_v8 = vmax.f32 %v1391_v2, %v1392_v50  ;;  %vm10829_vm2 = vnez %v10828_v46  ;;  %1455 = vmax.xlane.f32.xlu1 %v1454_v1 }
  0xbb   : > { %v1394_v14 = vsel %vm10827_vm11, %v6756_v38, -1e+30  ;;  %4954 = vmatmul.mubr.msk.f32.gmra.mrb[14].mxu0 %vm10829_vm2, %v10719_v55  ;;  %v1403_v24 = vsel %vm10809_vm6, %v6664_v4, -1e+30  ;;  %v1404_v28 = vsel %vm10797_vm8, %v6747_v52, -1e+30  ;;  %vm10830_vm11 = vnez %v10724_v62 }
  0xbc   : > { %v1405_v44 = vsel %vm10814_vm4, %v6750_v56, -1e+30  ;;  %4955 = vmatprep.mubr.msk.f32.mxu0 %vm10830_vm11, %v10719_v55  ;;  %v1464_v50 = vmax.f32 %v1463_v17, %v1398_v0  ;;  %v1458_v2 = vmax.f32 %v1457_v8, %v1393_v36  ;;  %vm10831_vm9 = vnez %v10668_v63  ;;  %v5003_v62 = vld [vmem:[%s5989_s28 + $0x1] ss:$8 sm:$0xf] }
  0xbd   : > { %v1406_v1 = vsel %vm10831_vm9, %v6756_v38, -1e+30  ;;  %v1472_v20 = vmax.f32 %v1403_v24, %v1404_v28  ;;  %vm10833_vm6 = vnez %v10832_v22  ;;  %vm10834_vm8 = vnez %v10671_v10  ;;  %1450 = vmax.xlane.f32.xlu0 %v1449_v16 }
  0xbe   : > { %4986 = vmatmul.mubr.msk.f32.gmra.mrb[14].mxu1 %vm10833_vm6, %v10719_v55  ;;  %v1399_v19 = vsel %vm10834_vm8, %v6664_v4, -1e+30  ;;  %vm10835_vm4 = vnez %v10674_v21  ;;  %vm10836_vm3 = vnez %v10677_v32  ;;  %vm10837_vm9 = vnez %v10730_v31  ;;  %1465 = vmax.xlane.f32.xlu1 %v1464_v50  ;;  %v10859_v31 = vld [vmem:[#allocation62_spill] sm:$0xff] }
  0xbf   : > { %v1400_v60 = vsel %vm10835_vm4, %v6747_v52, -1e+30  ;;  %v1401_v0 = vsel %vm10836_vm3, %v6750_v56, -1e+30  ;;  %4987 = vmatprep.mubr.msk.f32.mxu1 %vm10837_vm9, %v10719_v55  ;;  %v1459_v36 = vmax.f32 %v1458_v2, %v1394_v14  ;;  %v1473_v17 = vmax.f32 %v1472_v20, %v1405_v44 }
  0xc0   : > { %vm10838_vm14 = vnez %v10680_v43  ;;  %v1467_v24 = vmax.f32 %v1399_v19, %v1400_v60  ;;  %vm10839_vm8 = vnez %v10721_v9  ;;  %v1411_v28 = vsel %vm10829_vm2, %v6664_v4, -1e+30  ;;  %v10849_v9 = vld [vmem:[#allocation60_spill] sm:$0xff] }
  0xc1   : > { %v1402_v8 = vsel %vm10838_vm14, %v6756_v38, -1e+30  ;;  %4956 = vmatmul.mubr.msk.f32.gmra.mrb[16].mxu0 %vm10839_vm8, %v10719_v55  ;;  %v1412_v16 = vsel %vm10821_vm0, %v6747_v52, -1e+30  ;;  %v1413_v14 = vsel %vm10833_vm6, %v6750_v56, -1e+30  ;;  %vm10840_vm14 = vnez %v10710_v29  ;;  %1460 = vmax.xlane.f32.xlu0 %v1459_v36 }
  0xc2   : > { %4957 = vmatprep.mubr.msk.f32.mxu0 %vm10840_vm14, %v10719_v55  ;;  %v1474_v60 = vmax.f32 %v1473_v17, %v1406_v1  ;;  %v1468_v44 = vmax.f32 %v1467_v24, %v1401_v0  ;;  %v1414_v50 = vsel %vm10826_vm13, %v6756_v38, -1e+30  ;;  %v1482_v2 = vmax.f32 %v1411_v28, %v1412_v16 }
  0xc3   : > { %vm10841_vm2 = vnez %v10727_v12  ;;  %v1407_v20 = vsel %vm10819_vm1, %v6664_v4, -1e+30  ;;  %v1408_v19 = vsel %vm10813_vm5, %v6747_v52, -1e+30  ;;  %v1409_v1 = vsel %vm10823_vm12, %v6750_v56, -1e+30 }
  0xc4   : > { %4988 = vmatmul.mubr.msk.f32.gmra.mrb[16].mxu1 %vm10841_vm2, %v10719_v55  ;;  %vm10842_vm13 = vnez %v10716_v6  ;;  %v1469_v0 = vmax.f32 %v1468_v44, %v1402_v8  ;;  %v1483_v17 = vmax.f32 %v1482_v2, %v1413_v14  ;;  %v1410_v24 = vsel %vm10816_vm15, %v6756_v38, -1e+30  ;;  %1475 = vmax.xlane.f32.xlu1 %v1474_v60  ;;  %v10845_v14 = vld [vmem:[#allocation61_spill] sm:$0xff]  ;;  %v10851_v12 = vld [vmem:[#allocation56_spill] sm:$0xff] }
  0xc5   : > { %4989 = vmatprep.mubr.msk.f32.mxu1 %vm10842_vm13, %v10719_v55  ;;  %v1477_v28 = vmax.f32 %v1407_v20, %v1408_v19  ;;  %vm10843_vm1 = vnez %v10707_v13  ;;  %v1420_v36 = vsel %vm10840_vm14, %v6747_v52, -1e+30  ;;  %vm10844_vm12 = vnez %v10713_v53  ;;  %v10853_v53 = vld [vmem:[#allocation57_spill] sm:$0xff] }
  0xc6   : > { %4958 = vmatmul.mubr.msk.f32.gmra.mrb[18].mxu0 %vm10843_vm1, %v10719_v55  ;;  %v1419_v16 = vsel %vm10843_vm1, %v6664_v4, -1e+30  ;;  %v1421_v8 = vsel %vm10844_vm12, %v6750_v56, -1e+30  ;;  %vm10846_vm15 = vnez %v10845_v14  ;;  %v1484_v44 = vmax.f32 %v1483_v17, %v1414_v50  ;;  %1470 = vmax.xlane.f32.xlu0 %v1469_v0 }
  0xc7   : > { %4959 = vmatprep.mubr.msk.f32.mxu0 %vm10846_vm15, %v10719_v55  ;;  %v1478_v2 = vmax.f32 %v1477_v28, %v1409_v1  ;;  %v1422_v60 = vsel %vm10842_vm13, %v6756_v38, -1e+30  ;;  %v1492_v20 = vmax.f32 %v1419_v16, %v1420_v36  ;;  %v1415_v19 = vsel %vm10839_vm8, %v6664_v4, -1e+30  ;;  %v10847_v1 = vld [vmem:[#allocation63_spill] sm:$0xff] }
  0xc8   : > { %4990 = vmatmul.mubr.msk.f32.gmra.mrb[18].mxu1 %vm10844_vm12, %v10719_v55  ;;  %v1416_v29 = vsel %vm10830_vm11, %v6747_v52, -1e+30  ;;  %v1417_v50 = vsel %vm10841_vm2, %v6750_v56, -1e+30  ;;  %vm10848_vm13 = vnez %v10847_v1  ;;  %v1418_v16 = vsel %vm10837_vm9, %v6756_v38, -1e+30  ;;  %1485 = vmax.xlane.f32.xlu1 %v1484_v44 }
  0xc9   : > { %4991 = vmatprep.mubr.msk.f32.mxu1 %vm10848_vm13, %v10719_v55  ;;  %v1479_v17 = vmax.f32 %v1478_v2, %v1410_v24  ;;  %v1493_v28 = vmax.f32 %v1492_v20, %v1421_v8  ;;  %v1487_v36 = vmax.f32 %v1415_v19, %v1416_v29  ;;  %vm10850_vm8 = vnez %v10849_v9  ;;  %v10855_v24 = vld [vmem:[#allocation58_spill] sm:$0xff]  ;;  %v10857_v44 = vld [vmem:[#allocation59_spill] sm:$0xff]  ;;  %v10869_v1 = vld [vmem:[#allocation68_spill] sm:$0xff] }
  0xca   : > { %4960 = vmatmul.mubr.msk.f32.gmra.mrb[20].mxu0 %vm10850_vm8, %v10719_v55  ;;  %vm10852_vm2 = vnez %v10851_v12  ;;  %vm10854_vm11 = vnez %v10853_v53  ;;  %vm10856_vm12 = vnez %v10855_v24  ;;  %vm10858_vm9 = vnez %v10857_v44 }
  0xcb   : > { %v1427_v6 = vsel %vm10852_vm2, %v6664_v4, -1e+30  ;;  %v1428_v0 = vsel %vm10854_vm11, %v6747_v52, -1e+30  ;;  %v1429_v8 = vsel %vm10856_vm12, %v6750_v56, -1e+30  ;;  %4961 = vmatprep.mubr.msk.f32.mxu0 %vm10854_vm11, %v10719_v55  ;;  %v1494_v29 = vmax.f32 %v1493_v28, %v1422_v60  ;;  %1480 = vmax.xlane.f32.xlu0 %v1479_v17 }
  0xcc   : > { %v1488_v2 = vmax.f32 %v1487_v36, %v1417_v50  ;;  %v1430_v20 = vsel %vm10858_vm9, %v6756_v38, -1e+30  ;;  %v1502_v19 = vmax.f32 %v1427_v6, %v1428_v0  ;;  %vm10860_vm14 = vnez %v10859_v31  ;;  %v10861_v31 = vld [vmem:[#allocation64_spill] sm:$0xff] }
  0xcd   : > { %4992 = vmatmul.mubr.msk.f32.gmra.mrb[20].mxu1 %vm10860_vm14, %v10719_v55  ;;  %v1423_v13 = vsel %vm10850_vm8, %v6664_v4, -1e+30  ;;  %v1424_v53 = vsel %vm10846_vm15, %v6747_v52, -1e+30  ;;  %v1425_v60 = vsel %vm10860_vm14, %v6750_v56, -1e+30  ;;  %v7008_v6 = vrot.slane %v5003_v62, %v6046_v35  ;;  %1495 = vmax.xlane.f32.xlu1 %v1494_v29 }
  0xce   : > { %4993 = vmatprep.mubr.msk.f32.mxu1 %vm10858_vm9, %v10719_v55  ;;  %v1489_v50 = vmax.f32 %v1488_v2, %v1418_v16  ;;  %v1503_v28 = vmax.f32 %v1502_v19, %v1429_v8  ;;  %v1426_v36 = vsel %vm10848_vm13, %v6756_v38, -1e+30  ;;  %v1497_v0 = vmax.f32 %v1423_v13, %v1424_v53  ;;  %4962 = vmatmul.mubr.msk.f32.gmra.mrb[22].mxu0 %vm10852_vm2, %v10719_v55  ;;  %v10863_v35 = vld [vmem:[#allocation65_spill] sm:$0xff]  ;;  %v10867_v29 = vld [vmem:[#allocation67_spill] sm:$0xff] }
  0xcf   : > { %vm10862_vm14 = vnez %v10861_v31  ;;  %vm10864_vm15 = vnez %v10863_v35  ;;  %vm10865_vm8 = vnez %v10763_v54  ;;  %v7026_v8 = vrot.slane %v5003_v62, %v6052_v40  ;;  %v10961_v54 = vld [vmem:[#allocation14_spill] sm:$0xff] }
  0xd0   : > { %v1435_v14 = vsel %vm10862_vm14, %v6664_v4, -1e+30  ;;  %v1436_v17 = vsel %vm10864_vm15, %v6747_v52, -1e+30  ;;  %v1437_v16 = vsel %vm10865_vm8, %v6750_v56, -1e+30  ;;  %vm10866_vm13 = vnez %v10773_v37  ;;  %1490 = vmax.xlane.f32.xlu0 %v1489_v50 }
  0xd1   : > { %4963 = vmatprep.mubr.msk.f32.mxu0 %vm10866_vm13, %v10719_v55  ;;  %v1504_v13 = vmax.f32 %v1503_v28, %v1430_v20  ;;  %v1498_v53 = vmax.f32 %v1497_v0, %v1425_v60  ;;  %vm10868_vm9 = vnez %v10867_v29  ;;  %v1512_v19 = vmax.f32 %v1435_v14, %v1436_v17  ;;  %4994 = vmatmul.mubr.msk.f32.gmra.mrb[22].mxu1 %vm10856_vm12, %v10719_v55  ;;  %v10871_v20 = vld [vmem:[#allocation70_spill] sm:$0xff]  ;;  %v10873_v14 = vld [vmem:[#allocation71_spill] sm:$0xff] }
  0xd2   : > { %v1438_v2 = vsel %vm10868_vm9, %v6756_v38, -1e+30  ;;  %vm10870_vm11 = vnez %v10869_v1  ;;  %v1432_v9 = vsel %vm10866_vm13, %v6747_v52, -1e+30  ;;  %vm10872_vm2 = vnez %v10871_v20 }
  0xd3   : > { %v1431_v40 = vsel %vm10870_vm11, %v6664_v4, -1e+30  ;;  %v1433_v60 = vsel %vm10872_vm2, %v6750_v56, -1e+30  ;;  %v7047_v28 = vrot.slane %v5003_v62, %v6055_v41  ;;  %vm10874_vm1 = vnez %v10873_v14  ;;  %4964 = vmatmul.mubr.msk.f32.gmra.mrb[24].mxu0 %vm10870_vm11, %v10719_v55  ;;  %1505 = vmax.xlane.f32.xlu1 %v1504_v13  ;;  %v10875_v41 = vld [vmem:[#allocation72_spill] sm:$0xff]  ;;  %v10880_v13 = vld [vmem:[#allocation75_spill] sm:$0xff] }
  0xd4   : > { %4995 = vmatprep.mubr.msk.f32.mxu1 %vm10874_vm1, %v10719_v55  ;;  %v1499_v0 = vmax.f32 %v1498_v53, %v1426_v36  ;;  %v1513_v17 = vmax.f32 %v1512_v19, %v1437_v16  ;;  %v1434_v44 = vsel %vm10874_vm1, %v6756_v38, -1e+30  ;;  %v1507_v37 = vmax.f32 %v1431_v40, %v1432_v9  ;;  %v10878_v36 = vld [vmem:[#allocation74_spill] sm:$0xff]  ;;  %4965 = vmatprep.mubr.msk.f32.mxu0 %vm10864_vm15, %v10719_v55 }
  0xd5   : > { %vm10876_vm13 = vnez %v10875_v41  ;;  %vm10877_vm12 = vnez %v10788_v23  ;;  %vm10879_vm5 = vnez %v10878_v36  ;;  %v7068_v53 = vrot.slane %v5003_v62, %v6058_v42  ;;  %4996 = vmatmul.mubr.msk.f32.gmra.mrb[24].mxu1 %vm10872_vm2, %v10719_v55 }
  0xd6   : > { %v1443_v24 = vsel %vm10876_vm13, %v6664_v4, -1e+30  ;;  %v1444_v50 = vsel %vm10877_vm12, %v6747_v52, -1e+30  ;;  %v1445_v16 = vsel %vm10879_vm5, %v6750_v56, -1e+30  ;;  %v1514_v40 = vmax.f32 %v1513_v17, %v1438_v2  ;;  %4997 = vmatprep.mubr.msk.f32.mxu1 %vm10868_vm9, %v10719_v55  ;;  %1500 = vmax.xlane.f32.xlu0 %v1499_v0 }
  0xd7   : > { %v1508_v9 = vmax.f32 %v1507_v37, %v1433_v60  ;;  %vm10881_vm1 = vnez %v10880_v13  ;;  %v1522_v14 = vmax.f32 %v1443_v24, %v1444_v50  ;;  %v1439_v62 = vsel %vm6768_vm7, %v6664_v4, -1e+30  ;;  %4966 = vmatmul.mubr.msk.f32.gmra.mrb[26].mxu0 %vm10862_vm14, %v10719_v55  ;;  %v10890_v50 = vld [vmem:[#allocation20_spill] sm:$0xff] }
  0xd8   : > { %v1446_v19 = vsel %vm10881_vm1, %v6756_v38, -1e+30  ;;  %vm10882_vm11 = vnez %v10804_v7  ;;  %vm10883_vm15 = vnez %v10807_v11  ;;  %vm10884_vm2 = vnez %v10811_v15  ;;  %1515 = vmax.xlane.f32.xlu1 %v1514_v40 }
  0xd9   : > { %v1440_v42 = vsel %vm10882_vm11, %v6747_v52, -1e+30  ;;  %v1441_v37 = vsel %vm10883_vm15, %v6750_v56, -1e+30  ;;  %v1509_v24 = vmax.f32 %v1508_v9, %v1434_v44  ;;  %v1523_v2 = vmax.f32 %v1522_v14, %v1445_v16  ;;  %4967 = vmatprep.mubr.msk.f32.mxu0 %vm10882_vm11, %v10719_v55  ;;  %v10888_v14 = vld [vmem:[#allocation31_spill] sm:$0xff]  ;;  %4998 = vmatmul.mubr.msk.f32.gmra.mrb[26].mxu1 %vm10865_vm8, %v10719_v55 }
  0xda   : > { %v1442_v60 = vsel %vm10884_vm2, %v6756_v38, -1e+30  ;;  %v1517_v4 = vmax.f32 %v1439_v62, %v1440_v42  ;;  %vm10885_vm6 = vnez %v10647_v18  ;;  %vm10886_vm9 = vnez %v10650_v33  ;;  %4999 = vmatprep.mubr.msk.f32.mxu1 %vm10884_vm2, %v10719_v55 }
  0xdb   : > { %v1554_v52 = vsel %vm10885_vm6, %v7008_v6, -1e+30  ;;  %v1555_v56 = vsel %vm10886_vm9, %v7026_v8, -1e+30  ;;  %vm10887_vm0 = vnez %v10653_v34  ;;  %v1524_v42 = vmax.f32 %v1523_v2, %v1446_v19  ;;  %1510 = vmax.xlane.f32.xlu0 %v1509_v24  ;;  %4968 = vmatmul.mubr.msk.f32.gmra.mrb[28].mxu0 %vm6768_vm7, %v10719_v55 }
  0xdc   : > { %v1556_v44 = vsel %vm10887_vm0, %v7047_v28, -1e+30  ;;  %v1518_v38 = vmax.f32 %v1517_v4, %v1441_v37  ;;  %vm10889_vm14 = vnez %v10888_v14  ;;  %v1619_v17 = vmax.f32 %v1554_v52, %v1555_v56  ;;  %v10893_v37 = vld [vmem:[#allocation23_spill] sm:$0xff]  ;;  %v10895_v52 = vld [vmem:[#allocation24_spill] sm:$0xff]  ;;  %4969 = vmatprep.mubr.msk.f32.mxu0 %vm10877_vm12, %v10719_v55 }
  0xdd   : > { %v1557_v0 = vsel %vm10889_vm14, %v7068_v53, -1e+30  ;;  %vm10891_vm9 = vnez %v10890_v50  ;;  %v1551_v40 = vsel %vm10815_vm10, %v7026_v8, -1e+30  ;;  %vm10892_vm0 = vnez %v10629_v49  ;;  %1525 = vmax.xlane.f32.xlu1 %v1524_v42  ;;  %v10897_v49 = vld [vmem:[#allocation25_spill] sm:$0xff]  ;;  %5000 = vmatmul.mubr.msk.f32.gmra.mrb[28].mxu1 %vm10883_vm15, %v10719_v55 }
  0xde   : > { %v1550_v16 = vsel %vm10891_vm9, %v7008_v6, -1e+30  ;;  %v1552_v9 = vsel %vm10892_vm0, %v7047_v28, -1e+30  ;;  %v1519_v19 = vmax.f32 %v1518_v38, %v1442_v60  ;;  %v1620_v62 = vmax.f32 %v1619_v17, %v1556_v44  ;;  %v10899_v60 = vld [vmem:[#allocation26_spill] sm:$0xff]  ;;  %5001 = vmatprep.mubr.msk.f32.mxu1 %vm10881_vm1, %v10719_v55 }
  0xdf   : > { %vm10894_vm14 = vnez %v10893_v37  ;;  %v1614_v4 = vmax.f32 %v1550_v16, %v1551_v40  ;;  %vm10896_vm0 = vnez %v10895_v52  ;;  %vm10898_vm10 = vnez %v10897_v49  ;;  %4970 = vmatmul.mubr.msk.f32.gmra.mrb[30].mxu0 %vm10876_vm13, %v10719_v55 }
  0xe0   : > { %v1553_v2 = vsel %vm10894_vm14, %v7068_v53, -1e+30  ;;  %v1562_v56 = vsel %vm10896_vm0, %v7008_v6, -1e+30  ;;  %v1563_v24 = vsel %vm10898_vm10, %v7026_v8, -1e+30  ;;  %vm10900_vm9 = vnez %v10899_v60  ;;  %1520 = vmax.xlane.f32.xlu0 %v1519_v19 }
  0xe1   : > { %v1564_v44 = vsel %vm10900_vm9, %v7047_v28, -1e+30  ;;  %v1621_v38 = vmax.f32 %v1620_v62, %v1557_v0  ;;  %v1615_v17 = vmax.f32 %v1614_v4, %v1552_v9  ;;  %vm10901_vm14 = vnez %v10644_v3  ;;  %5002 = vmatmul.mubr.msk.f32.gmra.mrb[30].mxu1 %vm10879_vm5, %v10719_v55 }
  0xe2   : > { %v1565_v42 = vsel %vm10901_vm14, %v7068_v53, -1e+30  ;;  %v1629_v16 = vmax.f32 %v1562_v56, %v1563_v24  ;;  %vm10902_vm10 = vnez %v10611_v25  ;;  %vm10903_vm9 = vnez %v10614_v26 }
  0xe3   : > { %v1558_v40 = vsel %vm10902_vm10, %v7008_v6, -1e+30  ;;  %v1559_v60 = vsel %vm10903_vm9, %v7026_v8, -1e+30  ;;  %vm10904_vm0 = vnez %v10617_v27  ;;  %v1616_v9 = vmax.f32 %v1615_v17, %v1553_v2  ;;  %1622 = vmax.xlane.f32.xlu1 %v1621_v38  ;;  %v10908_v2 = vld [vmem:[#allocation34_spill] sm:$0xff] }
  0xe4   : > { %v1560_v0 = vsel %vm10904_vm0, %v7047_v28, -1e+30  ;;  %v1630_v62 = vmax.f32 %v1629_v16, %v1564_v44  ;;  %vm10905_vm14 = vnez %v10620_v30  ;;  %v1624_v56 = vmax.f32 %v1558_v40, %v1559_v60 }
  0xe5   : > { %v1561_v4 = vsel %vm10905_vm14, %v7068_v53, -1e+30  ;;  %vm10906_vm0 = vnez %v10659_v57  ;;  %vm10907_vm9 = vnez %v10662_v58  ;;  %vm10909_vm10 = vnez %v10908_v2  ;;  %1617 = vmax.xlane.f32.xlu0 %v1616_v9 }
  0xe6   : > { %v1570_v24 = vsel %vm10906_vm0, %v7008_v6, -1e+30  ;;  %v1571_v19 = vsel %vm10907_vm9, %v7026_v8, -1e+30  ;;  %v1572_v44 = vsel %vm10909_vm10, %v7047_v28, -1e+30  ;;  %v1631_v17 = vmax.f32 %v1630_v62, %v1565_v42 }
  0xe7   : > { %v1625_v16 = vmax.f32 %v1624_v56, %v1560_v0  ;;  %vm10910_vm14 = vnez %v10668_v63  ;;  %v1639_v40 = vmax.f32 %v1570_v24, %v1571_v19  ;;  %vm10911_vm0 = vnez %v10671_v10 }
  0xe8   : > { %v1573_v60 = vsel %vm10910_vm14, %v7068_v53, -1e+30  ;;  %v1566_v38 = vsel %vm10911_vm0, %v7008_v6, -1e+30  ;;  %v1567_v2 = vsel %vm10835_vm4, %v7026_v8, -1e+30  ;;  %vm10912_vm14 = vnez %v10680_v43  ;;  %1632 = vmax.xlane.f32.xlu1 %v1631_v17 }
  0xe9   : > { %v1568_v42 = vsel %vm10836_vm3, %v7047_v28, -1e+30  ;;  %v1626_v0 = vmax.f32 %v1625_v16, %v1561_v4  ;;  %v1640_v62 = vmax.f32 %v1639_v40, %v1572_v44  ;;  %v1569_v56 = vsel %vm10912_vm14, %v7068_v53, -1e+30 }
  0xea   : > { %v1634_v55 = vmax.f32 %v1566_v38, %v1567_v2  ;;  %vm10913_vm0 = vnez %v10828_v46  ;;  %vm10914_vm4 = vnez %v10820_v59  ;;  %vm10915_vm3 = vnez %v10832_v22 }
  0xeb   : > { %v1578_v24 = vsel %vm10913_vm0, %v7008_v6, -1e+30  ;;  %v1579_v19 = vsel %vm10914_vm4, %v7026_v8, -1e+30  ;;  %v1580_v9 = vsel %vm10915_vm3, %v7047_v28, -1e+30  ;;  %v1641_v4 = vmax.f32 %v1640_v62, %v1573_v60  ;;  %1627 = vmax.xlane.f32.xlu0 %v1626_v0 }
  0xec   : > { %v1635_v44 = vmax.f32 %v1634_v55, %v1568_v42  ;;  %vm10916_vm10 = vnez %v10825_v47  ;;  %v1649_v2 = vmax.f32 %v1578_v24, %v1579_v19  ;;  %vm10917_vm14 = vnez %v10695_v39  ;;  %v10921_v24 = vld [vmem:[#allocation48_spill] sm:$0xff] }
  0xed   : > { %v1581_v16 = vsel %vm10916_vm10, %v7068_v53, -1e+30  ;;  %v1574_v17 = vsel %vm10917_vm14, %v7008_v6, -1e+30  ;;  %vm10918_vm0 = vnez %v10698_v48  ;;  %vm10919_vm4 = vnez %v10822_v61  ;;  %1642 = vmax.xlane.f32.xlu1 %v1641_v4  ;;  %v10923_v48 = vld [vmem:[#allocation49_spill] sm:$0xff]  ;;  %v10925_v61 = vld [vmem:[#allocation50_spill] sm:$0xff] }
  0xee   : > { %v1575_v40 = vsel %vm10918_vm0, %v7026_v8, -1e+30  ;;  %v1576_v38 = vsel %vm10919_vm4, %v7047_v28, -1e+30  ;;  %v1636_v60 = vmax.f32 %v1635_v44, %v1569_v56  ;;  %v1650_v42 = vmax.f32 %v1649_v2, %v1580_v9  ;;  %v10927_v44 = vld [vmem:[#allocation51_spill] sm:$0xff]  ;;  %v10950_v47 = vld [vmem:[#allocation12_spill] sm:$0xff] }
  0xef   : > { %vm10920_vm3 = vnez %v10704_v51  ;;  %v1644_v55 = vmax.f32 %v1574_v17, %v1575_v40  ;;  %vm10922_vm14 = vnez %v10921_v24  ;;  %vm10924_vm0 = vnez %v10923_v48  ;;  %v10929_v17 = vld [vmem:[#allocation52_spill] sm:$0xff]  ;;  %v10931_v24 = vld [vmem:[#allocation53_spill] sm:$0xff]  ;;  %v10933_v51 = vld [vmem:[#allocation54_spill] sm:$0xff] }
  0xf0   : > { %v1577_v62 = vsel %vm10920_vm3, %v7068_v53, -1e+30  ;;  %v1586_v19 = vsel %vm10922_vm14, %v7008_v6, -1e+30  ;;  %v1587_v39 = vsel %vm10924_vm0, %v7026_v8, -1e+30  ;;  %vm10926_vm4 = vnez %v10925_v61  ;;  %1637 = vmax.xlane.f32.xlu0 %v1636_v60 }
  0xf1   : > { %v1588_v0 = vsel %vm10926_vm4, %v7047_v28, -1e+30  ;;  %v1651_v56 = vmax.f32 %v1650_v42, %v1581_v16  ;;  %v1645_v9 = vmax.f32 %v1644_v55, %v1576_v38  ;;  %vm10928_vm3 = vnez %v10927_v44  ;;  %v10935_v42 = vld [vmem:[#allocation55_spill] sm:$0xff] }
  0xf2   : > { %v1589_v2 = vsel %vm10928_vm3, %v7068_v53, -1e+30  ;;  %v1659_v4 = vmax.f32 %v1586_v19, %v1587_v39  ;;  %vm10930_vm10 = vnez %v10929_v17  ;;  %vm10932_vm14 = vnez %v10931_v24  ;;  %v5004_v19 = vld [vmem:[%s5989_s28 + $0x2] ss:$8 sm:$0xf] }
  0xf3   : > { %v1582_v40 = vsel %vm10930_vm10, %v7008_v6, -1e+30  ;;  %v1583_v48 = vsel %vm10932_vm14, %v7026_v8, -1e+30  ;;  %vm10934_vm0 = vnez %v10933_v51  ;;  %v1646_v16 = vmax.f32 %v1645_v9, %v1577_v62  ;;  %1652 = vmax.xlane.f32.xlu1 %v1651_v56  ;;  %v10938_v24 = vld [vmem:[#allocation57_spill] sm:$0xff]  ;;  %v10940_v51 = vld [vmem:[#allocation58_spill] sm:$0xff] }
  0xf4   : > { %v1584_v61 = vsel %vm10934_vm0, %v7047_v28, -1e+30  ;;  %v1660_v38 = vmax.f32 %v1659_v4, %v1588_v0  ;;  %vm10936_vm4 = vnez %v10935_v42  ;;  %v1654_v39 = vmax.f32 %v1582_v40, %v1583_v48  ;;  %v10942_v9 = vld [vmem:[#allocation59_spill] sm:$0xff]  ;;  %v10944_v56 = vld [vmem:[#allocation60_spill] sm:$0xff]  ;;  %v10948_v42 = vld [vmem:[#allocation62_spill] sm:$0xff] }
  0xf5   : > { %v1585_v55 = vsel %vm10936_vm4, %v7068_v53, -1e+30  ;;  %vm10937_vm10 = vnez %v10851_v12  ;;  %vm10939_vm14 = vnez %v10938_v24  ;;  %vm10941_vm0 = vnez %v10940_v51  ;;  %v10946_v12 = vld [vmem:[#allocation61_spill] sm:$0xff]  ;;  %1647 = vmax.xlane.f32.xlu0 %v1646_v16 }
  0xf6   : > { %v1594_v17 = vsel %vm10937_vm10, %v7008_v6, -1e+30  ;;  %v1595_v44 = vsel %vm10939_vm14, %v7026_v8, -1e+30  ;;  %v1596_v60 = vsel %vm10941_vm0, %v7047_v28, -1e+30  ;;  %v1661_v62 = vmax.f32 %v1660_v38, %v1589_v2 }
  0xf7   : > { %v1655_v0 = vmax.f32 %v1654_v39, %v1584_v61  ;;  %vm10943_vm4 = vnez %v10942_v9  ;;  %v1669_v4 = vmax.f32 %v1594_v17, %v1595_v44  ;;  %vm10945_vm3 = vnez %v10944_v56  ;;  %v10951_v44 = vld [vmem:[#allocation63_spill] sm:$0xff] }
  0xf8   : > { %v1597_v48 = vsel %vm10943_vm4, %v7068_v53, -1e+30  ;;  %v1590_v40 = vsel %vm10945_vm3, %v7008_v6, -1e+30  ;;  %vm10947_vm10 = vnez %v10946_v12  ;;  %vm10949_vm14 = vnez %v10948_v42  ;;  %1662 = vmax.xlane.f32.xlu1 %v1661_v62 }
  0xf9   : > { %v1591_v24 = vsel %vm10947_vm10, %v7026_v8, -1e+30  ;;  %v1592_v51 = vsel %vm10949_vm14, %v7047_v28, -1e+30  ;;  %v7267_v2 = vrot.slane %v5004_v19, %v10950_v47  ;;  %v1656_v61 = vmax.f32 %v1655_v0, %v1585_v55  ;;  %v10955_v55 = vld [vmem:[#allocation13_spill] sm:$0xff] }
  0xfa   : > { %v1670_v38 = vmax.f32 %v1669_v4, %v1596_v60  ;;  %vm10952_vm4 = vnez %v10951_v44  ;;  %v1664_v39 = vmax.f32 %v1590_v40, %v1591_v24  ;;  %vm10953_vm3 = vnez %v10861_v31 }
  0xfb   : > { %v1593_v17 = vsel %vm10952_vm4, %v7068_v53, -1e+30  ;;  %v1602_v12 = vsel %vm10953_vm3, %v7008_v6, -1e+30  ;;  %vm10954_vm10 = vnez %v10863_v35  ;;  %v1604_v16 = vsel %vm10865_vm8, %v7047_v28, -1e+30  ;;  %1657 = vmax.xlane.f32.xlu0 %v1656_v61 }
  0xfc   : > { %v1603_v42 = vsel %vm10954_vm10, %v7026_v8, -1e+30  ;;  %v7282_v60 = vrot.slane %v5004_v19, %v10955_v55  ;;  %v1671_v0 = vmax.f32 %v1670_v38, %v1597_v48  ;;  %v1665_v4 = vmax.f32 %v1664_v39, %v1592_v51  ;;  %v10958_v35 = vld [vmem:[#allocation69_spill] sm:$0xff] }
  0xfd   : > { %vm10956_vm4 = vnez %v10867_v29  ;;  %v1679_v62 = vmax.f32 %v1602_v12, %v1603_v42  ;;  %vm10957_vm3 = vnez %v10869_v1  ;;  %vm10959_vm10 = vnez %v10958_v35  ;;  %v10962_v12 = vld [vmem:[#allocation71_spill] sm:$0xff] }
  0xfe   : > { %v1605_v24 = vsel %vm10956_vm4, %v7068_v53, -1e+30  ;;  %v1598_v40 = vsel %vm10957_vm3, %v7008_v6, -1e+30  ;;  %v1599_v31 = vsel %vm10959_vm10, %v7026_v8, -1e+30  ;;  %vm10960_vm8 = vnez %v10871_v20  ;;  %1672 = vmax.xlane.f32.xlu1 %v1671_v0 }
  0xff   : > { %v1600_v55 = vsel %vm10960_vm8, %v7047_v28, -1e+30  ;;  %v7297_v48 = vrot.slane %v5004_v19, %v10961_v54  ;;  %v1666_v51 = vmax.f32 %v1665_v4, %v1593_v17  ;;  %v1680_v38 = vmax.f32 %v1679_v62, %v1604_v16  ;;  %v10964_v17 = vld [vmem:[#allocation15_spill] sm:$0xff] }
 0x100   : > { %vm10963_vm4 = vnez %v10962_v12  ;;  %v1674_v39 = vmax.f32 %v1598_v40, %v1599_v31  ;;  %v1610_v35 = vsel %vm10876_vm13, %v7008_v6, -1e+30  ;;  %v1611_v20 = vsel %vm10877_vm12, %v7026_v8, -1e+30 }
 0x101   : > { %v1601_v42 = vsel %vm10963_vm4, %v7068_v53, -1e+30  ;;  %v1612_v61 = vsel %vm10879_vm5, %v7047_v28, -1e+30  ;;  %v7312_v16 = vrot.slane %v5004_v19, %v10964_v17  ;;  %v1681_v4 = vmax.f32 %v1680_v38, %v1605_v24  ;;  %1667 = vmax.xlane.f32.xlu0 %v1666_v51 }
 0x102   : > { %v1675_v62 = vmax.f32 %v1674_v39, %v1600_v55  ;;  %v1613_v31 = vsel %vm10881_vm1, %v7068_v53, -1e+30  ;;  %v1689_v0 = vmax.f32 %v1610_v35, %v1611_v20  ;;  %v1606_v40 = vsel %vm6768_vm7, %v7008_v6, -1e+30 }
 0x103   : > { %v1607_v23 = vsel %vm10882_vm11, %v7026_v8, -1e+30  ;;  %v1608_v19 = vsel %vm10883_vm15, %v7047_v28, -1e+30  ;;  %v1609_v38 = vsel %vm10884_vm2, %v7068_v53, -1e+30  ;;  %1682 = vmax.xlane.f32.xlu1 %v1681_v4  ;;  %vm10965_vm11 = vnez %v10650_v33 }
 0x104   : > { %v1676_v24 = vmax.f32 %v1675_v62, %v1601_v42  ;;  %v1690_v55 = vmax.f32 %v1689_v0, %v1612_v61  ;;  %v1684_v35 = vmax.f32 %v1606_v40, %v1607_v23  ;;  %v1721_v6 = vsel %vm10885_vm6, %v7267_v2, -1e+30  ;;  %v10970_v61 = vld [vmem:[#allocation22_spill] sm:$0xff] }
 0x105   : > { %v1722_v8 = vsel %vm10965_vm11, %v7282_v60, -1e+30  ;;  %vm10966_vm15 = vnez %v10653_v34  ;;  %vm10967_vm7 = vnez %v10888_v14  ;;  %vm10968_vm2 = vnez %v10890_v50 }
 0x106   : > { %v1723_v20 = vsel %vm10966_vm15, %v7297_v48, -1e+30  ;;  %v1691_v28 = vmax.f32 %v1690_v55, %v1613_v31  ;;  %v1685_v51 = vmax.f32 %v1684_v35, %v1608_v19  ;;  %v1724_v53 = vsel %vm10967_vm7, %v7312_v16, -1e+30  ;;  %1677 = vmax.xlane.f32.xlu0 %v1676_v24  ;;  %v10975_v35 = vld [vmem:[#allocation26_spill] sm:$0xff] }
 0x107   : > { %v1786_v23 = vmax.f32 %v1721_v6, %v1722_v8  ;;  %v1717_v42 = vsel %vm10968_vm2, %v7267_v2, -1e+30  ;;  %vm10969_vm6 = vnez %v10626_v45  ;;  %vm10971_vm11 = vnez %v10970_v61 }
 0x108   : > { %v1718_v39 = vsel %vm10969_vm6, %v7282_v60, -1e+30  ;;  %v1719_v4 = vsel %vm10971_vm11, %v7297_v48, -1e+30  ;;  %v1686_v62 = vmax.f32 %v1685_v51, %v1609_v38  ;;  %vm10972_vm15 = vnez %v10893_v37  ;;  %1692 = vmax.xlane.f32.xlu1 %v1691_v28 }
 0x109   : > { %v1787_v31 = vmax.f32 %v1786_v23, %v1723_v20  ;;  %v1720_v0 = vsel %vm10972_vm15, %v7312_v16, -1e+30  ;;  %v1781_v40 = vmax.f32 %v1717_v42, %v1718_v39  ;;  %vm10973_vm2 = vnez %v10895_v52 }
 0x10a   : > { %v1729_v19 = vsel %vm10973_vm2, %v7267_v2, -1e+30  ;;  %vm10974_vm6 = vnez %v10897_v49  ;;  %vm10976_vm11 = vnez %v10975_v35  ;;  %vm10977_vm7 = vnez %v10644_v3  ;;  %1687 = vmax.xlane.f32.xlu0 %v1686_v62 }
 0x10b   : > { %v1730_v55 = vsel %vm10974_vm6, %v7282_v60, -1e+30  ;;  %v1731_v24 = vsel %vm10976_vm11, %v7297_v48, -1e+30  ;;  %v1788_v38 = vmax.f32 %v1787_v31, %v1724_v53  ;;  %v1782_v6 = vmax.f32 %v1781_v40, %v1719_v4 }
 0x10c   : > { %v1732_v8 = vsel %vm10977_vm7, %v7312_v16, -1e+30  ;;  %v1796_v20 = vmax.f32 %v1729_v19, %v1730_v55  ;;  %vm10978_vm15 = vnez %v10611_v25  ;;  %vm10979_vm2 = vnez %v10614_v26  ;;  %v10983_v19 = vld [vmem:[#allocation34_spill] sm:$0xff] }
 0x10d   : > { %v1725_v28 = vsel %vm10978_vm15, %v7267_v2, -1e+30  ;;  %v1726_v51 = vsel %vm10979_vm2, %v7282_v60, -1e+30  ;;  %vm10980_vm6 = vnez %v10617_v27  ;;  %v1783_v53 = vmax.f32 %v1782_v6, %v1720_v0  ;;  %1789 = vmax.xlane.f32.xlu1 %v1788_v38 }
 0x10e   : > { %v1727_v23 = vsel %vm10980_vm6, %v7297_v48, -1e+30  ;;  %v1797_v42 = vmax.f32 %v1796_v20, %v1731_v24  ;;  %vm10981_vm11 = vnez %v10620_v30  ;;  %v1791_v4 = vmax.f32 %v1725_v28, %v1726_v51 }
 0x10f   : > { %v1728_v39 = vsel %vm10981_vm11, %v7312_v16, -1e+30  ;;  %vm10982_vm15 = vnez %v10659_v57  ;;  %v1738_v40 = vsel %vm10907_vm9, %v7282_v60, -1e+30  ;;  %vm10984_vm6 = vnez %v10983_v19  ;;  %1784 = vmax.xlane.f32.xlu0 %v1783_v53 }
 0x110   : > { %v1737_v31 = vsel %vm10982_vm15, %v7267_v2, -1e+30  ;;  %v1739_v62 = vsel %vm10984_vm6, %v7297_v48, -1e+30  ;;  %v1798_v0 = vmax.f32 %v1797_v42, %v1732_v8  ;;  %v1792_v55 = vmax.f32 %v1791_v4, %v1727_v23 }
 0x111   : > { %vm10985_vm2 = vnez %v10668_v63  ;;  %v1806_v6 = vmax.f32 %v1737_v31, %v1738_v40  ;;  %vm10986_vm11 = vnez %v10671_v10  ;;  %vm10987_vm15 = vnez %v10674_v21 }
 0x112   : > { %v1740_v24 = vsel %vm10985_vm2, %v7312_v16, -1e+30  ;;  %v1733_v38 = vsel %vm10986_vm11, %v7267_v2, -1e+30  ;;  %v1734_v20 = vsel %vm10987_vm15, %v7282_v60, -1e+30  ;;  %vm10988_vm9 = vnez %v10677_v32  ;;  %1799 = vmax.xlane.f32.xlu1 %v1798_v0 }
 0x113   : > { %v1735_v28 = vsel %vm10988_vm9, %v7297_v48, -1e+30  ;;  %v1793_v8 = vmax.f32 %v1792_v55, %v1728_v39  ;;  %v1807_v51 = vmax.f32 %v1806_v6, %v1739_v62  ;;  %vm10989_vm6 = vnez %v10680_v43  ;;  %v10993_v62 = vld [vmem:[#allocation43_spill] sm:$0xff]  ;;  %v10995_v0 = vld [vmem:[#allocation44_spill] sm:$0xff] }
 0x114   : > { %v1736_v23 = vsel %vm10989_vm6, %v7312_v16, -1e+30  ;;  %v1801_v42 = vmax.f32 %v1733_v38, %v1734_v20  ;;  %vm10990_vm11 = vnez %v10828_v46  ;;  %vm10991_vm15 = vnez %v10820_v59  ;;  %v10997_v20 = vld [vmem:[#allocation45_spill] sm:$0xff]  ;;  %v10999_v46 = vld [vmem:[#allocation46_spill] sm:$0xff] }
 0x115   : > { %v1745_v4 = vsel %vm10990_vm11, %v7267_v2, -1e+30  ;;  %v1746_v31 = vsel %vm10991_vm15, %v7282_v60, -1e+30  ;;  %vm10992_vm9 = vnez %v10832_v22  ;;  %v1808_v39 = vmax.f32 %v1807_v51, %v1740_v24  ;;  %1794 = vmax.xlane.f32.xlu0 %v1793_v8  ;;  %v11001_v51 = vld [vmem:[#allocation47_spill] sm:$0xff] }
 0x116   : > { %v1747_v53 = vsel %vm10992_vm9, %v7297_v48, -1e+30  ;;  %v1802_v40 = vmax.f32 %v1801_v42, %v1735_v28  ;;  %vm10994_vm2 = vnez %v10993_v62  ;;  %v1816_v6 = vmax.f32 %v1745_v4, %v1746_v31  ;;  %v11003_v31 = vld [vmem:[#allocation48_spill] sm:$0xff] }
 0x117   : > { %v1748_v55 = vsel %vm10994_vm2, %v7312_v16, -1e+30  ;;  %vm10996_vm6 = vnez %v10995_v0  ;;  %vm10998_vm11 = vnez %v10997_v20  ;;  %vm11000_vm15 = vnez %v10999_v46  ;;  %1809 = vmax.xlane.f32.xlu1 %v1808_v39  ;;  %v11005_v20 = vld [vmem:[#allocation49_spill] sm:$0xff]  ;;  %v11007_v46 = vld [vmem:[#allocation50_spill] sm:$0xff] }
 0x118   : > { %v1741_v38 = vsel %vm10996_vm6, %v7267_v2, -1e+30  ;;  %v1742_v59 = vsel %vm10998_vm11, %v7282_v60, -1e+30  ;;  %v1743_v22 = vsel %vm11000_vm15, %v7297_v48, -1e+30  ;;  %v1803_v24 = vmax.f32 %v1802_v40, %v1736_v23 }
 0x119   : > { %v1817_v28 = vmax.f32 %v1816_v6, %v1747_v53  ;;  %vm11002_vm9 = vnez %v11001_v51  ;;  %v1811_v4 = vmax.f32 %v1741_v38, %v1742_v59  ;;  %vm11004_vm6 = vnez %v11003_v31  ;;  %v11009_v40 = vld [vmem:[#allocation51_spill] sm:$0xff]  ;;  %v11011_v6 = vld [vmem:[#allocation52_spill] sm:$0xff]  ;;  %v11013_v31 = vld [vmem:[#allocation53_spill] sm:$0xff] }
 0x11a   : > { %v1744_v42 = vsel %vm11002_vm9, %v7312_v16, -1e+30  ;;  %v1753_v0 = vsel %vm11004_vm6, %v7267_v2, -1e+30  ;;  %vm11006_vm11 = vnez %v11005_v20  ;;  %vm11008_vm15 = vnez %v11007_v46  ;;  %v11015_v51 = vld [vmem:[#allocation54_spill] sm:$0xff]  ;;  %1804 = vmax.xlane.f32.xlu0 %v1803_v24 }
 0x11b   : > { %v1754_v62 = vsel %vm11006_vm11, %v7282_v60, -1e+30  ;;  %v1755_v8 = vsel %vm11008_vm15, %v7297_v48, -1e+30  ;;  %v1818_v23 = vmax.f32 %v1817_v28, %v1748_v55  ;;  %v1812_v53 = vmax.f32 %v1811_v4, %v1743_v22  ;;  %v11017_v28 = vld [vmem:[#allocation55_spill] sm:$0xff] }
 0x11c   : > { %vm11010_vm9 = vnez %v11009_v40  ;;  %v1826_v39 = vmax.f32 %v1753_v0, %v1754_v62  ;;  %vm11012_vm2 = vnez %v11011_v6  ;;  %vm11014_vm6 = vnez %v11013_v31  ;;  %v5005_v0 = vld [vmem:[%s5989_s28 + $0x3] ss:$8 sm:$0xf] }
 0x11d   : > { %v1756_v59 = vsel %vm11010_vm9, %v7312_v16, -1e+30  ;;  %v1749_v38 = vsel %vm11012_vm2, %v7267_v2, -1e+30  ;;  %v1750_v20 = vsel %vm11014_vm6, %v7282_v60, -1e+30  ;;  %vm11016_vm11 = vnez %v11015_v51  ;;  %1819 = vmax.xlane.f32.xlu1 %v1818_v23 }
 0x11e   : > { %v1751_v46 = vsel %vm11016_vm11, %v7297_v48, -1e+30  ;;  %v1813_v55 = vmax.f32 %v1812_v53, %v1744_v42  ;;  %v1827_v22 = vmax.f32 %v1826_v39, %v1755_v8  ;;  %vm11018_vm15 = vnez %v11017_v28  ;;  %v11019_v6 = vld [vmem:[#allocation56_spill] sm:$0xff]  ;;  %v11021_v31 = vld [vmem:[#allocation57_spill] sm:$0xff] }
 0x11f   : > { %v1752_v4 = vsel %vm11018_vm15, %v7312_v16, -1e+30  ;;  %v1821_v62 = vmax.f32 %v1749_v38, %v1750_v20  ;;  %vm11020_vm2 = vnez %v11019_v6  ;;  %vm11022_vm6 = vnez %v11021_v31  ;;  %v11026_v39 = vld [vmem:[#allocation61_spill] sm:$0xff] }
 0x120   : > { %v1761_v40 = vsel %vm11020_vm2, %v7267_v2, -1e+30  ;;  %v1762_v43 = vsel %vm11022_vm6, %v7282_v60, -1e+30  ;;  %v1763_v24 = vsel %vm10941_vm0, %v7297_v48, -1e+30  ;;  %v1828_v42 = vmax.f32 %v1827_v22, %v1756_v59  ;;  %1814 = vmax.xlane.f32.xlu0 %v1813_v55 }
 0x121   : > { %v1822_v8 = vmax.f32 %v1821_v62, %v1751_v46  ;;  %vm11024_vm15 = vnez %v10942_v9  ;;  %v1836_v53 = vmax.f32 %v1761_v40, %v1762_v43  ;;  %vm11025_vm11 = vnez %v10944_v56  ;;  %v11030_v62 = vld [vmem:[#allocation64_spill] sm:$0xff]  ;;  %v11032_v56 = vld [vmem:[#allocation65_spill] sm:$0xff] }
 0x122   : > { %v1764_v20 = vsel %vm11024_vm15, %v7312_v16, -1e+30  ;;  %v1757_v23 = vsel %vm11025_vm11, %v7267_v2, -1e+30  ;;  %vm11027_vm2 = vnez %v11026_v39  ;;  %v1759_v51 = vsel %vm10949_vm14, %v7297_v48, -1e+30  ;;  %1829 = vmax.xlane.f32.xlu1 %v1828_v42 }
 0x123   : > { %v1758_v38 = vsel %vm11027_vm2, %v7282_v60, -1e+30  ;;  %v7472_v59 = vrot.slane %v5005_v0, %v10950_v47  ;;  %v1823_v46 = vmax.f32 %v1822_v8, %v1752_v4  ;;  %v1837_v22 = vmax.f32 %v1836_v53, %v1763_v24  ;;  %v11034_v47 = vld [vmem:[#allocation66_spill] sm:$0xff]  ;;  %v11036_v4 = vld [vmem:[#allocation13_spill] sm:$0xff] }
 0x124   : > { %vm11029_vm15 = vnez %v10951_v44  ;;  %v1831_v40 = vmax.f32 %v1757_v23, %v1758_v38  ;;  %vm11031_vm11 = vnez %v11030_v62  ;;  %vm11033_vm2 = vnez %v11032_v56  ;;  %v11040_v56 = vld [vmem:[#allocation73_spill] sm:$0xff] }
 0x125   : > { %v1760_v43 = vsel %vm11029_vm15, %v7312_v16, -1e+30  ;;  %v1769_v39 = vsel %vm11031_vm11, %v7267_v2, -1e+30  ;;  %v1770_v31 = vsel %vm11033_vm2, %v7282_v60, -1e+30  ;;  %vm11035_vm14 = vnez %v11034_v47  ;;  %1824 = vmax.xlane.f32.xlu0 %v1823_v46 }
 0x126   : > { %v1771_v55 = vsel %vm11035_vm14, %v7297_v48, -1e+30  ;;  %v7487_v24 = vrot.slane %v5005_v0, %v11036_v4  ;;  %v1838_v8 = vmax.f32 %v1837_v22, %v1764_v20  ;;  %v1832_v53 = vmax.f32 %v1831_v40, %v1759_v51 }
 0x127   : > { %vm11037_vm15 = vnez %v10867_v29  ;;  %v1846_v23 = vmax.f32 %v1769_v39, %v1770_v31  ;;  %v1765_v38 = vsel %vm10957_vm3, %v7267_v2, -1e+30  ;;  %v1766_v62 = vsel %vm10959_vm10, %v7282_v60, -1e+30 }
 0x128   : > { %v1772_v42 = vsel %vm11037_vm15, %v7312_v16, -1e+30  ;;  %v1767_v4 = vsel %vm10960_vm8, %v7297_v48, -1e+30  ;;  %v7502_v20 = vrot.slane %v5005_v0, %v10961_v54  ;;  %v1833_v51 = vmax.f32 %v1832_v53, %v1760_v43  ;;  %1839 = vmax.xlane.f32.xlu1 %v1838_v8 }
 0x129   : > { %v1847_v22 = vmax.f32 %v1846_v23, %v1771_v55  ;;  %v1768_v31 = vsel %vm10963_vm4, %v7312_v16, -1e+30  ;;  %v1841_v39 = vmax.f32 %v1765_v38, %v1766_v62  ;;  %v1777_v40 = vsel %vm10876_vm13, %v7267_v2, -1e+30 }
 0x12a   : > { %v1778_v47 = vsel %vm10877_vm12, %v7282_v60, -1e+30  ;;  %v1779_v46 = vsel %vm10879_vm5, %v7297_v48, -1e+30  ;;  %v7517_v43 = vrot.slane %v5005_v0, %v10964_v17  ;;  %v1780_v62 = vsel %vm10881_vm1, %v7312_v16, -1e+30  ;;  %1834 = vmax.xlane.f32.xlu0 %v1833_v51 }
 0x12b   : > { %v1848_v55 = vmax.f32 %v1847_v22, %v1772_v42  ;;  %v1842_v53 = vmax.f32 %v1841_v39, %v1767_v4  ;;  %v1856_v8 = vmax.f32 %v1777_v40, %v1778_v47  ;;  %vm11041_vm13 = vnez %v10801_v5 }
 0x12c   : > { %v1773_v23 = vsel %vm11041_vm13, %v7267_v2, -1e+30  ;;  %vm11042_vm12 = vnez %v10804_v7  ;;  %vm11043_vm5 = vnez %v10807_v11  ;;  %vm11044_vm4 = vnez %v10811_v15 }
 0x12d   : > { %v1774_v38 = vsel %vm11042_vm12, %v7282_v60, -1e+30  ;;  %v1775_v0 = vsel %vm11043_vm5, %v7297_v48, -1e+30  ;;  %v1843_v42 = vmax.f32 %v1842_v53, %v1768_v31  ;;  %v1857_v4 = vmax.f32 %v1856_v8, %v1779_v46  ;;  %1849 = vmax.xlane.f32.xlu1 %v1848_v55 }
 0x12e   : > { %v1776_v22 = vsel %vm11044_vm4, %v7312_v16, -1e+30  ;;  %v1851_v47 = vmax.f32 %v1773_v23, %v1774_v38  ;;  %vm11045_vm13 = vnez %v10647_v18  ;;  %vm11046_vm12 = vnez %v10650_v33 }
 0x12f   : > { %v1888_v2 = vsel %vm11045_vm13, %v7472_v59, -1e+30  ;;  %v1889_v60 = vsel %vm11046_vm12, %v7487_v24, -1e+30  ;;  %vm11047_vm5 = vnez %v10653_v34  ;;  %v1858_v51 = vmax.f32 %v1857_v4, %v1780_v62  ;;  %1844 = vmax.xlane.f32.xlu0 %v1843_v42 }
 0x130   : > { %v1890_v48 = vsel %vm11047_vm5, %v7502_v20, -1e+30  ;;  %v1852_v31 = vmax.f32 %v1851_v47, %v1775_v0  ;;  %vm11048_vm1 = vnez %v10888_v14  ;;  %v1953_v39 = vmax.f32 %v1888_v2, %v1889_v60 }
 0x131   : > { %v1891_v16 = vsel %vm11048_vm1, %v7517_v43, -1e+30  ;;  %vm11049_vm4 = vnez %v10890_v50  ;;  %vm11050_vm13 = vnez %v10626_v45  ;;  %vm11051_vm12 = vnez %v10970_v61  ;;  %1859 = vmax.xlane.f32.xlu1 %v1858_v51 }
 0x132   : > { %v1884_v40 = vsel %vm11049_vm4, %v7472_v59, -1e+30  ;;  %v1885_v46 = vsel %vm11050_vm13, %v7487_v24, -1e+30  ;;  %v1886_v55 = vsel %vm11051_vm12, %v7502_v20, -1e+30  ;;  %v1853_v53 = vmax.f32 %v1852_v31, %v1776_v22  ;;  %v7579_v31 = vpop.xlane.xlu1 %1228 }
 0x133   : > { %v1954_v62 = vmax.f32 %v1953_v39, %v1890_v48  ;;  %vm11052_vm5 = vnez %v10893_v37  ;;  %v1948_v23 = vmax.f32 %v1884_v40, %v1885_v46  ;;  %vm11053_vm4 = vnez %v10895_v52  ;;  %11059 = vst [vmem:[#allocation72_spill] sm:$0xff] %v7579_v31 }
 0x134   : > { %v1887_v8 = vsel %vm11052_vm5, %v7517_v43, -1e+30  ;;  %v1896_v38 = vsel %vm11053_vm4, %v7472_v59, -1e+30  ;;  %vm11054_vm13 = vnez %v10897_v49  ;;  %vm11055_vm12 = vnez %v10975_v35  ;;  %1854 = vmax.xlane.f32.xlu0 %v1853_v53 }
 0x135   : > { %v1897_v0 = vsel %vm11054_vm13, %v7487_v24, -1e+30  ;;  %v1898_v42 = vsel %vm11055_vm12, %v7502_v20, -1e+30  ;;  %v1955_v4 = vmax.f32 %v1954_v62, %v1891_v16  ;;  %v1949_v22 = vmax.f32 %v1948_v23, %v1886_v55 }
 0x136   : > { %v1899_v47 = vsel %vm10977_vm7, %v7517_v43, -1e+30  ;;  %v1963_v2 = vmax.f32 %v1896_v38, %v1897_v0  ;;  %vm11056_vm5 = vnez %v10611_v25  ;;  %vm11057_vm4 = vnez %v10614_v26 }
 0x137   : > { %v1892_v60 = vsel %vm11056_vm5, %v7472_v59, -1e+30  ;;  %v1893_v48 = vsel %vm11057_vm4, %v7487_v24, -1e+30  ;;  %vm11058_vm13 = vnez %v10617_v27  ;;  %v1950_v16 = vmax.f32 %v1949_v22, %v1887_v8  ;;  %1956 = vmax.xlane.f32.xlu1 %v1955_v4 }
 0x138   : > { %v1894_v51 = vsel %vm11058_vm13, %v7502_v20, -1e+30  ;;  %v1964_v39 = vmax.f32 %v1963_v2, %v1898_v42  ;;  %vm11060_vm7 = vnez %v10620_v30  ;;  %v1958_v46 = vmax.f32 %v1892_v60, %v1893_v48  ;;  %v7605_v2 = vpop.xlane.xlu0 %1218  ;;  %v11069_v48 = vld [vmem:[#allocation39_spill] sm:$0xff] }
 0x139   : > { %v1895_v40 = vsel %vm11060_vm7, %v7517_v43, -1e+30  ;;  %vm11061_vm5 = vnez %v10659_v57  ;;  %vm11062_vm4 = vnez %v10662_v58  ;;  %vm11063_vm13 = vnez %v10983_v19  ;;  %11068 = vst [vmem:[#allocation74_spill] sm:$0xff] %v7605_v2  ;;  %1951 = vmax.xlane.f32.xlu0 %v1950_v16 }
 0x13a   : > { %v1904_v55 = vsel %vm11061_vm5, %v7472_v59, -1e+30  ;;  %v1905_v62 = vsel %vm11062_vm4, %v7487_v24, -1e+30  ;;  %v1906_v53 = vsel %vm11063_vm13, %v7502_v20, -1e+30  ;;  %v1965_v8 = vmax.f32 %v1964_v39, %v1899_v47 }
 0x13b   : > { %v1959_v23 = vmax.f32 %v1958_v46, %v1894_v51  ;;  %vm11064_vm12 = vnez %v10668_v63  ;;  %v1973_v0 = vmax.f32 %v1904_v55, %v1905_v62  ;;  %vm11065_vm7 = vnez %v10671_v10  ;;  %v11071_v46 = vld [vmem:[#allocation40_spill] sm:$0xff]  ;;  %v11073_v62 = vld [vmem:[#allocation41_spill] sm:$0xff] }
 0x13c   : > { %v1907_v38 = vsel %vm11064_vm12, %v7517_v43, -1e+30  ;;  %v1900_v42 = vsel %vm11065_vm7, %v7472_v59, -1e+30  ;;  %vm11066_vm5 = vnez %v10674_v21  ;;  %vm11067_vm4 = vnez %v10677_v32  ;;  %1966 = vmax.xlane.f32.xlu1 %v1965_v8  ;;  %v11075_v32 = vld [vmem:[#allocation42_spill] sm:$0xff] }
 0x13d   : > { %v1901_v4 = vsel %vm11066_vm5, %v7487_v24, -1e+30  ;;  %v1902_v22 = vsel %vm11067_vm4, %v7502_v20, -1e+30  ;;  %v1960_v47 = vmax.f32 %v1959_v23, %v1895_v40  ;;  %v1974_v60 = vmax.f32 %v1973_v0, %v1906_v53  ;;  %v7619_v40 = vpop.xlane.xlu1 %1233  ;;  %v11078_v0 = vld [vmem:[#allocation43_spill] sm:$0xff] }
 0x13e   : > { %vm11070_vm12 = vnez %v11069_v48  ;;  %v1968_v39 = vmax.f32 %v1900_v42, %v1901_v4  ;;  %vm11072_vm7 = vnez %v11071_v46  ;;  %vm11074_vm5 = vnez %v11073_v62  ;;  %11077 = vst [vmem:[#allocation75_spill] sm:$0xff] %v7619_v40  ;;  %v11080_v4 = vld [vmem:[#allocation44_spill] sm:$0xff]  ;;  %v11082_v62 = vld [vmem:[#allocation45_spill] sm:$0xff] }
 0x13f   : > { %v1903_v51 = vsel %vm11070_vm12, %v7517_v43, -1e+30  ;;  %v1912_v55 = vsel %vm11072_vm7, %v7472_v59, -1e+30  ;;  %v1913_v31 = vsel %vm11074_vm5, %v7487_v24, -1e+30  ;;  %vm11076_vm4 = vnez %v11075_v32  ;;  %1961 = vmax.xlane.f32.xlu0 %v1960_v47 }
 0x140   : > { %v1914_v16 = vsel %vm11076_vm4, %v7502_v20, -1e+30  ;;  %v1975_v53 = vmax.f32 %v1974_v60, %v1907_v38  ;;  %v1969_v23 = vmax.f32 %v1968_v39, %v1902_v22  ;;  %vm11079_vm12 = vnez %v11078_v0  ;;  %v11084_v32 = vld [vmem:[#allocation46_spill] sm:$0xff]  ;;  %v11086_v60 = vld [vmem:[#allocation47_spill] sm:$0xff] }
 0x141   : > { %v1915_v8 = vsel %vm11079_vm12, %v7517_v43, -1e+30  ;;  %v1983_v42 = vmax.f32 %v1912_v55, %v1913_v31  ;;  %vm11081_vm7 = vnez %v11080_v4  ;;  %vm11083_vm5 = vnez %v11082_v62  ;;  %v11088_v55 = vld [vmem:[#allocation48_spill] sm:$0xff]  ;;  %v11090_v62 = vld [vmem:[#allocation49_spill] sm:$0xff] }
 0x142   : > { %v1908_v2 = vsel %vm11081_vm7, %v7472_v59, -1e+30  ;;  %v1909_v46 = vsel %vm11083_vm5, %v7487_v24, -1e+30  ;;  %vm11085_vm4 = vnez %v11084_v32  ;;  %v1970_v38 = vmax.f32 %v1969_v23, %v1903_v51  ;;  %1976 = vmax.xlane.f32.xlu1 %v1975_v53  ;;  %v11092_v32 = vld [vmem:[#allocation50_spill] sm:$0xff]  ;;  %v7645_v51 = vpop.xlane.xlu0 %1223 }
 0x143   : > { %v1910_v48 = vsel %vm11085_vm4, %v7502_v20, -1e+30  ;;  %v1984_v22 = vmax.f32 %v1983_v42, %v1914_v16  ;;  %vm11087_vm13 = vnez %v11086_v60  ;;  %v1978_v31 = vmax.f32 %v1908_v2, %v1909_v46  ;;  %11094 = vst [vmem:[#allocation73_spill] sm:$0xff] %v7645_v51  ;;  %v11095_v2 = vld [vmem:[#allocation51_spill] sm:$0xff]  ;;  %v11096_v42 = vld [vmem:[#allocation52_spill] sm:$0xff]  ;;  %v7659_v51 = vpop.xlane.xlu1 %1243 }
 0x144   : > { %v1911_v39 = vsel %vm11087_vm13, %v7517_v43, -1e+30  ;;  %vm11089_vm7 = vnez %v11088_v55  ;;  %vm11091_vm5 = vnez %v11090_v62  ;;  %vm11093_vm4 = vnez %v11092_v32  ;;  %v11098_v62 = vld [vmem:[#allocation53_spill] sm:$0xff]  ;;  %v11100_v32 = vld [vmem:[#allocation54_spill] sm:$0xff]  ;;  %11102 = vst [vmem:[#allocation80_spill] sm:$0xff] %v7659_v51  ;;  %1971 = vmax.xlane.f32.xlu0 %v1970_v38 }
 0x145   : > { %v1920_v40 = vsel %vm11089_vm7, %v7472_v59, -1e+30  ;;  %v1921_v4 = vsel %vm11091_vm5, %v7487_v24, -1e+30  ;;  %v1922_v47 = vsel %vm11093_vm4, %v7502_v20, -1e+30  ;;  %v1985_v16 = vmax.f32 %v1984_v22, %v1915_v8 }
 0x146   : > { %v1979_v23 = vmax.f32 %v1978_v31, %v1910_v48  ;;  %v1923_v46 = vsel %vm11010_vm9, %v7517_v43, -1e+30  ;;  %v1993_v53 = vmax.f32 %v1920_v40, %v1921_v4  ;;  %vm11097_vm7 = vnez %v11096_v42  ;;  %v5006_v22 = vld [vmem:[%s5989_s28 + $0x4] ss:$8 sm:$0xf] }
 0x147   : > { %v1916_v55 = vsel %vm11097_vm7, %v7472_v59, -1e+30  ;;  %vm11099_vm5 = vnez %v11098_v62  ;;  %vm11101_vm4 = vnez %v11100_v32  ;;  %vm11103_vm9 = vnez %v11017_v28  ;;  %1986 = vmax.xlane.f32.xlu1 %v1985_v16  ;;  %v11108_v16 = vld [vmem:[#allocation60_spill] sm:$0xff]  ;;  %v7686_v28 = vpop.xlane.xlu0 %1238 }
 0x148   : > { %v1917_v60 = vsel %vm11099_vm5, %v7487_v24, -1e+30  ;;  %v1918_v0 = vsel %vm11101_vm4, %v7502_v20, -1e+30  ;;  %v1980_v48 = vmax.f32 %v1979_v23, %v1911_v39  ;;  %v1994_v8 = vmax.f32 %v1993_v53, %v1922_v47  ;;  %v11110_v53 = vld [vmem:[#allocation61_spill] sm:$0xff]  ;;  %11114 = vst [vmem:[#allocation81_spill] sm:$0xff] %v7686_v28 }
 0x149   : > { %v1919_v40 = vsel %vm11103_vm9, %v7517_v43, -1e+30  ;;  %v1988_v4 = vmax.f32 %v1916_v55, %v1917_v60  ;;  %vm11104_vm7 = vnez %v11019_v6  ;;  %v1929_v32 = vsel %vm11022_vm6, %v7487_v24, -1e+30  ;;  %v11112_v6 = vld [vmem:[#allocation62_spill] sm:$0xff] }
 0x14a   : > { %v1928_v31 = vsel %vm11104_vm7, %v7472_v59, -1e+30  ;;  %v1930_v38 = vsel %vm10941_vm0, %v7502_v20, -1e+30  ;;  %v1995_v39 = vmax.f32 %v1994_v8, %v1923_v46  ;;  %vm11107_vm9 = vnez %v10942_v9  ;;  %1981 = vmax.xlane.f32.xlu0 %v1980_v48 }
 0x14b   : > { %v1989_v47 = vmax.f32 %v1988_v4, %v1918_v0  ;;  %v1931_v60 = vsel %vm11107_vm9, %v7517_v43, -1e+30  ;;  %v2003_v55 = vmax.f32 %v1928_v31, %v1929_v32  ;;  %vm11109_vm4 = vnez %v11108_v16  ;;  %v11115_v0 = vld [vmem:[#allocation12_spill] sm:$0xff] }
 0x14c   : > { %v1924_v23 = vsel %vm11109_vm4, %v7472_v59, -1e+30  ;;  %vm11111_vm7 = vnez %v11110_v53  ;;  %vm11113_vm6 = vnez %v11112_v6  ;;  %v7689_v46 = vrot.slane %v5006_v22, %v11115_v0  ;;  %1996 = vmax.xlane.f32.xlu1 %v1995_v39 }
 0x14d   : > { %v1925_v62 = vsel %vm11111_vm7, %v7487_v24, -1e+30  ;;  %v1926_v51 = vsel %vm11113_vm6, %v7502_v20, -1e+30  ;;  %v1990_v8 = vmax.f32 %v1989_v47, %v1919_v40  ;;  %v2004_v32 = vmax.f32 %v2003_v55, %v1930_v38  ;;  %v7703_v40 = vpop.xlane.xlu1 %1253  ;;  %v11121_v38 = vld [vmem:[#allocation13_spill] sm:$0xff] }
 0x14e   : > { %vm11116_vm9 = vnez %v10951_v44  ;;  %v1998_v31 = vmax.f32 %v1924_v23, %v1925_v62  ;;  %v1936_v16 = vsel %vm11031_vm11, %v7472_v59, -1e+30  ;;  %v1937_v28 = vsel %vm11033_vm2, %v7487_v24, -1e+30  ;;  %11120 = vst [vmem:[#allocation12_spill] sm:$0xff] %v7703_v40 }
 0x14f   : > { %v1927_v4 = vsel %vm11116_vm9, %v7517_v43, -1e+30  ;;  %v1938_v48 = vsel %vm11035_vm14, %v7502_v20, -1e+30  ;;  %v7706_v47 = vrot.slane %v5006_v22, %v11121_v38  ;;  %v2005_v55 = vmax.f32 %v2004_v32, %v1931_v60  ;;  %1991 = vmax.xlane.f32.xlu0 %v1990_v8 }
 0x150   : > { %v1999_v62 = vmax.f32 %v1998_v31, %v1926_v51  ;;  %v1939_v39 = vsel %vm11037_vm15, %v7517_v43, -1e+30  ;;  %v2013_v23 = vmax.f32 %v1936_v16, %v1937_v28  ;;  %v1932_v6 = vsel %vm10957_vm3, %v7472_v59, -1e+30  ;;  %v7726_v31 = vpop.xlane.xlu0 %1248 }
 0x151   : > { %v1933_v9 = vsel %vm10959_vm10, %v7487_v24, -1e+30  ;;  %v1934_v44 = vsel %vm10960_vm8, %v7502_v20, -1e+30  ;;  %v7721_v60 = vrot.slane %v5006_v22, %v10961_v54  ;;  %vm11124_vm15 = vnez %v10962_v12  ;;  %2006 = vmax.xlane.f32.xlu1 %v2005_v55  ;;  %11125 = vst [vmem:[#allocation13_spill] sm:$0xff] %v7726_v31  ;;  %v7752_v31 = vpop.xlane.xlu1 %1263 }
 0x152   : > { %v2000_v51 = vmax.f32 %v1999_v62, %v1927_v4  ;;  %v2014_v32 = vmax.f32 %v2013_v23, %v1938_v48  ;;  %v1935_v28 = vsel %vm11124_vm15, %v7517_v43, -1e+30  ;;  %v2008_v16 = vmax.f32 %v1932_v6, %v1933_v9  ;;  %11133 = vst [vmem:[#allocation82_spill] sm:$0xff] %v7752_v31 }
 0x153   : > { %vm11126_vm10 = vnez %v10875_v41  ;;  %vm11127_vm8 = vnez %v11040_v56  ;;  %vm11128_vm3 = vnez %v10878_v36  ;;  %v7738_v4 = vrot.slane %v5006_v22, %v10964_v17 }
 0x154   : > { %v1944_v53 = vsel %vm11126_vm10, %v7472_v59, -1e+30  ;;  %v1945_v40 = vsel %vm11127_vm8, %v7487_v24, -1e+30  ;;  %v1946_v8 = vsel %vm11128_vm3, %v7502_v20, -1e+30  ;;  %v2015_v48 = vmax.f32 %v2014_v32, %v1939_v39  ;;  %2001 = vmax.xlane.f32.xlu0 %v2000_v51 }
 0x155   : > { %v2009_v9 = vmax.f32 %v2008_v16, %v1934_v44  ;;  %vm11129_vm15 = vnez %v10880_v13  ;;  %v2023_v55 = vmax.f32 %v1944_v53, %v1945_v40  ;;  %vm11130_vm10 = vnez %v10801_v5  ;;  %v7769_v16 = vpop.xlane.xlu0 %1258 }
 0x156   : > { %v1947_v6 = vsel %vm11129_vm15, %v7517_v43, -1e+30  ;;  %v1940_v62 = vsel %vm11130_vm10, %v7472_v59, -1e+30  ;;  %vm11131_vm8 = vnez %v10804_v7  ;;  %vm11132_vm3 = vnez %v10807_v11  ;;  %2016 = vmax.xlane.f32.xlu1 %v2015_v48  ;;  %11138 = vst [vmem:[#allocation83_spill] sm:$0xff] %v7769_v16  ;;  %v11168_v16 = vld [vmem:[#allocation42_spill] sm:$0xff] }
 0x157   : > { %v1941_v23 = vsel %vm11131_vm8, %v7487_v24, -1e+30  ;;  %v1942_v22 = vsel %vm11132_vm3, %v7502_v20, -1e+30  ;;  %v2010_v44 = vmax.f32 %v2009_v9, %v1935_v28  ;;  %v2024_v39 = vmax.f32 %v2023_v55, %v1946_v8 }
 0x158   : > { %vm11134_vm15 = vnez %v10811_v15  ;;  %v2018_v40 = vmax.f32 %v1940_v62, %v1941_v23  ;;  %vm11135_vm10 = vnez %v10647_v18  ;;  %vm11136_vm8 = vnez %v10650_v33 }
 0x159   : > { %v1943_v53 = vsel %vm11134_vm15, %v7517_v43, -1e+30  ;;  %v2055_v59 = vsel %vm11135_vm10, %v7689_v46, -1e+30  ;;  %v2056_v24 = vsel %vm11136_vm8, %v7706_v47, -1e+30  ;;  %vm11137_vm3 = vnez %v10653_v34  ;;  %2011 = vmax.xlane.f32.xlu0 %v2010_v44 }
 0x15a   : > { %v2057_v20 = vsel %vm11137_vm3, %v7721_v60, -1e+30  ;;  %v2025_v51 = vmax.f32 %v2024_v39, %v1947_v6  ;;  %v2019_v32 = vmax.f32 %v2018_v40, %v1942_v22  ;;  %v2058_v43 = vsel %vm11048_vm1, %v7738_v4, -1e+30  ;;  %v7783_v22 = vpop.xlane.xlu1 %1273 }
 0x15b   : > { %v2120_v28 = vmax.f32 %v2055_v59, %v2056_v24  ;;  %vm11139_vm10 = vnez %v10890_v50  ;;  %vm11140_vm8 = vnez %v10626_v45  ;;  %vm11141_vm3 = vnez %v10970_v61  ;;  %11143 = vst [vmem:[#allocation84_spill] sm:$0xff] %v7783_v22 }
 0x15c   : > { %v2051_v8 = vsel %vm11139_vm10, %v7689_v46, -1e+30  ;;  %v2052_v48 = vsel %vm11140_vm8, %v7706_v47, -1e+30  ;;  %v2053_v9 = vsel %vm11141_vm3, %v7721_v60, -1e+30  ;;  %v2020_v6 = vmax.f32 %v2019_v32, %v1943_v53  ;;  %2026 = vmax.xlane.f32.xlu1 %v2025_v51 }
 0x15d   : > { %v2121_v55 = vmax.f32 %v2120_v28, %v2057_v20  ;;  %vm11142_vm1 = vnez %v10893_v37  ;;  %v2115_v23 = vmax.f32 %v2051_v8, %v2052_v48  ;;  %vm11144_vm10 = vnez %v10895_v52 }
 0x15e   : > { %v2054_v62 = vsel %vm11142_vm1, %v7738_v4, -1e+30  ;;  %v2063_v39 = vsel %vm11144_vm10, %v7689_v46, -1e+30  ;;  %vm11145_vm8 = vnez %v10897_v49  ;;  %vm11146_vm3 = vnez %v10975_v35  ;;  %2021 = vmax.xlane.f32.xlu0 %v2020_v6 }
 0x15f   : > { %v2064_v40 = vsel %vm11145_vm8, %v7706_v47, -1e+30  ;;  %v2065_v44 = vsel %vm11146_vm3, %v7721_v60, -1e+30  ;;  %v2122_v53 = vmax.f32 %v2121_v55, %v2058_v43  ;;  %v2116_v59 = vmax.f32 %v2115_v23, %v2053_v9  ;;  %v7809_v55 = vpop.xlane.xlu0 %1268 }
 0x160   : > { %vm11147_vm1 = vnez %v10644_v3  ;;  %v2130_v20 = vmax.f32 %v2063_v39, %v2064_v40  ;;  %vm11148_vm15 = vnez %v10611_v25  ;;  %vm11149_vm10 = vnez %v10614_v26  ;;  %11152 = vst [vmem:[#allocation85_spill] sm:$0xff] %v7809_v55  ;;  %v11166_v55 = vld [vmem:[#allocation41_spill] sm:$0xff] }
 0x161   : > { %v2066_v24 = vsel %vm11147_vm1, %v7738_v4, -1e+30  ;;  %v2059_v51 = vsel %vm11148_vm15, %v7689_v46, -1e+30  ;;  %v2060_v32 = vsel %vm11149_vm10, %v7706_v47, -1e+30  ;;  %vm11150_vm8 = vnez %v10617_v27  ;;  %2123 = vmax.xlane.f32.xlu1 %v2122_v53 }
 0x162   : > { %v2061_v28 = vsel %vm11150_vm8, %v7721_v60, -1e+30  ;;  %v2117_v43 = vmax.f32 %v2116_v59, %v2054_v62  ;;  %v2131_v8 = vmax.f32 %v2130_v20, %v2065_v44  ;;  %vm11151_vm3 = vnez %v10620_v30  ;;  %v7823_v59 = vpop.xlane.xlu1 %1283 }
 0x163   : > { %v2062_v48 = vsel %vm11151_vm3, %v7738_v4, -1e+30  ;;  %v2125_v9 = vmax.f32 %v2059_v51, %v2060_v32  ;;  %vm11153_vm15 = vnez %v10659_v57  ;;  %vm11154_vm10 = vnez %v10662_v58  ;;  %11157 = vst [vmem:[#allocation86_spill] sm:$0xff] %v7823_v59  ;;  %v11160_v32 = vld [vmem:[#allocation38_spill] sm:$0xff]  ;;  %v11164_v59 = vld [vmem:[#allocation40_spill] sm:$0xff] }
 0x164   : > { %v2071_v23 = vsel %vm11153_vm15, %v7689_v46, -1e+30  ;;  %v2072_v39 = vsel %vm11154_vm10, %v7706_v47, -1e+30  ;;  %vm11155_vm8 = vnez %v10983_v19  ;;  %v2132_v62 = vmax.f32 %v2131_v8, %v2066_v24  ;;  %2118 = vmax.xlane.f32.xlu0 %v2117_v43 }
 0x165   : > { %v2073_v6 = vsel %vm11155_vm8, %v7721_v60, -1e+30  ;;  %v2126_v40 = vmax.f32 %v2125_v9, %v2061_v28  ;;  %vm11156_vm3 = vnez %v10668_v63  ;;  %v2140_v53 = vmax.f32 %v2071_v23, %v2072_v39  ;;  %v11162_v9 = vld [vmem:[#allocation39_spill] sm:$0xff] }
 0x166   : > { %v2074_v44 = vsel %vm11156_vm3, %v7738_v4, -1e+30  ;;  %vm11158_vm15 = vnez %v10671_v10  ;;  %vm11159_vm10 = vnez %v10674_v21  ;;  %vm11161_vm8 = vnez %v11160_v32  ;;  %2133 = vmax.xlane.f32.xlu1 %v2132_v62  ;;  %v11182_v32 = vld [vmem:[#allocation49_spill] sm:$0xff] }
 0x167   : > { %v2067_v20 = vsel %vm11158_vm15, %v7689_v46, -1e+30  ;;  %v2068_v51 = vsel %vm11159_vm10, %v7706_v47, -1e+30  ;;  %v2069_v24 = vsel %vm11161_vm8, %v7721_v60, -1e+30  ;;  %v2127_v28 = vmax.f32 %v2126_v40, %v2062_v48 }
 0x168   : > { %v2141_v8 = vmax.f32 %v2140_v53, %v2073_v6  ;;  %vm11163_vm3 = vnez %v11162_v9  ;;  %v2135_v39 = vmax.f32 %v2067_v20, %v2068_v51  ;;  %vm11165_vm15 = vnez %v11164_v59  ;;  %v7849_v20 = vpop.xlane.xlu0 %1278  ;;  %v11172_v51 = vld [vmem:[#allocation44_spill] sm:$0xff] }
 0x169   : > { %v2070_v23 = vsel %vm11163_vm3, %v7738_v4, -1e+30  ;;  %v2079_v22 = vsel %vm11165_vm15, %v7689_v46, -1e+30  ;;  %vm11167_vm10 = vnez %v11166_v55  ;;  %vm11169_vm8 = vnez %v11168_v16  ;;  %11171 = vst [vmem:[#allocation87_spill] sm:$0xff] %v7849_v20  ;;  %v11174_v55 = vld [vmem:[#allocation45_spill] sm:$0xff]  ;;  %2128 = vmax.xlane.f32.xlu0 %v2127_v28 }
 0x16a   : > { %v2080_v31 = vsel %vm11167_vm10, %v7706_v47, -1e+30  ;;  %v2081_v43 = vsel %vm11169_vm8, %v7721_v60, -1e+30  ;;  %v2142_v48 = vmax.f32 %v2141_v8, %v2074_v44  ;;  %v2136_v6 = vmax.f32 %v2135_v39, %v2069_v24  ;;  %v11176_v16 = vld [vmem:[#allocation46_spill] sm:$0xff]  ;;  %v11180_v40 = vld [vmem:[#allocation48_spill] sm:$0xff] }
 0x16b   : > { %v2082_v53 = vsel %vm11079_vm12, %v7738_v4, -1e+30  ;;  %v2150_v62 = vmax.f32 %v2079_v22, %v2080_v31  ;;  %vm11173_vm15 = vnez %v11172_v51  ;;  %vm11175_vm10 = vnez %v11174_v55  ;;  %v5007_v20 = vld [vmem:[%s5989_s28 + $0x5] ss:$8 sm:$0xf]  ;;  %v7864_v51 = vpop.xlane.xlu1 %1293 }
 0x16c   : > { %v2075_v59 = vsel %vm11173_vm15, %v7689_v46, -1e+30  ;;  %v2076_v9 = vsel %vm11175_vm10, %v7706_v47, -1e+30  ;;  %vm11177_vm8 = vnez %v11176_v16  ;;  %v2137_v24 = vmax.f32 %v2136_v6, %v2070_v23  ;;  %2143 = vmax.xlane.f32.xlu1 %v2142_v48  ;;  %11179 = vst [vmem:[#allocation88_spill] sm:$0xff] %v7864_v51  ;;  %v11184_v28 = vld [vmem:[#allocation50_spill] sm:$0xff] }
 0x16d   : > { %v2077_v44 = vsel %vm11177_vm8, %v7721_v60, -1e+30  ;;  %v2151_v8 = vmax.f32 %v2150_v62, %v2081_v43  ;;  %v2078_v31 = vsel %vm11087_vm13, %v7738_v4, -1e+30  ;;  %v2145_v22 = vmax.f32 %v2075_v59, %v2076_v9  ;;  %v11194_v62 = vld [vmem:[#allocation56_spill] sm:$0xff] }
 0x16e   : > { %vm11181_vm15 = vnez %v11180_v40  ;;  %vm11183_vm10 = vnez %v11182_v32  ;;  %vm11185_vm8 = vnez %v11184_v28  ;;  %vm11186_vm13 = vnez %v11095_v2  ;;  %v11189_v32 = vld [vmem:[#allocation54_spill] sm:$0xff]  ;;  %2138 = vmax.xlane.f32.xlu0 %v2137_v24 }
 0x16f   : > { %v2087_v55 = vsel %vm11181_vm15, %v7689_v46, -1e+30  ;;  %v2088_v16 = vsel %vm11183_vm10, %v7706_v47, -1e+30  ;;  %v2089_v23 = vsel %vm11185_vm8, %v7721_v60, -1e+30  ;;  %v2152_v43 = vmax.f32 %v2151_v8, %v2082_v53 }
 0x170   : > { %v2146_v6 = vmax.f32 %v2145_v22, %v2077_v44  ;;  %v2090_v59 = vsel %vm11186_vm13, %v7738_v4, -1e+30  ;;  %v2160_v9 = vmax.f32 %v2087_v55, %v2088_v16  ;;  %vm11187_vm12 = vnez %v11096_v42  ;;  %v11191_v16 = vld [vmem:[#allocation55_spill] sm:$0xff]  ;;  %v7893_v42 = vpop.xlane.xlu0 %1288 }
 0x171   : > { %v2083_v48 = vsel %vm11187_vm12, %v7689_v46, -1e+30  ;;  %v2084_v51 = vsel %vm11099_vm5, %v7706_v47, -1e+30  ;;  %vm11190_vm10 = vnez %v11189_v32  ;;  %v7888_v53 = vrot.slane %v5007_v20, %v11115_v0  ;;  %11193 = vst [vmem:[#allocation89_spill] sm:$0xff] %v7893_v42  ;;  %2153 = vmax.xlane.f32.xlu1 %v2152_v43  ;;  %v11196_v32 = vld [vmem:[#allocation57_spill] sm:$0xff] }
 0x172   : > { %v2085_v28 = vsel %vm11190_vm10, %v7721_v60, -1e+30  ;;  %v2147_v44 = vmax.f32 %v2146_v6, %v2078_v31  ;;  %v2161_v8 = vmax.f32 %v2160_v9, %v2089_v23  ;;  %vm11192_vm13 = vnez %v11191_v16  ;;  %v11200_v9 = vld [vmem:[#allocation59_spill] sm:$0xff] }
 0x173   : > { %v2086_v55 = vsel %vm11192_vm13, %v7738_v4, -1e+30  ;;  %v2155_v22 = vmax.f32 %v2083_v48, %v2084_v51  ;;  %vm11195_vm5 = vnez %v11194_v62  ;;  %vm11197_vm10 = vnez %v11196_v32  ;;  %v7907_v51 = vpop.xlane.xlu1 %1455 }
 0x174   : > { %v2095_v2 = vsel %vm11195_vm5, %v7689_v46, -1e+30  ;;  %v2096_v40 = vsel %vm11197_vm10, %v7706_v47, -1e+30  ;;  %v2097_v31 = vsel %vm10941_vm0, %v7721_v60, -1e+30  ;;  %v7905_v23 = vrot.slane %v5007_v20, %v11121_v38  ;;  %2148 = vmax.xlane.f32.xlu0 %v2147_v44  ;;  %v7928_v32 = vpop.xlane.xlu0 %1450 }
 0x175   : > { %11199 = vst [vmem:[#allocation90_spill] sm:$0xff] %v7907_v51  ;;  %v2162_v6 = vmax.f32 %v2161_v8, %v2090_v59  ;;  %v2156_v43 = vmax.f32 %v2155_v22, %v2085_v28  ;;  %vm11201_vm13 = vnez %v11200_v9  ;;  %v2170_v42 = vmax.f32 %v2095_v2, %v2096_v40  ;;  %v11205_v2 = vld [vmem:[#allocation63_spill] sm:$0xff]  ;;  %11206 = vst [vmem:[#allocation91_spill] sm:$0xff] %v7928_v32  ;;  %v11212_v9 = vld [vmem:[#allocation69_spill] sm:$0xff] }
 0x176   : > { %v2098_v48 = vsel %vm11201_vm13, %v7738_v4, -1e+30  ;;  %v2091_v62 = vsel %vm11109_vm4, %v7689_v46, -1e+30  ;;  %v2092_v16 = vsel %vm11111_vm7, %v7706_v47, -1e+30  ;;  %v7922_v59 = vrot.slane %v5007_v20, %v10961_v54 }
 0x177   : > { %v2093_v21 = vsel %vm11113_vm6, %v7721_v60, -1e+30  ;;  %v2157_v28 = vmax.f32 %v2156_v43, %v2086_v55  ;;  %v2171_v8 = vmax.f32 %v2170_v42, %v2097_v31  ;;  %v2094_v40 = vsel %vm11116_vm9, %v7738_v4, -1e+30  ;;  %2163 = vmax.xlane.f32.xlu1 %v2162_v6 }
 0x178   : > { %v2165_v22 = vmax.f32 %v2091_v62, %v2092_v16  ;;  %v5008_v51 = vld [vmem:[%s5989_s28 + $0x6] ss:$8 sm:$0xf]  ;;  %v2103_v39 = vsel %vm11031_vm11, %v7689_v46, -1e+30  ;;  %v7940_v55 = vrot.slane %v5007_v20, %v10964_v17  ;;  %v7942_v62 = vpop.xlane.xlu1 %1465  ;;  %vm11210_vm9 = vnez %v10867_v29 }
 0x179   : > { %v2104_v10 = vsel %vm11033_vm2, %v7706_v47, -1e+30  ;;  %v2105_v42 = vsel %vm11035_vm14, %v7721_v60, -1e+30  ;;  %v2172_v16 = vmax.f32 %v2171_v8, %v2098_v48  ;;  %v2106_v6 = vsel %vm11210_vm9, %v7738_v4, -1e+30  ;;  %2158 = vmax.xlane.f32.xlu0 %v2157_v28 }
 0x17a   : > { %v2166_v31 = vmax.f32 %v2165_v22, %v2093_v21  ;;  %v2180_v43 = vmax.f32 %v2103_v39, %v2104_v10  ;;  %vm11211_vm11 = vnez %v10869_v1  ;;  %vm11213_vm2 = vnez %v11212_v9  ;;  %v11214_v20 = vld [vmem:[#allocation70_spill] sm:$0xff]  ;;  %v7962_v22 = vpop.xlane.xlu0 %1460 }
 0x17b   : > { %v2099_v32 = vsel %vm11211_vm11, %v7689_v46, -1e+30  ;;  %v2100_v44 = vsel %vm11213_vm2, %v7706_v47, -1e+30  ;;  %vm11215_vm14 = vnez %v11214_v20  ;;  %v7957_v48 = vrot.slane %v5008_v51, %v11115_v0  ;;  %2173 = vmax.xlane.f32.xlu1 %v2172_v16 }
 0x17c   : > { %v2101_v24 = vsel %vm11215_vm14, %v7721_v60, -1e+30  ;;  %v2167_v21 = vmax.f32 %v2166_v31, %v2094_v40  ;;  %v2181_v8 = vmax.f32 %v2180_v43, %v2105_v42  ;;  %vm11217_vm9 = vnez %v10962_v12 }
 0x17d   : > { %11216 = vst [vmem:[#allocation92_spill] sm:$0xff] %v7957_v48  ;;  %v2102_v10 = vsel %vm11217_vm9, %v7738_v4, -1e+30  ;;  %v2175_v39 = vmax.f32 %v2099_v32, %v2100_v44  ;;  %vm11218_vm2 = vnez %v10875_v41  ;;  %vm11219_vm14 = vnez %v11040_v56  ;;  %v7976_v32 = vpop.xlane.xlu1 %1475 }
 0x17e   : > { %v2111_v9 = vsel %vm11218_vm2, %v7689_v46, -1e+30  ;;  %v2112_v20 = vsel %vm11219_vm14, %v7706_v47, -1e+30  ;;  %vm11220_vm11 = vnez %v10878_v36  ;;  %v7974_v40 = vrot.slane %v5008_v51, %v11121_v38  ;;  %2168 = vmax.xlane.f32.xlu0 %v2167_v21 }
 0x17f   : > { %v2113_v28 = vsel %vm11220_vm11, %v7721_v60, -1e+30  ;;  %v2182_v44 = vmax.f32 %v2181_v8, %v2106_v6  ;;  %v2176_v42 = vmax.f32 %v2175_v39, %v2101_v24  ;;  %vm11222_vm9 = vnez %v10880_v13  ;;  %v7997_v39 = vpop.xlane.xlu0 %1470 }
 0x180   : > { %11221 = vst [vmem:[#allocation93_spill] sm:$0xff] %v7974_v40  ;;  %v2114_v16 = vsel %vm11222_vm9, %v7738_v4, -1e+30  ;;  %v2190_v31 = vmax.f32 %v2111_v9, %v2112_v20  ;;  %vm11223_vm14 = vnez %v10801_v5  ;;  %vm11224_vm11 = vnez %v10804_v7 }
 0x181   : > { %v2107_v43 = vsel %vm11223_vm14, %v7689_v46, -1e+30  ;;  %v2108_v48 = vsel %vm11224_vm11, %v7706_v47, -1e+30  ;;  %vm11225_vm2 = vnez %v10807_v11  ;;  %v7991_v6 = vrot.slane %v5008_v51, %v10961_v54  ;;  %2183 = vmax.xlane.f32.xlu1 %v2182_v44 }
 0x182   : > { %v2109_v40 = vsel %vm11225_vm2, %v7721_v60, -1e+30  ;;  %v2177_v24 = vmax.f32 %v2176_v42, %v2102_v10  ;;  %v2191_v8 = vmax.f32 %v2190_v31, %v2113_v28  ;;  %vm11226_vm9 = vnez %v10811_v15  ;;  %v5009_v46 = vld [vmem:[%s5989_s28 + $0x7] ss:$8 sm:$0xf] }
 0x183   : > { %v2110_v9 = vsel %vm11226_vm9, %v7738_v4, -1e+30  ;;  %v2185_v20 = vmax.f32 %v2107_v43, %v2108_v48  ;;  %vm11227_vm11 = vnez %v10647_v18  ;;  %vm11228_vm2 = vnez %v10650_v33  ;;  %v8011_v4 = vpop.xlane.xlu1 %1485 }
 0x184   : > { %v2222_v47 = vsel %vm11227_vm11, %v7888_v53, -1e+30  ;;  %v2223_v60 = vsel %vm11228_vm2, %v7905_v23, -1e+30  ;;  %vm11229_vm14 = vnez %v10653_v34  ;;  %v8009_v10 = vrot.slane %v5008_v51, %v10964_v17  ;;  %2178 = vmax.xlane.f32.xlu0 %v2177_v24 }
 0x185   : > { %v2224_v21 = vsel %vm11229_vm14, %v7922_v59, -1e+30  ;;  %v2192_v48 = vmax.f32 %v2191_v8, %v2114_v16  ;;  %v2186_v28 = vmax.f32 %v2185_v20, %v2109_v40  ;;  %vm11230_vm9 = vnez %v10888_v14 }
 0x186   : > { %v2225_v44 = vsel %vm11230_vm9, %v7940_v55, -1e+30  ;;  %v2287_v42 = vmax.f32 %v2222_v47, %v2223_v60  ;;  %vm11231_vm11 = vnez %v10890_v50  ;;  %vm11232_vm2 = vnez %v10626_v45  ;;  %v8031_v60 = vpop.xlane.xlu0 %1480 }
 0x187   : > { %v2218_v31 = vsel %vm11231_vm11, %v7888_v53, -1e+30  ;;  %v2219_v43 = vsel %vm11232_vm2, %v7905_v23, -1e+30  ;;  %vm11233_vm14 = vnez %v10970_v61  ;;  %v8026_v16 = vrot.slane %v5009_v46, %v11115_v0  ;;  %2193 = vmax.xlane.f32.xlu1 %v2192_v48 }
 0x188   : > { %v2220_v51 = vsel %vm11233_vm14, %v7922_v59, -1e+30  ;;  %v2187_v40 = vmax.f32 %v2186_v28, %v2110_v9  ;;  %v2288_v8 = vmax.f32 %v2287_v42, %v2224_v21  ;;  %vm11235_vm9 = vnez %v10893_v37  ;;  %v8045_v21 = vpop.xlane.xlu1 %1495 }
 0x189   : > { %11234 = vst [vmem:[#allocation94_spill] sm:$0xff] %v8026_v16  ;;  %v2221_v20 = vsel %vm11235_vm9, %v7940_v55, -1e+30  ;;  %v2282_v47 = vmax.f32 %v2218_v31, %v2219_v43  ;;  %vm11236_vm2 = vnez %v10895_v52  ;;  %vm11237_vm14 = vnez %v10897_v49 }
 0x18a   : > { %v2230_v45 = vsel %vm11236_vm2, %v7888_v53, -1e+30  ;;  %v2231_v61 = vsel %vm11237_vm14, %v7905_v23, -1e+30  ;;  %vm11238_vm11 = vnez %v10975_v35  ;;  %v8043_v9 = vrot.slane %v5009_v46, %v11121_v38  ;;  %2188 = vmax.xlane.f32.xlu0 %v2187_v40 }
 0x18b   : > { %v2232_v24 = vsel %vm11238_vm11, %v7922_v59, -1e+30  ;;  %v2289_v28 = vmax.f32 %v2288_v8, %v2225_v44  ;;  %v2283_v48 = vmax.f32 %v2282_v47, %v2220_v51  ;;  %v2233_v42 = vsel %vm11147_vm1, %v7940_v55, -1e+30 }
 0x18c   : > { %11239 = vst [vmem:[#allocation95_spill] sm:$0xff] %v8043_v9  ;;  %v2297_v31 = vmax.f32 %v2230_v45, %v2231_v61  ;;  %vm11240_vm14 = vnez %v10611_v25  ;;  %vm11241_vm11 = vnez %v10614_v26  ;;  %vm11242_vm2 = vnez %v10617_v27  ;;  %v5010_v47 = vld [vmem:[%s5989_s28 + $0x20] ss:$8 sm:$0xf]  ;;  %v8066_v25 = vpop.xlane.xlu0 %1490 }
 0x18d   : > { %v2226_v43 = vsel %vm11240_vm14, %v7888_v53, -1e+30  ;;  %v2227_v16 = vsel %vm11241_vm11, %v7905_v23, -1e+30  ;;  %v2228_v9 = vsel %vm11242_vm2, %v7922_v59, -1e+30  ;;  %v8060_v44 = vrot.slane %v5009_v46, %v10961_v54  ;;  %2290 = vmax.xlane.f32.xlu1 %v2289_v28 }
 0x18e   : > { %v2284_v51 = vmax.f32 %v2283_v48, %v2221_v20  ;;  %v2298_v8 = vmax.f32 %v2297_v31, %v2232_v24  ;;  %vm11244_vm1 = vnez %v10620_v30  ;;  %v2292_v61 = vmax.f32 %v2226_v43, %v2227_v16  ;;  %v8080_v16 = vpop.xlane.xlu1 %1505  ;;  %v11251_v43 = vld [vmem:[#allocation36_spill] sm:$0xff] }
 0x18f   : > { %11243 = vst [vmem:[#allocation96_spill] sm:$0xff] %v8060_v44  ;;  %v2229_v45 = vsel %vm11244_vm1, %v7940_v55, -1e+30  ;;  %vm11245_vm11 = vnez %v10659_v57  ;;  %vm11246_vm2 = vnez %v10662_v58  ;;  %vm11247_vm14 = vnez %v10983_v19  ;;  %11249 = vst [vmem:[#allocation98_spill] sm:$0xff] %v8080_v16  ;;  %v11253_v57 = vld [vmem:[#allocation37_spill] sm:$0xff] }
 0x190   : > { %v2238_v27 = vsel %vm11245_vm11, %v7888_v53, -1e+30  ;;  %v2239_v44 = vsel %vm11246_vm2, %v7905_v23, -1e+30  ;;  %v2240_v40 = vsel %vm11247_vm14, %v7922_v59, -1e+30  ;;  %v8078_v20 = vrot.slane %v5009_v46, %v10964_v17  ;;  %2285 = vmax.xlane.f32.xlu0 %v2284_v51 }
 0x191   : > { %v2299_v24 = vmax.f32 %v2298_v8, %v2233_v42  ;;  %v2293_v48 = vmax.f32 %v2292_v61, %v2228_v9  ;;  %vm11250_vm1 = vnez %v10668_v63  ;;  %v2307_v31 = vmax.f32 %v2238_v27, %v2239_v44  ;;  %v11255_v46 = vld [vmem:[#allocation38_spill] sm:$0xff] }
 0x192   : > { %11248 = vst [vmem:[#allocation97_spill] sm:$0xff] %v8078_v20  ;;  %v2241_v28 = vsel %vm11250_vm1, %v7940_v55, -1e+30  ;;  %vm11252_vm11 = vnez %v11251_v43  ;;  %vm11254_vm2 = vnez %v11253_v57  ;;  %vm11256_vm14 = vnez %v11255_v46  ;;  %v8100_v43 = vpop.xlane.xlu0 %1500  ;;  %v11260_v57 = vld [vmem:[#allocation40_spill] sm:$0xff]  ;;  %v11262_v46 = vld [vmem:[#allocation41_spill] sm:$0xff]  ;;  %v11264_v51 = vld [vmem:[#allocation42_spill] sm:$0xff] }
 0x193   : > { %v2234_v58 = vsel %vm11252_vm11, %v7888_v53, -1e+30  ;;  %v2235_v19 = vsel %vm11254_vm2, %v7905_v23, -1e+30  ;;  %v2236_v20 = vsel %vm11256_vm14, %v7922_v59, -1e+30  ;;  %v8095_v42 = vrot.slane %v5010_v47, %v11115_v0  ;;  %2300 = vmax.xlane.f32.xlu1 %v2299_v24 }
 0x194   : > { %v2294_v9 = vmax.f32 %v2293_v48, %v2229_v45  ;;  %v2308_v8 = vmax.f32 %v2307_v31, %v2240_v40  ;;  %v2237_v44 = vsel %vm11163_vm3, %v7940_v55, -1e+30  ;;  %v2302_v61 = vmax.f32 %v2234_v58, %v2235_v19  ;;  %11259 = vst [vmem:[#allocation100_spill] sm:$0xff] %v8100_v43  ;;  %v8114_v48 = vpop.xlane.xlu1 %1515  ;;  %v11267_v24 = vld [vmem:[#allocation43_spill] sm:$0xff]  ;;  %v11271_v43 = vld [vmem:[#allocation45_spill] sm:$0xff]  ;;  %v11273_v27 = vld [vmem:[#allocation46_spill] sm:$0xff] }
 0x195   : > { %11257 = vst [vmem:[#allocation99_spill] sm:$0xff] %v8095_v42  ;;  %vm11261_vm2 = vnez %v11260_v57  ;;  %vm11263_vm14 = vnez %v11262_v46  ;;  %vm11265_vm11 = vnez %v11264_v51  ;;  %v8112_v40 = vrot.slane %v5010_v47, %v11121_v38  ;;  %v11269_v57 = vld [vmem:[#allocation44_spill] sm:$0xff] }
 0x196   : > { %v2246_v63 = vsel %vm11261_vm2, %v7888_v53, -1e+30  ;;  %v2247_v16 = vsel %vm11263_vm14, %v7905_v23, -1e+30  ;;  %v2248_v45 = vsel %vm11265_vm11, %v7922_v59, -1e+30  ;;  %v2309_v58 = vmax.f32 %v2308_v8, %v2241_v28  ;;  %2295 = vmax.xlane.f32.xlu0 %v2294_v9 }
 0x197   : > { %11266 = vst [vmem:[#allocation101_spill] sm:$0xff] %v8112_v40  ;;  %v2303_v19 = vmax.f32 %v2302_v61, %v2236_v20  ;;  %vm11268_vm3 = vnez %v11267_v24  ;;  %v2317_v42 = vmax.f32 %v2246_v63, %v2247_v16  ;;  %vm11270_vm2 = vnez %v11269_v57  ;;  %v11276_v63 = vld [vmem:[#allocation47_spill] sm:$0xff]  ;;  %v8134_v57 = vpop.xlane.xlu0 %1510  ;;  %v11280_v24 = vld [vmem:[#allocation49_spill] sm:$0xff] }
 0x198   : > { %v2249_v31 = vsel %vm11268_vm3, %v7940_v55, -1e+30  ;;  %v2242_v46 = vsel %vm11270_vm2, %v7888_v53, -1e+30  ;;  %vm11272_vm14 = vnez %v11271_v43  ;;  %vm11274_vm11 = vnez %v11273_v27  ;;  %11278 = vst [vmem:[#allocation103_spill] sm:$0xff] %v8134_v57  ;;  %2310 = vmax.xlane.f32.xlu1 %v2309_v58  ;;  %v11285_v58 = vld [vmem:[#allocation51_spill] sm:$0xff] }
 0x199   : > { %v2243_v51 = vsel %vm11272_vm14, %v7905_v23, -1e+30  ;;  %v2244_v40 = vsel %vm11274_vm11, %v7922_v59, -1e+30  ;;  %v8129_v28 = vrot.slane %v5010_v47, %v10961_v54  ;;  %v2304_v20 = vmax.f32 %v2303_v19, %v2237_v44 }
 0x19a   : > { %v2318_v8 = vmax.f32 %v2317_v42, %v2248_v45  ;;  %vm11277_vm3 = vnez %v11276_v63  ;;  %v2312_v61 = vmax.f32 %v2242_v46, %v2243_v51  ;;  %v2254_v27 = vsel %vm11181_vm15, %v7888_v53, -1e+30  ;;  %v8145_v42 = vpop.xlane.xlu1 %1525  ;;  %v11301_v46 = vld [vmem:[#allocation90_spill] sm:$0xff] }
 0x19b   : > { %11275 = vst [vmem:[#allocation102_spill] sm:$0xff] %v8129_v28  ;;  %v2245_v16 = vsel %vm11277_vm3, %v7940_v55, -1e+30  ;;  %vm11281_vm11 = vnez %v11280_v24  ;;  %v8143_v9 = vrot.slane %v5010_v47, %v10964_v17  ;;  %11283 = vst [vmem:[#allocation105_spill] sm:$0xff] %v8145_v42  ;;  %v2256_v51 = vsel %vm11185_vm8, %v7922_v59, -1e+30  ;;  %2305 = vmax.xlane.f32.xlu0 %v2304_v20  ;;  %v8168_v43 = vpop.xlane.xlu0 %1520 }
 0x19c   : > { %v2255_v54 = vsel %vm11281_vm11, %v7905_v23, -1e+30  ;;  %v2319_v44 = vmax.f32 %v2318_v8, %v2249_v31  ;;  %v2313_v45 = vmax.f32 %v2312_v61, %v2244_v40  ;;  %vm11286_vm2 = vnez %v11285_v58  ;;  %v11288_v47 = vld [vmem:[#allocation53_spill] sm:$0xff]  ;;  %v11290_v31 = vld [vmem:[#allocation54_spill] sm:$0xff]  ;;  %v11292_v61 = vld [vmem:[#allocation55_spill] sm:$0xff]  ;;  %11295 = vst [vmem:[#allocation106_spill] sm:$0xff] %v8168_v43 }
 0x19d   : > { %11282 = vst [vmem:[#allocation104_spill] sm:$0xff] %v8143_v9  ;;  %v2257_v19 = vsel %vm11286_vm2, %v7940_v55, -1e+30  ;;  %v2327_v28 = vmax.f32 %v2254_v27, %v2255_v54  ;;  %v2250_v24 = vsel %vm11187_vm12, %v7888_v53, -1e+30  ;;  %vm11289_vm11 = vnez %v11288_v47 }
 0x19e   : > { %v2251_v17 = vsel %vm11289_vm11, %v7905_v23, -1e+30  ;;  %vm11291_vm15 = vnez %v11290_v31  ;;  %v2314_v8 = vmax.f32 %v2313_v45, %v2245_v16  ;;  %vm11293_vm8 = vnez %v11292_v61  ;;  %2320 = vmax.xlane.f32.xlu1 %v2319_v44  ;;  %v11303_v45 = vld [vmem:[#allocation62_spill] sm:$0xff]  ;;  %v11305_v44 = vld [vmem:[#allocation64_spill] sm:$0xff] }
 0x19f   : > { %v2252_v40 = vsel %vm11291_vm15, %v7922_v59, -1e+30  ;;  %v2253_v9 = vsel %vm11293_vm8, %v7940_v55, -1e+30  ;;  %v2322_v58 = vmax.f32 %v2250_v24, %v2251_v17  ;;  %v2262_v27 = vsel %vm11195_vm5, %v7888_v53, -1e+30  ;;  %v1623_v24 = vpop.xlane.xlu1 %1622 }
 0x1a0   : > { %v2328_v47 = vmax.f32 %v2327_v28, %v2256_v51  ;;  %v2263_v31 = vsel %vm11197_vm10, %v7905_v23, -1e+30  ;;  %v2264_v16 = vsel %vm10941_vm0, %v7922_v59, -1e+30  ;;  %v2265_v17 = vsel %vm11201_vm13, %v7940_v55, -1e+30  ;;  %2315 = vmax.xlane.f32.xlu0 %v2314_v8 }
 0x1a1   : > { %v2323_v54 = vmax.f32 %v2322_v58, %v2252_v40  ;;  %v2337_v61 = vmax.f32 %v2262_v27, %v2263_v31  ;;  %v2258_v28 = vsel %vm11109_vm4, %v7888_v53, -1e+30  ;;  %v2259_v51 = vsel %vm11111_vm7, %v7905_v23, -1e+30 }
 0x1a2   : > { %vm11302_vm10 = vcmask 7168   ;;  %v2329_v63 = vmax.f32 %v2328_v47, %v2257_v19  ;;  %v2260_v42 = vsel %vm11113_vm6, %v7922_v59, -1e+30  ;;  %vm11304_vm13 = vnez %v11205_v2  ;;  %v5011_v57 = vld [vmem:[%s5989_s28 + $0x21] ss:$8 sm:$0xf] }
 0x1a3   : > { %v8187_v20 = vsel %vm11302_vm10, %v11301_v46, %v1623_v24  ;;  %v2261_v58 = vsel %vm11304_vm13, %v7940_v55, -1e+30  ;;  %v2324_v31 = vmax.f32 %v2323_v54, %v2253_v9  ;;  %v2338_v40 = vmax.f32 %v2337_v61, %v2264_v16  ;;  %v1618_v46 = vpop.xlane.xlu0 %1617  ;;  %v11307_v19 = vld [vmem:[#allocation65_spill] sm:$0xff]  ;;  %v11309_v24 = vld [vmem:[#allocation66_spill] sm:$0xff]  ;;  %v11313_v61 = vld [vmem:[#allocation91_spill] sm:$0xff] }
 0x1a4   : > { %v2332_v27 = vmax.f32 %v2258_v28, %v2259_v51  ;;  %vm11306_vm7 = vnez %v11305_v44  ;;  %2330 = vmax.xlane.f32.xlu1 %v2329_v63  ;;  %vm11308_vm10 = vnez %v11307_v19  ;;  %vm11310_vm6 = vnez %v11309_v24  ;;  %v1633_v63 = vpop.xlane.xlu1 %1632  ;;  %v11317_v24 = vld [vmem:[#allocation69_spill] sm:$0xff] }
 0x1a5   : > { %v2270_v43 = vsel %vm11306_vm7, %v7888_v53, -1e+30  ;;  %v2271_v47 = vsel %vm11308_vm10, %v7905_v23, -1e+30  ;;  %v2272_v2 = vsel %vm11310_vm6, %v7922_v59, -1e+30  ;;  %vm11311_vm13 = vnez %v10867_v29  ;;  %2325 = vmax.xlane.f32.xlu0 %v2324_v31 }
 0x1a6   : > { %v2273_v9 = vsel %vm11311_vm13, %v7940_v55, -1e+30  ;;  %v8209_v8 = vrot.slane %v5011_v57, %v11115_v0  ;;  %vm11314_vm7 = vcmask 7168   ;;  %v2339_v16 = vmax.f32 %v2338_v40, %v2265_v17 }
 0x1a7   : > { %v8213_v54 = vsel %vm11314_vm7, %v11313_v61, %v1618_v46  ;;  %v2333_v28 = vmax.f32 %v2332_v27, %v2260_v42  ;;  %v2347_v51 = vmax.f32 %v2270_v43, %v2271_v47  ;;  %vm11315_vm10 = vmmov %vm11314_vm7  ;;  %vm11316_vm6 = vnez %v10869_v1  ;;  %v1628_v40 = vpop.xlane.xlu0 %1627 }
 0x1a8   : > { %11312 = vst [vmem:[#allocation90_spill] sm:$0xff] %v8209_v8  ;;  %v8217_v19 = vsel %vm11315_vm10, %v7942_v62, %v1633_v63  ;;  %v2266_v29 = vsel %vm11316_vm6, %v7888_v53, -1e+30  ;;  %vm11318_vm13 = vnez %v11317_v24  ;;  %v11319_v8 = vld [vmem:[#allocation70_spill] sm:$0xff]  ;;  %vm11321_vm4 = vnez %v10962_v12  ;;  %2340 = vmax.xlane.f32.xlu1 %v2339_v16  ;;  %v1643_v31 = vpop.xlane.xlu1 %1642 }
 0x1a9   : > { %v2267_v0 = vsel %vm11318_vm13, %v7905_v23, -1e+30  ;;  %vm11320_vm7 = vnez %v11319_v8  ;;  %v2334_v17 = vmax.f32 %v2333_v28, %v2261_v58  ;;  %v2348_v42 = vmax.f32 %v2347_v51, %v2272_v2 }
 0x1aa   : > { %v2268_v46 = vsel %vm11320_vm7, %v7922_v59, -1e+30  ;;  %v2269_v62 = vsel %vm11321_vm4, %v7940_v55, -1e+30  ;;  %v2342_v43 = vmax.f32 %v2266_v29, %v2267_v0  ;;  %vm11322_vm10 = vnez %v10875_v41 }
 0x1ab   : > { %v2278_v27 = vsel %vm11322_vm10, %v7888_v53, -1e+30  ;;  %vm11323_vm13 = vnez %v11040_v56  ;;  %vm11324_vm7 = vnez %v10878_v36  ;;  %v8241_v2 = vrot.slane %v5011_v57, %v11121_v38  ;;  %2335 = vmax.xlane.f32.xlu0 %v2334_v17  ;;  %v11335_v17 = vld [vmem:[#allocation93_spill] sm:$0xff] }
 0x1ac   : > { %v2279_v47 = vsel %vm11323_vm13, %v7905_v23, -1e+30  ;;  %v2280_v58 = vsel %vm11324_vm7, %v7922_v59, -1e+30  ;;  %vm11326_vm4 = vcmask 7168   ;;  %v2349_v61 = vmax.f32 %v2348_v42, %v2273_v9  ;;  %v5230_v42 = vpop.f32.mrb[0].mxu1 }
 0x1ad   : > { %11325 = vst [vmem:[#allocation64_spill] sm:$0xff] %v8241_v2  ;;  %v8245_v29 = vsel %vm11326_vm4, %v7962_v22, %v1628_v40  ;;  %v2343_v63 = vmax.f32 %v2342_v43, %v2268_v46  ;;  %vm11327_vm10 = vnez %v10880_v13  ;;  %vm11328_vm13 = vmmov %vm11326_vm4  ;;  %v2357_v51 = vmax.f32 %v2278_v27, %v2279_v47  ;;  %v5150_v22 = vpop.f32.mrb[0].mxu0  ;;  %v1638_v40 = vpop.xlane.xlu0 %1637  ;;  %v11333_v27 = vld [vmem:[#allocation92_spill] sm:$0xff] }
 0x1ae   : > { %v2281_v16 = vsel %vm11327_vm10, %v7940_v55, -1e+30  ;;  %v8252_v28 = vsel %vm11328_vm13, %v7976_v32, %v1643_v31  ;;  %vm11329_vm7 = vnez %v10801_v5  ;;  %vm11330_vm4 = vnez %v10804_v7  ;;  %v5151_v43 = vpop.f32.mrb[1].mxu0  ;;  %2350 = vmax.xlane.f32.xlu1 %v2349_v61  ;;  %v1653_v47 = vpop.xlane.xlu1 %1652 }
 0x1af   : > { %v2274_v57 = vsel %vm11329_vm7, %v7888_v53, -1e+30  ;;  %v2275_v38 = vsel %vm11330_vm4, %v7905_v23, -1e+30  ;;  %v2344_v9 = vmax.f32 %v2343_v63, %v2269_v62  ;;  %vm11331_vm6 = vnez %v10807_v11  ;;  %v5231_v63 = vpop.f32.mrb[1].mxu1 }
 0x1b0   : > { %v2276_v0 = vsel %vm11331_vm6, %v7922_v59, -1e+30  ;;  %vm11332_vm13 = vnez %v10811_v15  ;;  %v2352_v46 = vmax.f32 %v2274_v57, %v2275_v38  ;;  %v2358_v53 = vmax.f32 %v2357_v51, %v2280_v58 }
 0x1b1   : > { %v2277_v32 = vsel %vm11332_vm13, %v7940_v55, -1e+30  ;;  %vm11334_vm4 = vnez %v10647_v18  ;;  %vm11336_vm7 = vnez %v10650_v33  ;;  %vm11337_vm6 = vnez %v10653_v34  ;;  %2345 = vmax.xlane.f32.xlu0 %v2344_v9 }
 0x1b2   : > { %v2389_v23 = vsel %vm11334_vm4, %v11333_v27, -1e+30  ;;  %v2390_v62 = vsel %vm11336_vm7, %v11335_v17, -1e+30  ;;  %v2391_v59 = vsel %vm11337_vm6, %v7991_v6, -1e+30  ;;  %v2353_v31 = vmax.f32 %v2352_v46, %v2276_v0 }
 0x1b3   : > { %vm11338_vm13 = vcmask 7168   ;;  %vm11339_vm10 = vnez %v10888_v14  ;;  %v2454_v61 = vmax.f32 %v2389_v23, %v2390_v62  ;;  %v2359_v57 = vmax.f32 %v2358_v53, %v2281_v16  ;;  %v8292_v46 = vpop.f32.mrb[2].mxu0  ;;  %v11344_v62 = vld [vmem:[#allocation22_spill] sm:$0xff]  ;;  %v8300_v16 = vpop.f32.mrb[2].mxu1  ;;  %v11384_v14 = vld [vmem:[#allocation40_spill] sm:$0xff] }
 0x1b4   : > { %v8277_v55 = vsel %vm11338_vm13, %v7997_v39, %v1638_v40  ;;  %v2392_v58 = vsel %vm11339_vm10, %v8009_v10, -1e+30  ;;  %vm11340_vm0 = vmmov %vm11338_vm13  ;;  %vm11341_vm6 = vnez %v10890_v50  ;;  %v11342_v39 = vld [vmem:[#allocation21_spill] sm:$0xff]  ;;  %v2354_v40 = vmax.f32 %v2353_v31, %v2277_v32  ;;  %v8302_v53 = vpop.f32.mrb[3].mxu0 }
 0x1b5   : > { %v8284_v51 = vsel %vm11340_vm0, %v8011_v4, %v1653_v47  ;;  %v2385_v38 = vsel %vm11341_vm6, %v11333_v27, -1e+30  ;;  %vm11343_vm13 = vnez %v11342_v39  ;;  %v2455_v23 = vmax.f32 %v2454_v61, %v2391_v59  ;;  %v1648_v47 = vpop.xlane.xlu0 %1647  ;;  %2360 = vmax.xlane.f32.xlu1 %v2359_v57  ;;  %v1663_v61 = vpop.xlane.xlu1 %1662 }
 0x1b6   : > { %v2386_v0 = vsel %vm11343_vm13, %v11335_v17, -1e+30  ;;  %vm11345_vm4 = vnez %v11344_v62  ;;  %v2388_v4 = vsel %vm11235_vm9, %v8009_v10, -1e+30  ;;  %vm11346_vm0 = vnez %v10895_v52  ;;  %2355 = vmax.xlane.f32.xlu0 %v2354_v40 }
 0x1b7   : > { %v2387_v2 = vsel %vm11345_vm4, %v7991_v6, -1e+30  ;;  %v2449_v39 = vmax.f32 %v2385_v38, %v2386_v0  ;;  %v2397_v9 = vsel %vm11346_vm0, %v11333_v27, -1e+30  ;;  %vm11347_vm13 = vnez %v10897_v49  ;;  %v5234_v0 = vpop.f32.mrb[3].mxu1 }
 0x1b8   : > { %v2398_v32 = vsel %vm11347_vm13, %v11335_v17, -1e+30  ;;  %vm11348_vm4 = vnez %v10975_v35  ;;  %vm11349_vm9 = vcmask 7168   ;;  %v2456_v37 = vmax.f32 %v2455_v23, %v2392_v58  ;;  %v11352_v35 = vld [vmem:[#allocation16_spill] sm:$0xff]  ;;  %v8330_v58 = vpop.f32.mrb[4].mxu0 }
 0x1b9   : > { %v2399_v59 = vsel %vm11348_vm4, %v7991_v6, -1e+30  ;;  %v8315_v31 = vsel %vm11349_vm9, %v8031_v60, %v1648_v47  ;;  %vm11350_vm6 = vnez %v10644_v3  ;;  %v2464_v38 = vmax.f32 %v2397_v9, %v2398_v32  ;;  %vm11351_vm0 = vmmov %vm11349_vm9  ;;  %v11355_v47 = vld [vmem:[#allocation18_spill] sm:$0xff]  ;;  %v1658_v32 = vpop.xlane.xlu0 %1657  ;;  %v8340_v3 = vpop.f32.mrb[4].mxu1 }
 0x1ba   : > { %v2400_v57 = vsel %vm11350_vm6, %v8009_v10, -1e+30  ;;  %v8322_v49 = vsel %vm11351_vm0, %v8045_v21, %v1663_v61  ;;  %v2450_v52 = vmax.f32 %v2449_v39, %v2387_v2  ;;  %vm11353_vm4 = vnez %v11352_v35  ;;  %v8338_v39 = vpop.f32.mrb[5].mxu0  ;;  %2457 = vmax.xlane.f32.xlu1 %v2456_v37  ;;  %v11361_v37 = vld [vmem:[#allocation98_spill] sm:$0xff] }
 0x1bb   : > { %v2393_v62 = vsel %vm11353_vm4, %v11333_v27, -1e+30  ;;  %vm11354_vm9 = vnez %v10614_v26  ;;  %v2465_v23 = vmax.f32 %v2464_v38, %v2399_v59  ;;  %vm11356_vm6 = vnez %v11355_v47  ;;  %v1673_v59 = vpop.xlane.xlu1 %1672 }
 0x1bc   : > { %v2394_v60 = vsel %vm11354_vm9, %v11335_v17, -1e+30  ;;  %v2395_v9 = vsel %vm11356_vm6, %v7991_v6, -1e+30  ;;  %vm11357_vm0 = vnez %v10620_v30  ;;  %v2451_v61 = vmax.f32 %v2450_v52, %v2388_v4  ;;  %v11359_v30 = vld [vmem:[#allocation32_spill] sm:$0xff] }
 0x1bd   : > { %v2396_v21 = vsel %vm11357_vm0, %v8009_v10, -1e+30  ;;  %v2459_v2 = vmax.f32 %v2393_v62, %v2394_v60  ;;  %v5152_v26 = vadd.f32 %v5151_v43, %v5150_v22  ;;  %v5232_v35 = vadd.f32 %v5231_v63, %v5230_v42  ;;  %v8349_v60 = vpop.f32.mrb[5].mxu1  ;;  %v1295_v42 = vld [vmem:[#allocation2] sm:$0xff]  ;;  %v11364_v43 = vld [vmem:[#allocation33_spill] sm:$0xff]  ;;  %v11366_v63 = vld [vmem:[#allocation34_spill] sm:$0xff] }
 0x1be   : > { %vm11358_vm4 = vcmask 7168   ;;  %v2466_v38 = vmax.f32 %v2465_v23, %v2400_v57  ;;  %vm11360_vm0 = vnez %v11359_v30  ;;  %vm11365_vm9 = vnez %v11364_v43  ;;  %v8361_v57 = vpop.f32.mrb[6].mxu0  ;;  %2452 = vmax.xlane.f32.xlu0 %v2451_v61  ;;  %v11371_v43 = vld [vmem:[#allocation74_spill] sm:$0xff]  ;;  %v11373_v30 = vld [vmem:[#allocation37_spill] sm:$0xff] }
 0x1bf   : > { %v8344_v40 = vsel %vm11358_vm4, %v8066_v25, %v1658_v32  ;;  %v2460_v47 = vmax.f32 %v2459_v2, %v2395_v9  ;;  %v2405_v62 = vsel %vm11360_vm0, %v11333_v27, -1e+30  ;;  %vm11362_vm6 = vmmov %vm11358_vm4  ;;  %v1137_v22 = vadd.f32 %v5232_v35, %v5152_v26  ;;  %v11369_v26 = vld [vmem:[#allocation36_spill] sm:$0xff] }
 0x1c0   : > { %v8353_v52 = vsel %vm11362_vm6, %v11361_v37, %v1673_v59  ;;  %v2406_v25 = vsel %vm11365_vm9, %v11335_v17, -1e+30  ;;  %vm11367_vm4 = vnez %v11366_v63  ;;  %v2408_v2 = vsel %vm11250_vm1, %v8009_v10, -1e+30  ;;  %v8369_v59 = vpop.f32.mrb[7].mxu0  ;;  %v1668_v37 = vpop.xlane.xlu0 %1667  ;;  %2467 = vmax.xlane.f32.xlu1 %v2466_v38 }
 0x1c1   : > { %11363 = vst [vmem:[#allocation91_spill] sm:$0xff] %v8353_v52  ;;  %v2407_v4 = vsel %vm11367_vm4, %v7991_v6, -1e+30  ;;  %v2461_v23 = vmax.f32 %v2460_v47, %v2396_v21  ;;  %v2474_v32 = vmax.f32 %v2405_v62, %v2406_v25  ;;  %vm11370_vm6 = vnez %v11369_v26  ;;  %v11375_v21 = vld [vmem:[#allocation38_spill] sm:$0xff]  ;;  %v11377_v62 = vld [vmem:[#allocation39_spill] sm:$0xff]  ;;  %v11379_v26 = vld [vmem:[#allocation100_spill] sm:$0xff]  ;;  %v1683_v38 = vpop.xlane.xlu1 %1682 }
 0x1c2   : > { %v2401_v35 = vsel %vm11370_vm6, %v11333_v27, -1e+30  ;;  %vm11372_vm9 = vcmask 80896   ;;  %vm11374_vm4 = vnez %v11373_v30  ;;  %vm11376_vm0 = vnez %v11375_v21 }
 0x1c3   : > { %v1312_v63 = vsel %vm11372_vm9, %v1137_v22, %v11371_v43  ;;  %v2402_v47 = vsel %vm11374_vm4, %v11335_v17, -1e+30  ;;  %v2403_v61 = vsel %vm11376_vm0, %v7991_v6, -1e+30  ;;  %vm11378_vm1 = vnez %v11377_v62  ;;  %v8386_v43 = vpop.f32.mrb[6].mxu1  ;;  %2462 = vmax.xlane.f32.xlu0 %v2461_v23 }
 0x1c4   : > { %v2404_v25 = vsel %vm11378_vm1, %v8009_v10, -1e+30  ;;  %vm11380_vm6 = vcmask 7168   ;;  %v1328_v52 = vadd.f32 %v1312_v63, %v1295_v42  ;;  %v2475_v50 = vmax.f32 %v2474_v32, %v2407_v4  ;;  %v8400_v42 = vpop.f32.mrb[8].mxu0 }
 0x1c5   : > { %v8384_v9 = vsel %vm11380_vm6, %v11379_v26, %v1668_v37  ;;  %v2469_v22 = vmax.f32 %v2401_v35, %v2402_v47  ;;  %vm11382_vm9 = vmmov %vm11380_vm6  ;;  %v5155_v21 = vadd.f32 %v8302_v53, %v8292_v46  ;;  %v5235_v62 = vadd.f32 %v5234_v0, %v8300_v16  ;;  %v8398_v37 = vpop.f32.mrb[7].mxu1  ;;  %v11389_v46 = vld [vmem:[#allocation42_spill] sm:$0xff]  ;;  %v8409_v53 = vpop.f32.mrb[9].mxu0  ;;  %v1296_v47 = vld [vmem:[#allocation2 + $0x8] sm:$0xff] }
 0x1c6   : > { %11381 = vst [vmem:[#allocation92_spill] sm:$0xff] %v8384_v9  ;;  %v8390_v30 = vsel %vm11382_vm9, %v8114_v48, %v1683_v38  ;;  %vm11385_vm1 = vnez %v11384_v14  ;;  %vm11386_vm6 = vcmask 89088   ;;  %v2476_v63 = vmax.f32 %v2475_v50, %v2408_v2  ;;  %v11387_v48 = vld [vmem:[#allocation41_spill] sm:$0xff]  ;;  %v1678_v0 = vpop.xlane.xlu0 %1677  ;;  %v11391_v38 = vld [vmem:[#allocation43_spill] sm:$0xff]  ;;  %v11393_v50 = vld [vmem:[#allocation44_spill] sm:$0xff]  ;;  %v1693_v14 = vpop.xlane.xlu1 %1692 }
 0x1c7   : > { %11383 = vst [vmem:[#allocation93_spill] sm:$0xff] %v8390_v30  ;;  %v2413_v26 = vsel %vm11385_vm1, %v11333_v27, -1e+30  ;;  %1345 = vst.msk [vmem:[#allocation2] sm:$0xff] %vm11386_vm6, %v1328_v52  ;;  %v2470_v4 = vmax.f32 %v2469_v22, %v2403_v61  ;;  %vm11388_vm9 = vnez %v11387_v48  ;;  %vm11390_vm0 = vnez %v11389_v46  ;;  %v8417_v61 = vpop.f32.mrb[8].mxu1  ;;  %v11395_v22 = vld [vmem:[#allocation103_spill] sm:$0xff] }
 0x1c8   : > { %v2414_v32 = vsel %vm11388_vm9, %v11335_v17, -1e+30  ;;  %v2415_v16 = vsel %vm11390_vm0, %v7991_v6, -1e+30  ;;  %v1142_v35 = vadd.f32 %v5235_v62, %v5155_v21  ;;  %vm11392_vm1 = vnez %v11391_v38  ;;  %2477 = vmax.xlane.f32.xlu1 %v2476_v63  ;;  %v11399_v38 = vld [vmem:[#allocation46_spill] sm:$0xff]  ;;  %v11404_v9 = vld [vmem:[#allocation73_spill] sm:$0xff] }
 0x1c9   : > { %v2416_v23 = vsel %vm11392_vm1, %v8009_v10, -1e+30  ;;  %v2484_v52 = vmax.f32 %v2413_v26, %v2414_v32  ;;  %vm11394_vm6 = vnez %v11393_v50  ;;  %vm11396_vm9 = vcmask 7168   ;;  %v8429_v32 = vpop.f32.mrb[9].mxu1  ;;  %v11401_v50 = vld [vmem:[#allocation105_spill] sm:$0xff] }
 0x1ca   : > { %v2409_v2 = vsel %vm11394_vm6, %v11333_v27, -1e+30  ;;  %v8421_v46 = vsel %vm11396_vm9, %v11395_v22, %v1678_v0  ;;  %v2471_v48 = vmax.f32 %v2470_v4, %v2404_v25  ;;  %v2410_v62 = vsel %vm11272_vm14, %v11335_v17, -1e+30  ;;  %vm11402_vm6 = vmmov %vm11396_vm9  ;;  %v8440_v22 = vpop.f32.mrb[10].mxu0 }
 0x1cb   : > { %11397 = vst [vmem:[#allocation98_spill] sm:$0xff] %v8421_v46  ;;  %vm11400_vm1 = vnez %v11399_v38  ;;  %v8433_v30 = vsel %vm11402_vm6, %v11401_v50, %v1693_v14  ;;  %vm11405_vm9 = vcmask 80896   ;;  %v2485_v63 = vmax.f32 %v2484_v52, %v2415_v16  ;;  %v8444_v34 = vpop.f32.mrb[11].mxu0  ;;  %v1688_v14 = vpop.xlane.xlu0 %1687  ;;  %v11407_v16 = vld [vmem:[#allocation48_spill] sm:$0xff]  ;;  %v11409_v52 = vld [vmem:[#allocation49_spill] sm:$0xff] }
 0x1cc   : > { %v2411_v26 = vsel %vm11400_vm1, %v7991_v6, -1e+30  ;;  %11403 = vst [vmem:[#allocation74_spill] sm:$0xff] %v8433_v30  ;;  %v1313_v0 = vsel %vm11405_vm9, %v1142_v35, %v11404_v9  ;;  %v2412_v4 = vsel %vm11277_vm3, %v8009_v10, -1e+30  ;;  %2472 = vmax.xlane.f32.xlu0 %v2471_v48  ;;  %v2479_v38 = vmax.f32 %v2409_v2, %v2410_v62  ;;  %v11411_v2 = vld [vmem:[#allocation106_spill] sm:$0xff] }
 0x1cd   : > { %v1329_v21 = vadd.f32 %v1313_v0, %v1296_v47  ;;  %v5158_v46 = vadd.f32 %v8338_v39, %v8330_v58  ;;  %v2486_v50 = vmax.f32 %v2485_v63, %v2416_v23  ;;  %v5238_v9 = vadd.f32 %v8349_v60, %v8340_v3  ;;  %v8454_v47 = vpop.f32.mrb[10].mxu1  ;;  %v1790_v23 = vpop.xlane.xlu1 %1789  ;;  %v11415_v3 = vld [vmem:[#allocation50_spill] sm:$0xff]  ;;  %v11427_v30 = vld [vmem:[#allocation56_spill] sm:$0xff] }
 0x1ce   : > { %vm11408_vm6 = vnez %v11407_v16  ;;  %vm11410_vm9 = vnez %v11409_v52  ;;  %vm11412_vm1 = vcmask 7168   ;;  %vm11414_vm3 = vcmask 89088   ;;  %v8467_v63 = vpop.f32.mrb[11].mxu1 }
 0x1cf   : > { %v2421_v35 = vsel %vm11408_vm6, %v11333_v27, -1e+30  ;;  %v2422_v48 = vsel %vm11410_vm9, %v11335_v17, -1e+30  ;;  %v8458_v58 = vsel %vm11412_vm1, %v11411_v2, %v1688_v14  ;;  %1346 = vst.msk [vmem:[#allocation2 + $0x8] sm:$0xff] %vm11414_vm3, %v1329_v21  ;;  %v2480_v39 = vmax.f32 %v2479_v38, %v2411_v26  ;;  %2487 = vmax.xlane.f32.xlu1 %v2486_v50  ;;  %v1297_v2 = vld [vmem:[#allocation2 + $0x10] sm:$0xff] }
 0x1d0   : > { %11413 = vst [vmem:[#allocation100_spill] sm:$0xff] %v8458_v58  ;;  %vm11416_vm14 = vnez %v11415_v3  ;;  %v2424_v0 = vsel %vm11286_vm2, %v8009_v10, -1e+30  ;;  %vm11418_vm9 = vcmask 15360   ;;  %v1147_v14 = vadd.f32 %v5238_v9, %v5158_v46  ;;  %v8476_v3 = vpop.f32.mrb[12].mxu0  ;;  %v1785_v9 = vpop.xlane.xlu0 %1784 }
 0x1d1   : > { %v2423_v60 = vsel %vm11416_vm14, %v7991_v6, -1e+30  ;;  %v8471_v52 = vsel %vm11418_vm9, %v8187_v20, %v1790_v23  ;;  %v2494_v21 = vmax.f32 %v2421_v35, %v2422_v48  ;;  %v2417_v26 = vsel %vm11187_vm12, %v11333_v27, -1e+30  ;;  %v11424_v35 = vld [vmem:[#allocation72_spill] sm:$0xff]  ;;  %vm11426_vm1 = vmmov %vm11418_vm9 }
 0x1d2   : > { %11419 = vst [vmem:[#allocation103_spill] sm:$0xff] %v8471_v52  ;;  %v2481_v16 = vmax.f32 %v2480_v39, %v2412_v4  ;;  %v2418_v25 = vsel %vm11289_vm11, %v11335_v17, -1e+30  ;;  %v2419_v58 = vsel %vm11291_vm15, %v7991_v6, -1e+30  ;;  %vm11425_vm3 = vcmask 80896   ;;  %v1800_v52 = vpop.xlane.xlu1 %1799  ;;  %vm11428_vm9 = vmmov %vm11426_vm1 }
 0x1d3   : > { %v2420_v46 = vsel %vm11293_vm8, %v8009_v10, -1e+30  ;;  %v1314_v48 = vsel %vm11425_vm3, %v1147_v14, %v11424_v35  ;;  %v2495_v23 = vmax.f32 %v2494_v21, %v2423_v60  ;;  %v2489_v38 = vmax.f32 %v2417_v26, %v2418_v25  ;;  %v8491_v39 = vpop.f32.mrb[12].mxu1  ;;  %v8502_v25 = vpop.f32.mrb[13].mxu0  ;;  %v11432_v26 = vld [vmem:[#allocation58_spill] sm:$0xff] }
 0x1d4   : > { %v5161_v4 = vadd.f32 %v8369_v59, %v8361_v57  ;;  %2482 = vmax.xlane.f32.xlu0 %v2481_v16  ;;  %v8495_v50 = vsel %vm11426_vm1, %v8213_v54, %v1785_v9  ;;  %v1330_v62 = vadd.f32 %v1314_v48, %v1297_v2  ;;  %v5241_v20 = vadd.f32 %v8398_v37, %v8386_v43  ;;  %v11429_v54 = vld [vmem:[#allocation57_spill] sm:$0xff]  ;;  %v8511_v2 = vpop.f32.mrb[13].mxu1  ;;  %v8513_v21 = vpop.f32.mrb[14].mxu0  ;;  %v1298_v37 = vld [vmem:[#allocation2 + $0x18] sm:$0xff]  ;;  %v11436_v48 = vld [vmem:[#allocation60_spill] sm:$0xff] }
 0x1d5   : > { %v2429_v60 = vsel %vm11195_vm5, %v11333_v27, -1e+30  ;;  %v2496_v14 = vmax.f32 %v2495_v23, %v2424_v0  ;;  %v2490_v57 = vmax.f32 %v2489_v38, %v2419_v58  ;;  %v8506_v59 = vsel %vm11428_vm9, %v8217_v19, %v1800_v52  ;;  %v11434_v0 = vld [vmem:[#allocation59_spill] sm:$0xff]  ;;  %v8522_v38 = vpop.f32.mrb[15].mxu0  ;;  %v1795_v35 = vpop.xlane.xlu0 %1794 }
 0x1d6   : > { %vm11430_vm3 = vnez %v11429_v54  ;;  %vm11431_vm1 = vcmask 89088   ;;  %v1152_v43 = vadd.f32 %v5241_v20, %v5161_v4  ;;  %vm11433_vm5 = vnez %v11432_v26  ;;  %v11438_v20 = vld [vmem:[#allocation61_spill] sm:$0xff]  ;;  %v8542_v26 = vpop.f32.mrb[14].mxu1 }
 0x1d7   : > { %v2430_v16 = vsel %vm11430_vm3, %v11335_v17, -1e+30  ;;  %1347 = vst.msk [vmem:[#allocation2 + $0x10] sm:$0xff] %vm11431_vm1, %v1330_v62  ;;  %v2431_v58 = vsel %vm11433_vm5, %v7991_v6, -1e+30  ;;  %vm11435_vm9 = vnez %v11434_v0  ;;  %2497 = vmax.xlane.f32.xlu1 %v2496_v14  ;;  %v2491_v9 = vmax.f32 %v2490_v57, %v2420_v46  ;;  %v11444_v57 = vld [vmem:[#allocation63_spill] sm:$0xff]  ;;  %v1810_v0 = vpop.xlane.xlu1 %1809 }
 0x1d8   : > { %v2432_v19 = vsel %vm11435_vm9, %v8009_v10, -1e+30  ;;  %v2504_v52 = vmax.f32 %v2429_v60, %v2430_v16  ;;  %vm11437_vm3 = vnez %v11436_v48  ;;  %vm11439_vm1 = vnez %v11438_v20  ;;  %v11442_v16 = vld [vmem:[#allocation75_spill] sm:$0xff] }
 0x1d9   : > { %v2425_v62 = vsel %vm11437_vm3, %v11333_v27, -1e+30  ;;  %v2426_v23 = vsel %vm11439_vm1, %v11335_v17, -1e+30  ;;  %vm11440_vm5 = vnez %v11303_v45  ;;  %vm11441_vm9 = vcmask 15360   ;;  %2492 = vmax.xlane.f32.xlu0 %v2491_v9  ;;  %v11448_v9 = vld [vmem:[#allocation65_spill] sm:$0xff] }
 0x1da   : > { %v2427_v4 = vsel %vm11440_vm5, %v7991_v6, -1e+30  ;;  %v8535_v60 = vsel %vm11441_vm9, %v8245_v29, %v1795_v35  ;;  %vm11443_vm8 = vcmask 80896   ;;  %v2505_v14 = vmax.f32 %v2504_v52, %v2431_v58  ;;  %vm11446_vm5 = vmmov %vm11441_vm9  ;;  %v8550_v35 = vpop.f32.mrb[15].mxu1 }
 0x1db   : > { %v1315_v46 = vsel %vm11443_vm8, %v1152_v43, %v11442_v16  ;;  %vm11445_vm15 = vnez %v11444_v57  ;;  %v2499_v54 = vmax.f32 %v2425_v62, %v2426_v23  ;;  %v8546_v45 = vsel %vm11446_vm5, %v8252_v28, %v1810_v0  ;;  %v8552_v43 = vpop.f32.mrb[16].mxu0  ;;  %v11451_v62 = vld [vmem:[#allocation66_spill] sm:$0xff]  ;;  %v8571_v16 = vpop.f32.mrb[16].mxu1 }
 0x1dc   : > { %v2428_v48 = vsel %vm11445_vm15, %v8009_v10, -1e+30  ;;  %v1331_v20 = vadd.f32 %v1315_v46, %v1298_v37  ;;  %v5164_v29 = vadd.f32 %v8409_v53, %v8400_v42  ;;  %v2506_v58 = vmax.f32 %v2505_v14, %v2432_v19  ;;  %v8562_v0 = vpop.f32.mrb[17].mxu0  ;;  %v1805_v53 = vpop.xlane.xlu0 %1804 }
 0x1dd   : > { %v5244_v52 = vadd.f32 %v8429_v32, %v8417_v61  ;;  %vm11447_vm8 = vnez %v11305_v44  ;;  %vm11449_vm9 = vnez %v11448_v9  ;;  %vm11450_vm5 = vcmask 89088   ;;  %v11453_v61 = vld [vmem:[#allocation67_spill] sm:$0xff] }
 0x1de   : > { %v2437_v37 = vsel %vm11447_vm8, %v11333_v27, -1e+30  ;;  %v2438_v28 = vsel %vm11449_vm9, %v11335_v17, -1e+30  ;;  %1348 = vst.msk [vmem:[#allocation2 + $0x18] sm:$0xff] %vm11450_vm5, %v1331_v20  ;;  %v2500_v42 = vmax.f32 %v2499_v54, %v2427_v4  ;;  %vm11452_vm15 = vnez %v11451_v62  ;;  %2507 = vmax.xlane.f32.xlu1 %v2506_v58  ;;  %v1299_v20 = vld [vmem:[#allocation2 + $0x20] sm:$0xff] }
 0x1df   : > { %v2439_v19 = vsel %vm11452_vm15, %v7991_v6, -1e+30  ;;  %vm11454_vm1 = vnez %v11453_v61  ;;  %v2514_v23 = vmax.f32 %v2437_v37, %v2438_v28  ;;  %vm11455_vm9 = vcmask 15360   ;;  %v1820_v61 = vpop.xlane.xlu1 %1819  ;;  %v8583_v62 = vpop.f32.mrb[17].mxu1 }
 0x1e0   : > { %v2440_v32 = vsel %vm11454_vm1, %v8009_v10, -1e+30  ;;  %v8575_v46 = vsel %vm11455_vm9, %v8277_v55, %v1805_v53  ;;  %v1157_v14 = vadd.f32 %v5244_v52, %v5164_v29  ;;  %vm11456_vm5 = vnez %v10869_v1  ;;  %v8591_v58 = vpop.f32.mrb[18].mxu0  ;;  %v11460_v52 = vld [vmem:[#allocation81_spill] sm:$0xff] }
 0x1e1   : > { %v2433_v54 = vsel %vm11456_vm5, %v11333_v27, -1e+30  ;;  %vm11457_vm15 = vnez %v11317_v24  ;;  %v2501_v37 = vmax.f32 %v2500_v42, %v2428_v48  ;;  %v2515_v28 = vmax.f32 %v2514_v23, %v2439_v19  ;;  %v8601_v42 = vpop.f32.mrb[19].mxu0 }
 0x1e2   : > { %v2434_v4 = vsel %vm11457_vm15, %v11335_v17, -1e+30  ;;  %vm11458_vm1 = vnez %v11319_v8  ;;  %vm11459_vm9 = vnez %v10962_v12  ;;  %vm11461_vm5 = vcmask 80896   ;;  %v1815_v12 = vpop.xlane.xlu0 %1814 }
 0x1e3   : > { %v2435_v55 = vsel %vm11458_vm1, %v7991_v6, -1e+30  ;;  %v2436_v29 = vsel %vm11459_vm9, %v8009_v10, -1e+30  ;;  %v1316_v53 = vsel %vm11461_vm5, %v1157_v14, %v11460_v52  ;;  %v2509_v24 = vmax.f32 %v2433_v54, %v2434_v4  ;;  %2502 = vmax.xlane.f32.xlu0 %v2501_v37  ;;  %v8608_v54 = vpop.f32.mrb[18].mxu1  ;;  %v8629_v4 = vpop.f32.mrb[20].mxu0 }
 0x1e4   : > { %vm11462_vm15 = vcmask 15360   ;;  %v5167_v48 = vadd.f32 %v8444_v34, %v8440_v22  ;;  %v1332_v19 = vadd.f32 %v1316_v53, %v1299_v20  ;;  %v2516_v23 = vmax.f32 %v2515_v28, %v2440_v32  ;;  %v11472_v52 = vld [vmem:[#allocation80_spill] sm:$0xff] }
 0x1e5   : > { %v8597_v1 = vsel %vm11462_vm15, %v8284_v51, %v1820_v61  ;;  %v5247_v8 = vadd.f32 %v8467_v63, %v8454_v47  ;;  %vm11463_vm5 = vnez %v10875_v41  ;;  %v2510_v51 = vmax.f32 %v2509_v24, %v2435_v55  ;;  %v1830_v47 = vpop.xlane.xlu1 %1829  ;;  %v8620_v63 = vpop.f32.mrb[19].mxu1  ;;  %v1300_v24 = vld [vmem:[#allocation2 + $0x28] sm:$0xff] }
 0x1e6   : > { %v2445_v14 = vsel %vm11463_vm5, %v11333_v27, -1e+30  ;;  %v8612_v61 = vsel %vm11462_vm15, %v8315_v31, %v1815_v12  ;;  %vm11464_vm9 = vnez %v11040_v56  ;;  %vm11465_vm1 = vnez %v10878_v36  ;;  %2517 = vmax.xlane.f32.xlu1 %v2516_v23  ;;  %v8646_v23 = vpop.f32.mrb[20].mxu1 }
 0x1e7   : > { %v2446_v34 = vsel %vm11464_vm9, %v11335_v17, -1e+30  ;;  %v2447_v22 = vsel %vm11465_vm1, %v7991_v6, -1e+30  ;;  %vm11466_vm8 = vcmask 89088   ;;  %v1162_v32 = vadd.f32 %v5247_v8, %v5167_v48 }
 0x1e8   : > { %1349 = vst.msk [vmem:[#allocation2 + $0x20] sm:$0xff] %vm11466_vm8, %v1332_v19  ;;  %vm11467_vm15 = vnez %v10880_v13  ;;  %v2524_v31 = vmax.f32 %v2445_v14, %v2446_v34  ;;  %vm11468_vm9 = vnez %v10801_v5  ;;  %v2511_v37 = vmax.f32 %v2510_v51, %v2436_v29  ;;  %v1825_v19 = vpop.xlane.xlu0 %1824  ;;  %v8656_v34 = vpop.f32.mrb[21].mxu0  ;;  %v11546_v5 = vld [vmem:[#allocation74_spill] sm:$0xff] }
 0x1e9   : > { %v2448_v12 = vsel %vm11467_vm15, %v8009_v10, -1e+30  ;;  %v2441_v20 = vsel %vm11468_vm9, %v11333_v27, -1e+30  ;;  %vm11469_vm1 = vnez %v10804_v7  ;;  %vm11470_vm8 = vnez %v10807_v11  ;;  %v1840_v51 = vpop.xlane.xlu1 %1839  ;;  %v11540_v11 = vld [vmem:[#allocation38_spill] sm:$0xff] }
 0x1ea   : > { %v2442_v28 = vsel %vm11469_vm1, %v11335_v17, -1e+30  ;;  %v2443_v8 = vsel %vm11470_vm8, %v7991_v6, -1e+30  ;;  %vm11471_vm5 = vnez %v10811_v15  ;;  %vm11473_vm15 = vcmask 80896   ;;  %2512 = vmax.xlane.f32.xlu0 %v2511_v37  ;;  %v11485_v37 = vld [vmem:[#allocation97_spill] sm:$0xff] }
 0x1eb   : > { %v2444_v55 = vsel %vm11471_vm5, %v8009_v10, -1e+30  ;;  %v1317_v53 = vsel %vm11473_vm15, %v1162_v32, %v11472_v52  ;;  %v2525_v48 = vmax.f32 %v2524_v31, %v2447_v22  ;;  %v2519_v27 = vmax.f32 %v2441_v20, %v2442_v28  ;;  %v8664_v31 = vpop.f32.mrb[21].mxu1  ;;  %v8666_v20 = vpop.f32.mrb[22].mxu0  ;;  %v11493_v28 = vld [vmem:[#allocation13_spill] sm:$0xff] }
 0x1ec   : > { %vm11474_vm9 = vcmask 15360   ;;  %v1333_v17 = vadd.f32 %v1317_v53, %v1300_v24  ;;  %v5170_v10 = vadd.f32 %v8502_v25, %v8476_v3  ;;  %v5250_v14 = vadd.f32 %v8511_v2, %v8491_v39  ;;  %v11480_v24 = vld [vmem:[#allocation95_spill] sm:$0xff]  ;;  %v1301_v39 = vld [vmem:[#allocation2 + $0x30] sm:$0xff]  ;;  %v11482_v25 = vld [vmem:[#allocation96_spill] sm:$0xff]  ;;  %v8675_v53 = vpop.f32.mrb[23].mxu0  ;;  %v1835_v33 = vpop.xlane.xlu0 %1834 }
 0x1ed   : > { %v8644_v29 = vsel %vm11474_vm9, %v8322_v49, %v1830_v47  ;;  %vm11476_vm8 = vmmov %vm11474_vm9  ;;  %v2526_v49 = vmax.f32 %v2525_v48, %v2448_v12  ;;  %v2520_v22 = vmax.f32 %v2519_v27, %v2443_v8  ;;  %v11478_v47 = vld [vmem:[#allocation94_spill] sm:$0xff]  ;;  %vm11479_vm9 = vnez %v10647_v18  ;;  %v11487_v27 = vld [vmem:[#allocation20_spill] sm:$0xff]  ;;  %v8691_v18 = vpop.f32.mrb[22].mxu1 }
 0x1ee   : > { %11475 = vst [vmem:[#allocation105_spill] sm:$0xff] %v8644_v29  ;;  %v8650_v6 = vsel %vm11476_vm8, %v8344_v40, %v1825_v19  ;;  %v2556_v32 = vsel %vm11479_vm9, %v11478_v47, -1e+30  ;;  %v2557_v40 = vsel %vm11336_vm7, %v11480_v24, -1e+30  ;;  %vm11481_vm15 = vcmask 89088  }
 0x1ef   : > { %11477 = vst [vmem:[#allocation73_spill] sm:$0xff] %v8650_v6  ;;  %1350 = vst.msk [vmem:[#allocation2 + $0x28] sm:$0xff] %vm11481_vm15, %v1333_v17  ;;  %v1167_v3 = vadd.f32 %v5250_v14, %v5170_v10  ;;  %v11483_v2 = vld [vmem:[#allocation30_spill] sm:$0xff]  ;;  %v2559_v8 = vsel %vm11339_vm10, %v11485_v37, -1e+30  ;;  %v2621_v52 = vmax.f32 %v2556_v32, %v2557_v40  ;;  %2527 = vmax.xlane.f32.xlu1 %v2526_v49  ;;  %vm11488_vm7 = vnez %v11487_v27  ;;  %v11489_v17 = vld [vmem:[#allocation21_spill] sm:$0xff]  ;;  %v1850_v27 = vpop.xlane.xlu1 %1849 }
 0x1f0   : > { %vm11484_vm8 = vnez %v11483_v2  ;;  %v2521_v48 = vmax.f32 %v2520_v22, %v2444_v55  ;;  %v2552_v19 = vsel %vm11488_vm7, %v11478_v47, -1e+30  ;;  %vm11490_vm15 = vnez %v11489_v17  ;;  %v11491_v14 = vld [vmem:[#allocation22_spill] sm:$0xff]  ;;  %v11495_v49 = vld [vmem:[#allocation23_spill] sm:$0xff] }
 0x1f1   : > { %v2558_v12 = vsel %vm11484_vm8, %v11482_v25, -1e+30  ;;  %v2553_v10 = vsel %vm11490_vm15, %v11480_v24, -1e+30  ;;  %vm11492_vm8 = vnez %v11491_v14  ;;  %vm11494_vm10 = vcmask 80896   ;;  %v11497_v6 = vld [vmem:[#allocation91_spill] sm:$0xff] }
 0x1f2   : > { %v2554_v2 = vsel %vm11492_vm8, %v11482_v25, -1e+30  ;;  %v1318_v32 = vsel %vm11494_vm10, %v1167_v3, %v11493_v28  ;;  %v2622_v40 = vmax.f32 %v2621_v52, %v2558_v12  ;;  %vm11496_vm9 = vnez %v11495_v49  ;;  %2522 = vmax.xlane.f32.xlu0 %v2521_v48  ;;  %v11500_v14 = vld [vmem:[#allocation92_spill] sm:$0xff]  ;;  %v8703_v12 = vpop.f32.mrb[23].mxu1  ;;  %v8705_v28 = vpop.f32.mrb[24].mxu0 }
 0x1f3   : > { %v2555_v55 = vsel %vm11496_vm9, %v11485_v37, -1e+30  ;;  %v2616_v22 = vmax.f32 %v2552_v19, %v2553_v10  ;;  %v1334_v17 = vadd.f32 %v1318_v32, %v1301_v39  ;;  %vm11498_vm15 = vcmask 15360   ;;  %v11503_v48 = vld [vmem:[#allocation24_spill] sm:$0xff] }
 0x1f4   : > { %v8695_v29 = vsel %vm11498_vm15, %v11497_v6, %v1840_v51  ;;  %vm11501_vm8 = vmmov %vm11498_vm15  ;;  %v5173_v3 = vadd.f32 %v8522_v38, %v8513_v21  ;;  %v2623_v52 = vmax.f32 %v2622_v40, %v2559_v8  ;;  %v5253_v39 = vadd.f32 %v8550_v35, %v8542_v26  ;;  %v8712_v51 = vpop.f32.mrb[25].mxu0  ;;  %v11507_v38 = vld [vmem:[#allocation26_spill] sm:$0xff]  ;;  %v11511_v35 = vld [vmem:[#allocation93_spill] sm:$0xff] }
 0x1f5   : > { %11499 = vst [vmem:[#allocation106_spill] sm:$0xff] %v8695_v29  ;;  %v8699_v15 = vsel %vm11501_vm8, %v11500_v14, %v1835_v33  ;;  %v2617_v19 = vmax.f32 %v2616_v22, %v2554_v2  ;;  %vm11504_vm10 = vnez %v11503_v48  ;;  %vm11505_vm8 = vcmask 89088   ;;  %v11509_v2 = vld [vmem:[#allocation27_spill] sm:$0xff]  ;;  %v1845_v14 = vpop.xlane.xlu0 %1844  ;;  %v11514_v33 = vld [vmem:[#allocation16_spill] sm:$0xff] }
 0x1f6   : > { %11502 = vst [vmem:[#allocation72_spill] sm:$0xff] %v8699_v15  ;;  %v2564_v6 = vsel %vm11504_vm10, %v11478_v47, -1e+30  ;;  %1351 = vst.msk [vmem:[#allocation2 + $0x30] sm:$0xff] %vm11505_vm8, %v1334_v17  ;;  %v2565_v21 = vsel %vm11347_vm13, %v11480_v24, -1e+30  ;;  %vm11508_vm15 = vnez %v11507_v38  ;;  %vm11510_vm9 = vnez %v11509_v2  ;;  %2624 = vmax.xlane.f32.xlu1 %v2623_v52  ;;  %v1860_v38 = vpop.xlane.xlu1 %1859 }
 0x1f7   : > { %v2566_v8 = vsel %vm11508_vm15, %v11482_v25, -1e+30  ;;  %v2567_v26 = vsel %vm11510_vm9, %v11485_v37, -1e+30  ;;  %vm11512_vm7 = vcmask 15360   ;;  %v2618_v32 = vmax.f32 %v2617_v19, %v2555_v55  ;;  %v1302_v40 = vld [vmem:[#allocation2 + $0x38] sm:$0xff] }
 0x1f8   : > { %v8726_v10 = vsel %vm11512_vm7, %v11511_v35, %v1850_v27  ;;  %v1172_v17 = vadd.f32 %v5253_v39, %v5173_v3  ;;  %v2631_v22 = vmax.f32 %v2564_v6, %v2565_v21  ;;  %vm11515_vm8 = vnez %v11514_v33  ;;  %v8731_v15 = vpop.f32.mrb[24].mxu1  ;;  %v11516_v2 = vld [vmem:[#allocation17_spill] sm:$0xff]  ;;  %v11518_v27 = vld [vmem:[#allocation18_spill] sm:$0xff]  ;;  %v11520_v55 = vld [vmem:[#allocation19_spill] sm:$0xff] }
 0x1f9   : > { %11513 = vst [vmem:[#allocation75_spill] sm:$0xff] %v8726_v10  ;;  %v2560_v48 = vsel %vm11515_vm8, %v11478_v47, -1e+30  ;;  %vm11517_vm9 = vnez %v11516_v2  ;;  %vm11519_vm7 = vnez %v11518_v27  ;;  %vm11521_vm15 = vnez %v11520_v55  ;;  %v11522_v52 = vld [vmem:[#allocation98_spill] sm:$0xff]  ;;  %2619 = vmax.xlane.f32.xlu0 %v2618_v32  ;;  %v11525_v39 = vld [vmem:[#allocation12_spill] sm:$0xff]  ;;  %v8750_v33 = vpop.f32.mrb[25].mxu1 }
 0x1fa   : > { %v2561_v49 = vsel %vm11517_vm9, %v11480_v24, -1e+30  ;;  %v2562_v35 = vsel %vm11519_vm7, %v11482_v25, -1e+30  ;;  %v2563_v3 = vsel %vm11521_vm15, %v11485_v37, -1e+30  ;;  %v2632_v21 = vmax.f32 %v2631_v22, %v2566_v8 }
 0x1fb   : > { %vm11523_vm13 = vcmask 15360   ;;  %vm11526_vm8 = vcmask 80896   ;;  %v2626_v10 = vmax.f32 %v2560_v48, %v2561_v49  ;;  %v5176_v2 = vadd.f32 %v8562_v0, %v8552_v43  ;;  %v8752_v27 = vpop.f32.mrb[26].mxu0  ;;  %v1855_v49 = vpop.xlane.xlu0 %1854  ;;  %v11531_v22 = vld [vmem:[#allocation34_spill] sm:$0xff] }
 0x1fc   : > { %v8744_v19 = vsel %vm11523_vm13, %v11522_v52, %v1845_v14  ;;  %v1319_v6 = vsel %vm11526_vm8, %v1172_v17, %v11525_v39  ;;  %v5256_v55 = vadd.f32 %v8583_v62, %v8571_v16  ;;  %v11527_v14 = vld [vmem:[#allocation32_spill] sm:$0xff]  ;;  %v11529_v52 = vld [vmem:[#allocation33_spill] sm:$0xff]  ;;  %v8762_v48 = vpop.f32.mrb[26].mxu1  ;;  %v2633_v43 = vmax.f32 %v2632_v21, %v2567_v26  ;;  %v11533_v62 = vld [vmem:[#allocation35_spill] sm:$0xff]  ;;  %v1957_v39 = vpop.xlane.xlu1 %1956 }
 0x1fd   : > { %11524 = vst [vmem:[#allocation65_spill] sm:$0xff] %v8744_v19  ;;  %v1335_v29 = vadd.f32 %v1319_v6, %v1302_v40  ;;  %vm11528_vm13 = vnez %v11527_v14  ;;  %vm11530_vm8 = vnez %v11529_v52  ;;  %v2627_v0 = vmax.f32 %v2626_v10, %v2562_v35  ;;  %v1303_v17 = vld [vmem:[#allocation2 + $0x40] sm:$0xff]  ;;  %v8770_v6 = vpop.f32.mrb[27].mxu0  ;;  %v8779_v21 = vpop.f32.mrb[27].mxu1 }
 0x1fe   : > { %v2572_v32 = vsel %vm11528_vm13, %v11478_v47, -1e+30  ;;  %v2573_v8 = vsel %vm11530_vm8, %v11480_v24, -1e+30  ;;  %vm11532_vm15 = vnez %v11531_v22  ;;  %vm11534_vm7 = vnez %v11533_v62  ;;  %v11536_v19 = vld [vmem:[#allocation36_spill] sm:$0xff]  ;;  %v8781_v22 = vpop.f32.mrb[28].mxu0  ;;  %2634 = vmax.xlane.f32.xlu1 %v2633_v43 }
 0x1ff   : > { %v2574_v40 = vsel %vm11532_vm15, %v11482_v25, -1e+30  ;;  %v2575_v16 = vsel %vm11534_vm7, %v11485_v37, -1e+30  ;;  %vm11535_vm13 = vcmask 89088   ;;  %v1177_v52 = vadd.f32 %v5256_v55, %v5176_v2  ;;  %11539 = vst [vmem:[#allocation81_spill] sm:$0xff] %v8781_v22 }
 0x200   : > { %1352 = vst.msk [vmem:[#allocation2 + $0x38] sm:$0xff] %vm11535_vm13, %v1335_v29  ;;  %v2641_v14 = vmax.f32 %v2572_v32, %v2573_v8  ;;  %vm11537_vm8 = vnez %v11536_v19  ;;  %v2569_v35 = vsel %vm11374_vm4, %v11480_v24, -1e+30  ;;  %v2628_v62 = vmax.f32 %v2627_v0, %v2563_v3  ;;  %v11542_v2 = vld [vmem:[#allocation39_spill] sm:$0xff]  ;;  %v8789_v8 = vpop.f32.mrb[29].mxu0  ;;  %v11548_v3 = vld [vmem:[#allocation100_spill] sm:$0xff]  ;;  %v1952_v0 = vpop.xlane.xlu0 %1951 }
 0x201   : > { %v2568_v26 = vsel %vm11537_vm8, %v11478_v47, -1e+30  ;;  %vm11541_vm7 = vnez %v11540_v11  ;;  %vm11543_vm13 = vnez %v11542_v2  ;;  %v11544_v19 = vld [vmem:[#allocation83_spill] sm:$0xff]  ;;  %vm11545_vm8 = vcmask 80896   ;;  %v8801_v11 = vpop.f32.mrb[28].mxu1 }
 0x202   : > { %v2570_v29 = vsel %vm11541_vm7, %v11482_v25, -1e+30  ;;  %v2571_v55 = vsel %vm11543_vm13, %v11485_v37, -1e+30  ;;  %v2636_v32 = vmax.f32 %v2568_v26, %v2569_v35  ;;  %v1320_v10 = vsel %vm11545_vm8, %v1177_v52, %v11544_v19  ;;  %2629 = vmax.xlane.f32.xlu0 %v2628_v62  ;;  %v8807_v52 = vpop.f32.mrb[29].mxu1 }
 0x203   : > { %v2642_v7 = vmax.f32 %v2641_v14, %v2574_v40  ;;  %vm11547_vm4 = vcmask 15360   ;;  %v1336_v2 = vadd.f32 %v1320_v10, %v1303_v17  ;;  %v5179_v35 = vadd.f32 %v8601_v42, %v8591_v58  ;;  %v1967_v14 = vpop.xlane.xlu1 %1966  ;;  %v11553_v40 = vld [vmem:[#allocation41_spill] sm:$0xff] }
 0x204   : > { %v8795_v22 = vsel %vm11547_vm4, %v11546_v5, %v1860_v38  ;;  %vm11549_vm15 = vmmov %vm11547_vm4  ;;  %v2637_v26 = vmax.f32 %v2636_v32, %v2570_v29  ;;  %v5259_v19 = vadd.f32 %v8620_v63, %v8608_v54  ;;  %v11551_v38 = vld [vmem:[#allocation40_spill] sm:$0xff]  ;;  %v2582_v10 = vsel %vm11390_vm0, %v11482_v25, -1e+30  ;;  %v1304_v54 = vld [vmem:[#allocation2 + $0x48] sm:$0xff]  ;;  %v8822_v29 = vpop.f32.mrb[30].mxu0 }
 0x205   : > { %v8799_v43 = vsel %vm11549_vm15, %v11548_v3, %v1855_v49  ;;  %v2643_v5 = vmax.f32 %v2642_v7, %v2575_v16  ;;  %vm11552_vm4 = vnez %v11551_v38  ;;  %vm11554_vm15 = vnez %v11553_v40  ;;  %v11557_v63 = vld [vmem:[#allocation43_spill] sm:$0xff]  ;;  %v11559_v32 = vld [vmem:[#allocation44_spill] sm:$0xff]  ;;  %v11561_v17 = vld [vmem:[#allocation45_spill] sm:$0xff]  ;;  %v8840_v38 = vpop.f32.mrb[30].mxu1 }
 0x206   : > { %11550 = vst [vmem:[#allocation80_spill] sm:$0xff] %v8799_v43  ;;  %v2580_v49 = vsel %vm11552_vm4, %v11478_v47, -1e+30  ;;  %v2581_v62 = vsel %vm11554_vm15, %v11480_v24, -1e+30  ;;  %vm11556_vm8 = vcmask 89088   ;;  %v2638_v58 = vmax.f32 %v2637_v26, %v2571_v55 }
 0x207   : > { %1353 = vst.msk [vmem:[#allocation2 + $0x40] sm:$0xff] %vm11556_vm8, %v1336_v2  ;;  %v1182_v42 = vadd.f32 %v5259_v19, %v5179_v35  ;;  %vm11558_vm13 = vnez %v11557_v63  ;;  %v2651_v16 = vmax.f32 %v2580_v49, %v2581_v62  ;;  %2644 = vmax.xlane.f32.xlu1 %v2643_v5  ;;  %vm11560_vm15 = vnez %v11559_v32  ;;  %v11563_v2 = vld [vmem:[#allocation46_spill] sm:$0xff]  ;;  %v1962_v35 = vpop.xlane.xlu0 %1961  ;;  %v11567_v62 = vld [vmem:[#allocation47_spill] sm:$0xff] }
 0x208   : > { %v2583_v7 = vsel %vm11558_vm13, %v11485_v37, -1e+30  ;;  %v2576_v3 = vsel %vm11560_vm15, %v11478_v47, -1e+30  ;;  %vm11562_vm0 = vnez %v11561_v17  ;;  %vm11564_vm8 = vnez %v11563_v2  ;;  %2639 = vmax.xlane.f32.xlu0 %v2638_v58  ;;  %v11565_v19 = vld [vmem:[#allocation82_spill] sm:$0xff]  ;;  %v1977_v17 = vpop.xlane.xlu1 %1976  ;;  %v8847_v58 = vpop.f32.mrb[31].mxu0 }
 0x209   : > { %v2577_v40 = vsel %vm11562_vm0, %v11480_v24, -1e+30  ;;  %v2578_v55 = vsel %vm11564_vm8, %v11482_v25, -1e+30  ;;  %v5182_v26 = vadd.f32 %v8656_v34, %v8629_v4  ;;  %vm11566_vm13 = vcmask 80896  }
 0x20a   : > { %v1321_v5 = vsel %vm11566_vm13, %v1182_v42, %v11565_v19  ;;  %v2652_v49 = vmax.f32 %v2651_v16, %v2582_v10  ;;  %vm11568_vm15 = vnez %v11567_v62  ;;  %v2646_v63 = vmax.f32 %v2576_v3, %v2577_v40  ;;  %v8849_v10 = vpop.f32.mrb[31].mxu1  ;;  %v11570_v19 = vld [vmem:[#allocation103_spill] sm:$0xff]  ;;  %v1305_v3 = vld [vmem:[#allocation2 + $0x50] sm:$0xff] }
 0x20b   : > { %v2579_v32 = vsel %vm11568_vm15, %v11485_v37, -1e+30  ;;  %v1337_v43 = vadd.f32 %v1321_v5, %v1304_v54  ;;  %vm10571_vm0 = vcmask 23552   ;;  %v5262_v2 = vadd.f32 %v8664_v31, %v8646_v23  ;;  %v11574_v31 = vld [vmem:[#allocation49_spill] sm:$0xff] }
 0x20c   : > { %v2588_v34 = vsel %vm11408_vm6, %v11478_v47, -1e+30  ;;  %v2653_v42 = vmax.f32 %v2652_v49, %v2583_v7  ;;  %v2647_v16 = vmax.f32 %v2646_v63, %v2578_v55  ;;  %v8853_v40 = vsel %vm10571_vm0, %v11570_v19, %v1957_v39  ;;  %v1972_v55 = vpop.xlane.xlu0 %1971  ;;  %v1987_v19 = vpop.xlane.xlu1 %1986 }
 0x20d   : > { %11571 = vst [vmem:[#allocation94_spill] sm:$0xff] %v8853_v40  ;;  %v8857_v54 = vsel %vm10571_vm0, %v8495_v50, %v1952_v0  ;;  %vm11573_vm13 = vcmask 89088   ;;  %v1187_v23 = vadd.f32 %v5262_v2, %v5182_v26  ;;  %vm11575_vm6 = vnez %v11574_v31  ;;  %v11582_v40 = vld [vmem:[#allocation54_spill] sm:$0xff] }
 0x20e   : > { %11572 = vst [vmem:[#allocation95_spill] sm:$0xff] %v8857_v54  ;;  %1354 = vst.msk [vmem:[#allocation2 + $0x48] sm:$0xff] %vm11573_vm13, %v1337_v43  ;;  %v2589_v5 = vsel %vm11575_vm6, %v11480_v24, -1e+30  ;;  %v2590_v63 = vsel %vm11416_vm14, %v11482_v25, -1e+30  ;;  %2654 = vmax.xlane.f32.xlu1 %v2653_v42  ;;  %v2648_v50 = vmax.f32 %v2647_v16, %v2579_v32  ;;  %vm11583_vm0 = vnez %v11582_v40 }
 0x20f   : > { %v2591_v39 = vsel %vm11286_vm2, %v11485_v37, -1e+30  ;;  %v2661_v0 = vmax.f32 %v2588_v34, %v2589_v5  ;;  %v2584_v43 = vsel %vm11187_vm12, %v11478_v47, -1e+30  ;;  %v2585_v26 = vsel %vm11289_vm11, %v11480_v24, -1e+30 }
 0x210   : > { %v11580_v54 = vld [vmem:[#allocation85_spill] sm:$0xff]  ;;  %vm11581_vm13 = vcmask 80896   ;;  %v2586_v7 = vsel %vm11583_vm0, %v11482_v25, -1e+30  ;;  %v11584_v42 = vld [vmem:[#allocation55_spill] sm:$0xff]  ;;  %v2656_v34 = vmax.f32 %v2584_v43, %v2585_v26  ;;  %2649 = vmax.xlane.f32.xlu0 %v2648_v50  ;;  %vm11586_vm12 = vcmask 23552  }
 0x211   : > { %v1322_v4 = vsel %vm11581_vm13, %v1187_v23, %v11580_v54  ;;  %vm11585_vm2 = vnez %v11584_v42  ;;  %v2662_v5 = vmax.f32 %v2661_v0, %v2590_v63  ;;  %v8885_v2 = vsel %vm11586_vm12, %v8506_v59, %v1967_v14  ;;  %vm11587_vm11 = vmmov %vm11586_vm12  ;;  %v11590_v14 = vld [vmem:[#allocation57_spill] sm:$0xff]  ;;  %v1306_v50 = vld [vmem:[#allocation2 + $0x58] sm:$0xff] }
 0x212   : > { %v2587_v32 = vsel %vm11585_vm2, %v11485_v37, -1e+30  ;;  %v1338_v16 = vadd.f32 %v1322_v4, %v1305_v3  ;;  %v8889_v49 = vsel %vm11587_vm11, %v8535_v60, %v1962_v35  ;;  %v2657_v54 = vmax.f32 %v2656_v34, %v2586_v7  ;;  %v1982_v3 = vpop.xlane.xlu0 %1981  ;;  %v11592_v35 = vld [vmem:[#allocation58_spill] sm:$0xff]  ;;  %v11597_v26 = vld [vmem:[#allocation61_spill] sm:$0xff] }
 0x213   : > { %v5185_v23 = vadd.f32 %v8675_v53, %v8666_v20  ;;  %v5265_v42 = vadd.f32 %v8703_v12, %v8691_v18  ;;  %vm11588_vm13 = vnez %v11427_v30  ;;  %vm11589_vm2 = vcmask 89088   ;;  %v11594_v20 = vld [vmem:[#allocation59_spill] sm:$0xff]  ;;  %v8908_v53 = vpop.xlane.xlu1 %1996 }
 0x214   : > { %v2596_v4 = vsel %vm11588_vm13, %v11478_v47, -1e+30  ;;  %1355 = vst.msk [vmem:[#allocation2 + $0x50] sm:$0xff] %vm11589_vm2, %v1338_v16  ;;  %v2663_v59 = vmax.f32 %v2662_v5, %v2591_v39  ;;  %vm11591_vm12 = vnez %v11590_v14  ;;  %vm11593_vm11 = vnez %v11592_v35  ;;  %v11599_v16 = vld [vmem:[#allocation62_spill] sm:$0xff] }
 0x215   : > { %v2597_v60 = vsel %vm11591_vm12, %v11480_v24, -1e+30  ;;  %v2598_v63 = vsel %vm11593_vm11, %v11482_v25, -1e+30  ;;  %vm11595_vm0 = vnez %v11594_v20  ;;  %v2658_v12 = vmax.f32 %v2657_v54, %v2587_v32  ;;  %v11603_v54 = vld [vmem:[#allocation84_spill] sm:$0xff] }
 0x216   : > { %v2599_v18 = vsel %vm11595_vm0, %v11485_v37, -1e+30  ;;  %v1192_v7 = vadd.f32 %v5265_v42, %v5185_v23  ;;  %v2671_v0 = vmax.f32 %v2596_v4, %v2597_v60  ;;  %v2592_v43 = vsel %vm11437_vm3, %v11478_v47, -1e+30  ;;  %2664 = vmax.xlane.f32.xlu1 %v2663_v59 }
 0x217   : > { %vm11598_vm2 = vnez %v11597_v26  ;;  %vm11600_vm11 = vnez %v11599_v16  ;;  %vm11601_vm0 = vnez %v11444_v57  ;;  %vm11602_vm12 = vcmask 23552   ;;  %2659 = vmax.xlane.f32.xlu0 %v2658_v12  ;;  %v1992_v16 = vpop.xlane.xlu0 %1991 }
 0x218   : > { %v2593_v34 = vsel %vm11598_vm2, %v11480_v24, -1e+30  ;;  %v2594_v5 = vsel %vm11600_vm11, %v11482_v25, -1e+30  ;;  %v2595_v32 = vsel %vm11601_vm0, %v11485_v37, -1e+30  ;;  %v8924_v42 = vsel %vm11602_vm12, %v8546_v45, %v1977_v17  ;;  %vm11605_vm2 = vmmov %vm11602_vm12  ;;  %v8939_v17 = vpop.xlane.xlu1 %2006 }
 0x219   : > { %vm11604_vm3 = vcmask 80896   ;;  %v2672_v4 = vmax.f32 %v2671_v0, %v2598_v63  ;;  %v2666_v59 = vmax.f32 %v2592_v43, %v2593_v34  ;;  %v8930_v60 = vsel %vm11605_vm2, %v8575_v46, %v1972_v55  ;;  %v11608_v55 = vld [vmem:[#allocation66_spill] sm:$0xff]  ;;  %v11615_v34 = vld [vmem:[#allocation69_spill] sm:$0xff] }
 0x21a   : > { %v1323_v23 = vsel %vm11604_vm3, %v1192_v7, %v11603_v54  ;;  %v5188_v57 = vadd.f32 %v8712_v51, %v8705_v28  ;;  %v5268_v39 = vadd.f32 %v8750_v33, %v8731_v15  ;;  %vm11606_vm12 = vnez %v11305_v44  ;;  %v1307_v15 = vld [vmem:[#allocation2 + $0x60] sm:$0xff]  ;;  %v11611_v51 = vld [vmem:[#allocation67_spill] sm:$0xff]  ;;  %v11617_v54 = vld [vmem:[#allocation70_spill] sm:$0xff] }
 0x21b   : > { %v1339_v26 = vadd.f32 %v1323_v23, %v1306_v50  ;;  %v2604_v45 = vsel %vm11606_vm12, %v11478_v47, -1e+30  ;;  %v2673_v63 = vmax.f32 %v2672_v4, %v2599_v18  ;;  %v2667_v12 = vmax.f32 %v2666_v59, %v2594_v5  ;;  %v11613_v18 = vld [vmem:[#allocation68_spill] sm:$0xff]  ;;  %v2002_v23 = vpop.xlane.xlu0 %2001  ;;  %v11621_v4 = vld [vmem:[#allocation87_spill] sm:$0xff] }
 0x21c   : > { %vm11607_vm3 = vnez %v11448_v9  ;;  %vm11609_vm2 = vnez %v11608_v55  ;;  %vm11610_vm0 = vcmask 89088   ;;  %v1197_v28 = vadd.f32 %v5268_v39, %v5188_v57  ;;  %v11619_v39 = vld [vmem:[#allocation71_spill] sm:$0xff] }
 0x21d   : > { %v2605_v46 = vsel %vm11607_vm3, %v11480_v24, -1e+30  ;;  %v2606_v7 = vsel %vm11609_vm2, %v11482_v25, -1e+30  ;;  %1356 = vst.msk [vmem:[#allocation2 + $0x58] sm:$0xff] %vm11610_vm0, %v1339_v26  ;;  %vm11612_vm11 = vnez %v11611_v51  ;;  %vm11614_vm12 = vnez %v11613_v18  ;;  %2674 = vmax.xlane.f32.xlu1 %v2673_v63  ;;  %v8969_v63 = vpop.xlane.xlu1 %2016 }
 0x21e   : > { %v2607_v33 = vsel %vm11612_vm11, %v11485_v37, -1e+30  ;;  %v2681_v50 = vmax.f32 %v2604_v45, %v2605_v46  ;;  %v2600_v0 = vsel %vm11614_vm12, %v11478_v47, -1e+30  ;;  %v2668_v43 = vmax.f32 %v2667_v12, %v2595_v32 }
 0x21f   : > { %vm11616_vm3 = vnez %v11615_v34  ;;  %vm11618_vm0 = vnez %v11617_v54  ;;  %vm11620_vm2 = vnez %v11619_v39  ;;  %vm11622_vm11 = vcmask 80896  }
 0x220   : > { %v2601_v5 = vsel %vm11616_vm3, %v11480_v24, -1e+30  ;;  %v2602_v57 = vsel %vm11618_vm0, %v11482_v25, -1e+30  ;;  %v2603_v26 = vsel %vm11620_vm2, %v11485_v37, -1e+30  ;;  %v1324_v59 = vsel %vm11622_vm11, %v1197_v28, %v11621_v4  ;;  %2669 = vmax.xlane.f32.xlu0 %v2668_v43 }
 0x221   : > { %v2682_v45 = vmax.f32 %v2681_v50, %v2606_v7  ;;  %v2676_v46 = vmax.f32 %v2600_v0, %v2601_v5  ;;  %vm11623_vm12 = vcmask 23552   ;;  %v1340_v12 = vadd.f32 %v1324_v59, %v1307_v15  ;;  %v11632_v43 = vld [vmem:[#allocation77_spill] sm:$0xff]  ;;  %v9003_v4 = vpop.xlane.xlu1 %2026  ;;  %v11635_v59 = vld [vmem:[#allocation86_spill] sm:$0xff] }
 0x222   : > { %v8967_v32 = vsel %vm11623_vm12, %v8597_v1, %v1987_v19  ;;  %vm11624_vm0 = vmmov %vm11623_vm12  ;;  %v5191_v39 = vadd.f32 %v8770_v6, %v8752_v27  ;;  %v5271_v28 = vadd.f32 %v8779_v21, %v8762_v48  ;;  %vm11625_vm11 = vnez %v10875_v41  ;;  %v8992_v21 = vpop.xlane.xlu0 %2011 }
 0x223   : > { %v8973_v54 = vsel %vm11624_vm0, %v8612_v61, %v1982_v3  ;;  %v2683_v7 = vmax.f32 %v2682_v45, %v2607_v33  ;;  %v2677_v50 = vmax.f32 %v2676_v46, %v2602_v57  ;;  %v2612_v1 = vsel %vm11625_vm11, %v11478_v47, -1e+30  ;;  %v1308_v3 = vld [vmem:[#allocation2 + $0x68] sm:$0xff]  ;;  %v11630_v33 = vld [vmem:[#allocation76_spill] sm:$0xff]  ;;  %v11633_v57 = vld [vmem:[#allocation78_spill] sm:$0xff] }
 0x224   : > { %vm11626_vm12 = vnez %v11040_v56  ;;  %vm11627_vm2 = vcmask 89088   ;;  %v1202_v61 = vadd.f32 %v5271_v28, %v5191_v39  ;;  %vm11628_vm0 = vnez %v10878_v36 }
 0x225   : > { %v2613_v19 = vsel %vm11626_vm12, %v11480_v24, -1e+30  ;;  %1357 = vst.msk [vmem:[#allocation2 + $0x60] sm:$0xff] %vm11627_vm2, %v1340_v12  ;;  %v2614_v27 = vsel %vm11628_vm0, %v11482_v25, -1e+30  ;;  %vm11629_vm3 = vnez %v10880_v13  ;;  %2684 = vmax.xlane.f32.xlu1 %v2683_v7  ;;  %v2678_v15 = vmax.f32 %v2677_v50, %v2603_v26  ;;  %v11638_v7 = vld [vmem:[#allocation105_spill] sm:$0xff] }
 0x226   : > { %v2615_v48 = vsel %vm11629_vm3, %v11485_v37, -1e+30  ;;  %v2691_v6 = vmax.f32 %v2612_v1, %v2613_v19  ;;  %vm11631_vm12 = vnez %v11630_v33  ;;  %v2609_v5 = vsel %vm11469_vm1, %v11480_v24, -1e+30  ;;  %v11640_v50 = vld [vmem:[#allocation73_spill] sm:$0xff]  ;;  %v11663_v26 = vld [vmem:[#allocation22_spill] sm:$0xff] }
 0x227   : > { %v2608_v0 = vsel %vm11631_vm12, %v11478_v47, -1e+30  ;;  %vm11634_vm2 = vnez %v11633_v57  ;;  %vm11636_vm3 = vcmask 80896   ;;  %v2611_v12 = vsel %vm11471_vm5, %v11485_v37, -1e+30  ;;  %2679 = vmax.xlane.f32.xlu0 %v2678_v15  ;;  %v11642_v1 = vld [vmem:[#allocation81_spill] sm:$0xff] }
 0x228   : > { %v2610_v39 = vsel %vm11634_vm2, %v11482_v25, -1e+30  ;;  %v1325_v45 = vsel %vm11636_vm3, %v1202_v61, %v11635_v59  ;;  %v2692_v46 = vmax.f32 %v2691_v6, %v2614_v27  ;;  %v2686_v28 = vmax.f32 %v2608_v0, %v2609_v5  ;;  %v11643_v6 = vld [vmem:[#allocation99_spill] sm:$0xff]  ;;  %v11644_v15 = vld [vmem:[#allocation28_spill] sm:$0xff]  ;;  %v9026_v0 = vpop.xlane.xlu0 %2021  ;;  %v11648_v5 = vld [vmem:[#allocation29_spill] sm:$0xff] }
 0x229   : > { %v1341_v47 = vadd.f32 %v1325_v45, %v1308_v3  ;;  %vm11639_vm1 = vcmask 23552   ;;  %v5194_v19 = vadd.f32 %v8789_v8, %v11642_v1  ;;  %v5274_v37 = vadd.f32 %v8807_v52, %v8801_v11  ;;  %v11650_v59 = vld [vmem:[#allocation102_spill] sm:$0xff] }
 0x22a   : > { %v9013_v24 = vsel %vm11639_vm1, %v11638_v7, %v8908_v53  ;;  %vm11641_vm2 = vmmov %vm11639_vm1  ;;  %v2693_v61 = vmax.f32 %v2692_v46, %v2615_v48  ;;  %v2687_v27 = vmax.f32 %v2686_v28, %v2610_v39  ;;  %vm11645_vm3 = vnez %v11644_v15  ;;  %v11647_v53 = vld [vmem:[#allocation101_spill] sm:$0xff]  ;;  %v11651_v45 = vld [vmem:[#allocation30_spill] sm:$0xff]  ;;  %v9043_v28 = vpop.xlane.xlu1 %2123 }
 0x22b   : > { %v9017_v25 = vsel %vm11641_vm2, %v11640_v50, %v1992_v16  ;;  %v2723_v3 = vsel %vm11645_vm3, %v11643_v6, -1e+30  ;;  %vm11646_vm1 = vcmask 89088   ;;  %vm11649_vm2 = vnez %v11648_v5  ;;  %v11653_v48 = vld [vmem:[#allocation104_spill] sm:$0xff]  ;;  %v11654_v39 = vld [vmem:[#allocation31_spill] sm:$0xff]  ;;  %v11656_v52 = vld [vmem:[#allocation106_spill] sm:$0xff] }
 0x22c   : > { %1358 = vst.msk [vmem:[#allocation2 + $0x68] sm:$0xff] %vm11646_vm1, %v1341_v47  ;;  %v2724_v16 = vsel %vm11649_vm2, %v11647_v53, -1e+30  ;;  %vm11652_vm5 = vnez %v11651_v45  ;;  %vm11655_vm12 = vnez %v11654_v39  ;;  %vm11657_vm0 = vcmask 23552   ;;  %2694 = vmax.xlane.f32.xlu1 %v2693_v61  ;;  %v1309_v50 = vld [vmem:[#allocation2 + $0x70] sm:$0xff]  ;;  %v11659_v5 = vld [vmem:[#allocation20_spill] sm:$0xff] }
 0x22d   : > { %v2725_v8 = vsel %vm11652_vm5, %v11650_v59, -1e+30  ;;  %v2726_v11 = vsel %vm11655_vm12, %v11653_v48, -1e+30  ;;  %v9041_v46 = vsel %vm11657_vm0, %v11656_v52, %v8939_v17  ;;  %v2688_v47 = vmax.f32 %v2687_v27, %v2611_v12  ;;  %v11661_v15 = vld [vmem:[#allocation21_spill] sm:$0xff]  ;;  %v11665_v52 = vld [vmem:[#allocation23_spill] sm:$0xff] }
 0x22e   : > { %11658 = vst [vmem:[#allocation96_spill] sm:$0xff] %v9041_v46  ;;  %v1207_v7 = vadd.f32 %v5274_v37, %v5194_v19  ;;  %v2788_v1 = vmax.f32 %v2723_v3, %v2724_v16  ;;  %vm11660_vm1 = vnez %v11659_v5  ;;  %vm11662_vm5 = vnez %v11661_v15  ;;  %v11667_v12 = vld [vmem:[#allocation72_spill] sm:$0xff]  ;;  %v11669_v27 = vld [vmem:[#allocation89_spill] sm:$0xff]  ;;  %v9065_v5 = vpop.xlane.xlu0 %2118 }
 0x22f   : > { %v2719_v45 = vsel %vm11660_vm1, %v11643_v6, -1e+30  ;;  %v2720_v39 = vsel %vm11662_vm5, %v11647_v53, -1e+30  ;;  %vm11664_vm12 = vnez %v11663_v26  ;;  %vm11666_vm0 = vnez %v11665_v52  ;;  %2689 = vmax.xlane.f32.xlu0 %v2688_v47  ;;  %v11672_v47 = vld [vmem:[#allocation25_spill] sm:$0xff] }
 0x230   : > { %v2721_v17 = vsel %vm11664_vm12, %v11650_v59, -1e+30  ;;  %v2722_v61 = vsel %vm11666_vm0, %v11653_v48, -1e+30  ;;  %vm11668_vm2 = vcmask 23552   ;;  %vm11670_vm3 = vcmask 80896  }
 0x231   : > { %v9059_v19 = vsel %vm11668_vm2, %v11667_v12, %v2002_v23  ;;  %v1326_v37 = vsel %vm11670_vm3, %v1207_v7, %v11669_v27  ;;  %v2789_v3 = vmax.f32 %v2788_v1, %v2725_v8  ;;  %v2783_v16 = vmax.f32 %v2719_v45, %v2720_v39  ;;  %v9075_v7 = vpop.xlane.xlu1 %2133  ;;  %v11676_v39 = vld [vmem:[#allocation27_spill] sm:$0xff]  ;;  %v11679_v27 = vld [vmem:[#allocation16_spill] sm:$0xff] }
 0x232   : > { %v5197_v15 = vadd.f32 %v8847_v58, %v8822_v29  ;;  %v1342_v26 = vadd.f32 %v1326_v37, %v1309_v50  ;;  %v5277_v52 = vadd.f32 %v8849_v10, %v8840_v38  ;;  %v2731_v23 = vsel %vm11504_vm10, %v11643_v6, -1e+30  ;;  %v11674_v29 = vld [vmem:[#allocation26_spill] sm:$0xff]  ;;  %v1310_v50 = vld [vmem:[#allocation2 + $0x78] sm:$0xff] }
 0x233   : > { %vm11673_vm2 = vnez %v11672_v47  ;;  %v2790_v45 = vmax.f32 %v2789_v3, %v2726_v11  ;;  %v2784_v8 = vmax.f32 %v2783_v16, %v2721_v17  ;;  %vm11675_vm3 = vnez %v11674_v29  ;;  %v11682_v16 = vld [vmem:[#allocation18_spill] sm:$0xff]  ;;  %v11684_v29 = vld [vmem:[#allocation19_spill] sm:$0xff] }
 0x234   : > { %v2732_v12 = vsel %vm11673_vm2, %v11647_v53, -1e+30  ;;  %v2733_v58 = vsel %vm11675_vm3, %v11650_v59, -1e+30  ;;  %vm11677_vm0 = vnez %v11676_v39  ;;  %vm11678_vm12 = vcmask 89088   ;;  %v11688_v11 = vld [vmem:[#allocation75_spill] sm:$0xff] }
 0x235   : > { %v2734_v38 = vsel %vm11677_vm0, %v11653_v48, -1e+30  ;;  %1359 = vst.msk [vmem:[#allocation2 + $0x70] sm:$0xff] %vm11678_vm12, %v1342_v26  ;;  %v1212_v10 = vadd.f32 %v5277_v52, %v5197_v15  ;;  %v2798_v1 = vmax.f32 %v2731_v23, %v2732_v12  ;;  %vm11680_vm2 = vnez %v11679_v27  ;;  %2791 = vmax.xlane.f32.xlu1 %v2790_v45  ;;  %v9096_v52 = vpop.xlane.xlu0 %2128  ;;  %v11686_v23 = vld [vmem:[#allocation88_spill] sm:$0xff] }
 0x236   : > { %v2727_v37 = vsel %vm11680_vm2, %v11643_v6, -1e+30  ;;  %v2728_v17 = vsel %vm11517_vm9, %v11647_v53, -1e+30  ;;  %v2785_v3 = vmax.f32 %v2784_v8, %v2722_v61  ;;  %vm11683_vm3 = vnez %v11682_v16  ;;  %v11690_v61 = vld [vmem:[#allocation65_spill] sm:$0xff]  ;;  %v9110_v16 = vpop.xlane.xlu1 %2143 }
 0x237   : > { %v2729_v39 = vsel %vm11683_vm3, %v11650_v59, -1e+30  ;;  %vm11685_vm12 = vnez %v11684_v29  ;;  %v2793_v15 = vmax.f32 %v2727_v37, %v2728_v17  ;;  %vm11687_vm0 = vcmask 80896   ;;  %v11693_v29 = vld [vmem:[#allocation32_spill] sm:$0xff] }
 0x238   : > { %v2730_v26 = vsel %vm11685_vm12, %v11653_v48, -1e+30  ;;  %v1327_v12 = vsel %vm11687_vm0, %v1212_v10, %v11686_v23  ;;  %v2799_v27 = vmax.f32 %v2798_v1, %v2733_v58  ;;  %vm11689_vm9 = vcmask 23552   ;;  %2786 = vmax.xlane.f32.xlu0 %v2785_v3  ;;  %v11695_v58 = vld [vmem:[#allocation33_spill] sm:$0xff] }
 0x239   : > { %v9103_v45 = vsel %vm11689_vm9, %v11688_v11, %v8969_v63  ;;  %vm11691_vm2 = vmmov %vm11689_vm9  ;;  %v1343_v37 = vadd.f32 %v1327_v12, %v1310_v50  ;;  %v2794_v17 = vmax.f32 %v2793_v15, %v2729_v39  ;;  %vm11694_vm12 = vnez %v11693_v29  ;;  %v11697_v11 = vld [vmem:[#allocation34_spill] sm:$0xff]  ;;  %v11702_v50 = vld [vmem:[#allocation36_spill] sm:$0xff] }
 0x23a   : > { %v9108_v8 = vsel %vm11691_vm2, %v11690_v61, %v8992_v21  ;;  %v2739_v10 = vsel %vm11694_vm12, %v11643_v6, -1e+30  ;;  %vm11696_vm0 = vnez %v11695_v58  ;;  %v2800_v63 = vmax.f32 %v2799_v27, %v2734_v38  ;;  %v11699_v21 = vld [vmem:[#allocation35_spill] sm:$0xff]  ;;  %v11704_v12 = vld [vmem:[#allocation37_spill] sm:$0xff]  ;;  %v9134_v58 = vpop.xlane.xlu0 %2138  ;;  %v11711_v27 = vld [vmem:[#allocation80_spill] sm:$0xff] }
 0x23b   : > { %11692 = vst [vmem:[#allocation97_spill] sm:$0xff] %v9108_v8  ;;  %v2740_v1 = vsel %vm11696_vm0, %v11647_v53, -1e+30  ;;  %vm11698_vm9 = vnez %v11697_v11  ;;  %vm11700_vm2 = vnez %v11699_v21  ;;  %vm11701_vm3 = vcmask 89088   ;;  %v11729_v8 = vld [vmem:[#allocation15_spill] sm:$0xff] }
 0x23c   : > { %v2741_v23 = vsel %vm11698_vm9, %v11650_v59, -1e+30  ;;  %v2742_v61 = vsel %vm11700_vm2, %v11653_v48, -1e+30  ;;  %v2808_v3 = vmax.f32 %v2739_v10, %v2740_v1  ;;  %1360 = vst.msk [vmem:[#allocation2 + $0x78] sm:$0xff] %vm11701_vm3, %v1343_v37  ;;  %v2795_v39 = vmax.f32 %v2794_v17, %v2730_v26  ;;  %2801 = vmax.xlane.f32.xlu1 %v2800_v63  ;;  %v11707_v10 = vld [vmem:[#allocation39_spill] sm:$0xff]  ;;  %v9144_v1 = vpop.xlane.xlu1 %2153 }
 0x23d   : > { %vm11703_vm12 = vnez %v11702_v50  ;;  %vm11705_vm0 = vnez %v11704_v12  ;;  %v2737_v11 = vsel %vm11541_vm7, %v11650_v59, -1e+30  ;;  %vm11708_vm3 = vnez %v11707_v10 }
 0x23e   : > { %v2735_v15 = vsel %vm11703_vm12, %v11643_v6, -1e+30  ;;  %v2736_v38 = vsel %vm11705_vm0, %v11647_v53, -1e+30  ;;  %v2809_v21 = vmax.f32 %v2808_v3, %v2741_v23  ;;  %v2738_v26 = vsel %vm11708_vm3, %v11653_v48, -1e+30  ;;  %2796 = vmax.xlane.f32.xlu0 %v2795_v39  ;;  %v9172_v29 = vpop.xlane.xlu0 %2148 }
 0x23f   : > { %v2803_v37 = vmax.f32 %v2735_v15, %v2736_v38  ;;  %vm11709_vm12 = vcmask 23552   ;;  %v2747_v23 = vsel %vm11552_vm4, %v11643_v6, -1e+30  ;;  %v11715_v3 = vld [vmem:[#allocation41_spill] sm:$0xff]  ;;  %v11717_v38 = vld [vmem:[#allocation42_spill] sm:$0xff]  ;;  %v11719_v39 = vld [vmem:[#allocation43_spill] sm:$0xff] }
 0x240   : > { %v9142_v17 = vsel %vm11709_vm12, %v8795_v22, %v9003_v4  ;;  %vm11712_vm7 = vmmov %vm11709_vm12  ;;  %vm11716_vm3 = vnez %v11715_v3  ;;  %vm11718_vm12 = vnez %v11717_v38  ;;  %v2810_v4 = vmax.f32 %v2809_v21, %v2742_v61  ;;  %v11726_v21 = vld [vmem:[#allocation14_spill] sm:$0xff] }
 0x241   : > { %11710 = vst [vmem:[#allocation13_spill] sm:$0xff] %v9142_v17  ;;  %v9149_v12 = vsel %vm11712_vm7, %v11711_v27, %v9026_v0  ;;  %v2748_v15 = vsel %vm11716_vm3, %v11647_v53, -1e+30  ;;  %v2749_v22 = vsel %vm11718_vm12, %v11650_v59, -1e+30  ;;  %v2804_v10 = vmax.f32 %v2803_v37, %v2737_v11  ;;  %v11721_v27 = vld [vmem:[#allocation44_spill] sm:$0xff] }
 0x242   : > { %11713 = vst [vmem:[#allocation91_spill] sm:$0xff] %v9149_v12  ;;  %vm11720_vm0 = vnez %v11719_v39  ;;  %v2818_v0 = vmax.f32 %v2747_v23, %v2748_v15  ;;  %vm11722_vm7 = vnez %v11721_v27  ;;  %v11723_v12 = vld [vmem:[#allocation45_spill] sm:$0xff]  ;;  %v2745_v38 = vsel %vm11564_vm8, %v11650_v59, -1e+30  ;;  %2811 = vmax.xlane.f32.xlu1 %v2810_v4  ;;  %v11727_v17 = vld [vmem:[#allocation48_spill] sm:$0xff] }
 0x243   : > { %v2750_v50 = vsel %vm11720_vm0, %v11653_v48, -1e+30  ;;  %v2743_v63 = vsel %vm11722_vm7, %v11643_v6, -1e+30  ;;  %vm11724_vm4 = vnez %v11723_v12  ;;  %v2805_v37 = vmax.f32 %v2804_v10, %v2738_v26  ;;  %v9181_v12 = vpop.xlane.xlu1 %2163 }
 0x244   : > { %v2744_v3 = vsel %vm11724_vm4, %v11647_v53, -1e+30  ;;  %v5764_v11 = vld [vmem:[%s5989_s28 + $0x21] ss:$8 sm:$0xf]  ;;  %v2819_v23 = vmax.f32 %v2818_v0, %v2749_v22  ;;  %vm10585_vm4 = vcmask 31744   ;;  %vm11728_vm8 = vnez %v11727_v17 }
 0x245   : > { %v9176_v61 = vrot.slane %v5764_v11, %v11726_v21  ;;  %v2746_v15 = vsel %vm11568_vm15, %v11653_v48, -1e+30  ;;  %v2813_v27 = vmax.f32 %v2743_v63, %v2744_v3  ;;  %v2755_v39 = vsel %vm11728_vm8, %v11643_v6, -1e+30  ;;  %2806 = vmax.xlane.f32.xlu0 %v2805_v37  ;;  %v11730_v22 = vld [vmem:[#allocation94_spill] sm:$0xff]  ;;  %v11731_v3 = vld [vmem:[#allocation95_spill] sm:$0xff] }
 0x246   : > { %v2756_v21 = vsel %vm11575_vm6, %v11647_v53, -1e+30  ;;  %v9190_v4 = vrot.slane %v5764_v11, %v11729_v8  ;;  %v2820_v10 = vmax.f32 %v2819_v23, %v2750_v50  ;;  %v9195_v63 = vsel %vm10585_vm4, %v11730_v22, %v9043_v28  ;;  %v11732_v17 = vld [vmem:[#allocation50_spill] sm:$0xff]  ;;  %v11733_v8 = vld [vmem:[#allocation51_spill] sm:$0xff]  ;;  %v9211_v28 = vpop.xlane.xlu0 %2158 }
 0x247   : > { %v2814_v26 = vmax.f32 %v2813_v27, %v2745_v38  ;;  %v9200_v0 = vsel %vm10585_vm4, %v11731_v3, %v9065_v5  ;;  %v2757_v31 = vsel %vm11416_vm14, %v11650_v59, -1e+30  ;;  %vm11734_vm6 = vnez %v11733_v8  ;;  %v11735_v38 = vld [vmem:[#allocation52_spill] sm:$0xff]  ;;  %v11737_v5 = vld [vmem:[#allocation53_spill] sm:$0xff]  ;;  %v11740_v3 = vld [vmem:[#allocation55_spill] sm:$0xff] }
 0x248   : > { %v2758_v11 = vsel %vm11734_vm6, %v11653_v48, -1e+30  ;;  %v2828_v50 = vmax.f32 %v2755_v39, %v2756_v21  ;;  %vm11736_vm8 = vnez %v11735_v38  ;;  %2821 = vmax.xlane.f32.xlu1 %v2820_v10  ;;  %vm11738_vm4 = vnez %v11737_v5  ;;  %v9222_v21 = vpop.xlane.xlu1 %2173 }
 0x249   : > { %v2751_v27 = vsel %vm11736_vm8, %v11643_v6, -1e+30  ;;  %v2815_v37 = vmax.f32 %v2814_v26, %v2746_v15  ;;  %v2752_v23 = vsel %vm11738_vm4, %v11647_v53, -1e+30  ;;  %vm11739_vm14 = vnez %v11582_v40 }
 0x24a   : > { %v2753_v22 = vsel %vm11739_vm14, %v11650_v59, -1e+30  ;;  %vm11741_vm6 = vnez %v11740_v3  ;;  %v2829_v38 = vmax.f32 %v2828_v50, %v2757_v31  ;;  %v2823_v8 = vmax.f32 %v2751_v27, %v2752_v23  ;;  %v11748_v23 = vld [vmem:[#allocation60_spill] sm:$0xff] }
 0x24b   : > { %v2754_v39 = vsel %vm11741_vm6, %v11653_v48, -1e+30  ;;  %vm11742_vm8 = vcmask 31744   ;;  %2816 = vmax.xlane.f32.xlu0 %v2815_v37  ;;  %v2763_v26 = vsel %vm11588_vm13, %v11643_v6, -1e+30  ;;  %vm11744_vm6 = vnez %v11590_v14  ;;  %v9251_v37 = vpop.xlane.xlu0 %2168 }
 0x24c   : > { %v9227_v15 = vsel %vm11742_vm8, %v8885_v2, %v9075_v7  ;;  %vm11743_vm4 = vmmov %vm11742_vm8  ;;  %v2764_v31 = vsel %vm11744_vm6, %v11647_v53, -1e+30  ;;  %vm11745_vm14 = vnez %v11592_v35  ;;  %v2824_v7 = vmax.f32 %v2823_v8, %v2753_v22  ;;  %v11750_v35 = vld [vmem:[#allocation61_spill] sm:$0xff] }
 0x24d   : > { %v9232_v10 = vsel %vm11743_vm4, %v8889_v49, %v9096_v52  ;;  %v2765_v50 = vsel %vm11745_vm14, %v11650_v59, -1e+30  ;;  %vm11746_vm8 = vmmov %vm11743_vm4  ;;  %v2830_v49 = vmax.f32 %v2829_v38, %v2758_v11  ;;  %vm11747_vm4 = vnez %v11594_v20  ;;  %v9267_v11 = vpop.xlane.xlu1 %2183 }
 0x24e   : > { %v9246_v2 = vsel %vm11746_vm8, %v8924_v42, %v9110_v16  ;;  %v2766_v52 = vsel %vm11747_vm4, %v11653_v48, -1e+30  ;;  %v2838_v27 = vmax.f32 %v2763_v26, %v2764_v31  ;;  %vm11749_vm6 = vnez %v11748_v23  ;;  %v11752_v42 = vld [vmem:[#allocation62_spill] sm:$0xff]  ;;  %v11755_v26 = vld [vmem:[#allocation63_spill] sm:$0xff] }
 0x24f   : > { %v2759_v14 = vsel %vm11749_vm6, %v11643_v6, -1e+30  ;;  %vm11751_vm14 = vnez %v11750_v35  ;;  %vm11753_vm8 = vnez %v11752_v42  ;;  %vm11754_vm13 = vcmask 31744   ;;  %2831 = vmax.xlane.f32.xlu1 %v2830_v49  ;;  %v9289_v49 = vpop.xlane.xlu0 %2178 }
 0x250   : > { %v2760_v30 = vsel %vm11751_vm14, %v11647_v53, -1e+30  ;;  %v2761_v16 = vsel %vm11753_vm8, %v11650_v59, -1e+30  ;;  %v9265_v8 = vsel %vm11754_vm13, %v8930_v60, %v9134_v58  ;;  %v2825_v38 = vmax.f32 %v2824_v7, %v2754_v39 }
 0x251   : > { %v2839_v22 = vmax.f32 %v2838_v27, %v2765_v50  ;;  %vm11756_vm6 = vnez %v11755_v26  ;;  %v2833_v35 = vmax.f32 %v2759_v14, %v2760_v30  ;;  %vm11757_vm14 = vnez %v11305_v44 }
 0x252   : > { %v2762_v31 = vsel %vm11756_vm6, %v11653_v48, -1e+30  ;;  %v2771_v42 = vsel %vm11757_vm14, %v11643_v6, -1e+30  ;;  %vm11758_vm8 = vnez %v11448_v9  ;;  %vm11759_vm13 = vnez %v11608_v55  ;;  %2826 = vmax.xlane.f32.xlu0 %v2825_v38 }
 0x253   : > { %v2772_v23 = vsel %vm11758_vm8, %v11647_v53, -1e+30  ;;  %v2773_v60 = vsel %vm11759_vm13, %v11650_v59, -1e+30  ;;  %vm11760_vm4 = vcmask 31744   ;;  %v2840_v39 = vmax.f32 %v2839_v22, %v2766_v52  ;;  %v9305_v52 = vpop.xlane.xlu1 %2193 }
 0x254   : > { %v9284_v58 = vsel %vm11760_vm4, %v8967_v32, %v9144_v1  ;;  %v2834_v30 = vmax.f32 %v2833_v35, %v2761_v16  ;;  %vm11761_vm6 = vnez %v11611_v51  ;;  %v2848_v50 = vmax.f32 %v2771_v42, %v2772_v23  ;;  %v11764_v32 = vld [vmem:[#allocation70_spill] sm:$0xff]  ;;  %v11767_v16 = vld [vmem:[#allocation71_spill] sm:$0xff] }
 0x255   : > { %v2774_v14 = vsel %vm11761_vm6, %v11653_v48, -1e+30  ;;  %vm11762_vm8 = vnez %v11613_v18  ;;  %vm11763_vm13 = vnez %v11615_v34  ;;  %vm11765_vm4 = vnez %v11764_v32  ;;  %2841 = vmax.xlane.f32.xlu1 %v2840_v39 }
 0x256   : > { %v2767_v7 = vsel %vm11762_vm8, %v11643_v6, -1e+30  ;;  %v2768_v27 = vsel %vm11763_vm13, %v11647_v53, -1e+30  ;;  %v2769_v1 = vsel %vm11765_vm4, %v11650_v59, -1e+30  ;;  %v2835_v23 = vmax.f32 %v2834_v30, %v2762_v31 }
 0x257   : > { %vm11766_vm14 = vcmask 31744   ;;  %v2849_v42 = vmax.f32 %v2848_v50, %v2773_v60  ;;  %vm11768_vm8 = vnez %v11767_v16  ;;  %v2843_v22 = vmax.f32 %v2767_v7, %v2768_v27  ;;  %v9327_v50 = vpop.xlane.xlu0 %2188 }
 0x258   : > { %v9303_v35 = vsel %vm11766_vm14, %v8973_v54, %v9172_v29  ;;  %v2770_v38 = vsel %vm11768_vm8, %v11653_v48, -1e+30  ;;  %v2779_v32 = vsel %vm11625_vm11, %v11643_v6, -1e+30  ;;  %vm11769_vm4 = vnez %v11040_v56  ;;  %2836 = vmax.xlane.f32.xlu0 %v2835_v23 }
 0x259   : > { %v2780_v34 = vsel %vm11769_vm4, %v11647_v53, -1e+30  ;;  %vm11770_vm14 = vnez %v10878_v36  ;;  %vm11771_vm13 = vcmask 31744   ;;  %v2850_v31 = vmax.f32 %v2849_v42, %v2774_v14  ;;  %v11780_v42 = vld [vmem:[#allocation28_spill] sm:$0xff] }
 0x25a   : > { %v2781_v54 = vsel %vm11770_vm14, %v11650_v59, -1e+30  ;;  %v9322_v29 = vsel %vm11771_vm13, %v9013_v24, %v9181_v12  ;;  %v2844_v60 = vmax.f32 %v2843_v22, %v2769_v1  ;;  %vm11772_vm8 = vnez %v10880_v13 }
 0x25b   : > { %v2782_v39 = vsel %vm11772_vm8, %v11653_v48, -1e+30  ;;  %v2858_v30 = vmax.f32 %v2779_v32, %v2780_v34  ;;  %vm11773_vm4 = vnez %v11630_v33  ;;  %vm11774_vm14 = vnez %v11632_v43  ;;  %v9343_v34 = vpop.xlane.xlu1 %2290  ;;  %2851 = vmax.xlane.f32.xlu1 %v2850_v31 }
 0x25c   : > { %v2775_v7 = vsel %vm11773_vm4, %v11643_v6, -1e+30  ;;  %v2776_v27 = vsel %vm11774_vm14, %v11647_v53, -1e+30  ;;  %vm11775_vm13 = vnez %v11633_v57  ;;  %vm11776_vm11 = vcmask 31744   ;;  %v11777_v6 = vld [vmem:[#allocation79_spill] sm:$0xff] }
 0x25d   : > { %v2777_v24 = vsel %vm11775_vm13, %v11650_v59, -1e+30  ;;  %v9341_v12 = vsel %vm11776_vm11, %v9017_v25, %v9211_v28  ;;  %v2845_v14 = vmax.f32 %v2844_v60, %v2770_v38  ;;  %v2859_v32 = vmax.f32 %v2858_v30, %v2781_v54  ;;  %v11779_v53 = vld [vmem:[#allocation90_spill] sm:$0xff]  ;;  %v11782_v59 = vld [vmem:[#allocation64_spill] sm:$0xff]  ;;  %v11783_v57 = vld [vmem:[#allocation29_spill] sm:$0xff] }
 0x25e   : > { %vm11778_vm4 = vnez %v11777_v6  ;;  %v2853_v23 = vmax.f32 %v2775_v7, %v2776_v27  ;;  %vm11781_vm14 = vnez %v11780_v42  ;;  %vm11784_vm13 = vnez %v11783_v57  ;;  %v11785_v25 = vld [vmem:[#allocation30_spill] sm:$0xff]  ;;  %v11787_v38 = vld [vmem:[#allocation96_spill] sm:$0xff]  ;;  %v11789_v60 = vld [vmem:[#allocation31_spill] sm:$0xff]  ;;  %v9365_v27 = vpop.xlane.xlu0 %2285 }
 0x25f   : > { %v2778_v1 = vsel %vm11778_vm4, %v11653_v48, -1e+30  ;;  %v2890_v22 = vsel %vm11781_vm14, %v11779_v53, -1e+30  ;;  %v2891_v43 = vsel %vm11784_vm13, %v11782_v59, -1e+30  ;;  %vm11786_vm11 = vnez %v11785_v25  ;;  %2846 = vmax.xlane.f32.xlu0 %v2845_v14 }
 0x260   : > { %v2892_v28 = vsel %vm11786_vm11, %v9176_v61, -1e+30  ;;  %vm11788_vm8 = vcmask 31744   ;;  %v2860_v48 = vmax.f32 %v2859_v32, %v2782_v39  ;;  %v2854_v31 = vmax.f32 %v2853_v23, %v2777_v24  ;;  %v11796_v23 = vld [vmem:[#allocation23_spill] sm:$0xff]  ;;  %v11806_v25 = vld [vmem:[#allocation17_spill] sm:$0xff] }
 0x261   : > { %v9360_v54 = vsel %vm11788_vm8, %v11787_v38, %v9222_v21  ;;  %vm11790_vm4 = vnez %v11789_v60  ;;  %v2955_v7 = vmax.f32 %v2890_v22, %v2891_v43  ;;  %v2886_v42 = vsel %vm11660_vm1, %v11779_v53, -1e+30  ;;  %v11793_v21 = vld [vmem:[#allocation22_spill] sm:$0xff]  ;;  %v9381_v43 = vpop.xlane.xlu1 %2300 }
 0x262   : > { %v2893_v30 = vsel %vm11790_vm4, %v9190_v4, -1e+30  ;;  %v2887_v6 = vsel %vm11662_vm5, %v11782_v59, -1e+30  ;;  %vm11794_vm8 = vnez %v11793_v21  ;;  %vm11795_vm14 = vcmask 31744   ;;  %2861 = vmax.xlane.f32.xlu1 %v2860_v48  ;;  %v11802_v48 = vld [vmem:[#allocation27_spill] sm:$0xff] }
 0x263   : > { %v2888_v39 = vsel %vm11794_vm8, %v9176_v61, -1e+30  ;;  %v9379_v24 = vsel %vm11795_vm14, %v9059_v19, %v9251_v37  ;;  %v2855_v14 = vmax.f32 %v2854_v31, %v2778_v1  ;;  %v2956_v32 = vmax.f32 %v2955_v7, %v2892_v28  ;;  %v11799_v19 = vld [vmem:[#allocation26_spill] sm:$0xff]  ;;  %vm11801_vm13 = vmmov %vm11795_vm14  ;;  %v9403_v7 = vpop.xlane.xlu0 %2295 }
 0x264   : > { %vm11797_vm1 = vnez %v11796_v23  ;;  %v2950_v38 = vmax.f32 %v2886_v42, %v2887_v6  ;;  %v2898_v60 = vsel %vm11504_vm10, %v11779_v53, -1e+30  ;;  %vm11798_vm5 = vnez %v11672_v47  ;;  %v11804_v47 = vld [vmem:[#allocation16_spill] sm:$0xff] }
 0x265   : > { %v2889_v22 = vsel %vm11797_vm1, %v9190_v4, -1e+30  ;;  %v2899_v57 = vsel %vm11798_vm5, %v11782_v59, -1e+30  ;;  %vm11800_vm4 = vnez %v11799_v19  ;;  %v9398_v1 = vsel %vm11801_vm13, %v9103_v45, %v9267_v11  ;;  %2856 = vmax.xlane.f32.xlu0 %v2855_v14  ;;  %v11808_v45 = vld [vmem:[#allocation18_spill] sm:$0xff]  ;;  %vm11811_vm1 = vmmov %vm11801_vm13  ;;  %v9419_v14 = vpop.xlane.xlu1 %2310  ;;  %v11814_v19 = vld [vmem:[#allocation32_spill] sm:$0xff] }
 0x266   : > { %v2900_v37 = vsel %vm11800_vm4, %v9176_v61, -1e+30  ;;  %v2957_v28 = vmax.f32 %v2956_v32, %v2893_v30  ;;  %v2951_v6 = vmax.f32 %v2950_v38, %v2888_v39  ;;  %vm11803_vm11 = vnez %v11802_v48  ;;  %v11810_v30 = vld [vmem:[#allocation97_spill] sm:$0xff]  ;;  %v11812_v38 = vld [vmem:[#allocation19_spill] sm:$0xff] }
 0x267   : > { %v2901_v46 = vsel %vm11803_vm11, %v9190_v4, -1e+30  ;;  %v2965_v31 = vmax.f32 %v2898_v60, %v2899_v57  ;;  %vm11805_vm10 = vnez %v11804_v47  ;;  %vm11807_vm8 = vnez %v11806_v25  ;;  %v11816_v47 = vld [vmem:[#allocation33_spill] sm:$0xff]  ;;  %vm11820_vm11 = vmmov %vm11811_vm1 }
 0x268   : > { %v2894_v42 = vsel %vm11805_vm10, %v11779_v53, -1e+30  ;;  %v2895_v21 = vsel %vm11807_vm8, %v11782_v59, -1e+30  ;;  %vm11809_vm14 = vnez %v11808_v45  ;;  %v9417_v39 = vsel %vm11811_vm1, %v11810_v30, %v9289_v49  ;;  %2958 = vmax.xlane.f32.xlu1 %v2957_v28  ;;  %v9441_v30 = vpop.xlane.xlu0 %2305 }
 0x269   : > { %v2896_v11 = vsel %vm11809_vm14, %v9176_v61, -1e+30  ;;  %v2952_v32 = vmax.f32 %v2951_v6, %v2889_v22  ;;  %v2966_v23 = vmax.f32 %v2965_v31, %v2900_v37  ;;  %vm11813_vm5 = vnez %v11812_v38  ;;  %v11819_v22 = vld [vmem:[#allocation13_spill] sm:$0xff]  ;;  %v11823_v38 = vld [vmem:[#allocation36_spill] sm:$0xff]  ;;  %vm11830_vm14 = vmmov %vm11811_vm1 }
 0x26a   : > { %v2897_v60 = vsel %vm11813_vm5, %v9190_v4, -1e+30  ;;  %v2960_v57 = vmax.f32 %v2894_v42, %v2895_v21  ;;  %vm11815_vm4 = vnez %v11814_v19  ;;  %vm11817_vm13 = vnez %v11816_v47  ;;  %v11825_v47 = vld [vmem:[#allocation37_spill] sm:$0xff] }
 0x26b   : > { %v2906_v48 = vsel %vm11815_vm4, %v11779_v53, -1e+30  ;;  %v2907_v25 = vsel %vm11817_vm13, %v11782_v59, -1e+30  ;;  %v2908_v45 = vsel %vm11698_vm9, %v9176_v61, -1e+30  ;;  %v9436_v37 = vsel %vm11820_vm11, %v11819_v22, %v9305_v52  ;;  %2953 = vmax.xlane.f32.xlu0 %v2952_v32 }
 0x26c   : > { %11821 = vst [vmem:[#allocation92_spill] sm:$0xff] %v9436_v37  ;;  %v2967_v28 = vmax.f32 %v2966_v23, %v2901_v46  ;;  %v2961_v6 = vmax.f32 %v2960_v57, %v2896_v11  ;;  %v2909_v42 = vsel %vm11700_vm2, %v9190_v4, -1e+30  ;;  %v2975_v21 = vmax.f32 %v2906_v48, %v2907_v25  ;;  %v11827_v52 = vld [vmem:[#allocation38_spill] sm:$0xff]  ;;  %v11829_v11 = vld [vmem:[#allocation91_spill] sm:$0xff]  ;;  %v9457_v23 = vpop.xlane.xlu1 %2320 }
 0x26d   : > { %vm11824_vm10 = vnez %v11823_v38  ;;  %vm11826_vm9 = vnez %v11825_v47  ;;  %vm11828_vm8 = vnez %v11827_v52  ;;  %v9455_v32 = vsel %vm11830_vm14, %v11829_v11, %v9327_v50  ;;  %v11832_v25 = vld [vmem:[#allocation39_spill] sm:$0xff]  ;;  %v11834_v38 = vld [vmem:[#allocation40_spill] sm:$0xff]  ;;  %v11842_v50 = vld [vmem:[#allocation46_spill] sm:$0xff] }
 0x26e   : > { %v2902_v19 = vsel %vm11824_vm10, %v11779_v53, -1e+30  ;;  %v2903_v49 = vsel %vm11826_vm9, %v11782_v59, -1e+30  ;;  %v2904_v46 = vsel %vm11828_vm8, %v9176_v61, -1e+30  ;;  %2968 = vmax.xlane.f32.xlu1 %v2967_v28  ;;  %v2962_v57 = vmax.f32 %v2961_v6, %v2897_v60 }
 0x26f   : > { %11831 = vst [vmem:[#allocation93_spill] sm:$0xff] %v9455_v32  ;;  %v2976_v48 = vmax.f32 %v2975_v21, %v2908_v45  ;;  %vm11833_vm2 = vnez %v11832_v25  ;;  %v2970_v31 = vmax.f32 %v2902_v19, %v2903_v49  ;;  %vm11835_vm1 = vnez %v11834_v38  ;;  %v9474_v19 = vpop.xlane.xlu0 %2315  ;;  %v11840_v38 = vld [vmem:[#allocation45_spill] sm:$0xff] }
 0x270   : > { %v2905_v22 = vsel %vm11833_vm2, %v9190_v4, -1e+30  ;;  %v2914_v47 = vsel %vm11835_vm1, %v11779_v53, -1e+30  ;;  %v2915_v37 = vsel %vm11716_vm3, %v11782_v59, -1e+30  ;;  %2963 = vmax.xlane.f32.xlu0 %v2962_v57  ;;  %vm11841_vm3 = vnez %v11840_v38 }
 0x271   : > { %v2916_v11 = vsel %vm11718_vm12, %v9176_v61, -1e+30  ;;  %v2977_v60 = vmax.f32 %v2976_v48, %v2909_v42  ;;  %v2971_v45 = vmax.f32 %v2970_v31, %v2904_v46  ;;  %v2917_v6 = vsel %vm11720_vm0, %v9190_v4, -1e+30  ;;  %v9485_v46 = vpop.xlane.xlu1 %2330  ;;  %v11846_v49 = vld [vmem:[#allocation49_spill] sm:$0xff] }
 0x272   : > { %v2985_v21 = vmax.f32 %v2914_v47, %v2915_v37  ;;  %v2910_v25 = vsel %vm11722_vm7, %v11779_v53, -1e+30  ;;  %v2911_v52 = vsel %vm11841_vm3, %v11782_v59, -1e+30  ;;  %vm11843_vm12 = vnez %v11842_v50  ;;  %v11844_v47 = vld [vmem:[#allocation48_spill] sm:$0xff] }
 0x273   : > { %v2912_v42 = vsel %vm11843_vm12, %v9176_v61, -1e+30  ;;  %2978 = vmax.xlane.f32.xlu1 %v2977_v60  ;;  %v2972_v57 = vmax.f32 %v2971_v45, %v2905_v22  ;;  %v2913_v37 = vsel %vm11568_vm15, %v9190_v4, -1e+30  ;;  %v2980_v31 = vmax.f32 %v2910_v25, %v2911_v52  ;;  %v11849_v45 = vld [vmem:[#allocation51_spill] sm:$0xff]  ;;  %v11851_v25 = vld [vmem:[#allocation52_spill] sm:$0xff] }
 0x274   : > { %v2986_v48 = vmax.f32 %v2985_v21, %v2916_v11  ;;  %vm3114_vm0 = vcmask 39936   ;;  %vm11845_vm7 = vnez %v11844_v47  ;;  %vm11847_vm5 = vnez %v11846_v49  ;;  %v9506_v11 = vpop.xlane.xlu0 %2325 }
 0x275   : > { %v2922_v28 = vsel %vm11845_vm7, %v11779_v53, -1e+30  ;;  %v2923_v38 = vsel %vm11847_vm5, %v11782_v59, -1e+30  ;;  %2973 = vmax.xlane.f32.xlu0 %v2972_v57  ;;  %v2981_v32 = vmax.f32 %v2980_v31, %v2912_v42  ;;  %v9499_v22 = vsel %vm3114_vm0, %v9195_v63, %v9343_v34  ;;  %v9517_v34 = vpop.xlane.xlu1 %2340  ;;  %v11860_v31 = vld [vmem:[#allocation58_spill] sm:$0xff] }
 0x276   : > { %v2987_v50 = vmax.f32 %v2986_v48, %v2917_v6  ;;  %v9504_v62 = vsel %vm3114_vm0, %v9200_v0, %v9365_v27  ;;  %vm11848_vm15 = vnez %v11732_v17  ;;  %vm11850_vm4 = vnez %v11849_v45  ;;  %v11865_v45 = vld [vmem:[#allocation61_spill] sm:$0xff] }
 0x277   : > { %v2924_v60 = vsel %vm11848_vm15, %v9176_v61, -1e+30  ;;  %v2925_v6 = vsel %vm11850_vm4, %v9190_v4, -1e+30  ;;  %v2995_v21 = vmax.f32 %v2922_v28, %v2923_v38  ;;  %vm11852_vm13 = vnez %v11851_v25 }
 0x278   : > { %v2918_v63 = vsel %vm11852_vm13, %v11779_v53, -1e+30  ;;  %2988 = vmax.xlane.f32.xlu1 %v2987_v50  ;;  %v2982_v0 = vmax.f32 %v2981_v32, %v2913_v37  ;;  %vm11853_vm11 = vnez %v11737_v5  ;;  %vm11854_vm10 = vnez %v11582_v40  ;;  %v11856_v40 = vld [vmem:[#allocation56_spill] sm:$0xff] }
 0x279   : > { %v2919_v27 = vsel %vm11853_vm11, %v11782_v59, -1e+30  ;;  %v2920_v17 = vsel %vm11854_vm10, %v9176_v61, -1e+30  ;;  %vm11855_vm9 = vnez %v11740_v3  ;;  %v2996_v42 = vmax.f32 %v2995_v21, %v2924_v60  ;;  %v11858_v3 = vld [vmem:[#allocation57_spill] sm:$0xff]  ;;  %v2351_v38 = vpop.xlane.xlu1 %2350  ;;  %v11863_v50 = vld [vmem:[#allocation60_spill] sm:$0xff] }
 0x27a   : > { %v2921_v52 = vsel %vm11855_vm9, %v9190_v4, -1e+30  ;;  %v2990_v57 = vmax.f32 %v2918_v63, %v2919_v27  ;;  %v9531_v48 = vsel %vm3114_vm0, %v9227_v15, %v9381_v43  ;;  %v9536_v5 = vsel %vm3114_vm0, %v9232_v10, %v9403_v7  ;;  %2983 = vmax.xlane.f32.xlu0 %v2982_v0  ;;  %v2336_v10 = vpop.xlane.xlu0 %2335 }
 0x27b   : > { %vm11857_vm8 = vnez %v11856_v40  ;;  %vm11859_vm14 = vnez %v11858_v3  ;;  %vm11861_vm2 = vnez %v11860_v31  ;;  %v9550_v15 = vsel %vm3114_vm0, %v9246_v2, %v9419_v14  ;;  %v11867_v2 = vld [vmem:[#allocation62_spill] sm:$0xff] }
 0x27c   : > { %v2930_v32 = vsel %vm11857_vm8, %v11779_v53, -1e+30  ;;  %v2931_v37 = vsel %vm11859_vm14, %v11782_v59, -1e+30  ;;  %v2932_v47 = vsel %vm11861_vm2, %v9176_v61, -1e+30  ;;  %v2997_v43 = vmax.f32 %v2996_v42, %v2925_v6 }
 0x27d   : > { %v2991_v7 = vmax.f32 %v2990_v57, %v2920_v17  ;;  %vm11862_vm1 = vnez %v11594_v20  ;;  %v3005_v49 = vmax.f32 %v2930_v32, %v2931_v37  ;;  %vm11864_vm3 = vnez %v11863_v50  ;;  %v2361_v40 = vpop.xlane.xlu1 %2360 }
 0x27e   : > { %v2933_v28 = vsel %vm11862_vm1, %v9190_v4, -1e+30  ;;  %v2926_v60 = vsel %vm11864_vm3, %v11779_v53, -1e+30  ;;  %vm11866_vm12 = vnez %v11865_v45  ;;  %vm11868_vm7 = vnez %v11867_v2  ;;  %2998 = vmax.xlane.f32.xlu1 %v2997_v43  ;;  %v11888_v2 = vld [vmem:[#allocation79_spill] sm:$0xff] }
 0x27f   : > { %v2927_v21 = vsel %vm11866_vm12, %v11782_v59, -1e+30  ;;  %v2928_v14 = vsel %vm11868_vm7, %v9176_v61, -1e+30  ;;  %v9567_v6 = vsel %vm3114_vm0, %v9265_v8, %v9441_v30  ;;  %v2992_v20 = vmax.f32 %v2991_v7, %v2921_v52 }
 0x280   : > { %v3006_v25 = vmax.f32 %v3005_v49, %v2932_v47  ;;  %vm11869_vm5 = vnez %v11755_v26  ;;  %v3000_v0 = vmax.f32 %v2926_v60, %v2927_v21  ;;  %vm3131_vm15 = vcmask 48128   ;;  %v2346_v26 = vpop.xlane.xlu0 %2345 }
 0x281   : > { %v2929_v63 = vsel %vm11869_vm5, %v9190_v4, -1e+30  ;;  %vm11870_vm4 = vnez %v11305_v44  ;;  %vm11871_vm13 = vnez %v11448_v9  ;;  %vm11872_vm11 = vnez %v11608_v55  ;;  %2993 = vmax.xlane.f32.xlu0 %v2992_v20  ;;  %v11874_v55 = vld [vmem:[#allocation69_spill] sm:$0xff]  ;;  %v2458_v50 = vpop.xlane.xlu1 %2457 }
 0x282   : > { %v2938_v27 = vsel %vm11870_vm4, %v11779_v53, -1e+30  ;;  %v2939_v17 = vsel %vm11871_vm13, %v11782_v59, -1e+30  ;;  %v2940_v8 = vsel %vm11872_vm11, %v9176_v61, -1e+30  ;;  %v3122_v30 = vsel %vm3114_vm0, %v9284_v58, %v9457_v23 }
 0x283   : > { %v3007_v52 = vmax.f32 %v3006_v25, %v2933_v28  ;;  %v3001_v42 = vmax.f32 %v3000_v0, %v2928_v14  ;;  %v2941_v44 = vsel %vm11761_vm6, %v9190_v4, -1e+30  ;;  %v3015_v57 = vmax.f32 %v2938_v27, %v2939_v17  ;;  %v11876_v58 = vld [vmem:[#allocation70_spill] sm:$0xff]  ;;  %v11891_v0 = vld [vmem:[#allocation93_spill] sm:$0xff] }
 0x284   : > { %vm11873_vm10 = vnez %v11613_v18  ;;  %vm11875_vm9 = vnez %v11874_v55  ;;  %vm11877_vm8 = vnez %v11876_v58  ;;  %v3121_v3 = vsel %vm3114_vm0, %v9303_v35, %v9474_v19  ;;  %v2356_v7 = vpop.xlane.xlu0 %2355 }
 0x285   : > { %v2934_v9 = vsel %vm11873_vm10, %v11779_v53, -1e+30  ;;  %v2935_v32 = vsel %vm11875_vm9, %v11782_v59, -1e+30  ;;  %v2936_v23 = vsel %vm11877_vm8, %v9176_v61, -1e+30  ;;  %3008 = vmax.xlane.f32.xlu1 %v3007_v52  ;;  %v3002_v51 = vmax.f32 %v3001_v42, %v2929_v63 }
 0x286   : > { %v3016_v37 = vmax.f32 %v3015_v57, %v2940_v8  ;;  %vm11878_vm6 = vnez %v11767_v16  ;;  %v3010_v31 = vmax.f32 %v2934_v9, %v2935_v32  ;;  %vm11879_vm14 = vnez %v10875_v41  ;;  %v11890_v63 = vld [vmem:[#allocation92_spill] sm:$0xff] }
 0x287   : > { %v2937_v18 = vsel %vm11878_vm6, %v9190_v4, -1e+30  ;;  %v2946_v47 = vsel %vm11879_vm14, %v11779_v53, -1e+30  ;;  %vm11880_vm2 = vnez %v11040_v56  ;;  %vm11881_vm1 = vnez %v10878_v36  ;;  %3003 = vmax.xlane.f32.xlu0 %v3002_v51  ;;  %v11884_v36 = vld [vmem:[#allocation77_spill] sm:$0xff] }
 0x288   : > { %v2947_v43 = vsel %vm11880_vm2, %v11782_v59, -1e+30  ;;  %v2948_v35 = vsel %vm11881_vm1, %v9176_v61, -1e+30  ;;  %v3124_v19 = vsel %vm3114_vm0, %v9322_v29, %v9485_v46  ;;  %v3017_v16 = vmax.f32 %v3016_v37, %v2941_v44  ;;  %v11886_v29 = vld [vmem:[#allocation78_spill] sm:$0xff] }
 0x289   : > { %v3011_v28 = vmax.f32 %v3010_v31, %v2936_v23  ;;  %vm11882_vm3 = vnez %v10880_v13  ;;  %v3025_v49 = vmax.f32 %v2946_v47, %v2947_v43  ;;  %vm11883_vm12 = vnez %v11630_v33 }
 0x28a   : > { %v2949_v41 = vsel %vm11882_vm3, %v9190_v4, -1e+30  ;;  %v2942_v56 = vsel %vm11883_vm12, %v11779_v53, -1e+30  ;;  %vm11885_vm7 = vnez %v11884_v36  ;;  %vm11887_vm5 = vnez %v11886_v29  ;;  %3018 = vmax.xlane.f32.xlu1 %v3017_v16 }
 0x28b   : > { %v2943_v60 = vsel %vm11885_vm7, %v11782_v59, -1e+30  ;;  %v2944_v46 = vsel %vm11887_vm5, %v9176_v61, -1e+30  ;;  %v3123_v45 = vsel %vm3114_vm0, %v9341_v12, %v9506_v11  ;;  %v3012_v13 = vmax.f32 %v3011_v28, %v2937_v18  ;;  %v2453_v11 = vpop.xlane.xlu0 %2452 }
 0x28c   : > { %v3026_v21 = vmax.f32 %v3025_v49, %v2948_v35  ;;  %vm11889_vm4 = vnez %v11888_v2  ;;  %v3020_v53 = vmax.f32 %v2942_v56, %v2943_v60  ;;  %v3126_v59 = vsel %vm3114_vm0, %v9360_v54, %v9517_v34  ;;  %v2468_v54 = vpop.xlane.xlu1 %2467 }
 0x28d   : > { %v2945_v33 = vsel %vm11889_vm4, %v9190_v4, -1e+30  ;;  %v3125_v14 = vsel %vm3114_vm0, %v9379_v24, %v2336_v10  ;;  %v3128_v61 = vsel %vm3114_vm0, %v9398_v1, %v2351_v38  ;;  %v3127_v12 = vsel %vm3114_vm0, %v9417_v39, %v2346_v26  ;;  %3013 = vmax.xlane.f32.xlu0 %v3012_v13 }
 0x28e   : > { %v3027_v20 = vmax.f32 %v3026_v21, %v2949_v41  ;;  %v3021_v25 = vmax.f32 %v3020_v53, %v2944_v46  ;;  %v3130_v4 = vsel %vm3114_vm0, %v11890_v63, %v2361_v40  ;;  %v3129_v27 = vsel %vm3114_vm0, %v11891_v0, %v2356_v7 }
 0x28f   : > { %v9647_v24 = vsel %vm3131_vm15, %v9499_v22, %v2458_v50  ;;  %v9651_v1 = vsel %vm3131_vm15, %v9504_v62, %v2453_v11  ;;  %v9655_v39 = vsel %vm3131_vm15, %v9531_v48, %v2468_v54  ;;  %v2463_v10 = vpop.xlane.xlu0 %2462  ;;  %vm3148_vm0 = vcmask 56320   ;;  %v3031_v54 = vld [vmem:[#allocation3 + $0x8] sm:$0xff] }
 0x290   : > { %3028 = vmax.xlane.f32.xlu1 %v3027_v20  ;;  %v3022_v34 = vmax.f32 %v3021_v25, %v2945_v33  ;;  %v9659_v38 = vsel %vm3131_vm15, %v9536_v5, %v2463_v10  ;;  %v2478_v17 = vpop.xlane.xlu1 %2477  ;;  %vm3182_vm13 = vcmask 72704   ;;  %vm11892_vm11 = vcmask 80896  }
 0x291   : > { %v9663_v22 = vsel %vm3131_vm15, %v9550_v15, %v2478_v17  ;;  %vm11893_vm10 = vmmov %vm11892_vm11 }
 0x292   : > { %3023 = vmax.xlane.f32.xlu0 %v3022_v34  ;;  %vm11894_vm9 = vmmov %vm11893_vm10 }
 0x293   : > { %v2473_v8 = vpop.xlane.xlu0 %2472  ;;  %vm11895_vm8 = vmmov %vm11894_vm9 }
 0x294   : > { %v9667_v62 = vsel %vm3131_vm15, %v9567_v6, %v2473_v8  ;;  %v2488_v48 = vpop.xlane.xlu1 %2487  ;;  %vm11896_vm6 = vmmov %vm11895_vm8 }
 0x295   : > { %v9670_v26 = vsel %vm3131_vm15, %v3122_v30, %v2488_v48  ;;  %v3030_v48 = vld [vmem:[#allocation3] sm:$0xff]  ;;  %vm11897_vm14 = vmmov %vm11896_vm6 }
 0x296   : > { %vm11898_vm2 = vmmov %vm11896_vm6 }
 0x297   : > { %v2483_v52 = vpop.xlane.xlu0 %2482  ;;  %vm11899_vm1 = vmmov %vm11898_vm2 }
 0x298   : > { %v9673_v42 = vsel %vm3131_vm15, %v3121_v3, %v2483_v52  ;;  %v2498_v5 = vpop.xlane.xlu1 %2497  ;;  %vm11900_vm3 = vmmov %vm11899_vm1 }
 0x299   : > { %v9676_v44 = vsel %vm3131_vm15, %v3124_v19, %v2498_v5  ;;  %vm11901_vm12 = vmmov %vm11899_vm1 }
 0x29a   : > { %vm11902_vm7 = vmmov %vm11899_vm1 }
 0x29b   : > { %v2493_v57 = vpop.xlane.xlu0 %2492  ;;  %vm11903_vm5 = vmmov %vm11899_vm1 }
 0x29c   : > { %v9679_v15 = vsel %vm3131_vm15, %v3123_v45, %v2493_v57  ;;  %v2508_v40 = vpop.xlane.xlu1 %2507  ;;  %vm11904_vm4 = vmmov %vm11899_vm1 }
 0x29d   : > { %v9682_v6 = vsel %vm3131_vm15, %v3126_v59, %v2508_v40 }
 0x29f   : > { %v2503_v9 = vpop.xlane.xlu0 %2502 }
 0x2a0   : > { %v9685_v30 = vsel %vm3131_vm15, %v3125_v14, %v2503_v9  ;;  %v2518_v55 = vpop.xlane.xlu1 %2517 }
 0x2a1   : > { %v9688_v32 = vsel %vm3131_vm15, %v3128_v61, %v2518_v55 }
 0x2a3   : > { %v2513_v58 = vpop.xlane.xlu0 %2512 }
 0x2a4   : > { %v9691_v23 = vsel %vm3131_vm15, %v3127_v12, %v2513_v58  ;;  %v2528_v3 = vpop.xlane.xlu1 %2527 }
 0x2a5   : > { %v9694_v51 = vsel %vm3131_vm15, %v3130_v4, %v2528_v3 }
 0x2a7   : > { %v2523_v37 = vpop.xlane.xlu0 %2522 }
 0x2a8   : > { %v9697_v18 = vsel %vm3131_vm15, %v3129_v27, %v2523_v37  ;;  %v2625_v31 = vpop.xlane.xlu1 %2624  ;;  %vm3165_vm15 = vcmask 64512  }
 0x2a9   : > { %v3150_v27 = vsel %vm3148_vm0, %v9647_v24, %v2625_v31  ;;  %v3033_v24 = vld [vmem:[#allocation3 + $0x18] sm:$0xff]  ;;  %v3032_v31 = vld [vmem:[#allocation3 + $0x10] sm:$0xff] }
 0x2ab   : > { %v2620_v47 = vpop.xlane.xlu0 %2619 }
 0x2ac   : > { %v2635_v43 = vpop.xlane.xlu1 %2634  ;;  %v3149_v17 = vsel %vm3148_vm0, %v9651_v1, %v2620_v47 }
 0x2ad   : > { %v3152_v40 = vsel %vm3148_vm0, %v9655_v39, %v2635_v43 }
 0x2af   : > { %v2630_v35 = vpop.xlane.xlu0 %2629 }
 0x2b0   : > { %v2645_v19 = vpop.xlane.xlu1 %2644  ;;  %v3151_v1 = vsel %vm3148_vm0, %v9659_v38, %v2630_v35 }
 0x2b3   : > { %v2640_v7 = vpop.xlane.xlu0 %2639 }
 0x2b4   : > { %v9699_v16 = vpop.xlane.xlu1 %2654 }
 0x2b7   : > { %v9701_v28 = vpop.xlane.xlu0 %2649 }
 0x2b8   : > { %v9703_v41 = vpop.xlane.xlu1 %2664 }
 0x2bb   : > { %v9705_v49 = vpop.xlane.xlu0 %2659 }
 0x2bc   : > { %v9707_v50 = vpop.xlane.xlu1 %2674 }
 0x2bf   : > { %v9709_v56 = vpop.xlane.xlu0 %2669 }
 0x2c0   : > { %v9711_v36 = vpop.xlane.xlu1 %2684 }
 0x2c3   : > { %v9713_v60 = vpop.xlane.xlu0 %2679 }
 0x2c4   : > { %v9715_v29 = vpop.xlane.xlu1 %2694 }
 0x2c7   : > { %v9717_v46 = vpop.xlane.xlu0 %2689 }
 0x2c8   : > { %v2792_v45 = vpop.xlane.xlu1 %2791 }
 0x2c9   : > { %v3167_v34 = vsel %vm3165_vm15, %v3150_v27, %v2792_v45  ;;  %v3154_v45 = vsel %vm3148_vm0, %v9663_v22, %v2645_v19 }
 0x2cb   : > { %v2787_v13 = vpop.xlane.xlu0 %2786 }
 0x2cc   : > { %v2802_v21 = vpop.xlane.xlu1 %2801  ;;  %v3166_v52 = vsel %vm3165_vm15, %v3149_v17, %v2787_v13 }
 0x2cd   : > { %v3169_v55 = vsel %vm3165_vm15, %v3152_v40, %v2802_v21  ;;  %v3035_v21 = vld [vmem:[#allocation3 + $0x28] sm:$0xff] }
 0x2cf   : > { %v2797_v2 = vpop.xlane.xlu0 %2796 }
 0x2d0   : > { %v2812_v33 = vpop.xlane.xlu1 %2811  ;;  %v3168_v47 = vsel %vm3165_vm15, %v3151_v1, %v2797_v2  ;;  %v3160_v1 = vsel %vm3148_vm0, %v9682_v6, %v9707_v50 }
 0x2d1   : > { %v3171_v27 = vsel %vm3165_vm15, %v3154_v45, %v2812_v33  ;;  %v3156_v33 = vsel %vm3148_vm0, %v9670_v26, %v9699_v16 }
 0x2d3   : > { %v2807_v53 = vpop.xlane.xlu0 %2806 }
 0x2d5   : > { %v2822_v59 = vpop.xlane.xlu1 %2821 }
 0x2d8   : > { %v2817_v14 = vpop.xlane.xlu0 %2816 }
 0x2dc   : > { %v9719_v61 = vpop.xlane.xlu1 %2831 }
 0x2df   : > { %v9721_v12 = vpop.xlane.xlu0 %2826 }
 0x2e2   : > { %v9723_v11 = vpop.xlane.xlu1 %2841 }
 0x2e5   : > { %v9725_v20 = vpop.xlane.xlu0 %2836 }
 0x2e8   : > { %v9727_v25 = vpop.xlane.xlu1 %2851 }
 0x2ec   : > { %v9729_v63 = vpop.xlane.xlu0 %2846 }
 0x2ef   : > { %v9731_v4 = vpop.xlane.xlu1 %2861 }
 0x2f2   : > { %v9733_v0 = vpop.xlane.xlu0 %2856 }
 0x2f5   : > { %v2959_v10 = vpop.xlane.xlu1 %2958 }
 0x2f6   : > { %v3184_v8 = vsel %vm3182_vm13, %v3167_v34, %v2959_v10  ;;  %v3034_v34 = vld [vmem:[#allocation3 + $0x20] sm:$0xff] }
 0x2f7   : > { %v3200_v5 = vmax.f32 %v3031_v54, %v3184_v8  ;;  %v3153_v54 = vsel %vm3148_vm0, %v9667_v62, %v2640_v7  ;;  %v3037_v8 = vld [vmem:[#allocation3 + $0x38] sm:$0xff] }
 0x2f8   : > { %v2954_v57 = vpop.xlane.xlu0 %2953  ;;  %v3170_v10 = vsel %vm3165_vm15, %v3153_v54, %v2807_v53  ;;  %v3155_v53 = vsel %vm3148_vm0, %v9673_v42, %v9701_v28 }
 0x2f9   : > { %v3183_v9 = vsel %vm3182_vm13, %v3166_v52, %v2954_v57  ;;  %3216 = vst.msk [vmem:[#allocation3 + $0x8] sm:$0xff] %vm11892_vm11, %v3200_v5  ;;  %v3036_v5 = vld [vmem:[#allocation3 + $0x30] sm:$0xff]  ;;  %v3172_v57 = vsel %vm3165_vm15, %v3155_v53, %v2817_v14  ;;  %v3157_v14 = vsel %vm3148_vm0, %v9679_v15, %v9705_v49  ;;  %v3177_v15 = vsel %vm3165_vm15, %v3160_v1, %v9723_v11  ;;  %vm11905_vm11 = vmmov %vm11899_vm1  ;;  %v9839_v53 = vld [vmem:[#allocation2 + $0x28] sm:$0xff] (!%p5012_p0) }
 0x2fa   : > { %v3199_v58 = vmax.f32 %v3030_v48, %v3183_v9  ;;  %v3173_v48 = vsel %vm3165_vm15, %v3156_v33, %v2822_v59  ;;  %v3158_v59 = vsel %vm3148_vm0, %v9676_v44, %v9703_v41  ;;  %v3174_v44 = vsel %vm3165_vm15, %v3157_v14, %v9721_v12  ;;  %v3243_v14 = vld [vmem:[#allocation2 + $0x40] sm:$0xff] (!%p5012_p0) }
 0x2fb   : > { %v2969_v3 = vpop.xlane.xlu1 %2968  ;;  %v3175_v42 = vsel %vm3165_vm15, %v3158_v59, %v9719_v61  ;;  %v3159_v12 = vsel %vm3148_vm0, %v9685_v30, %v9709_v56  ;;  %v3162_v11 = vsel %vm3148_vm0, %v9688_v32, %v9711_v36 }
 0x2fc   : > { %v3186_v37 = vsel %vm3182_vm13, %v3169_v55, %v2969_v3  ;;  %3215 = vst.msk [vmem:[#allocation3] sm:$0xff] %vm11893_vm10, %v3199_v58  ;;  %v3038_v58 = vld [vmem:[#allocation3 + $0x40] sm:$0xff]  ;;  %v3176_v6 = vsel %vm3165_vm15, %v3159_v12, %v9725_v20  ;;  %v3179_v30 = vsel %vm3165_vm15, %v3162_v11, %v9727_v25  ;;  %v3161_v20 = vsel %vm3148_vm0, %v9691_v23, %v9713_v60  ;;  %vm11906_vm10 = vmmov %vm11899_vm1  ;;  %v3248_v12 = vld [vmem:[#allocation2 + $0x68] sm:$0xff] (!%p5012_p0) }
 0x2fd   : > { %v3202_v39 = vmax.f32 %v3033_v24, %v3186_v37  ;;  %v2964_v43 = vpop.xlane.xlu0 %2963  ;;  %v3039_v24 = vld [vmem:[#allocation3 + $0x48] sm:$0xff]  ;;  %v3041_v37 = vld [vmem:[#allocation3 + $0x58] sm:$0xff]  ;;  %v3178_v32 = vsel %vm3165_vm15, %v3161_v20, %v9729_v63  ;;  %v3164_v25 = vsel %vm3148_vm0, %v9694_v51, %v9715_v29  ;;  %v3163_v63 = vsel %vm3148_vm0, %v9697_v18, %v9717_v46  ;;  %v3237_v18 = vld [vmem:[#allocation2 + $0x10] sm:$0xff] (!%p5012_p0) }
 0x2fe   : > { %v3185_v13 = vsel %vm3182_vm13, %v3168_v47, %v2964_v43  ;;  %v3181_v23 = vsel %vm3165_vm15, %v3164_v25, %v9731_v4  ;;  %v3180_v51 = vsel %vm3165_vm15, %v3163_v63, %v9733_v0  ;;  %v3235_v46 = vld [vmem:[#allocation2] sm:$0xff] (!%p5012_p0)  ;;  %vm3253_vm0 = vcmp.gt.f32.partialorder (!%p5012_p0), %v3237_v18, 0.5  ;;  %v3236_v0 = vld [vmem:[#allocation2 + $0x8] sm:$0xff] (!%p5012_p0)  ;;  %v3381_v20 = vld [vmem:[%s5982_s30 + $0x10] sm:$0xff] (!%p5012_p0) }
 0x2ff   : > { %3218 = vst.msk [vmem:[#allocation3 + $0x18] sm:$0xff] %vm11894_vm9, %v3202_v39  ;;  %v3201_v38 = vmax.f32 %v3032_v31, %v3185_v13  ;;  %v3040_v39 = vld [vmem:[#allocation3 + $0x50] sm:$0xff]  ;;  %v3043_v13 = vld [vmem:[#allocation3 + $0x68] sm:$0xff]  ;;  %vm11907_vm9 = vmmov %vm11899_vm1 }
 0x300   : > { %v2979_v35 = vpop.xlane.xlu1 %2978  ;;  %v3387_v25 = vld [vmem:[%s5982_s30 + $0x40] sm:$0xff] (!%p5012_p0)  ;;  %v3393_v63 = vld [vmem:[%s5982_s30 + $0x70] sm:$0xff] (!%p5012_p0) }
 0x301   : > { %v3188_v2 = vsel %vm3182_vm13, %v3171_v27, %v2979_v35  ;;  %3217 = vst.msk [vmem:[#allocation3 + $0x10] sm:$0xff] %vm11895_vm8, %v3201_v38  ;;  %v3042_v38 = vld [vmem:[#allocation3 + $0x60] sm:$0xff]  ;;  %vm3251_vm8 = vcmp.gt.f32.partialorder (!%p5012_p0), %v3235_v46, 0.5 }
 0x302   : > { %v3204_v22 = vmax.f32 %v3035_v21, %v3188_v2  ;;  %v2974_v19 = vpop.xlane.xlu0 %2973  ;;  %v3045_v2 = vld [vmem:[#allocation3 + $0x78] sm:$0xff] }
 0x303   : > { %v3187_v17 = vsel %vm3182_vm13, %v3170_v10, %v2974_v19 }
 0x304   : > { %3220 = vst.msk [vmem:[#allocation3 + $0x28] sm:$0xff] %vm11896_vm6, %v3204_v22  ;;  %v3203_v62 = vmax.f32 %v3034_v34, %v3187_v17  ;;  %v3044_v22 = vld [vmem:[#allocation3 + $0x70] sm:$0xff]  ;;  %v9834_v17 = vld [vmem:[#allocation2 + $0x18] sm:$0xff] (!%p5012_p0) }
 0x305   : > { %v2989_v7 = vpop.xlane.xlu1 %2988  ;;  %vm3254_vm6 = vcmp.gt.f32.partialorder (!%p5012_p0), %v9834_v17, 0.5 }
 0x306   : > { %v3190_v52 = vsel %vm3182_vm13, %v3173_v48, %v2989_v7  ;;  %3219 = vst.msk [vmem:[#allocation3 + $0x20] sm:$0xff] %vm11897_vm14, %v3203_v62  ;;  %v5828_v48 = vmov (!%p5012_p0), 0   ;;  %vm11908_vm14 = vcmask (!%p5012_p0), 80896  }
 0x307   : > { %v3206_v26 = vmax.f32 %v3037_v8, %v3190_v52  ;;  %v2984_v16 = vpop.xlane.xlu0 %2983  ;;  %v5827_v8 = vmov (!%p5012_p0), 10   ;;  %v3285_v62 = vsel (!%p5012_p0), %vm3253_vm0, 1, %v5828_v48  ;;  %v3283_v7 = vsel (!%p5012_p0), %vm3251_vm8, 1, %v5828_v48  ;;  %v3239_v52 = vld [vmem:[#allocation2 + $0x20] sm:$0xff] (!%p5012_p0)  ;;  %5395 = vmatprep.mubr.msk.f32.mxu0 (!%p5012_p0), %vm11908_vm14, %v3235_v46 }
 0x308   : > { %v3189_v40 = vsel %vm3182_vm13, %v3172_v57, %v2984_v16  ;;  %5766 = vset.pattern.permute.xlu1 (!%p5012_p0), %v5827_v8  ;;  %5765 = vset.pattern.permute.xlu0 (!%p5012_p0), %v5827_v8  ;;  %v3241_v16 = vld [vmem:[#allocation2 + $0x30] sm:$0xff] (!%p5012_p0) }
 0x309   : > { %3222 = vst.msk [vmem:[#allocation3 + $0x38] sm:$0xff] %vm11898_vm2, %v3206_v26  ;;  %v3205_v9 = vmax.f32 %v3036_v5, %v3189_v40  ;;  %3306 = vperm.xlu1 (!%p5012_p0), %5766, %v3285_v62   ;;  %3300 = vperm.xlu0 (!%p5012_p0), %5765, %v3283_v7   ;;  %v3286_v5 = vsel (!%p5012_p0), %vm3254_vm6, 1, %v5828_v48  ;;  %vm3256_vm2 = vcmp.gt.f32.partialorder (!%p5012_p0), %v9839_v53, 0.5  ;;  %v9845_v26 = vld [vmem:[#allocation2 + $0x38] sm:$0xff] (!%p5012_p0)  ;;  %v3396_v40 = vld [vmem:[%s10145_s5] sm:$0xff] (!%p5012_p0) }
 0x30a   : > { %v3288_v59 = vsel (!%p5012_p0), %vm3256_vm2, 1, %v5828_v48 }
 0x30b   : > { %v2999_v28 = vpop.xlane.xlu1 %2998  ;;  %3221 = vst.msk [vmem:[#allocation3 + $0x30] sm:$0xff] %vm11899_vm1, %v3205_v9  ;;  %vm3255_vm1 = vcmp.gt.f32.partialorder (!%p5012_p0), %v3239_v52, 0.5 }
 0x30c   : > { %v3192_v55 = vsel %vm3182_vm13, %v3175_v42, %v2999_v28  ;;  %v3287_v9 = vsel (!%p5012_p0), %vm3255_vm1, 1, %v5828_v48  ;;  %v3244_v28 = vld [vmem:[#allocation2 + $0x48] sm:$0xff] (!%p5012_p0) }
 0x30d   : > { %v3208_v41 = vmax.f32 %v3039_v24, %v3192_v55  ;;  %3309 = vperm.xlu1 (!%p5012_p0), %5766, %v3286_v5   ;;  %v3397_v24 = vld [vmem:[%s10145_s5 + $0x8] sm:$0x3] (!%p5012_p0) }
 0x30e   : > { %v2994_v3 = vpop.xlane.xlu0 %2993  ;;  %v5633_v42 = vpack.c.bf16 (!%p5012_p0), %v3397_v24, %v3396_v40  ;;  %v3272_v5 = vld [vmem:[#allocation3 + $0x28] sm:$0xff] (!%p5012_p0) }
 0x30f   : > { %v3191_v61 = vsel %vm3182_vm13, %v3174_v44, %v2994_v3  ;;  %3224 = vst.msk [vmem:[#allocation3 + $0x48] sm:$0xff] %vm11900_vm3, %v3208_v41  ;;  %vm3446_vm3 = vcmask (!%p5012_p0), 1041408   ;;  %v3788_v44 = vld [vmem:[%s10146_s6] sm:$0xff] (!%p5012_p0)  ;;  %v3789_v41 = vld [vmem:[%s10146_s6 + $0x8] sm:$0x3] (!%p5012_p0) }
 0x310   : > { %v3207_v49 = vmax.f32 %v3038_v58, %v3191_v61  ;;  %v3395_v58 = vld [vmem:[%s10144_s4] sm:$0xff] (!%p5012_p0)  ;;  %v3246_v61 = vld [vmem:[#allocation2 + $0x58] sm:$0xff] (!%p5012_p0) }
 0x311   : > { %3315 = vperm.xlu1 (!%p5012_p0), %5766, %v3288_v59   ;;  %vm3262_vm0 = vcmp.gt.f32.partialorder (!%p5012_p0), %v3246_v61, 0.5 }
 0x312   : > { %v3009_v31 = vpop.xlane.xlu1 %3008  ;;  %3223 = vst.msk [vmem:[#allocation3 + $0x40] sm:$0xff] %vm11901_vm12, %v3207_v49  ;;  %vm3258_vm12 = vcmp.gt.f32.partialorder (!%p5012_p0), %v9845_v26, 0.5 }
 0x313   : > { %v3194_v47 = vsel %vm3182_vm13, %v3177_v15, %v3009_v31  ;;  %v3290_v3 = vsel (!%p5012_p0), %vm3258_vm12, 1, %v5828_v48  ;;  %v5639_v15 = vpack.c.bf16 (!%p5012_p0), %v3789_v41, %v3788_v44 }
 0x314   : > { %v3210_v50 = vmax.f32 %v3041_v37, %v3194_v47  ;;  %v3004_v43 = vpop.xlane.xlu0 %3003  ;;  %v3245_v37 = vld [vmem:[#allocation2 + $0x50] sm:$0xff] (!%p5012_p0)  ;;  %v3247_v47 = vld [vmem:[#allocation2 + $0x60] sm:$0xff] (!%p5012_p0) }
 0x315   : > { %v3193_v45 = vsel %vm3182_vm13, %v3176_v6, %v3004_v43  ;;  %3321 = vperm.xlu1 (!%p5012_p0), %5766, %v3290_v3   ;;  %vm3261_vm8 = vcmp.gt.f32.partialorder (!%p5012_p0), %v3245_v37, 0.5  ;;  %vm3263_vm2 = vcmp.gt.f32.partialorder (!%p5012_p0), %v3247_v47, 0.5  ;;  %v3249_v43 = vld [vmem:[#allocation2 + $0x70] sm:$0xff] (!%p5012_p0) }
 0x316   : > { %3226 = vst.msk [vmem:[#allocation3 + $0x58] sm:$0xff] %vm11902_vm7, %v3210_v50  ;;  %v3209_v56 = vmax.f32 %v3040_v39, %v3193_v45  ;;  %vm3257_vm7 = vcmp.gt.f32.partialorder (!%p5012_p0), %v3241_v16, 0.5  ;;  %v3294_v39 = vsel (!%p5012_p0), %vm3262_vm0, 1, %v5828_v48  ;;  %v3293_v6 = vsel (!%p5012_p0), %vm3261_vm8, 1, %v5828_v48  ;;  %v3250_v50 = vld [vmem:[#allocation2 + $0x78] sm:$0xff] (!%p5012_p0) }
 0x317   : > { %v3019_v21 = vpop.xlane.xlu1 %3018  ;;  %v3289_v1 = vsel (!%p5012_p0), %vm3257_vm7, 1, %v5828_v48  ;;  %v3295_v45 = vsel (!%p5012_p0), %vm3263_vm2, 1, %v5828_v48  ;;  %vm3266_vm12 = vcmp.gt.f32.partialorder (!%p5012_p0), %v3250_v50, 0.5  ;;  %vm3265_vm7 = vcmp.gt.f32.partialorder (!%p5012_p0), %v3249_v43, 0.5 }
 0x318   : > { %v3196_v27 = vsel %vm3182_vm13, %v3179_v30, %v3019_v21  ;;  %3225 = vst.msk [vmem:[#allocation3 + $0x50] sm:$0xff] %vm11903_vm5, %v3209_v56  ;;  %vm5829_vm5 = vmmov (!%p5012_p0), 1   ;;  %v3297_v30 = vsel (!%p5012_p0), %vm3265_vm7, 1, %v5828_v48  ;;  %v3379_v56 = vld [vmem:[%s5982_s30] sm:$0xff] (!%p5012_p0)  ;;  %v3380_v21 = vld [vmem:[%s5982_s30 + $0x8] sm:$0xff] (!%p5012_p0) }
 0x319   : > { %v3212_v36 = vmax.f32 %v3043_v13, %v3196_v27  ;;  %v3298_v13 = vsel (!%p5012_p0), %vm3266_vm12, 1, %v5828_v48  ;;  %v3382_v27 = vld [vmem:[%s5982_s30 + $0x18] sm:$0xff] (!%p5012_p0)  ;;  %v3275_v24 = vld [vmem:[#allocation3 + $0x40] sm:$0xff] (!%p5012_p0) }
 0x31a   : > { %v3014_v35 = vpop.xlane.xlu0 %3013 }
 0x31b   : > { %v3195_v54 = vsel %vm3182_vm13, %v3178_v32, %v3014_v35  ;;  %3228 = vst.msk [vmem:[#allocation3 + $0x68] sm:$0xff] %vm11904_vm4, %v3212_v36  ;;  %vm9856_vm4 = vmpackc.low (!%p5012_p0), %vm3446_vm3, %vm5829_vm5  ;;  %v3384_v32 = vld [vmem:[%s5982_s30 + $0x28] sm:$0xff] (!%p5012_p0)  ;;  %v3385_v36 = vld [vmem:[%s5982_s30 + $0x30] sm:$0xff] (!%p5012_p0) }
 0x31c   : > { %v3211_v60 = vmax.f32 %v3042_v38, %v3195_v54  ;;  %5635 = vmatprep.subr.msk.bf16.mxu0 (!%p5012_p0), %vm9856_vm4, %v5633_v42  ;;  %v3383_v38 = vld [vmem:[%s5982_s30 + $0x20] sm:$0xff] (!%p5012_p0)  ;;  %v3386_v35 = vld [vmem:[%s5982_s30 + $0x38] sm:$0xff] (!%p5012_p0)  ;;  %v3388_v54 = vld [vmem:[%s5982_s30 + $0x48] sm:$0xff] (!%p5012_p0) }
 0x31d   : > { %v3029_v34 = vpop.xlane.xlu1 %3028  ;;  %3234 = sbr.rel (%p5012_p0) target bundleno = 1836 (0x72c), region = 107  ;;  %5638 = vmatpush3.bf16.msk.msra.mxu0 (!%p5012_p0), %vm9856_vm4, %v5633_v42 }
 0x31e   : > { %v3198_v10 = vsel %vm3182_vm13, %v3181_v23, %v3029_v34  ;;  %3227 = vst.msk [vmem:[#allocation3 + $0x60] sm:$0xff] %vm11905_vm11, %v3211_v60  ;;  %vm3260_vm11 = vcmp.gt.f32.partialorder (!%p5012_p0), %v3244_v28, 0.5  ;;  %5419 = vmatprep.subr.mxu0 (!%p5012_p0), %v3395_v58  ;;  %v3390_v23 = vld [vmem:[%s5982_s30 + $0x58] sm:$0xff] (!%p5012_p0)  ;;  %v3391_v60 = vld [vmem:[%s5982_s30 + $0x60] sm:$0xff] (!%p5012_p0)  ;;  %v3392_v34 = vld [vmem:[%s5982_s30 + $0x68] sm:$0xff] (!%p5012_p0) }
 0x31f   : > { %v3214_v29 = vmax.f32 %v3045_v2, %v3198_v10  ;;  %v3024_v19 = vpop.xlane.xlu0 %3023  ;;  %v3292_v49 = vsel (!%p5012_p0), %vm3260_vm11, 1, %v5828_v48  ;;  %v3389_v2 = vld [vmem:[%s5982_s30 + $0x50] sm:$0xff] (!%p5012_p0)  ;;  %v3394_v10 = vld [vmem:[%s5982_s30 + $0x78] sm:$0xff] (!%p5012_p0) }
 0x320   : > { %v3197_v4 = vsel %vm3182_vm13, %v3180_v51, %v3024_v19  ;;  %vm3252_vm13 = vcmp.gt.f32.partialorder (!%p5012_p0), %v3236_v0, 0.5  ;;  %3327 = vperm.xlu1 (!%p5012_p0), %5766, %v3292_v49   ;;  %v3269_v19 = vld [vmem:[#allocation3 + $0x10] sm:$0xff] (!%p5012_p0) }
 0x321   : > { %3230 = vst.msk [vmem:[#allocation3 + $0x78] sm:$0xff] %vm11906_vm10, %v3214_v29  ;;  %v3213_v33 = vmax.f32 %v3044_v22, %v3197_v4  ;;  %v3284_v57 = vsel (!%p5012_p0), %vm3252_vm13, 1, %v5828_v48  ;;  %vm3259_vm10 = vcmp.gt.f32.partialorder (!%p5012_p0), %v3243_v14, 0.5  ;;  %v3267_v22 = vld [vmem:[#allocation3] sm:$0xff] (!%p5012_p0)  ;;  %v3277_v44 = vld [vmem:[#allocation3 + $0x50] sm:$0xff] (!%p5012_p0) }
 0x322   : > { %3303 = vperm.xlu0 (!%p5012_p0), %5765, %v3284_v57   ;;  %v3291_v31 = vsel (!%p5012_p0), %vm3259_vm10, 1, %v5828_v48  ;;  %v3273_v57 = vld [vmem:[#allocation3 + $0x30] sm:$0xff] (!%p5012_p0) }
 0x323   : > { %3229 = vst.msk [vmem:[#allocation3 + $0x70] sm:$0xff] %vm11907_vm9, %v3213_v33  ;;  %vm11911_vm9 = vmmov (!%p5012_p0), %vm11908_vm14  ;;  %vm3264_vm14 = vcmp.gt.f32.partialorder (!%p5012_p0), %v3248_v12, 0.5  ;;  %v3268_v33 = vld [vmem:[#allocation3 + $0x8] sm:$0xff] (!%p5012_p0) }
 0x324   : > { %5396 = vmatmul.mubr.msk.f32.vlgmr.msra.gmra.mrb[0].mxu0 %vm11911_vm9, %v3236_v0  ;;  %vm11912_vm6 = vmmov %vm11911_vm9  ;;  %3333 = vperm.xlu1 %5766, %v3294_v39   ;;  %v3296_v11 = vsel %vm3264_vm14, 1, %v5828_v48  ;;  %v3270_v0 = vld [vmem:[#allocation3 + $0x18] sm:$0xff]  ;;  %v3271_v48 = vld [vmem:[#allocation3 + $0x20] sm:$0xff] }
 0x325   : > { %5420 = vmatpush3.msra.mxu0 %v3395_v58  ;;  %5398 = vmatprep.mubr.msk.f32.mxu0 %vm11912_vm6, %v3237_v18  ;;  %vm11913_vm13 = vmmov %vm11912_vm6  ;;  %v3276_v58 = vld [vmem:[#allocation3 + $0x48] sm:$0xff] }
 0x326   : > { %3312 = vperm.xlu0 %5765, %v3287_v9   ;;  %5641 = vmatprep.subr.msk.bf16.mxu0 %vm9856_vm4, %v5639_v15  ;;  %vm11914_vm1 = vmmov %vm11912_vm6  ;;  %v3274_v9 = vld [vmem:[#allocation3 + $0x38] sm:$0xff]  ;;  %v3280_v39 = vld [vmem:[#allocation3 + $0x68] sm:$0xff] }
 0x327   : > { %vm11915_vm3 = vmmov %vm11914_vm1 }
 0x328   : > { %5399 = vmatmul.mubr.msk.f32.gmra.mrb[2].mxu0 %vm11913_vm13, %v9834_v17  ;;  %vm11916_vm5 = vmmov %vm11914_vm1  ;;  %3339 = vperm.xlu1 %5766, %v3296_v11  }
 0x329   : > { %5401 = vmatprep.mubr.msk.f32.mxu0 %vm11914_vm1, %v3239_v52  ;;  %vm11917_vm11 = vmmov %vm11914_vm1 }
 0x32a   : > { %3318 = vperm.xlu0 %5765, %v3289_v1   ;;  %vm11918_vm10 = vmmov %vm11914_vm1 }
 0x32b   : > { %vm11919_vm9 = vmmov %vm11914_vm1 }
 0x32c   : > { %5402 = vmatmul.mubr.msk.f32.gmra.mrb[4].mxu0 %vm11915_vm3, %v9839_v53  ;;  %3345 = vperm.xlu1 %5766, %v3298_v13   ;;  %vm11920_vm0 = vmmov %vm11914_vm1  ;;  %v3282_v13 = vld [vmem:[#allocation3 + $0x78] sm:$0xff] }
 0x32d   : > { %5404 = vmatprep.mubr.msk.f32.mxu0 %vm11916_vm5, %v3241_v16  ;;  %vm11921_vm8 = vmmov %vm11920_vm0 }
 0x32e   : > { %3324 = vperm.xlu0 %5765, %v3291_v31   ;;  %vm11922_vm6 = vmmov %vm11920_vm0 }
 0x32f   : > { %vm11923_vm13 = vmmov %vm11920_vm0 }
 0x330   : > { %5405 = vmatmul.mubr.msk.f32.gmra.mrb[6].mxu0 %vm11917_vm11, %v9845_v26  ;;  %vm11924_vm14 = vmmov %vm11920_vm0 }
 0x331   : > { %5407 = vmatprep.mubr.msk.f32.mxu0 %vm11918_vm10, %v3243_v14  ;;  %vm11925_vm2 = vmmov %vm11920_vm0 }
 0x332   : > { %3330 = vperm.xlu0 %5765, %v3293_v6   ;;  %vm11926_vm3 = vmmov %vm11920_vm0  ;;  %v3281_v6 = vld [vmem:[#allocation3 + $0x70] sm:$0xff] }
 0x333   : > { %vm11927_vm5 = vmmov %vm11920_vm0 }
 0x334   : > { %5408 = vmatmul.mubr.msk.f32.gmra.mrb[8].mxu0 %vm11919_vm9, %v3244_v28  ;;  %vm11929_vm9 = vmmov %vm11920_vm0 }
 0x335   : > { %5410 = vmatprep.mubr.msk.f32.mxu0 %vm11920_vm0, %v3245_v37  ;;  %v3278_v37 = vld [vmem:[#allocation3 + $0x58] sm:$0xff] }
 0x336   : > { %3336 = vperm.xlu0 %5765, %v3295_v45  }
 0x338   : > { %5411 = vmatmul.mubr.msk.f32.gmra.mrb[10].mxu0 %vm11921_vm8, %v3246_v61 }
 0x339   : > { %5413 = vmatprep.mubr.msk.f32.mxu0 %vm11922_vm6, %v3247_v47 }
 0x33a   : > { %3342 = vperm.xlu0 %5765, %v3297_v30  }
 0x33c   : > { %5414 = vmatmul.mubr.msk.f32.gmra.mrb[12].mxu0 %vm11923_vm13, %v3248_v12  ;;  %vm11930_vm13 = vmmov %vm11920_vm0 }
 0x33d   : > { %5416 = vmatprep.mubr.msk.f32.mxu0 %vm11924_vm14, %v3249_v43  ;;  %vm11931_vm14 = vmmov %vm11920_vm0 }
 0x340   : > { %5417 = vmatmul.mubr.msk.f32.gmra.mrb[14].mxu0 %vm11925_vm2, %v3250_v50 }
 0x341   : > { %5421 = vmatprep.mubr.msk.f32.mxu0 %vm3165_vm15, %v3379_v56  ;;  %v4057_v56 = vld [vmem:[%s10148_s8] sm:$0xff] }
 0x344   : > { %5422 = vmatmul.mubr.msk.f32.vlgmr.msra.gmra.mrb[0].mxu0 %vm3165_vm15, %v3380_v21  ;;  %v4058_v21 = vld [vmem:[%s10148_s8 + $0x8] sm:$0xff] }
 0x345   : > { %5644 = vmatpush3.bf16.msk.msra.mxu0 %vm9856_vm4, %v5639_v15  ;;  %5424 = vmatprep.mubr.msk.f32.mxu0 %vm3165_vm15, %v3381_v20  ;;  %v3279_v15 = vld [vmem:[#allocation3 + $0x60] sm:$0xff]  ;;  %v5645_v20 = vpack.c.bf16 %v4058_v21, %v4057_v56 }
 0x347   : > { %5646 = vmatprep.subr.bf16.mxu1 %v5645_v20 }
 0x348   : > { %5425 = vmatmul.mubr.msk.f32.gmra.mrb[2].mxu0 %vm3165_vm15, %v3382_v27  ;;  %5648 = vmatpush3.bf16.msra.mxu1 %v5645_v20  ;;  %v4059_v27 = vld [vmem:[%s10148_s8 + $0x10] sm:$0xff] }
 0x349   : > { %5427 = vmatprep.mubr.msk.f32.mxu0 %vm3165_vm15, %v3383_v38  ;;  %v4060_v38 = vld [vmem:[%s10148_s8 + $0x18] sm:$0xff] }
 0x34c   : > { %5428 = vmatmul.mubr.msk.f32.gmra.mrb[4].mxu0 %vm3165_vm15, %v3384_v32  ;;  %v5649_v32 = vpack.c.bf16 %v4060_v38, %v4059_v27 }
 0x34d   : > { %5430 = vmatprep.mubr.msk.f32.mxu0 %vm3165_vm15, %v3385_v36  ;;  %v4294_v36 = vld [vmem:[%s10150_s10] sm:$0xff] }
 0x34e   : > { %5650 = vmatprep.subr.bf16.mxu1 %v5649_v32 }
 0x34f   : > { %5652 = vmatpush3.bf16.msra.mxu1 %v5649_v32 }
 0x350   : > { %5431 = vmatmul.mubr.msk.f32.gmra.mrb[6].mxu0 %vm3165_vm15, %v3386_v35  ;;  %v4295_v35 = vld [vmem:[%s10150_s10 + $0x8] sm:$0xff] }
 0x351   : > { %5433 = vmatprep.mubr.msk.f32.mxu0 %vm3165_vm15, %v3387_v25  ;;  %v5653_v25 = vpack.c.bf16 %v4295_v35, %v4294_v36 }
 0x353   : > { %5654 = vmatprep.subr.bf16.mxu1 %v5653_v25 }
 0x354   : > { %5434 = vmatmul.mubr.msk.f32.gmra.mrb[8].mxu0 %vm3165_vm15, %v3388_v54  ;;  %v9974_v54 = vld [vmem:[%s10147_s7] ss:$0 sm:$0xff] }
 0x355   : > { %5436 = vmatprep.mubr.msk.f32.mxu0 %vm3165_vm15, %v3389_v2 }
 0x358   : > { %5437 = vmatmul.mubr.msk.f32.gmra.mrb[10].mxu0 %vm3165_vm15, %v3390_v23 }
 0x359   : > { %5439 = vmatprep.mubr.msk.f32.mxu0 %vm3165_vm15, %v3391_v60 }
 0x35c   : > { %5440 = vmatmul.mubr.msk.f32.gmra.mrb[12].mxu0 %vm3165_vm15, %v3392_v34 }
 0x35d   : > { %5442 = vmatprep.mubr.msk.f32.mxu0 %vm3165_vm15, %v3393_v63 }
 0x360   : > { %5443 = vmatmul.mubr.msk.f32.gmra.mrb[14].mxu0 %vm3165_vm15, %v3394_v10  ;;  %vm11928_vm15 = vmmov %vm11920_vm0 }
 0x388   : > { %v3307_v51 = vpop.permute.xlu1 %3306  ;;  %v3301_v29 = vpop.permute.xlu0 %3300 }
 0x389   : > { %vm3347_vm4 = vcmp.eq.s32.totalorder %v3301_v29, 1  ;;  %vm3349_vm1 = vcmp.eq.s32.totalorder %v3307_v51, 1  ;;  %v4296_v51 = vld [vmem:[%s10150_s10 + $0x10] sm:$0xff]  ;;  %v4297_v29 = vld [vmem:[%s10150_s10 + $0x18] sm:$0xff] }
 0x38a   : > { %v3363_v4 = vsel %vm3347_vm4, %v3267_v22, 0.0  ;;  %v3365_v17 = vsel %vm3349_vm1, %v3269_v19, 0.0  ;;  %vm11932_vm1 = vmmov %vm11920_vm0 }
 0x38b   : > { %5449 = vmatprep.mubr.msk.f32.mxu0 %vm11926_vm3, %v3363_v4  ;;  %vm11933_vm3 = vmmov %vm11920_vm0 }
 0x38c   : > { %v3310_v18 = vpop.permute.xlu1 %3309 }
 0x38d   : > { %vm3350_vm7 = vcmp.eq.s32.totalorder %v3310_v18, 1 }
 0x38e   : > { %v3366_v53 = vsel %vm3350_vm7, %v3270_v0, 0.0 }
 0x390   : > { %v3316_v62 = vpop.permute.xlu1 %3315 }
 0x391   : > { %vm3352_vm10 = vcmp.eq.s32.totalorder %v3316_v62, 1 }
 0x392   : > { %v3368_v40 = vsel %vm3352_vm10, %v3272_v5, 0.0 }
 0x394   : > { %v3322_v26 = vpop.permute.xlu1 %3321 }
 0x395   : > { %vm3354_vm6 = vcmp.eq.s32.totalorder %v3322_v26, 1 }
 0x396   : > { %v3370_v14 = vsel %vm3354_vm6, %v3274_v9, 0.0 }
 0x39f   : > { %v3328_v42 = vpop.permute.xlu1 %3327 }
 0x3a0   : > { %vm3356_vm4 = vcmp.eq.s32.totalorder %v3328_v42, 1 }
 0x3a1   : > { %v3304_v46 = vpop.permute.xlu0 %3303  ;;  %v3372_v1 = vsel %vm3356_vm4, %v3276_v58, 0.0  ;;  %vm4068_vm4 = vcmask 261120  }
 0x3a2   : > { %vm3348_vm12 = vcmp.eq.s32.totalorder %v3304_v46, 1 }
 0x3a3   : > { %v3364_v8 = vsel %vm3348_vm12, %v3268_v33, 0.0  ;;  %v3334_v41 = vpop.permute.xlu1 %3333 }
 0x3a4   : > { %5450 = vmatmul.mubr.msk.f32.vlgmr.msra.gmra.mrb[0].mxu0 %vm11927_vm5, %v3364_v8  ;;  %vm3358_vm7 = vcmp.eq.s32.totalorder %v3334_v41, 1  ;;  %vm11934_vm5 = vmmov %vm11920_vm0  ;;  %v5657_v8 = vpack.c.bf16 %v4297_v29, %v4296_v51 }
 0x3a5   : > { %5452 = vmatprep.mubr.msk.f32.mxu0 %vm11928_vm15, %v3365_v17  ;;  %v3313_v7 = vpop.permute.xlu0 %3312  ;;  %vm11935_vm15 = vmmov %vm11920_vm0  ;;  %v3374_v12 = vsel %vm3358_vm7, %v3278_v37, 0.0 }
 0x3a6   : > { %vm3351_vm11 = vcmp.eq.s32.totalorder %v3313_v7, 1 }
 0x3a7   : > { %v3367_v52 = vsel %vm3351_vm11, %v3271_v48, 0.0  ;;  %v3340_v49 = vpop.permute.xlu1 %3339 }
 0x3a8   : > { %5453 = vmatmul.mubr.msk.f32.gmra.mrb[2].mxu0 %vm11929_vm9, %v3366_v53  ;;  %vm3360_vm10 = vcmp.eq.s32.totalorder %v3340_v49, 1  ;;  %vm11936_vm9 = vmmov %vm11920_vm0 }
 0x3a9   : > { %5455 = vmatprep.mubr.msk.f32.mxu0 %vm11920_vm0, %v3367_v52  ;;  %v3319_v16 = vpop.permute.xlu0 %3318  ;;  %v3376_v11 = vsel %vm3360_vm10, %v3280_v39, 0.0 }
 0x3aa   : > { %vm3353_vm8 = vcmp.eq.s32.totalorder %v3319_v16, 1 }
 0x3ab   : > { %v3369_v59 = vsel %vm3353_vm8, %v3273_v57, 0.0  ;;  %v3346_v50 = vpop.permute.xlu1 %3345 }
 0x3ac   : > { %5456 = vmatmul.mubr.msk.f32.gmra.mrb[4].mxu0 %vm11930_vm13, %v3368_v40  ;;  %vm3362_vm6 = vcmp.eq.s32.totalorder %v3346_v50, 1  ;;  %vm11937_vm13 = vmmov %vm11920_vm0 }
 0x3ad   : > { %5458 = vmatprep.mubr.msk.f32.mxu0 %vm11931_vm14, %v3369_v59  ;;  %v3325_v28 = vpop.permute.xlu0 %3324  ;;  %vm11938_vm14 = vmmov %vm11920_vm0  ;;  %v3378_v30 = vsel %vm3362_vm6, %v3282_v13, 0.0 }
 0x3ae   : > { %vm3355_vm2 = vcmp.eq.s32.totalorder %v3325_v28, 1 }
 0x3af   : > { %v3371_v55 = vsel %vm3355_vm2, %v3275_v24, 0.0  ;;  %vm11939_vm2 = vmmov %vm11920_vm0 }
 0x3b0   : > { %5459 = vmatmul.mubr.msk.f32.gmra.mrb[6].mxu0 %vm11932_vm1, %v3370_v14 }
 0x3b1   : > { %5461 = vmatprep.mubr.msk.f32.mxu0 %vm11933_vm3, %v3371_v55  ;;  %v3331_v3 = vpop.permute.xlu0 %3330 }
 0x3b2   : > { %vm3357_vm12 = vcmp.eq.s32.totalorder %v3331_v3, 1 }
 0x3b3   : > { %v3373_v61 = vsel %vm3357_vm12, %v3277_v44, 0.0 }
 0x3b4   : > { %5462 = vmatmul.mubr.msk.f32.gmra.mrb[8].mxu0 %vm11934_vm5, %v3372_v1 }
 0x3b5   : > { %5464 = vmatprep.mubr.msk.f32.mxu0 %vm11935_vm15, %v3373_v61  ;;  %v3337_v31 = vpop.permute.xlu0 %3336 }
 0x3b6   : > { %vm3359_vm11 = vcmp.eq.s32.totalorder %v3337_v31, 1 }
 0x3b7   : > { %v3375_v47 = vsel %vm3359_vm11, %v3279_v15, 0.0 }
 0x3b8   : > { %5465 = vmatmul.mubr.msk.f32.gmra.mrb[10].mxu0 %vm11936_vm9, %v3374_v12 }
 0x3b9   : > { %5467 = vmatprep.mubr.msk.f32.mxu0 %vm11920_vm0, %v3375_v47  ;;  %v3343_v43 = vpop.permute.xlu0 %3342 }
 0x3ba   : > { %vm3361_vm8 = vcmp.eq.s32.totalorder %v3343_v43, 1 }
 0x3bb   : > { %v3377_v45 = vsel %vm3361_vm8, %v3281_v6, 0.0 }
 0x3bc   : > { %5468 = vmatmul.mubr.msk.f32.gmra.mrb[12].mxu0 %vm11937_vm13, %v3376_v11 }
 0x3bd   : > { %5470 = vmatprep.mubr.msk.f32.mxu0 %vm11938_vm14, %v3377_v45 }
 0x3c0   : > { %5471 = vmatmul.mubr.msk.f32.gmra.mrb[14].mxu0 %vm11939_vm2, %v3378_v30 }
 0x477   : > { %v5451_v2 = vpop.f32.mrb[0].mxu0 }
 0x478   : > { %v4010_v23 = vadd.f32 %v5451_v2, %v9974_v54  ;;  %v3907_v60 = vpop.f32.mrb[1].mxu0 }
 0x479   : > { %v4009_v34 = vadd.f32 %v9974_v54, %v3907_v60 }
 0x47a   : > { %v4026_v63 = vmul.f32 0.2, %v4010_v23 }
 0x47b   : > { %v4025_v10 = vmul.f32 0.2, %v4009_v34  ;;  %v5454_v22 = vpop.f32.mrb[2].mxu0 }
 0x47c   : > { %v4012_v19 = vadd.f32 %v5454_v22, %v9974_v54  ;;  %v3917_v4 = vpop.f32.mrb[3].mxu0  ;;  %v4042_v46 = vmax.f32 %v4010_v23, %v4026_v63  ;;  %v4530_v63 = vld [vmem:[%s10152_s12] sm:$0xff] }
 0x47d   : > { %v4011_v33 = vadd.f32 %v9974_v54, %v3917_v4  ;;  %v4041_v18 = vmax.f32 %v4009_v34, %v4025_v10  ;;  %v10023_v22 = vld [vmem:[%s10149_s9] ss:$0 sm:$0xff] }
 0x47e   : > { %v4028_v17 = vmul.f32 0.2, %v4012_v19 }
 0x47f   : > { %v4027_v0 = vmul.f32 0.2, %v4011_v33  ;;  %v5457_v48 = vpop.f32.mrb[4].mxu0  ;;  %5481 = vmatprep.mubr.msk.f32.mxu1 %vm4068_vm4, %v4041_v18 }
 0x480   : > { %v4014_v62 = vadd.f32 %v5457_v48, %v9974_v54  ;;  %v3927_v7 = vpop.f32.mrb[5].mxu0  ;;  %5482 = vmatmul.mubr.msk.f32.vlgmr.msra.gmra.mrb[0].mxu1 %vm4068_vm4, %v4042_v46  ;;  %v4044_v5 = vmax.f32 %v4012_v19, %v4028_v17  ;;  %v4532_v17 = vld [vmem:[%s10152_s12 + $0x10] sm:$0xff] }
 0x481   : > { %v4043_v53 = vmax.f32 %v4011_v33, %v4027_v0  ;;  %v4013_v52 = vadd.f32 %v9974_v54, %v3927_v7  ;;  %5656 = vmatpush3.bf16.msra.mxu1 %v5653_v25 }
 0x482   : > { %v4030_v57 = vmul.f32 0.2, %v4014_v62  ;;  %5658 = vmatprep.subr.bf16.mxu1 %v5657_v8 }
 0x483   : > { %v4029_v26 = vmul.f32 0.2, %v4013_v52  ;;  %v5460_v16 = vpop.f32.mrb[6].mxu0  ;;  %5484 = vmatprep.mubr.msk.f32.mxu1 %vm4068_vm4, %v4043_v53 }
 0x484   : > { %v4016_v40 = vadd.f32 %v5460_v16, %v9974_v54  ;;  %v3937_v59 = vpop.f32.mrb[7].mxu0  ;;  %5485 = vmatmul.mubr.msk.f32.gmra.mrb[2].mxu1 %vm4068_vm4, %v4044_v5  ;;  %v4046_v42 = vmax.f32 %v4014_v62, %v4030_v57 }
 0x485   : > { %v4045_v9 = vmax.f32 %v4013_v52, %v4029_v26  ;;  %v4015_v24 = vadd.f32 %v9974_v54, %v3937_v59  ;;  %5660 = vmatpush3.bf16.msra.mxu1 %v5657_v8  ;;  %v4533_v8 = vld [vmem:[%s10152_s12 + $0x18] sm:$0xff] }
 0x486   : > { %v4032_v28 = vmul.f32 0.2, %v4016_v40  ;;  %v5665_v5 = vpack.c.bf16 %v4533_v8, %v4532_v17 }
 0x487   : > { %v4031_v14 = vmul.f32 0.2, %v4015_v24  ;;  %v5463_v55 = vpop.f32.mrb[8].mxu0  ;;  %5487 = vmatprep.mubr.msk.f32.mxu1 %vm4068_vm4, %v4045_v9 }
 0x488   : > { %v4018_v58 = vadd.f32 %v5463_v55, %v9974_v54  ;;  %v3947_v44 = vpop.f32.mrb[9].mxu0  ;;  %5488 = vmatmul.mubr.msk.f32.gmra.mrb[4].mxu1 %vm4068_vm4, %v4046_v42  ;;  %v4048_v1 = vmax.f32 %v4016_v40, %v4032_v28 }
 0x489   : > { %v4047_v41 = vmax.f32 %v4015_v24, %v4031_v14  ;;  %v4017_v3 = vadd.f32 %v9974_v54, %v3947_v44 }
 0x48a   : > { %v4034_v61 = vmul.f32 0.2, %v4018_v58 }
 0x48b   : > { %v4033_v37 = vmul.f32 0.2, %v4017_v3  ;;  %v5466_v15 = vpop.f32.mrb[10].mxu0  ;;  %5490 = vmatprep.mubr.msk.f32.mxu1 %vm4068_vm4, %v4047_v41 }
 0x48c   : > { %v4020_v49 = vadd.f32 %v5466_v15, %v9974_v54  ;;  %v3957_v31 = vpop.f32.mrb[11].mxu0  ;;  %5491 = vmatmul.mubr.msk.f32.gmra.mrb[6].mxu1 %vm4068_vm4, %v4048_v1  ;;  %v4050_v39 = vmax.f32 %v4018_v58, %v4034_v61 }
 0x48d   : > { %v4049_v12 = vmax.f32 %v4017_v3, %v4033_v37  ;;  %v4019_v47 = vadd.f32 %v9974_v54, %v3957_v31 }
 0x48e   : > { %v4036_v6 = vmul.f32 0.2, %v4020_v49 }
 0x48f   : > { %v4035_v50 = vmul.f32 0.2, %v4019_v47  ;;  %v5469_v43 = vpop.f32.mrb[12].mxu0  ;;  %5493 = vmatprep.mubr.msk.f32.mxu1 %vm4068_vm4, %v4049_v12 }
 0x490   : > { %v4022_v11 = vadd.f32 %v5469_v43, %v9974_v54  ;;  %v3967_v45 = vpop.f32.mrb[13].mxu0  ;;  %5494 = vmatmul.mubr.msk.f32.gmra.mrb[8].mxu1 %vm4068_vm4, %v4050_v39  ;;  %v4052_v56 = vmax.f32 %v4020_v49, %v4036_v6 }
 0x491   : > { %v4051_v13 = vmax.f32 %v4019_v47, %v4035_v50  ;;  %v4021_v30 = vadd.f32 %v9974_v54, %v3967_v45 }
 0x492   : > { %v4038_v21 = vmul.f32 0.2, %v4022_v11 }
 0x493   : > { %v4037_v20 = vmul.f32 0.2, %v4021_v30  ;;  %v5472_v27 = vpop.f32.mrb[14].mxu0  ;;  %5496 = vmatprep.mubr.msk.f32.mxu1 %vm4068_vm4, %v4051_v13 }
 0x494   : > { %v4024_v38 = vadd.f32 %v5472_v27, %v9974_v54  ;;  %v3977_v32 = vpop.f32.mrb[15].mxu0  ;;  %5497 = vmatmul.mubr.msk.f32.gmra.mrb[10].mxu1 %vm4068_vm4, %v4052_v56  ;;  %v4054_v25 = vmax.f32 %v4022_v11, %v4038_v21 }
 0x495   : > { %v4053_v36 = vmax.f32 %v4021_v30, %v4037_v20  ;;  %v4023_v35 = vadd.f32 %v9974_v54, %v3977_v32  ;;  %v4531_v54 = vld [vmem:[%s10152_s12 + $0x8] sm:$0xff] }
 0x496   : > { %v4040_v2 = vmul.f32 0.2, %v4024_v38  ;;  %v5661_v10 = vpack.c.bf16 %v4531_v54, %v4530_v63 }
 0x497   : > { %v4039_v23 = vmul.f32 0.2, %v4023_v35  ;;  %5499 = vmatprep.mubr.msk.f32.mxu1 %vm4068_vm4, %v4053_v36 }
 0x498   : > { %5500 = vmatmul.mubr.msk.f32.gmra.mrb[12].mxu1 %vm4068_vm4, %v4054_v25  ;;  %v4056_v34 = vmax.f32 %v4024_v38, %v4040_v2  ;;  %5662 = vmatprep.subr.bf16.mxu1 %v5661_v10 }
 0x499   : > { %v4055_v60 = vmax.f32 %v4023_v35, %v4039_v23 }
 0x49b   : > { %5502 = vmatprep.mubr.msk.f32.mxu1 %vm4068_vm4, %v4055_v60 }
 0x49c   : > { %5503 = vmatmul.mubr.msk.f32.gmra.mrb[14].mxu1 %vm4068_vm4, %v4056_v34 }
 0x553   : > { %v5483_v51 = vpop.f32.mrb[0].mxu1 }
 0x554   : > { %v4189_v29 = vadd.f32 %v5483_v51, %v10023_v22  ;;  %v4183_v19 = vpop.f32.mrb[1].mxu1 }
 0x555   : > { %v4184_v4 = vadd.f32 %v10023_v22, %v4183_v19 }
 0x556   : > { %v4263_v33 = vmul.f32 0.2, %v4189_v29 }
 0x557   : > { %v4262_v18 = vmul.f32 0.2, %v4184_v4  ;;  %v5486_v46 = vpop.f32.mrb[2].mxu1 }
 0x558   : > { %v4199_v0 = vadd.f32 %v5486_v46, %v10023_v22  ;;  %v4193_v48 = vpop.f32.mrb[3].mxu1  ;;  %v4279_v53 = vmax.f32 %v4189_v29, %v4263_v33  ;;  %v10066_v33 = vld [vmem:[%s11940_s21] ss:$0 sm:$0xff] }
 0x559   : > { %v4278_v62 = vmax.f32 %v4184_v4, %v4262_v18  ;;  %v4194_v7 = vadd.f32 %v10023_v22, %v4193_v48 }
 0x55a   : > { %v4265_v52 = vmul.f32 0.2, %v4199_v0 }
 0x55b   : > { %v4264_v57 = vmul.f32 0.2, %v4194_v7  ;;  %v5489_v26 = vpop.f32.mrb[4].mxu1  ;;  %5513 = vmatprep.mubr.msk.f32.mxu1 %vm4068_vm4, %v4278_v62 }
 0x55c   : > { %v4209_v16 = vadd.f32 %v5489_v26, %v10023_v22  ;;  %v4203_v40 = vpop.f32.mrb[5].mxu1  ;;  %5514 = vmatmul.mubr.msk.f32.vlgmr.msra.gmra.mrb[16].mxu1 %vm4068_vm4, %v4279_v53  ;;  %v4281_v24 = vmax.f32 %v4199_v0, %v4265_v52 }
 0x55d   : > { %v4280_v59 = vmax.f32 %v4194_v7, %v4264_v57  ;;  %v4204_v9 = vadd.f32 %v10023_v22, %v4203_v40  ;;  %5664 = vmatpush3.bf16.msra.mxu1 %v5661_v10 }
 0x55e   : > { %v4267_v42 = vmul.f32 0.2, %v4209_v16  ;;  %5666 = vmatprep.subr.bf16.mxu1 %v5665_v5 }
 0x55f   : > { %v4266_v28 = vmul.f32 0.2, %v4204_v9  ;;  %v5492_v14 = vpop.f32.mrb[6].mxu1  ;;  %5516 = vmatprep.mubr.msk.f32.mxu1 %vm4068_vm4, %v4280_v59 }
 0x560   : > { %v4219_v55 = vadd.f32 %v5492_v14, %v10023_v22  ;;  %v4213_v58 = vpop.f32.mrb[7].mxu1  ;;  %5517 = vmatmul.mubr.msk.f32.gmra.mrb[18].mxu1 %vm4068_vm4, %v4281_v24  ;;  %v4283_v3 = vmax.f32 %v4209_v16, %v4267_v42 }
 0x561   : > { %v4282_v44 = vmax.f32 %v4204_v9, %v4266_v28  ;;  %v4214_v41 = vadd.f32 %v10023_v22, %v4213_v58  ;;  %5668 = vmatpush3.bf16.msra.mxu1 %v5665_v5 }
 0x562   : > { %v4269_v1 = vmul.f32 0.2, %v4219_v55 }
 0x563   : > { %v4268_v61 = vmul.f32 0.2, %v4214_v41  ;;  %v5495_v37 = vpop.f32.mrb[8].mxu1  ;;  %5519 = vmatprep.mubr.msk.f32.mxu1 %vm4068_vm4, %v4282_v44 }
 0x564   : > { %v4229_v15 = vadd.f32 %v5495_v37, %v10023_v22  ;;  %v4223_v49 = vpop.f32.mrb[9].mxu1  ;;  %5520 = vmatmul.mubr.msk.f32.gmra.mrb[20].mxu1 %vm4068_vm4, %v4283_v3  ;;  %v4285_v47 = vmax.f32 %v4219_v55, %v4269_v1 }
 0x565   : > { %v4284_v31 = vmax.f32 %v4214_v41, %v4268_v61  ;;  %v4224_v12 = vadd.f32 %v10023_v22, %v4223_v49 }
 0x566   : > { %v4271_v39 = vmul.f32 0.2, %v4229_v15 }
 0x567   : > { %v4270_v6 = vmul.f32 0.2, %v4224_v12  ;;  %v5498_v50 = vpop.f32.mrb[10].mxu1  ;;  %5522 = vmatprep.mubr.msk.f32.mxu1 %vm4068_vm4, %v4284_v31 }
 0x568   : > { %v4239_v43 = vadd.f32 %v5498_v50, %v10023_v22  ;;  %v4233_v11 = vpop.f32.mrb[11].mxu1  ;;  %5523 = vmatmul.mubr.msk.f32.gmra.mrb[22].mxu1 %vm4068_vm4, %v4285_v47  ;;  %v4287_v30 = vmax.f32 %v4229_v15, %v4271_v39 }
 0x569   : > { %v4286_v45 = vmax.f32 %v4224_v12, %v4270_v6  ;;  %v4234_v13 = vadd.f32 %v10023_v22, %v4233_v11 }
 0x56a   : > { %v4273_v56 = vmul.f32 0.2, %v4239_v43 }
 0x56b   : > { %v4272_v21 = vmul.f32 0.2, %v4234_v13  ;;  %v5501_v20 = vpop.f32.mrb[12].mxu1  ;;  %5525 = vmatprep.mubr.msk.f32.mxu1 %vm4068_vm4, %v4286_v45 }
 0x56c   : > { %v4249_v27 = vadd.f32 %v5501_v20, %v10023_v22  ;;  %v4243_v38 = vpop.f32.mrb[13].mxu1  ;;  %5526 = vmatmul.mubr.msk.f32.gmra.mrb[24].mxu1 %vm4068_vm4, %v4287_v30  ;;  %v4289_v35 = vmax.f32 %v4239_v43, %v4273_v56 }
 0x56d   : > { %v4288_v32 = vmax.f32 %v4234_v13, %v4272_v21  ;;  %v4244_v36 = vadd.f32 %v10023_v22, %v4243_v38 }
 0x56e   : > { %v4275_v25 = vmul.f32 0.2, %v4249_v27 }
 0x56f   : > { %v4274_v2 = vmul.f32 0.2, %v4244_v36  ;;  %v5504_v23 = vpop.f32.mrb[14].mxu1  ;;  %5528 = vmatprep.mubr.msk.f32.mxu1 %vm4068_vm4, %v4288_v32 }
 0x570   : > { %v4259_v60 = vadd.f32 %v5504_v23, %v10023_v22  ;;  %v4253_v34 = vpop.f32.mrb[15].mxu1  ;;  %5529 = vmatmul.mubr.msk.f32.gmra.mrb[26].mxu1 %vm4068_vm4, %v4289_v35  ;;  %v4291_v10 = vmax.f32 %v4249_v27, %v4275_v25 }
 0x571   : > { %v4290_v63 = vmax.f32 %v4244_v36, %v4274_v2  ;;  %v4254_v54 = vadd.f32 %v10023_v22, %v4253_v34 }
 0x572   : > { %v4277_v51 = vmul.f32 0.2, %v4259_v60 }
 0x573   : > { %v4276_v29 = vmul.f32 0.2, %v4254_v54  ;;  %5531 = vmatprep.mubr.msk.f32.mxu1 %vm4068_vm4, %v4290_v63 }
 0x574   : > { %5532 = vmatmul.mubr.msk.f32.gmra.mrb[28].mxu1 %vm4068_vm4, %v4291_v10  ;;  %v4293_v4 = vmax.f32 %v4259_v60, %v4277_v51 }
 0x575   : > { %v4292_v19 = vmax.f32 %v4254_v54, %v4276_v29 }
 0x577   : > { %5534 = vmatprep.mubr.msk.f32.mxu1 %vm4068_vm4, %v4292_v19 }
 0x578   : > { %5535 = vmatmul.mubr.msk.f32.gmra.mrb[30].mxu1 %vm4068_vm4, %v4293_v4 }
 0x62f   : > { %v5515_v18 = vpop.f32.mrb[16].mxu1 }
 0x630   : > { %v4425_v22 = vadd.f32 %v5515_v18, %v10066_v33  ;;  %v4419_v46 = vpop.f32.mrb[17].mxu1 }
 0x631   : > { %v4420_v17 = vadd.f32 %v10066_v33, %v4419_v46 }
 0x632   : > { %v4499_v8 = vmul.f32 0.2, %v4425_v22 }
 0x633   : > { %v4498_v0 = vmul.f32 0.2, %v4420_v17  ;;  %v5518_v48 = vpop.f32.mrb[18].mxu1 }
 0x634   : > { %v4435_v62 = vadd.f32 %v5518_v48, %v10066_v33  ;;  %v4429_v7 = vpop.f32.mrb[19].mxu1  ;;  %v4515_v5 = vmax.f32 %v4425_v22, %v4499_v8 }
 0x635   : > { %v4514_v53 = vmax.f32 %v4420_v17, %v4498_v0  ;;  %v4430_v52 = vadd.f32 %v10066_v33, %v4429_v7 }
 0x636   : > { %v4501_v57 = vmul.f32 0.2, %v4435_v62 }
 0x637   : > { %v4500_v26 = vmul.f32 0.2, %v4430_v52  ;;  %v5521_v16 = vpop.f32.mrb[20].mxu1  ;;  %5545 = vmatprep.mubr.msk.f32.mxu1 %vm4068_vm4, %v4514_v53 }
 0x638   : > { %v4445_v40 = vadd.f32 %v5521_v16, %v10066_v33  ;;  %v4439_v59 = vpop.f32.mrb[21].mxu1  ;;  %5546 = vmatmul.mubr.msk.f32.vlgmr.msra.gmra.mrb[32].mxu1 %vm4068_vm4, %v4515_v5  ;;  %v4517_v42 = vmax.f32 %v4435_v62, %v4501_v57 }
 0x639   : > { %v4516_v9 = vmax.f32 %v4430_v52, %v4500_v26  ;;  %v4440_v24 = vadd.f32 %v10066_v33, %v4439_v59 }
 0x63a   : > { %v4503_v28 = vmul.f32 0.2, %v4445_v40 }
 0x63b   : > { %v4502_v14 = vmul.f32 0.2, %v4440_v24  ;;  %v5524_v55 = vpop.f32.mrb[22].mxu1  ;;  %5548 = vmatprep.mubr.msk.f32.mxu1 %vm4068_vm4, %v4516_v9 }
 0x63c   : > { %v4455_v58 = vadd.f32 %v5524_v55, %v10066_v33  ;;  %v4449_v44 = vpop.f32.mrb[23].mxu1  ;;  %5549 = vmatmul.mubr.msk.f32.gmra.mrb[34].mxu1 %vm4068_vm4, %v4517_v42  ;;  %v4519_v1 = vmax.f32 %v4445_v40, %v4503_v28 }
 0x63d   : > { %v4518_v41 = vmax.f32 %v4440_v24, %v4502_v14  ;;  %v4450_v3 = vadd.f32 %v10066_v33, %v4449_v44 }
 0x63e   : > { %v4505_v61 = vmul.f32 0.2, %v4455_v58 }
 0x63f   : > { %v4504_v37 = vmul.f32 0.2, %v4450_v3  ;;  %v5527_v15 = vpop.f32.mrb[24].mxu1  ;;  %5551 = vmatprep.mubr.msk.f32.mxu1 %vm4068_vm4, %v4518_v41 }
 0x640   : > { %v4465_v49 = vadd.f32 %v5527_v15, %v10066_v33  ;;  %v4459_v31 = vpop.f32.mrb[25].mxu1  ;;  %5552 = vmatmul.mubr.msk.f32.gmra.mrb[36].mxu1 %vm4068_vm4, %v4519_v1  ;;  %v4521_v39 = vmax.f32 %v4455_v58, %v4505_v61 }
 0x641   : > { %v4520_v12 = vmax.f32 %v4450_v3, %v4504_v37  ;;  %v4460_v47 = vadd.f32 %v10066_v33, %v4459_v31 }
 0x642   : > { %v4507_v6 = vmul.f32 0.2, %v4465_v49 }
 0x643   : > { %v4506_v50 = vmul.f32 0.2, %v4460_v47  ;;  %v5530_v43 = vpop.f32.mrb[26].mxu1  ;;  %5554 = vmatprep.mubr.msk.f32.mxu1 %vm4068_vm4, %v4520_v12 }
 0x644   : > { %v4475_v11 = vadd.f32 %v5530_v43, %v10066_v33  ;;  %v4469_v45 = vpop.f32.mrb[27].mxu1  ;;  %5555 = vmatmul.mubr.msk.f32.gmra.mrb[38].mxu1 %vm4068_vm4, %v4521_v39  ;;  %v4523_v56 = vmax.f32 %v4465_v49, %v4507_v6 }
 0x645   : > { %v4522_v13 = vmax.f32 %v4460_v47, %v4506_v50  ;;  %v4470_v30 = vadd.f32 %v10066_v33, %v4469_v45 }
 0x646   : > { %v4509_v21 = vmul.f32 0.2, %v4475_v11 }
 0x647   : > { %v4508_v20 = vmul.f32 0.2, %v4470_v30  ;;  %v5533_v27 = vpop.f32.mrb[28].mxu1  ;;  %5557 = vmatprep.mubr.msk.f32.mxu1 %vm4068_vm4, %v4522_v13 }
 0x648   : > { %v4485_v38 = vadd.f32 %v5533_v27, %v10066_v33  ;;  %v4479_v32 = vpop.f32.mrb[29].mxu1  ;;  %5558 = vmatmul.mubr.msk.f32.gmra.mrb[40].mxu1 %vm4068_vm4, %v4523_v56  ;;  %v4525_v25 = vmax.f32 %v4475_v11, %v4509_v21 }
 0x649   : > { %v4524_v36 = vmax.f32 %v4470_v30, %v4508_v20  ;;  %v4480_v35 = vadd.f32 %v10066_v33, %v4479_v32 }
 0x64a   : > { %v4511_v2 = vmul.f32 0.2, %v4485_v38 }
 0x64b   : > { %v4510_v23 = vmul.f32 0.2, %v4480_v35  ;;  %v5536_v60 = vpop.f32.mrb[30].mxu1  ;;  %5560 = vmatprep.mubr.msk.f32.mxu1 %vm4068_vm4, %v4524_v36 }
 0x64c   : > { %v4495_v34 = vadd.f32 %v5536_v60, %v10066_v33  ;;  %v4489_v63 = vpop.f32.mrb[31].mxu1  ;;  %5561 = vmatmul.mubr.msk.f32.gmra.mrb[42].mxu1 %vm4068_vm4, %v4525_v25  ;;  %v4527_v51 = vmax.f32 %v4485_v38, %v4511_v2 }
 0x64d   : > { %v4526_v54 = vmax.f32 %v4480_v35, %v4510_v23  ;;  %v4490_v10 = vadd.f32 %v10066_v33, %v4489_v63  ;;  %v5098_v33 = vld [vmem:[%s11941_s25] ss:$0 sm:$0xff] }
 0x64e   : > { %v4513_v29 = vmul.f32 0.2, %v4495_v34 }
 0x64f   : > { %v4512_v19 = vmul.f32 0.2, %v4490_v10  ;;  %5563 = vmatprep.mubr.msk.f32.mxu1 %vm4068_vm4, %v4526_v54 }
 0x650   : > { %5564 = vmatmul.mubr.msk.f32.gmra.mrb[44].mxu1 %vm4068_vm4, %v4527_v51  ;;  %v4529_v18 = vmax.f32 %v4495_v34, %v4513_v29 }
 0x651   : > { %v4528_v4 = vmax.f32 %v4490_v10, %v4512_v19 }
 0x653   : > { %5566 = vmatprep.mubr.msk.f32.mxu1 %vm4068_vm4, %v4528_v4 }
 0x654   : > { %5567 = vmatmul.mubr.msk.f32.gmra.mrb[46].mxu1 %vm4068_vm4, %v4529_v18 }
 0x70b   : > { %v5547_v22 = vpop.f32.mrb[32].mxu1 }
 0x70c   : > { %v4661_v46 = vadd.f32 %v5547_v22, %v5098_v33  ;;  %v4655_v17 = vpop.f32.mrb[33].mxu1 }
 0x70d   : > { %v4656_v8 = vadd.f32 %v5098_v33, %v4655_v17 }
 0x70e   : > { %4735 = vst [vmem:[%s5987_s27 + $0x8] sm:$0xff] %v4661_v46 }
 0x70f   : > { %4734 = vst [vmem:[%s5987_s27] sm:$0xff] %v4656_v8  ;;  %v5550_v0 = vpop.f32.mrb[34].mxu1 }
 0x710   : > { %v4671_v48 = vadd.f32 %v5550_v0, %v5098_v33  ;;  %v4665_v62 = vpop.f32.mrb[35].mxu1 }
 0x711   : > { %v4666_v7 = vadd.f32 %v5098_v33, %v4665_v62 }
 0x712   : > { %4737 = vst [vmem:[%s5987_s27 + $0x18] sm:$0xff] %v4671_v48 }
 0x713   : > { %4736 = vst [vmem:[%s5987_s27 + $0x10] sm:$0xff] %v4666_v7  ;;  %v5553_v53 = vpop.f32.mrb[36].mxu1 }
 0x714   : > { %v4681_v52 = vadd.f32 %v5553_v53, %v5098_v33  ;;  %v4675_v5 = vpop.f32.mrb[37].mxu1 }
 0x715   : > { %v4676_v57 = vadd.f32 %v5098_v33, %v4675_v5 }
 0x716   : > { %4739 = vst [vmem:[%s5987_s27 + $0x28] sm:$0xff] %v4681_v52 }
 0x717   : > { %4738 = vst [vmem:[%s5987_s27 + $0x20] sm:$0xff] %v4676_v57  ;;  %v5556_v26 = vpop.f32.mrb[38].mxu1 }
 0x718   : > { %v4691_v16 = vadd.f32 %v5556_v26, %v5098_v33  ;;  %v4685_v40 = vpop.f32.mrb[39].mxu1 }
 0x719   : > { %v4686_v59 = vadd.f32 %v5098_v33, %v4685_v40 }
 0x71a   : > { %4741 = vst [vmem:[%s5987_s27 + $0x38] sm:$0xff] %v4691_v16 }
 0x71b   : > { %4740 = vst [vmem:[%s5987_s27 + $0x30] sm:$0xff] %v4686_v59  ;;  %v5559_v9 = vpop.f32.mrb[40].mxu1 }
 0x71c   : > { %v4701_v24 = vadd.f32 %v5559_v9, %v5098_v33  ;;  %v4695_v42 = vpop.f32.mrb[41].mxu1 }
 0x71d   : > { %v4696_v28 = vadd.f32 %v5098_v33, %v4695_v42 }
 0x71e   : > { %4743 = vst [vmem:[%s5987_s27 + $0x48] sm:$0xff] %v4701_v24 }
 0x71f   : > { %4742 = vst [vmem:[%s5987_s27 + $0x40] sm:$0xff] %v4696_v28  ;;  %v5562_v14 = vpop.f32.mrb[42].mxu1 }
 0x720   : > { %v4711_v55 = vadd.f32 %v5562_v14, %v5098_v33  ;;  %v4705_v58 = vpop.f32.mrb[43].mxu1 }
 0x721   : > { %v4706_v44 = vadd.f32 %v5098_v33, %v4705_v58 }
 0x722   : > { %4745 = vst [vmem:[%s5987_s27 + $0x58] sm:$0xff] %v4711_v55 }
 0x723   : > { %4744 = vst [vmem:[%s5987_s27 + $0x50] sm:$0xff] %v4706_v44  ;;  %v5565_v41 = vpop.f32.mrb[44].mxu1 }
 0x724   : > { %v4721_v3 = vadd.f32 %v5565_v41, %v5098_v33  ;;  %v4715_v1 = vpop.f32.mrb[45].mxu1 }
 0x725   : > { %v4716_v61 = vadd.f32 %v5098_v33, %v4715_v1 }
 0x726   : > { %4747 = vst [vmem:[%s5987_s27 + $0x68] sm:$0xff] %v4721_v3 }
 0x727   : > { %4746 = vst [vmem:[%s5987_s27 + $0x60] sm:$0xff] %v4716_v61  ;;  %v5568_v37 = vpop.f32.mrb[46].mxu1 }
 0x728   : > { %v4731_v15 = vadd.f32 %v5568_v37, %v5098_v33  ;;  %v4725_v49 = vpop.f32.mrb[47].mxu1 }
 0x729   : > { %v4726_v31 = vadd.f32 %v5098_v33, %v4725_v49 }
 0x72a   : > { %4749 = vst [vmem:[%s5987_s27 + $0x78] sm:$0xff] %v4731_v15 }
 0x72b   : > { %4748 = vst [vmem:[%s5987_s27 + $0x70] sm:$0xff] %v4726_v31 }
 0x72c PF: > { %s11942_s26 = sld [smem:[#allocation8_spill]]  ;;  %s11943_s29 = sld [smem:[#allocation5_spill]] }
 0x72d   : > { %s11944_s30 = sld [smem:[#allocation11_spill]]  ;;  %s11945_s15 = sld [smem:[#allocation6_spill]] }
 0x72e   : > { %s11946_s16 = sld [smem:[#allocation7_spill]]  ;;  %s11947_s17 = sld [smem:[#allocation9_spill]] }
 0x72f   : > { %s11948_s18 = sld [smem:[#allocation10_spill]] }
 0x732   : > { %s24_s19 = sadd.s32 1, %s11942_s26  }
 0x733   : > { %p21_p1 = scmp.ge.s32.totalorder %s24_s19, 6  }
 0x735   :  { %23 = sbr.rel (!%p21_p1) target bundleno = 8 (0x8), region = 160 }

</bundles_post_ra>
